<compile_context>
chip_gen: v6e
topology: v6e:2x2x1
jax: 0.10.0
libtpu: 0.0.40
codegen_flags: <defaults>
</compile_context>

<pallas_src>
import functools
import math
from types import SimpleNamespace

import jax
import jax.numpy as jnp
from jax.experimental import pallas as pl
from jax.experimental.pallas import tpu as pltpu

BN_EPS = 1e-5
MM_DTYPE = jnp.bfloat16          # MXU operand dtype; accumulation stays float32.
ACT_DTYPE = jnp.bfloat16         # storage dtype of intra-block activations.
VMEM_LIMIT = 32 * 1024 * 1024    # explicit scoped-VMEM budget (fits v5e/v6e/v7x).


# ----------------------------------------------------------------------------- Pallas kernels
def _conv1x1_kernel(*refs, relu, prologue):
    """Per-image rows: y = [relu(x*scale+shift)] @ W, plus per-image sum / sumsq of y."""
    if prologue:
        x_ref, sc_ref, sh_ref, w_ref, y_ref, s_ref, q_ref = refs
        x = x_ref[0] * sc_ref[...] + sh_ref[...]          # f32 elementwise (v5e-friendly)
        if relu:
            x = jnp.maximum(x, 0.0)
    else:
        x_ref, w_ref, y_ref, s_ref, q_ref = refs
        x = x_ref[0]
    y = jnp.dot(x.astype(MM_DTYPE), w_ref[...], preferred_element_type=jnp.float32)
    y_ref[0] = y.astype(y_ref.dtype)
    s_ref[0] = jnp.sum(y, axis=0, keepdims=True)
    q_ref[0] = jnp.sum(y * y, axis=0, keepdims=True)


def _conv_tap_kernel(*refs, taps, ho, wo, pad, relu, prologue, padded):
    """Implicit-GEMM k x k conv on one image.

    Per tap (dy, dx): one (ho*Wp, Cs) @ (Cs, Cout) MXU matmul over a full row slab,
    whose dx-shifted column slice is added to a single f32 accumulator.  Optional BN
    affine + ReLU prologue and zero padding (into a VMEM scratch) are fused in."""
    i = 0
    x_ref = refs[i]; i += 1
    if prologue:
        sc_ref, sh_ref = refs[i], refs[i + 1]
        i += 2
    w_ref, y_ref, s_ref, q_ref = refs[i], refs[i + 1], refs[i + 2], refs[i + 3]
    xp_ref = refs[i + 4] if padded else None

    hs, ws, cs = x_ref.shape[1], x_ref.shape[2], x_ref.shape[3]
    cout = w_ref.shape[2]

    x = x_ref[0]
    if prologue:                                          # fused BN affine + ReLU
        x = x * sc_ref[...] + sh_ref[...]
        if relu:
            x = jnp.maximum(x, 0.0)
    if padded:                                            # zero-pad in VMEM, no HBM copy
        xp_ref[...] = jnp.zeros(xp_ref.shape, xp_ref.dtype)
        xp_ref[pad:pad + hs, pad:pad + ws, :] = x.astype(xp_ref.dtype)
        x = xp_ref[...]
    hp, wp = x.shape[0], x.shape[1]
    # Single cast of the whole row-flattened image, hoisted out of the tap loop.
    x2 = x.reshape(hp * wp, cs).astype(MM_DTYPE)

    acc = jnp.zeros((ho, wo, cout), jnp.float32)
    for t, (dy, dx) in enumerate(taps):
        rows = x2[dy * wp:(dy + ho) * wp, :]                            # (ho*wp, cs)
        r = jnp.dot(rows, w_ref[t], preferred_element_type=jnp.float32)
        acc = acc + r.reshape(ho, wp, cout)[:, dx:dx + wo, :]
    # TODO(synk): at real ResNet-50 sizes keep `acc` in a VMEM scratch (or tile ho) and
    #             add a row-tile "parallel" grid axis so v7x's two TensorCores pipeline.
    y_ref[0] = acc.astype(y_ref.dtype)
    s_ref[...] = jnp.sum(acc, axis=(0, 1), keepdims=True)
    q_ref[...] = jnp.sum(acc * acc, axis=(0, 1), keepdims=True)


def _residual_affine_kernel(a_ref, sa_ref, ba_ref, b_ref, sb_ref, bb_ref, o_ref, *, relu):
    y = (a_ref[...] * sa_ref[...] + ba_ref[...]
         + b_ref[...] * sb_ref[...] + bb_ref[...])
    if relu:
        y = jnp.maximum(y, 0.0)
    o_ref[...] = y


def _maxpool_s1_kernel(x_ref, o_ref, *, k, ho, wo):
    r = None
    for dy in range(k):
        for dx in range(k):
            w = x_ref[0, dy:dy + ho, dx:dx + wo, :]
            r = w if r is None else jnp.maximum(r, w)
    o_ref[0] = r


def _maxpool_s2_kernel(x_ref, o_ref, *, k, ho, wo, c):
    """x_ref: (1, Hp/2, 2, Wp/2, 2C) free row-major view of the zero-padded image.
    Stride-2 windows become contiguous slices (no strided loads, no HBM phase copies)."""
    r = None
    for dy in range(k):
        for dx in range(k):
            w = x_ref[0, dy // 2:dy // 2 + ho, dy % 2,
                      dx // 2:dx // 2 + wo, (dx % 2) * c:(dx % 2) * c + c]
            r = w if r is None else jnp.maximum(r, w)
    o_ref[0] = r


def _pool_linear_kernel(x_ref, w_ref, b_ref, o_ref, *, inv_r):
    feat = jnp.sum(x_ref[...], axis=1) * inv_r            # fused adaptive avg-pool
    o_ref[...] = (jnp.dot(feat.astype(MM_DTYPE), w_ref[...],
                          preferred_element_type=jnp.float32) + b_ref[...])


# ----------------------------------------------------------------------------- kernel wrappers
def conv1x1_stats(x_rows, w_bf16, prologue=None, relu_prologue=True,
                  out_dtype=jnp.float32):
    """x_rows: (N, R, Cin); w: (Cin, Cout) bf16.  Optional fused per-channel affine(+ReLU)
    prologue.  Returns y (N, R, Cout) and per-channel (sum, sumsq) of the f32 output."""
    N, R, Cin = x_rows.shape
    Cout = w_bf16.shape[1]
    has_pro = prologue is not None
    args = [x_rows]
    in_specs = [pl.BlockSpec((1, R, Cin), lambda n: (n, 0, 0))]
    if has_pro:
        scale, shift = prologue
        args += [scale.reshape(1, Cin).astype(jnp.float32),
                 shift.reshape(1, Cin).astype(jnp.float32)]
        in_specs += [pl.BlockSpec((1, Cin), lambda n: (0, 0)),
                     pl.BlockSpec((1, Cin), lambda n: (0, 0))]
    args.append(w_bf16)
    in_specs.append(pl.BlockSpec((Cin, Cout), lambda n: (0, 0)))
    y, s, q = pl.pallas_call(
        functools.partial(_conv1x1_kernel, relu=relu_prologue, prologue=has_pro),
        grid=(N,),
        in_specs=in_specs,
        out_specs=(
            pl.BlockSpec((1, R, Cout), lambda n: (n, 0, 0)),
            pl.BlockSpec((1, 1, Cout), lambda n: (n, 0, 0)),
            pl.BlockSpec((1, 1, Cout), lambda n: (n, 0, 0)),
        ),
        out_shape=(
            jax.ShapeDtypeStruct((N, R, Cout), out_dtype),
            jax.ShapeDtypeStruct((N, 1, Cout), jnp.float32),
            jax.ShapeDtypeStruct((N, 1, Cout), jnp.float32),
        ),
        compiler_params=pltpu.CompilerParams(dimension_semantics=("parallel",),
                                             vmem_limit_bytes=VMEM_LIMIT),
    )(*args)
    return y, jnp.sum(s, axis=0)[0], jnp.sum(q, axis=0)[0]


def conv_tap_stats(src, w_taps_bf16, taps, ho, wo, *, pad=0, prologue=None, relu=True,
                   out_dtype=jnp.float32):
    """src: (N, Hs, Ws, Cs); w_taps: (T, Cs, Cout) bf16; taps: static (dy, dx) offsets
    into the (optionally in-kernel zero-padded) image."""
    N, Hs, Ws, Cs = src.shape
    T, _, Cout = w_taps_bf16.shape
    has_pro = prologue is not None
    hp = Hs + 2 * pad
    wp = Ws + 2 * pad
    wp += (-wp) % 8                      # keep row slabs sublane-aligned
    padded = (hp != Hs) or (wp != Ws)

    args = [src]
    in_specs = [pl.BlockSpec((1, Hs, Ws, Cs), lambda n: (n, 0, 0, 0))]
    if has_pro:
        scale, shift = prologue
        args += [scale.reshape(1, Cs).astype(jnp.float32),
                 shift.reshape(1, Cs).astype(jnp.float32)]
        in_specs += [pl.BlockSpec((1, Cs), lambda n: (0, 0)),
                     pl.BlockSpec((1, Cs), lambda n: (0, 0))]
    args.append(w_taps_bf16)
    in_specs.append(pl.BlockSpec((T, Cs, Cout), lambda n: (0, 0, 0)))
    scratch = [pltpu.VMEM((hp, wp, Cs), jnp.float32)] if padded else []

    y, s, q = pl.pallas_call(
        functools.partial(_conv_tap_kernel, taps=tuple(taps), ho=ho, wo=wo, pad=pad,
                          relu=relu, prologue=has_pro, padded=padded),
        grid=(N,),
        in_specs=in_specs,
        out_specs=(
            pl.BlockSpec((1, ho, wo, Cout), lambda n: (n, 0, 0, 0)),
            pl.BlockSpec((1, 1, Cout), lambda n: (n, 0, 0)),
            pl.BlockSpec((1, 1, Cout), lambda n: (n, 0, 0)),
        ),
        out_shape=(
            jax.ShapeDtypeStruct((N, ho, wo, Cout), out_dtype),
            jax.ShapeDtypeStruct((N, 1, Cout), jnp.float32),
            jax.ShapeDtypeStruct((N, 1, Cout), jnp.float32),
        ),
        scratch_shapes=scratch,
        compiler_params=pltpu.CompilerParams(dimension_semantics=("parallel",),
                                             vmem_limit_bytes=VMEM_LIMIT),
    )(*args)
    return y, jnp.sum(s, axis=0)[0], jnp.sum(q, axis=0)[0]


def pallas_residual_affine(a, sa, ba, b, sb, bb, relu=True):
    """out = relu(a*sa+ba + b*sb+bb): fuses BN3 affine + shortcut affine + add + ReLU.
    Uses a lane-dense 128-wide view when C < 128 so stores are unmasked."""
    N, R, C = a.shape
    if C % 128 != 0 and 128 % C == 0 and (R * C) % 128 == 0:
        cols = (R * C) // 128
        rep = 128 // C
        vec = lambda v: jnp.tile(v.astype(jnp.float32), rep).reshape(1, 1, 128)
        out = pl.pallas_call(
            functools.partial(_residual_affine_kernel, relu=relu),
            out_shape=jax.ShapeDtypeStruct((N, cols, 128), jnp.float32),
            compiler_params=pltpu.CompilerParams(vmem_limit_bytes=VMEM_LIMIT),
        )(a.reshape(N, cols, 128).astype(jnp.float32), vec(sa), vec(ba),
          b.reshape(N, cols, 128).astype(jnp.float32), vec(sb), vec(bb))
        return out.reshape(N, R, C)
    rs = lambda v: v.reshape(1, 1, C).astype(jnp.float32)
    return pl.pallas_call(
        functools.partial(_residual_affine_kernel, relu=relu),
        out_shape=jax.ShapeDtypeStruct((N, R, C), jnp.float32),
        compiler_params=pltpu.CompilerParams(vmem_limit_bytes=VMEM_LIMIT),
    )(a.astype(jnp.float32), rs(sa), rs(ba), b.astype(jnp.float32), rs(sb), rs(bb))


def pallas_maxpool_nonneg(h, k, stride, pad):
    """MaxPool2d over a NON-NEGATIVE (post-ReLU) input; zero padding is then exact."""
    N, H, W, C = h.shape
    ho = (H + 2 * pad - k) // stride + 1
    wo = (W + 2 * pad - k) // stride + 1
    xp = jnp.pad(h, ((0, 0), (pad, pad), (pad, pad), (0, 0))) if pad else h
    if stride == 1:
        Hp, Wp = xp.shape[1], xp.shape[2]
        return pl.pallas_call(
            functools.partial(_maxpool_s1_kernel, k=k, ho=ho, wo=wo),
            grid=(N,),
            in_specs=[pl.BlockSpec((1, Hp, Wp, C), lambda n: (n, 0, 0, 0))],
            out_specs=pl.BlockSpec((1, ho, wo, C), lambda n: (n, 0, 0, 0)),
            out_shape=jax.ShapeDtypeStruct((N, ho, wo, C), h.dtype),
            compiler_params=pltpu.CompilerParams(dimension_semantics=("parallel",),
                                                 vmem_limit_bytes=VMEM_LIMIT),
        )(xp)
    if stride == 2:
        Hp, Wp = xp.shape[1], xp.shape[2]
        if Hp % 2 or Wp % 2:
            xp = jnp.pad(xp, ((0, 0), (0, Hp % 2), (0, Wp % 2), (0, 0)))
            Hp, Wp = xp.shape[1], xp.shape[2]
        # Free row-major view: (row-pair, row-phase, col-pair, col-phase*C).
        src = xp.reshape(N, Hp // 2, 2, Wp // 2, 2 * C)
        return pl.pallas_call(
            functools.partial(_maxpool_s2_kernel, k=k, ho=ho, wo=wo, c=C),
            grid=(N,),
            in_specs=[pl.BlockSpec((1, Hp // 2, 2, Wp // 2, 2 * C),
                                   lambda n: (n, 0, 0, 0, 0))],
            out_specs=pl.BlockSpec((1, ho, wo, C), lambda n: (n, 0, 0, 0)),
            out_shape=jax.ShapeDtypeStruct((N, ho, wo, C), h.dtype),
            compiler_params=pltpu.CompilerParams(dimension_semantics=("parallel",),
                                                 vmem_limit_bytes=VMEM_LIMIT),
        )(src)
    raise NotImplementedError("maxpool stride must be 1 or 2")


def pallas_pool_linear(h_rows, w_bf16, bias):
    """Fused AdaptiveAvgPool2d((1,1)) + flatten + Linear."""
    N, R, Cf = h_rows.shape
    Nc = w_bf16.shape[1]
    return pl.pallas_call(
        functools.partial(_pool_linear_kernel, inv_r=1.0 / R),
        out_shape=jax.ShapeDtypeStruct((N, Nc), jnp.float32),
        compiler_params=pltpu.CompilerParams(vmem_limit_bytes=VMEM_LIMIT),
    )(h_rows, w_bf16, bias.reshape(1, Nc).astype(jnp.float32))


# ----------------------------------------------------------------------------- conv / BN glue
def _phase_fold(x, pad_value=0.0):
    """Fold a stride-2 spatial sampling into channels: (N,H,W,C) -> (N,H/2,W/2,4C).
    Channel blocks ordered (py, px) in ((0,0),(0,1),(1,0),(1,1))."""
    N, H, W, C = x.shape
    if H % 2 or W % 2:
        x = jnp.pad(x, ((0, 0), (0, H % 2), (0, W % 2), (0, 0)),
                    constant_values=pad_value)
    return jnp.concatenate(
        [x[:, py::2, px::2, :] for py in (0, 1) for px in (0, 1)], axis=-1)


def conv2d_bn_stats(x_nhwc, w_khwio, k, stride, pad, prologue=None, relu=True,
                    out_dtype=jnp.float32):
    """k x k conv (no bias) with optional fused affine(+ReLU) prologue and fused
    per-channel sum / sumsq of the un-normalized output.
    Returns (y NHWC, sum, sumsq, element_count_per_channel)."""
    N, H, W, Cin = x_nhwc.shape
    Cout = w_khwio.shape[-1]
    ho = (H + 2 * pad - k) // stride + 1
    wo = (W + 2 * pad - k) // stride + 1
    if stride == 1:
        taps = tuple((dy, dx) for dy in range(k) for dx in range(k))
        w_taps = w_khwio.reshape(k * k, Cin, Cout).astype(MM_DTYPE)
        y, s, q = conv_tap_stats(x_nhwc, w_taps, taps, ho, wo, pad=pad,
                                 prologue=prologue, relu=relu, out_dtype=out_dtype)
    elif stride == 2:
        # affine + ReLU + zero-pad + phase-fold + bf16 cast as one fused XLA producer;
        # the stride-2 conv then runs as a stride-1 conv on the folded input.
        x = x_nhwc
        if prologue is not None:
            sc, sh = prologue
            x = x * sc + sh
            if relu:
                x = jnp.maximum(x, 0.0)
        x = x.astype(MM_DTYPE)
        xp = jnp.pad(x, ((0, 0), (pad, pad), (pad, pad), (0, 0))) if pad else x
        src = _phase_fold(xp)
        extra = (-src.shape[2]) % 16          # lane/sublane-friendly width for bf16
        if extra:
            src = jnp.pad(src, ((0, 0), (0, 0), (0, extra), (0, 0)))
        ko = (k + 1) // 2
        taps = tuple((oy, ox) for oy in range(ko) for ox in range(ko))
        blocks = []
        for oy in range(ko):
            for ox in range(ko):
                per_phase = []
                for py in (0, 1):
                    for px in (0, 1):
                        dy, dx = 2 * oy + py, 2 * ox + px
                        if dy < k and dx < k:
                            per_phase.append(w_khwio[dy, dx])
                        else:
                            per_phase.append(jnp.zeros((Cin, Cout), w_khwio.dtype))
                blocks.append(jnp.concatenate(per_phase, axis=0))   # (4*Cin, Cout)
        w_taps = jnp.stack(blocks, axis=0).astype(MM_DTYPE)
        y, s, q = conv_tap_stats(src, w_taps, taps, ho, wo, pad=0,
                                 prologue=None, relu=relu, out_dtype=out_dtype)
    else:
        raise NotImplementedError("conv stride must be 1 or 2")
    return y, s, q, N * ho * wo


def _bn_scale_shift(s, q, count, gamma, beta):
    """Training-mode BatchNorm (batch statistics, biased variance) folded to scale/shift."""
    mean = s / count
    var = jnp.maximum(q / count - mean * mean, 0.0)
    scale = gamma * jax.lax.rsqrt(var + BN_EPS)
    return scale, beta - mean * scale
# TODO(synk): BN running-stat updates (training-mode side effect) are not modeled; only the
#             forward normalization with batch statistics is computed.


# ----------------------------------------------------------------------------- parameter init
def xavier_conv(key, cin, cout, k):
    fan_in, fan_out = cin * k * k, cout * k * k
    bound = math.sqrt(6.0 / (fan_in + fan_out))
    return jax.random.uniform(key, (k, k, cin, cout), jnp.float32, -bound, bound)


def xavier_linear(key, fin, fout):
    bound = math.sqrt(6.0 / (fin + fout))
    return jax.random.uniform(key, (fin, fout), jnp.float32, -bound, bound)


def init_resnet_params(key, cfg, nb_classes):
    # Conv biases are omitted: zero-initialized and cancelled by BN mean subtraction.
    params = {}
    key, k1 = jax.random.split(key)
    c0 = cfg.nb_channels[0]
    params["conv1_w"] = xavier_conv(k1, cfg.input_channels, c0, cfg.first_conv_kernel)
    params["bn1"] = (jnp.ones((c0,), jnp.float32), jnp.zeros((c0,), jnp.float32))

    stages = []
    in_ch = c0
    for s in range(4):
        planes = cfg.nb_channels[s]
        blocks = []
        for b in range(cfg.nb_res_blocks[s]):
            downsample = b == 0
            key, k1, k2, k3, k4 = jax.random.split(key, 5)
            exp = 4 * planes
            bn3_gamma = jnp.zeros if cfg.zero_bn_init else jnp.ones
            blk = {
                "w1": xavier_conv(k1, in_ch, planes, cfg.resblock_kernel_sizes[0]),
                "bn1": (jnp.ones((planes,), jnp.float32), jnp.zeros((planes,), jnp.float32)),
                "w2": xavier_conv(k2, planes, planes, cfg.resblock_kernel_sizes[1]),
                "bn2": (jnp.ones((planes,), jnp.float32), jnp.zeros((planes,), jnp.float32)),
                "w3": xavier_conv(k3, planes, exp, cfg.resblock_kernel_sizes[2]),
                "bn3": (bn3_gamma((exp,), jnp.float32), jnp.zeros((exp,), jnp.float32)),
            }
            if downsample:
                blk["w_sc"] = xavier_conv(k4, in_ch, exp, 1)
                blk["bn_sc"] = (jnp.ones((exp,), jnp.float32), jnp.zeros((exp,), jnp.float32))
                in_ch = exp
            blocks.append(blk)
        stages.append(blocks)
    params["stages"] = stages

    key, kf = jax.random.split(key)
    params["fc_w"] = xavier_linear(kf, cfg.nb_channels[3] * 4, nb_classes)
    params["fc_b"] = jnp.zeros((nb_classes,), jnp.float32)
    return params


# ----------------------------------------------------------------------------- forward
def resblock_forward(x_nhwc, blk, cfg, stage_stride, downsample):
    ks, pads = cfg.resblock_kernel_sizes, cfg.resblock_paddings
    assert ks[0] == 1 and pads[0] == 0 and ks[2] == 1 and pads[2] == 0
    N, H, W, Cin = x_nhwc.shape
    planes = blk["w1"].shape[-1]
    cexp = blk["w3"].shape[-1]

    # 1_Weight (1x1) + 1_Norm batch statistics (fused into the matmul kernel).
    x_rows = x_nhwc.reshape(N, H * W, Cin)
    y1, s1, q1 = conv1x1_stats(x_rows, blk["w1"].reshape(Cin, planes).astype(MM_DTYPE),
                               out_dtype=ACT_DTYPE)
    sc1, sh1 = _bn_scale_shift(s1, q1, N * H * W, *blk["bn1"])

    # 1_Activation + zero-pad + 2_Weight (kxk, maybe stride 2) + 2_Norm stats.
    # (affine/ReLU/pad fused in-kernel for stride-1, fused into the fold producer for stride-2)
    stride2 = 2 if (downsample and stage_stride != 1) else 1
    y2, s2, q2, cnt2 = conv2d_bn_stats(
        y1.reshape(N, H, W, planes), blk["w2"], ks[1], stride2, pads[1],
        prologue=(sc1, sh1), relu=True, out_dtype=ACT_DTYPE)
    sc2, sh2 = _bn_scale_shift(s2, q2, cnt2, *blk["bn2"])
    _, H2, W2, _ = y2.shape

    # 2_Activation fused as a prologue of 3_Weight (1x1) + 3_Norm stats.
    y3, s3, q3 = conv1x1_stats(
        y2.reshape(N, H2 * W2, planes),
        blk["w3"].reshape(planes, cexp).astype(MM_DTYPE),
        prologue=(sc2, sh2), relu_prologue=True)
    sc3, sh3 = _bn_scale_shift(s3, q3, N * H2 * W2, *blk["bn3"])

    # Shortcut (DropPath prob = 0 -> identity; stochastic depth disabled).
    if downsample:
        xs = x_nhwc[:, ::stage_stride, ::stage_stride, :] if stage_stride != 1 else x_nhwc
        Ns, Hs_, Ws_, _ = xs.shape
        ysc, ssc, qsc = conv1x1_stats(
            xs.reshape(Ns, Hs_ * Ws_, Cin), blk["w_sc"].reshape(Cin, cexp).astype(MM_DTYPE))
        res = ysc
        res_sc, res_sh = _bn_scale_shift(ssc, qsc, Ns * Hs_ * Ws_, *blk["bn_sc"])
    else:
        res = x_rows                                  # already normalized
        res_sc = jnp.ones((cexp,), jnp.float32)
        res_sh = jnp.zeros((cexp,), jnp.float32)

    # 3_Norm affine + shortcut affine + residual add + 3_Activation (one fused kernel).
    out_rows = pallas_residual_affine(y3, sc3, sh3, res, res_sc, res_sh, relu=True)
    return out_rows.reshape(N, H2, W2, cexp)


def resnet_forward(params, x_nchw, cfg):
    # layout: NCHW (PyTorch convention) in, NHWC internally, (N, nb_classes) out.
    x = jnp.transpose(x_nchw.astype(jnp.float32), (0, 2, 3, 1))

    # Stem: conv (bias=False) with fused BN batch stats; BN affine + ReLU fused (XLA)
    # into the padded max-pool input; max-pool reads a free phase view (no HBM copies).
    y, s, q, cnt = conv2d_bn_stats(x, params["conv1_w"], cfg.first_conv_kernel,
                                   cfg.first_conv_stride, cfg.first_conv_padding)
    sc, sh = _bn_scale_shift(s, q, cnt, *params["bn1"])
    h = jnp.maximum(y * sc + sh, 0.0)        # >= 0, so zero padding in max-pool is exact
    h = pallas_maxpool_nonneg(h, cfg.first_max_pool_kernel, cfg.first_max_pool_stride,
                              cfg.first_max_pool_padding)

    # conv2..conv5
    for s_idx, blocks in enumerate(params["stages"]):
        stage_stride = cfg.strides_conv_block[s_idx]
        for b_idx, blk in enumerate(blocks):
            h = resblock_forward(h, blk, cfg, stage_stride, downsample=(b_idx == 0))

    # AdaptiveAvgPool2d((1,1)) + flatten + fc, fused in one Pallas kernel.
    N2, Hf, Wf, Cf = h.shape
    return pallas_pool_linear(h.reshape(N2, Hf * Wf, Cf),
                              params["fc_w"].astype(MM_DTYPE), params["fc_b"])


# ----------------------------------------------------------------------------- main
if __name__ == "__main__":
    cfg = SimpleNamespace(
        input_channels=3,
        nb_channels=[4, 8, 16, 32],
        nb_res_blocks=[1, 1, 1, 1],
        strides_conv_block=[1, 2, 2, 2],
        resblock_kernel_sizes=[1, 3, 1],
        resblock_paddings=[0, 1, 0],
        first_conv_kernel=3,
        first_conv_stride=1,
        first_conv_padding=1,
        first_max_pool_kernel=3,
        first_max_pool_stride=2,
        first_max_pool_padding=1,
        zero_bn_init=False,
        use_stochastic_depth=False,  # DropPath prob = 0 -> identity
    )
    nb_classes = 10

    key = jax.random.PRNGKey(0)
    pkey, xkey = jax.random.split(key)
    params = init_resnet_params(pkey, cfg, nb_classes)

    x = jax.random.normal(xkey, (2, cfg.input_channels, 16, 16), jnp.float32)
    fwd = jax.jit(functools.partial(resnet_forward, cfg=cfg))
    out = jax.block_until_ready(fwd(params, x))
    assert out.shape == (2, nb_classes), out.shape
    assert bool(jnp.all(jnp.isfinite(out)))
    print("KERNEL_OK")
</pallas_src>

<mosaic_0001>
module attributes {stable_mosaic.version = 11 : i64} {
  func.func @_conv_tap_kernel(%arg0: i32, %arg1: memref<1x16x16x3xf32, #tpu.memory_space<vmem>>, %arg2: memref<9x3x4xbf16, #tpu.memory_space<vmem>>, %arg3: memref<1x16x16x4xf32, #tpu.memory_space<vmem>>, %arg4: memref<1x1x4xf32, #tpu.memory_space<vmem>>, %arg5: memref<1x1x4xf32, #tpu.memory_space<vmem>>, %arg6: memref<18x24x3xf32, #tpu.memory_space<vmem>>) attributes {dimension_semantics = [#tpu.dimension_semantics<parallel>], iteration_bounds = array<i64: 2>, scalar_prefetch = 0 : i64, scratch_operands = 1 : i64, tpu.core_type = #tpu.core_type<tc>, window_params = [{transform_indices = @transform_0, window_bounds = array<i64: 1, 16, 16, 3>}, {pipeline_mode = #tpu.pipeline_mode<synchronous>, transform_indices = @transform_1, window_bounds = array<i64: 9, 3, 4>}, {transform_indices = @transform_2, window_bounds = array<i64: 1, 16, 16, 4>}, {transform_indices = @transform_3, window_bounds = array<i64: 1, 1, 4>}, {transform_indices = @transform_4, window_bounds = array<i64: 1, 1, 4>}]} {
    %c0 = arith.constant 0 : index
    %c0_0 = arith.constant 0 : index
    %c0_1 = arith.constant 0 : index
    %c0_2 = arith.constant 0 : index
    %0 = vector.load %arg1[%c0, %c0_0, %c0_1, %c0_2] : memref<1x16x16x3xf32, #tpu.memory_space<vmem>>, vector<1x16x16x3xf32>
    %1 = vector.shape_cast %0 : vector<1x16x16x3xf32> to vector<16x16x3xf32>
    %cst = arith.constant 0.000000e+00 : f32
    %2 = vector.broadcast %cst : f32 to vector<18x24x3xf32>
    %c0_3 = arith.constant 0 : index
    %c0_4 = arith.constant 0 : index
    %c0_5 = arith.constant 0 : index
    %3 = vector.load %arg6[%c0_3, %c0_4, %c0_5] : memref<18x24x3xf32, #tpu.memory_space<vmem>>, vector<18x24x3xf32>
    tpu.vector_store %arg6[%c0_3, %c0_4, %c0_5], %2 {strides = array<i32>} : memref<18x24x3xf32, #tpu.memory_space<vmem>>, vector<18x24x3xf32>,
    %c1 = arith.constant 1 : index
    %c1_6 = arith.constant 1 : index
    %c0_7 = arith.constant 0 : index
    %4 = vector.load %arg6[%c1, %c1_6, %c0_7] : memref<18x24x3xf32, #tpu.memory_space<vmem>>, vector<16x16x3xf32>
    tpu.vector_store %arg6[%c1, %c1_6, %c0_7], %1 {strides = array<i32>} : memref<18x24x3xf32, #tpu.memory_space<vmem>>, vector<16x16x3xf32>,
    %c0_8 = arith.constant 0 : index
    %c0_9 = arith.constant 0 : index
    %c0_10 = arith.constant 0 : index
    %5 = vector.load %arg6[%c0_8, %c0_9, %c0_10] : memref<18x24x3xf32, #tpu.memory_space<vmem>>, vector<18x24x3xf32>
    %6 = vector.shape_cast %5 : vector<18x24x3xf32> to vector<432x3xf32>
    %7 = arith.truncf %6 : vector<432x3xf32> to vector<432x3xbf16>
    %cst_11 = arith.constant 0.000000e+00 : f32
    %8 = vector.broadcast %cst_11 : f32 to vector<16x16x4xf32>
    %9 = vector.extract_strided_slice %7 {offsets = [0, 0], sizes = [384, 3], strides = [1, 1]} : vector<432x3xbf16> to vector<384x3xbf16>
    %c0_12 = arith.constant 0 : index
    %c0_13 = arith.constant 0 : index
    %c0_14 = arith.constant 0 : index
    %10 = vector.load %arg2[%c0_12, %c0_13, %c0_14] : memref<9x3x4xbf16, #tpu.memory_space<vmem>>, vector<1x3x4xbf16>
    %11 = vector.shape_cast %10 : vector<1x3x4xbf16> to vector<3x4xbf16>
    %cst_15 = arith.constant dense<0.000000e+00> : vector<384x4xf32>
    %12 = tpu.matmul %9, %11, %cst_15 {dimension_numbers = #tpu.dot_dimension_numbers<[1], [0], [0], [1], [0, 0, 1, 1], [], []>} : vector<384x3xbf16>, vector<3x4xbf16>, vector<384x4xf32> -> vector<384x4xf32>
    %13 = vector.shape_cast %12 : vector<384x4xf32> to vector<16x24x4xf32>
    %14 = vector.extract_strided_slice %13 {offsets = [0, 0, 0], sizes = [16, 16, 4], strides = [1, 1, 1]} : vector<16x24x4xf32> to vector<16x16x4xf32>
    %15 = arith.addf %8, %14 : vector<16x16x4xf32>
    %16 = vector.extract_strided_slice %7 {offsets = [0, 0], sizes = [384, 3], strides = [1, 1]} : vector<432x3xbf16> to vector<384x3xbf16>
    %c1_16 = arith.constant 1 : index
    %c0_17 = arith.constant 0 : index
    %c0_18 = arith.constant 0 : index
    %17 = vector.load %arg2[%c1_16, %c0_17, %c0_18] : memref<9x3x4xbf16, #tpu.memory_space<vmem>>, vector<1x3x4xbf16>
    %18 = vector.shape_cast %17 : vector<1x3x4xbf16> to vector<3x4xbf16>
    %cst_19 = arith.constant dense<0.000000e+00> : vector<384x4xf32>
    %19 = tpu.matmul %16, %18, %cst_19 {dimension_numbers = #tpu.dot_dimension_numbers<[1], [0], [0], [1], [0, 0, 1, 1], [], []>} : vector<384x3xbf16>, vector<3x4xbf16>, vector<384x4xf32> -> vector<384x4xf32>
    %20 = vector.shape_cast %19 : vector<384x4xf32> to vector<16x24x4xf32>
    %21 = vector.extract_strided_slice %20 {offsets = [0, 1, 0], sizes = [16, 16, 4], strides = [1, 1, 1]} : vector<16x24x4xf32> to vector<16x16x4xf32>
    %22 = arith.addf %15, %21 : vector<16x16x4xf32>
    %23 = vector.extract_strided_slice %7 {offsets = [0, 0], sizes = [384, 3], strides = [1, 1]} : vector<432x3xbf16> to vector<384x3xbf16>
    %c2 = arith.constant 2 : index
    %c0_20 = arith.constant 0 : index
    %c0_21 = arith.constant 0 : index
    %24 = vector.load %arg2[%c2, %c0_20, %c0_21] : memref<9x3x4xbf16, #tpu.memory_space<vmem>>, vector<1x3x4xbf16>
    %25 = vector.shape_cast %24 : vector<1x3x4xbf16> to vector<3x4xbf16>
    %cst_22 = arith.constant dense<0.000000e+00> : vector<384x4xf32>
    %26 = tpu.matmul %23, %25, %cst_22 {dimension_numbers = #tpu.dot_dimension_numbers<[1], [0], [0], [1], [0, 0, 1, 1], [], []>} : vector<384x3xbf16>, vector<3x4xbf16>, vector<384x4xf32> -> vector<384x4xf32>
    %27 = vector.shape_cast %26 : vector<384x4xf32> to vector<16x24x4xf32>
    %28 = vector.extract_strided_slice %27 {offsets = [0, 2, 0], sizes = [16, 16, 4], strides = [1, 1, 1]} : vector<16x24x4xf32> to vector<16x16x4xf32>
    %29 = arith.addf %22, %28 : vector<16x16x4xf32>
    %30 = vector.extract_strided_slice %7 {offsets = [24, 0], sizes = [384, 3], strides = [1, 1]} : vector<432x3xbf16> to vector<384x3xbf16>
    %c3 = arith.constant 3 : index
    %c0_23 = arith.constant 0 : index
    %c0_24 = arith.constant 0 : index
    %31 = vector.load %arg2[%c3, %c0_23, %c0_24] : memref<9x3x4xbf16, #tpu.memory_space<vmem>>, vector<1x3x4xbf16>
    %32 = vector.shape_cast %31 : vector<1x3x4xbf16> to vector<3x4xbf16>
    %cst_25 = arith.constant dense<0.000000e+00> : vector<384x4xf32>
    %33 = tpu.matmul %30, %32, %cst_25 {dimension_numbers = #tpu.dot_dimension_numbers<[1], [0], [0], [1], [0, 0, 1, 1], [], []>} : vector<384x3xbf16>, vector<3x4xbf16>, vector<384x4xf32> -> vector<384x4xf32>
    %34 = vector.shape_cast %33 : vector<384x4xf32> to vector<16x24x4xf32>
    %35 = vector.extract_strided_slice %34 {offsets = [0, 0, 0], sizes = [16, 16, 4], strides = [1, 1, 1]} : vector<16x24x4xf32> to vector<16x16x4xf32>
    %36 = arith.addf %29, %35 : vector<16x16x4xf32>
    %37 = vector.extract_strided_slice %7 {offsets = [24, 0], sizes = [384, 3], strides = [1, 1]} : vector<432x3xbf16> to vector<384x3xbf16>
    %c4 = arith.constant 4 : index
    %c0_26 = arith.constant 0 : index
    %c0_27 = arith.constant 0 : index
    %38 = vector.load %arg2[%c4, %c0_26, %c0_27] : memref<9x3x4xbf16, #tpu.memory_space<vmem>>, vector<1x3x4xbf16>
    %39 = vector.shape_cast %38 : vector<1x3x4xbf16> to vector<3x4xbf16>
    %cst_28 = arith.constant dense<0.000000e+00> : vector<384x4xf32>
    %40 = tpu.matmul %37, %39, %cst_28 {dimension_numbers = #tpu.dot_dimension_numbers<[1], [0], [0], [1], [0, 0, 1, 1], [], []>} : vector<384x3xbf16>, vector<3x4xbf16>, vector<384x4xf32> -> vector<384x4xf32>
    %41 = vector.shape_cast %40 : vector<384x4xf32> to vector<16x24x4xf32>
    %42 = vector.extract_strided_slice %41 {offsets = [0, 1, 0], sizes = [16, 16, 4], strides = [1, 1, 1]} : vector<16x24x4xf32> to vector<16x16x4xf32>
    %43 = arith.addf %36, %42 : vector<16x16x4xf32>
    %44 = vector.extract_strided_slice %7 {offsets = [24, 0], sizes = [384, 3], strides = [1, 1]} : vector<432x3xbf16> to vector<384x3xbf16>
    %c5 = arith.constant 5 : index
    %c0_29 = arith.constant 0 : index
    %c0_30 = arith.constant 0 : index
    %45 = vector.load %arg2[%c5, %c0_29, %c0_30] : memref<9x3x4xbf16, #tpu.memory_space<vmem>>, vector<1x3x4xbf16>
    %46 = vector.shape_cast %45 : vector<1x3x4xbf16> to vector<3x4xbf16>
    %cst_31 = arith.constant dense<0.000000e+00> : vector<384x4xf32>
    %47 = tpu.matmul %44, %46, %cst_31 {dimension_numbers = #tpu.dot_dimension_numbers<[1], [0], [0], [1], [0, 0, 1, 1], [], []>} : vector<384x3xbf16>, vector<3x4xbf16>, vector<384x4xf32> -> vector<384x4xf32>
    %48 = vector.shape_cast %47 : vector<384x4xf32> to vector<16x24x4xf32>
    %49 = vector.extract_strided_slice %48 {offsets = [0, 2, 0], sizes = [16, 16, 4], strides = [1, 1, 1]} : vector<16x24x4xf32> to vector<16x16x4xf32>
    %50 = arith.addf %43, %49 : vector<16x16x4xf32>
    %51 = vector.extract_strided_slice %7 {offsets = [48, 0], sizes = [384, 3], strides = [1, 1]} : vector<432x3xbf16> to vector<384x3xbf16>
    %c6 = arith.constant 6 : index
    %c0_32 = arith.constant 0 : index
    %c0_33 = arith.constant 0 : index
    %52 = vector.load %arg2[%c6, %c0_32, %c0_33] : memref<9x3x4xbf16, #tpu.memory_space<vmem>>, vector<1x3x4xbf16>
    %53 = vector.shape_cast %52 : vector<1x3x4xbf16> to vector<3x4xbf16>
    %cst_34 = arith.constant dense<0.000000e+00> : vector<384x4xf32>
    %54 = tpu.matmul %51, %53, %cst_34 {dimension_numbers = #tpu.dot_dimension_numbers<[1], [0], [0], [1], [0, 0, 1, 1], [], []>} : vector<384x3xbf16>, vector<3x4xbf16>, vector<384x4xf32> -> vector<384x4xf32>
    %55 = vector.shape_cast %54 : vector<384x4xf32> to vector<16x24x4xf32>
    %56 = vector.extract_strided_slice %55 {offsets = [0, 0, 0], sizes = [16, 16, 4], strides = [1, 1, 1]} : vector<16x24x4xf32> to vector<16x16x4xf32>
    %57 = arith.addf %50, %56 : vector<16x16x4xf32>
    %58 = vector.extract_strided_slice %7 {offsets = [48, 0], sizes = [384, 3], strides = [1, 1]} : vector<432x3xbf16> to vector<384x3xbf16>
    %c7 = arith.constant 7 : index
    %c0_35 = arith.constant 0 : index
    %c0_36 = arith.constant 0 : index
    %59 = vector.load %arg2[%c7, %c0_35, %c0_36] : memref<9x3x4xbf16, #tpu.memory_space<vmem>>, vector<1x3x4xbf16>
    %60 = vector.shape_cast %59 : vector<1x3x4xbf16> to vector<3x4xbf16>
    %cst_37 = arith.constant dense<0.000000e+00> : vector<384x4xf32>
    %61 = tpu.matmul %58, %60, %cst_37 {dimension_numbers = #tpu.dot_dimension_numbers<[1], [0], [0], [1], [0, 0, 1, 1], [], []>} : vector<384x3xbf16>, vector<3x4xbf16>, vector<384x4xf32> -> vector<384x4xf32>
    %62 = vector.shape_cast %61 : vector<384x4xf32> to vector<16x24x4xf32>
    %63 = vector.extract_strided_slice %62 {offsets = [0, 1, 0], sizes = [16, 16, 4], strides = [1, 1, 1]} : vector<16x24x4xf32> to vector<16x16x4xf32>
    %64 = arith.addf %57, %63 : vector<16x16x4xf32>
    %65 = vector.extract_strided_slice %7 {offsets = [48, 0], sizes = [384, 3], strides = [1, 1]} : vector<432x3xbf16> to vector<384x3xbf16>
    %c8 = arith.constant 8 : index
    %c0_38 = arith.constant 0 : index
    %c0_39 = arith.constant 0 : index
    %66 = vector.load %arg2[%c8, %c0_38, %c0_39] : memref<9x3x4xbf16, #tpu.memory_space<vmem>>, vector<1x3x4xbf16>
    %67 = vector.shape_cast %66 : vector<1x3x4xbf16> to vector<3x4xbf16>
    %cst_40 = arith.constant dense<0.000000e+00> : vector<384x4xf32>
    %68 = tpu.matmul %65, %67, %cst_40 {dimension_numbers = #tpu.dot_dimension_numbers<[1], [0], [0], [1], [0, 0, 1, 1], [], []>} : vector<384x3xbf16>, vector<3x4xbf16>, vector<384x4xf32> -> vector<384x4xf32>
    %69 = vector.shape_cast %68 : vector<384x4xf32> to vector<16x24x4xf32>
    %70 = vector.extract_strided_slice %69 {offsets = [0, 2, 0], sizes = [16, 16, 4], strides = [1, 1, 1]} : vector<16x24x4xf32> to vector<16x16x4xf32>
    %71 = arith.addf %64, %70 : vector<16x16x4xf32>
    %c0_41 = arith.constant 0 : index
    %c0_42 = arith.constant 0 : index
    %c0_43 = arith.constant 0 : index
    %c0_44 = arith.constant 0 : index
    %72 = vector.load %arg3[%c0_41, %c0_42, %c0_43, %c0_44] : memref<1x16x16x4xf32, #tpu.memory_space<vmem>>, vector<1x16x16x4xf32>
    %73 = vector.shape_cast %72 : vector<1x16x16x4xf32> to vector<16x16x4xf32>
    %74 = vector.shape_cast %71 : vector<16x16x4xf32> to vector<1x16x16x4xf32>
    tpu.vector_store %arg3[%c0_41, %c0_42, %c0_43, %c0_44], %74 {strides = array<i32>} : memref<1x16x16x4xf32, #tpu.memory_space<vmem>>, vector<1x16x16x4xf32>,
    %cst_45 = arith.constant dense<0.000000e+00> : vector<4xf32>
    %75 = vector.multi_reduction <add>, %71, %cst_45 [0, 1] : vector<16x16x4xf32> to vector<4xf32>
    %76 = vector.shape_cast %75 : vector<4xf32> to vector<1x1x4xf32>
    %c0_46 = arith.constant 0 : index
    %c0_47 = arith.constant 0 : index
    %c0_48 = arith.constant 0 : index
    %77 = vector.load %arg4[%c0_46, %c0_47, %c0_48] : memref<1x1x4xf32, #tpu.memory_space<vmem>>, vector<1x1x4xf32>
    tpu.vector_store %arg4[%c0_46, %c0_47, %c0_48], %76 {strides = array<i32>} : memref<1x1x4xf32, #tpu.memory_space<vmem>>, vector<1x1x4xf32>,
    %78 = arith.mulf %71, %71 : vector<16x16x4xf32>
    %cst_49 = arith.constant dense<0.000000e+00> : vector<4xf32>
    %79 = vector.multi_reduction <add>, %78, %cst_49 [0, 1] : vector<16x16x4xf32> to vector<4xf32>
    %80 = vector.shape_cast %79 : vector<4xf32> to vector<1x1x4xf32>
    %c0_50 = arith.constant 0 : index
    %c0_51 = arith.constant 0 : index
    %c0_52 = arith.constant 0 : index
    %81 = vector.load %arg5[%c0_50, %c0_51, %c0_52] : memref<1x1x4xf32, #tpu.memory_space<vmem>>, vector<1x1x4xf32>
    tpu.vector_store %arg5[%c0_50, %c0_51, %c0_52], %80 {strides = array<i32>} : memref<1x1x4xf32, #tpu.memory_space<vmem>>, vector<1x1x4xf32>,
    return
  }
  func.func @transform_0(%arg0: i32) -> (i32, i32, i32, i32) {
    %c0_i32 = arith.constant 0 : i32
    %c0_i32_0 = arith.constant 0 : i32
    %c0_i32_1 = arith.constant 0 : i32
    %c0_i32_2 = arith.constant 0 : i32
    return %arg0, %c0_i32, %c0_i32_0, %c0_i32_1 : i32, i32, i32, i32
  }
  func.func @transform_1(%arg0: i32) -> (i32, i32, i32) {
    %c0_i32 = arith.constant 0 : i32
    %c0_i32_0 = arith.constant 0 : i32
    %c0_i32_1 = arith.constant 0 : i32
    %c0_i32_2 = arith.constant 0 : i32
    return %c0_i32, %c0_i32_0, %c0_i32_1 : i32, i32, i32
  }
  func.func @transform_2(%arg0: i32) -> (i32, i32, i32, i32) {
    %c0_i32 = arith.constant 0 : i32
    %c0_i32_0 = arith.constant 0 : i32
    %c0_i32_1 = arith.constant 0 : i32
    %c0_i32_2 = arith.constant 0 : i32
    return %arg0, %c0_i32, %c0_i32_0, %c0_i32_1 : i32, i32, i32, i32
  }
  func.func @transform_3(%arg0: i32) -> (i32, i32, i32) {
    %c0_i32 = arith.constant 0 : i32
    %c0_i32_0 = arith.constant 0 : i32
    %c0_i32_1 = arith.constant 0 : i32
    return %arg0, %c0_i32, %c0_i32_0 : i32, i32, i32
  }
  func.func @transform_4(%arg0: i32) -> (i32, i32, i32) {
    %c0_i32 = arith.constant 0 : i32
    %c0_i32_0 = arith.constant 0 : i32
    %c0_i32_1 = arith.constant 0 : i32
    return %arg0, %c0_i32, %c0_i32_0 : i32, i32, i32
  }
}

module attributes {stable_mosaic.version = 11 : i64} {
  func.func @_conv1x1_kernel(%arg0: i32, %arg1: memref<1x64x4xf32, #tpu.memory_space<vmem>>, %arg2: memref<4x4xbf16, #tpu.memory_space<vmem>>, %arg3: memref<1x64x4xbf16, #tpu.memory_space<vmem>>, %arg4: memref<1x1x4xf32, #tpu.memory_space<vmem>>, %arg5: memref<1x1x4xf32, #tpu.memory_space<vmem>>) attributes {dimension_semantics = [#tpu.dimension_semantics<parallel>], iteration_bounds = array<i64: 2>, scalar_prefetch = 0 : i64, scratch_operands = 0 : i64, tpu.core_type = #tpu.core_type<tc>, window_params = [{transform_indices = @transform_0, window_bounds = array<i64: 1, 64, 4>}, {pipeline_mode = #tpu.pipeline_mode<synchronous>, transform_indices = @transform_1, window_bounds = array<i64: 4, 4>}, {transform_indices = @transform_2, window_bounds = array<i64: 1, 64, 4>}, {transform_indices = @transform_3, window_bounds = array<i64: 1, 1, 4>}, {transform_indices = @transform_4, window_bounds = array<i64: 1, 1, 4>}]} {
    %c0 = arith.constant 0 : index
    %c0_0 = arith.constant 0 : index
    %c0_1 = arith.constant 0 : index
    %0 = vector.load %arg1[%c0, %c0_0, %c0_1] : memref<1x64x4xf32, #tpu.memory_space<vmem>>, vector<1x64x4xf32>
    %1 = vector.shape_cast %0 : vector<1x64x4xf32> to vector<64x4xf32>
    %2 = arith.truncf %1 : vector<64x4xf32> to vector<64x4xbf16>
    %c0_2 = arith.constant 0 : index
    %c0_3 = arith.constant 0 : index
    %3 = vector.load %arg2[%c0_2, %c0_3] : memref<4x4xbf16, #tpu.memory_space<vmem>>, vector<4x4xbf16>
    %cst = arith.constant dense<0.000000e+00> : vector<64x4xf32>
    %4 = tpu.matmul %2, %3, %cst {dimension_numbers = #tpu.dot_dimension_numbers<[1], [0], [0], [1], [0, 0, 1, 1], [], []>} : vector<64x4xbf16>, vector<4x4xbf16>, vector<64x4xf32> -> vector<64x4xf32>
    %5 = arith.truncf %4 : vector<64x4xf32> to vector<64x4xbf16>
    %c0_4 = arith.constant 0 : index
    %c0_5 = arith.constant 0 : index
    %c0_6 = arith.constant 0 : index
    %6 = vector.load %arg3[%c0_4, %c0_5, %c0_6] : memref<1x64x4xbf16, #tpu.memory_space<vmem>>, vector<1x64x4xbf16>
    %7 = vector.shape_cast %6 : vector<1x64x4xbf16> to vector<64x4xbf16>
    %8 = vector.shape_cast %5 : vector<64x4xbf16> to vector<1x64x4xbf16>
    tpu.vector_store %arg3[%c0_4, %c0_5, %c0_6], %8 {strides = array<i32>} : memref<1x64x4xbf16, #tpu.memory_space<vmem>>, vector<1x64x4xbf16>,
    %cst_7 = arith.constant dense<0.000000e+00> : vector<4xf32>
    %9 = vector.multi_reduction <add>, %4, %cst_7 [0] : vector<64x4xf32> to vector<4xf32>
    %10 = vector.shape_cast %9 : vector<4xf32> to vector<1x4xf32>
    %c0_8 = arith.constant 0 : index
    %c0_9 = arith.constant 0 : index
    %c0_10 = arith.constant 0 : index
    %11 = vector.load %arg4[%c0_8, %c0_9, %c0_10] : memref<1x1x4xf32, #tpu.memory_space<vmem>>, vector<1x1x4xf32>
    %12 = vector.shape_cast %11 : vector<1x1x4xf32> to vector<1x4xf32>
    %13 = vector.shape_cast %10 : vector<1x4xf32> to vector<1x1x4xf32>
    tpu.vector_store %arg4[%c0_8, %c0_9, %c0_10], %13 {strides = array<i32>} : memref<1x1x4xf32, #tpu.memory_space<vmem>>, vector<1x1x4xf32>,
    %14 = arith.mulf %4, %4 : vector<64x4xf32>
    %cst_11 = arith.constant dense<0.000000e+00> : vector<4xf32>
    %15 = vector.multi_reduction <add>, %14, %cst_11 [0] : vector<64x4xf32> to vector<4xf32>
    %16 = vector.shape_cast %15 : vector<4xf32> to vector<1x4xf32>
    %c0_12 = arith.constant 0 : index
    %c0_13 = arith.constant 0 : index
    %c0_14 = arith.constant 0 : index
    %17 = vector.load %arg5[%c0_12, %c0_13, %c0_14] : memref<1x1x4xf32, #tpu.memory_space<vmem>>, vector<1x1x4xf32>
    %18 = vector.shape_cast %17 : vector<1x1x4xf32> to vector<1x4xf32>
    %19 = vector.shape_cast %16 : vector<1x4xf32> to vector<1x1x4xf32>
    tpu.vector_store %arg5[%c0_12, %c0_13, %c0_14], %19 {strides = array<i32>} : memref<1x1x4xf32, #tpu.memory_space<vmem>>, vector<1x1x4xf32>,
    return
  }
  func.func @transform_0(%arg0: i32) -> (i32, i32, i32) {
    %c0_i32 = arith.constant 0 : i32
    %c0_i32_0 = arith.constant 0 : i32
    %c0_i32_1 = arith.constant 0 : i32
    return %arg0, %c0_i32, %c0_i32_0 : i32, i32, i32
  }
  func.func @transform_1(%arg0: i32) -> (i32, i32) {
    %c0_i32 = arith.constant 0 : i32
    %c0_i32_0 = arith.constant 0 : i32
    %c0_i32_1 = arith.constant 0 : i32
    return %c0_i32, %c0_i32_0 : i32, i32
  }
  func.func @transform_2(%arg0: i32) -> (i32, i32, i32) {
    %c0_i32 = arith.constant 0 : i32
    %c0_i32_0 = arith.constant 0 : i32
    %c0_i32_1 = arith.constant 0 : i32
    return %arg0, %c0_i32, %c0_i32_0 : i32, i32, i32
  }
  func.func @transform_3(%arg0: i32) -> (i32, i32, i32) {
    %c0_i32 = arith.constant 0 : i32
    %c0_i32_0 = arith.constant 0 : i32
    %c0_i32_1 = arith.constant 0 : i32
    return %arg0, %c0_i32, %c0_i32_0 : i32, i32, i32
  }
  func.func @transform_4(%arg0: i32) -> (i32, i32, i32) {
    %c0_i32 = arith.constant 0 : i32
    %c0_i32_0 = arith.constant 0 : i32
    %c0_i32_1 = arith.constant 0 : i32
    return %arg0, %c0_i32, %c0_i32_0 : i32, i32, i32
  }
}

module attributes {stable_mosaic.version = 11 : i64} {
  func.func @_maxpool_s2_kernel(%arg0: i32, %arg1: memref<1x9x2x9x8xf32, #tpu.memory_space<vmem>>, %arg2: memref<1x8x8x4xf32, #tpu.memory_space<vmem>>) attributes {dimension_semantics = [#tpu.dimension_semantics<parallel>], iteration_bounds = array<i64: 2>, scalar_prefetch = 0 : i64, scratch_operands = 0 : i64, tpu.core_type = #tpu.core_type<tc>, window_params = [{transform_indices = @transform_0, window_bounds = array<i64: 1, 9, 2, 9, 8>}, {transform_indices = @transform_1, window_bounds = array<i64: 1, 8, 8, 4>}]} {
    %c0 = arith.constant 0 : index
    %c0_0 = arith.constant 0 : index
    %c0_1 = arith.constant 0 : index
    %c0_2 = arith.constant 0 : index
    %c0_3 = arith.constant 0 : index
    %0 = vector.load %arg1[%c0, %c0_0, %c0_1, %c0_2, %c0_3] : memref<1x9x2x9x8xf32, #tpu.memory_space<vmem>>, vector<1x8x1x8x4xf32>
    %1 = vector.shape_cast %0 : vector<1x8x1x8x4xf32> to vector<8x8x4xf32>
    %c0_4 = arith.constant 0 : index
    %c0_5 = arith.constant 0 : index
    %c0_6 = arith.constant 0 : index
    %c0_7 = arith.constant 0 : index
    %c4 = arith.constant 4 : index
    %2 = vector.load %arg1[%c0_4, %c0_5, %c0_6, %c0_7, %c4] : memref<1x9x2x9x8xf32, #tpu.memory_space<vmem>>, vector<1x8x1x8x4xf32>
    %3 = vector.shape_cast %2 : vector<1x8x1x8x4xf32> to vector<8x8x4xf32>
    %4 = arith.maximumf %1, %3 : vector<8x8x4xf32>
    %c0_8 = arith.constant 0 : index
    %c0_9 = arith.constant 0 : index
    %c0_10 = arith.constant 0 : index
    %c1 = arith.constant 1 : index
    %c0_11 = arith.constant 0 : index
    %5 = vector.load %arg1[%c0_8, %c0_9, %c0_10, %c1, %c0_11] : memref<1x9x2x9x8xf32, #tpu.memory_space<vmem>>, vector<1x8x1x8x4xf32>
    %6 = vector.shape_cast %5 : vector<1x8x1x8x4xf32> to vector<8x8x4xf32>
    %7 = arith.maximumf %4, %6 : vector<8x8x4xf32>
    %c0_12 = arith.constant 0 : index
    %c0_13 = arith.constant 0 : index
    %c1_14 = arith.constant 1 : index
    %c0_15 = arith.constant 0 : index
    %c0_16 = arith.constant 0 : index
    %8 = vector.load %arg1[%c0_12, %c0_13, %c1_14, %c0_15, %c0_16] : memref<1x9x2x9x8xf32, #tpu.memory_space<vmem>>, vector<1x8x1x8x4xf32>
    %9 = vector.shape_cast %8 : vector<1x8x1x8x4xf32> to vector<8x8x4xf32>
    %10 = arith.maximumf %7, %9 : vector<8x8x4xf32>
    %c0_17 = arith.constant 0 : index
    %c0_18 = arith.constant 0 : index
    %c1_19 = arith.constant 1 : index
    %c0_20 = arith.constant 0 : index
    %c4_21 = arith.constant 4 : index
    %11 = vector.load %arg1[%c0_17, %c0_18, %c1_19, %c0_20, %c4_21] : memref<1x9x2x9x8xf32, #tpu.memory_space<vmem>>, vector<1x8x1x8x4xf32>
    %12 = vector.shape_cast %11 : vector<1x8x1x8x4xf32> to vector<8x8x4xf32>
    %13 = arith.maximumf %10, %12 : vector<8x8x4xf32>
    %c0_22 = arith.constant 0 : index
    %c0_23 = arith.constant 0 : index
    %c1_24 = arith.constant 1 : index
    %c1_25 = arith.constant 1 : index
    %c0_26 = arith.constant 0 : index
    %14 = vector.load %arg1[%c0_22, %c0_23, %c1_24, %c1_25, %c0_26] : memref<1x9x2x9x8xf32, #tpu.memory_space<vmem>>, vector<1x8x1x8x4xf32>
    %15 = vector.shape_cast %14 : vector<1x8x1x8x4xf32> to vector<8x8x4xf32>
    %16 = arith.maximumf %13, %15 : vector<8x8x4xf32>
    %c0_27 = arith.constant 0 : index
    %c1_28 = arith.constant 1 : index
    %c0_29 = arith.constant 0 : index
    %c0_30 = arith.constant 0 : index
    %c0_31 = arith.constant 0 : index
    %17 = vector.load %arg1[%c0_27, %c1_28, %c0_29, %c0_30, %c0_31] : memref<1x9x2x9x8xf32, #tpu.memory_space<vmem>>, vector<1x8x1x8x4xf32>
    %18 = vector.shape_cast %17 : vector<1x8x1x8x4xf32> to vector<8x8x4xf32>
    %19 = arith.maximumf %16, %18 : vector<8x8x4xf32>
    %c0_32 = arith.constant 0 : index
    %c1_33 = arith.constant 1 : index
    %c0_34 = arith.constant 0 : index
    %c0_35 = arith.constant 0 : index
    %c4_36 = arith.constant 4 : index
    %20 = vector.load %arg1[%c0_32, %c1_33, %c0_34, %c0_35, %c4_36] : memref<1x9x2x9x8xf32, #tpu.memory_space<vmem>>, vector<1x8x1x8x4xf32>
    %21 = vector.shape_cast %20 : vector<1x8x1x8x4xf32> to vector<8x8x4xf32>
    %22 = arith.maximumf %19, %21 : vector<8x8x4xf32>
    %c0_37 = arith.constant 0 : index
    %c1_38 = arith.constant 1 : index
    %c0_39 = arith.constant 0 : index
    %c1_40 = arith.constant 1 : index
    %c0_41 = arith.constant 0 : index
    %23 = vector.load %arg1[%c0_37, %c1_38, %c0_39, %c1_40, %c0_41] : memref<1x9x2x9x8xf32, #tpu.memory_space<vmem>>, vector<1x8x1x8x4xf32>
    %24 = vector.shape_cast %23 : vector<1x8x1x8x4xf32> to vector<8x8x4xf32>
    %25 = arith.maximumf %22, %24 : vector<8x8x4xf32>
    %c0_42 = arith.constant 0 : index
    %c0_43 = arith.constant 0 : index
    %c0_44 = arith.constant 0 : index
    %c0_45 = arith.constant 0 : index
    %26 = vector.load %arg2[%c0_42, %c0_43, %c0_44, %c0_45] : memref<1x8x8x4xf32, #tpu.memory_space<vmem>>, vector<1x8x8x4xf32>
    %27 = vector.shape_cast %26 : vector<1x8x8x4xf32> to vector<8x8x4xf32>
    %28 = vector.shape_cast %25 : vector<8x8x4xf32> to vector<1x8x8x4xf32>
    tpu.vector_store %arg2[%c0_42, %c0_43, %c0_44, %c0_45], %28 {strides = array<i32>} : memref<1x8x8x4xf32, #tpu.memory_space<vmem>>, vector<1x8x8x4xf32>,
    return
  }
  func.func @transform_0(%arg0: i32) -> (i32, i32, i32, i32, i32) {
    %c0_i32 = arith.constant 0 : i32
    %c0_i32_0 = arith.constant 0 : i32
    %c0_i32_1 = arith.constant 0 : i32
    %c0_i32_2 = arith.constant 0 : i32
    %c0_i32_3 = arith.constant 0 : i32
    return %arg0, %c0_i32, %c0_i32_0, %c0_i32_1, %c0_i32_2 : i32, i32, i32, i32, i32
  }
  func.func @transform_1(%arg0: i32) -> (i32, i32, i32, i32) {
    %c0_i32 = arith.constant 0 : i32
    %c0_i32_0 = arith.constant 0 : i32
    %c0_i32_1 = arith.constant 0 : i32
    %c0_i32_2 = arith.constant 0 : i32
    return %arg0, %c0_i32, %c0_i32_0, %c0_i32_1 : i32, i32, i32, i32
  }
}

module attributes {stable_mosaic.version = 11 : i64} {
  func.func @_conv_tap_kernel(%arg0: i32, %arg1: memref<1x8x8x4xbf16, #tpu.memory_space<vmem>>, %arg2: memref<1x4xf32, #tpu.memory_space<vmem>>, %arg3: memref<1x4xf32, #tpu.memory_space<vmem>>, %arg4: memref<9x4x4xbf16, #tpu.memory_space<vmem>>, %arg5: memref<1x8x8x4xbf16, #tpu.memory_space<vmem>>, %arg6: memref<1x1x4xf32, #tpu.memory_space<vmem>>, %arg7: memref<1x1x4xf32, #tpu.memory_space<vmem>>, %arg8: memref<10x16x4xf32, #tpu.memory_space<vmem>>) attributes {dimension_semantics = [#tpu.dimension_semantics<parallel>], iteration_bounds = array<i64: 2>, scalar_prefetch = 0 : i64, scratch_operands = 1 : i64, tpu.core_type = #tpu.core_type<tc>, window_params = [{transform_indices = @transform_0, window_bounds = array<i64: 1, 8, 8, 4>}, {pipeline_mode = #tpu.pipeline_mode<synchronous>, transform_indices = @transform_1, window_bounds = array<i64: 1, 4>}, {pipeline_mode = #tpu.pipeline_mode<synchronous>, transform_indices = @transform_2, window_bounds = array<i64: 1, 4>}, {pipeline_mode = #tpu.pipeline_mode<synchronous>, transform_indices = @transform_3, window_bounds = array<i64: 9, 4, 4>}, {transform_indices = @transform_4, window_bounds = array<i64: 1, 8, 8, 4>}, {transform_indices = @transform_5, window_bounds = array<i64: 1, 1, 4>}, {transform_indices = @transform_6, window_bounds = array<i64: 1, 1, 4>}]} {
    %c0 = arith.constant 0 : index
    %c0_0 = arith.constant 0 : index
    %c0_1 = arith.constant 0 : index
    %c0_2 = arith.constant 0 : index
    %0 = vector.load %arg1[%c0, %c0_0, %c0_1, %c0_2] : memref<1x8x8x4xbf16, #tpu.memory_space<vmem>>, vector<1x8x8x4xbf16>
    %1 = vector.shape_cast %0 : vector<1x8x8x4xbf16> to vector<8x8x4xbf16>
    %c0_3 = arith.constant 0 : index
    %c0_4 = arith.constant 0 : index
    %2 = vector.load %arg2[%c0_3, %c0_4] : memref<1x4xf32, #tpu.memory_space<vmem>>, vector<1x4xf32>
    %3 = arith.extf %1 : vector<8x8x4xbf16> to vector<8x8x4xf32>
    %4 = vector.shape_cast %2 : vector<1x4xf32> to vector<1x1x4xf32>
    %5 = vector.broadcast %4 : vector<1x1x4xf32> to vector<8x8x4xf32>
    %6 = arith.mulf %3, %5 : vector<8x8x4xf32>
    %c0_5 = arith.constant 0 : index
    %c0_6 = arith.constant 0 : index
    %7 = vector.load %arg3[%c0_5, %c0_6] : memref<1x4xf32, #tpu.memory_space<vmem>>, vector<1x4xf32>
    %8 = vector.shape_cast %7 : vector<1x4xf32> to vector<1x1x4xf32>
    %9 = vector.broadcast %8 : vector<1x1x4xf32> to vector<8x8x4xf32>
    %10 = arith.addf %6, %9 : vector<8x8x4xf32>
    %cst = arith.constant 0.000000e+00 : f32
    %11 = vector.broadcast %cst : f32 to vector<8x8x4xf32>
    %12 = arith.maximumf %10, %11 : vector<8x8x4xf32>
    %cst_7 = arith.constant 0.000000e+00 : f32
    %13 = vector.broadcast %cst_7 : f32 to vector<10x16x4xf32>
    %c0_8 = arith.constant 0 : index
    %c0_9 = arith.constant 0 : index
    %c0_10 = arith.constant 0 : index
    %14 = vector.load %arg8[%c0_8, %c0_9, %c0_10] : memref<10x16x4xf32, #tpu.memory_space<vmem>>, vector<10x16x4xf32>
    tpu.vector_store %arg8[%c0_8, %c0_9, %c0_10], %13 {strides = array<i32>} : memref<10x16x4xf32, #tpu.memory_space<vmem>>, vector<10x16x4xf32>,
    %c1 = arith.constant 1 : index
    %c1_11 = arith.constant 1 : index
    %c0_12 = arith.constant 0 : index
    %15 = vector.load %arg8[%c1, %c1_11, %c0_12] : memref<10x16x4xf32, #tpu.memory_space<vmem>>, vector<8x8x4xf32>
    tpu.vector_store %arg8[%c1, %c1_11, %c0_12], %12 {strides = array<i32>} : memref<10x16x4xf32, #tpu.memory_space<vmem>>, vector<8x8x4xf32>,
    %c0_13 = arith.constant 0 : index
    %c0_14 = arith.constant 0 : index
    %c0_15 = arith.constant 0 : index
    %16 = vector.load %arg8[%c0_13, %c0_14, %c0_15] : memref<10x16x4xf32, #tpu.memory_space<vmem>>, vector<10x16x4xf32>
    %17 = vector.shape_cast %16 : vector<10x16x4xf32> to vector<160x4xf32>
    %18 = arith.truncf %17 : vector<160x4xf32> to vector<160x4xbf16>
    %cst_16 = arith.constant 0.000000e+00 : f32
    %19 = vector.broadcast %cst_16 : f32 to vector<8x8x4xf32>
    %20 = vector.extract_strided_slice %18 {offsets = [0, 0], sizes = [128, 4], strides = [1, 1]} : vector<160x4xbf16> to vector<128x4xbf16>
    %c0_17 = arith.constant 0 : index
    %c0_18 = arith.constant 0 : index
    %c0_19 = arith.constant 0 : index
    %21 = vector.load %arg4[%c0_17, %c0_18, %c0_19] : memref<9x4x4xbf16, #tpu.memory_space<vmem>>, vector<1x4x4xbf16>
    %22 = vector.shape_cast %21 : vector<1x4x4xbf16> to vector<4x4xbf16>
    %cst_20 = arith.constant dense<0.000000e+00> : vector<128x4xf32>
    %23 = tpu.matmul %20, %22, %cst_20 {dimension_numbers = #tpu.dot_dimension_numbers<[1], [0], [0], [1], [0, 0, 1, 1], [], []>} : vector<128x4xbf16>, vector<4x4xbf16>, vector<128x4xf32> -> vector<128x4xf32>
    %24 = vector.shape_cast %23 : vector<128x4xf32> to vector<8x16x4xf32>
    %25 = vector.extract_strided_slice %24 {offsets = [0, 0, 0], sizes = [8, 8, 4], strides = [1, 1, 1]} : vector<8x16x4xf32> to vector<8x8x4xf32>
    %26 = arith.addf %19, %25 : vector<8x8x4xf32>
    %27 = vector.extract_strided_slice %18 {offsets = [0, 0], sizes = [128, 4], strides = [1, 1]} : vector<160x4xbf16> to vector<128x4xbf16>
    %c1_21 = arith.constant 1 : index
    %c0_22 = arith.constant 0 : index
    %c0_23 = arith.constant 0 : index
    %28 = vector.load %arg4[%c1_21, %c0_22, %c0_23] : memref<9x4x4xbf16, #tpu.memory_space<vmem>>, vector<1x4x4xbf16>
    %29 = vector.shape_cast %28 : vector<1x4x4xbf16> to vector<4x4xbf16>
    %cst_24 = arith.constant dense<0.000000e+00> : vector<128x4xf32>
    %30 = tpu.matmul %27, %29, %cst_24 {dimension_numbers = #tpu.dot_dimension_numbers<[1], [0], [0], [1], [0, 0, 1, 1], [], []>} : vector<128x4xbf16>, vector<4x4xbf16>, vector<128x4xf32> -> vector<128x4xf32>
    %31 = vector.shape_cast %30 : vector<128x4xf32> to vector<8x16x4xf32>
    %32 = vector.extract_strided_slice %31 {offsets = [0, 1, 0], sizes = [8, 8, 4], strides = [1, 1, 1]} : vector<8x16x4xf32> to vector<8x8x4xf32>
    %33 = arith.addf %26, %32 : vector<8x8x4xf32>
    %34 = vector.extract_strided_slice %18 {offsets = [0, 0], sizes = [128, 4], strides = [1, 1]} : vector<160x4xbf16> to vector<128x4xbf16>
    %c2 = arith.constant 2 : index
    %c0_25 = arith.constant 0 : index
    %c0_26 = arith.constant 0 : index
    %35 = vector.load %arg4[%c2, %c0_25, %c0_26] : memref<9x4x4xbf16, #tpu.memory_space<vmem>>, vector<1x4x4xbf16>
    %36 = vector.shape_cast %35 : vector<1x4x4xbf16> to vector<4x4xbf16>
    %cst_27 = arith.constant dense<0.000000e+00> : vector<128x4xf32>
    %37 = tpu.matmul %34, %36, %cst_27 {dimension_numbers = #tpu.dot_dimension_numbers<[1], [0], [0], [1], [0, 0, 1, 1], [], []>} : vector<128x4xbf16>, vector<4x4xbf16>, vector<128x4xf32> -> vector<128x4xf32>
    %38 = vector.shape_cast %37 : vector<128x4xf32> to vector<8x16x4xf32>
    %39 = vector.extract_strided_slice %38 {offsets = [0, 2, 0], sizes = [8, 8, 4], strides = [1, 1, 1]} : vector<8x16x4xf32> to vector<8x8x4xf32>
    %40 = arith.addf %33, %39 : vector<8x8x4xf32>
    %41 = vector.extract_strided_slice %18 {offsets = [16, 0], sizes = [128, 4], strides = [1, 1]} : vector<160x4xbf16> to vector<128x4xbf16>
    %c3 = arith.constant 3 : index
    %c0_28 = arith.constant 0 : index
    %c0_29 = arith.constant 0 : index
    %42 = vector.load %arg4[%c3, %c0_28, %c0_29] : memref<9x4x4xbf16, #tpu.memory_space<vmem>>, vector<1x4x4xbf16>
    %43 = vector.shape_cast %42 : vector<1x4x4xbf16> to vector<4x4xbf16>
    %cst_30 = arith.constant dense<0.000000e+00> : vector<128x4xf32>
    %44 = tpu.matmul %41, %43, %cst_30 {dimension_numbers = #tpu.dot_dimension_numbers<[1], [0], [0], [1], [0, 0, 1, 1], [], []>} : vector<128x4xbf16>, vector<4x4xbf16>, vector<128x4xf32> -> vector<128x4xf32>
    %45 = vector.shape_cast %44 : vector<128x4xf32> to vector<8x16x4xf32>
    %46 = vector.extract_strided_slice %45 {offsets = [0, 0, 0], sizes = [8, 8, 4], strides = [1, 1, 1]} : vector<8x16x4xf32> to vector<8x8x4xf32>
    %47 = arith.addf %40, %46 : vector<8x8x4xf32>
    %48 = vector.extract_strided_slice %18 {offsets = [16, 0], sizes = [128, 4], strides = [1, 1]} : vector<160x4xbf16> to vector<128x4xbf16>
    %c4 = arith.constant 4 : index
    %c0_31 = arith.constant 0 : index
    %c0_32 = arith.constant 0 : index
    %49 = vector.load %arg4[%c4, %c0_31, %c0_32] : memref<9x4x4xbf16, #tpu.memory_space<vmem>>, vector<1x4x4xbf16>
    %50 = vector.shape_cast %49 : vector<1x4x4xbf16> to vector<4x4xbf16>
    %cst_33 = arith.constant dense<0.000000e+00> : vector<128x4xf32>
    %51 = tpu.matmul %48, %50, %cst_33 {dimension_numbers = #tpu.dot_dimension_numbers<[1], [0], [0], [1], [0, 0, 1, 1], [], []>} : vector<128x4xbf16>, vector<4x4xbf16>, vector<128x4xf32> -> vector<128x4xf32>
    %52 = vector.shape_cast %51 : vector<128x4xf32> to vector<8x16x4xf32>
    %53 = vector.extract_strided_slice %52 {offsets = [0, 1, 0], sizes = [8, 8, 4], strides = [1, 1, 1]} : vector<8x16x4xf32> to vector<8x8x4xf32>
    %54 = arith.addf %47, %53 : vector<8x8x4xf32>
    %55 = vector.extract_strided_slice %18 {offsets = [16, 0], sizes = [128, 4], strides = [1, 1]} : vector<160x4xbf16> to vector<128x4xbf16>
    %c5 = arith.constant 5 : index
    %c0_34 = arith.constant 0 : index
    %c0_35 = arith.constant 0 : index
    %56 = vector.load %arg4[%c5, %c0_34, %c0_35] : memref<9x4x4xbf16, #tpu.memory_space<vmem>>, vector<1x4x4xbf16>
    %57 = vector.shape_cast %56 : vector<1x4x4xbf16> to vector<4x4xbf16>
    %cst_36 = arith.constant dense<0.000000e+00> : vector<128x4xf32>
    %58 = tpu.matmul %55, %57, %cst_36 {dimension_numbers = #tpu.dot_dimension_numbers<[1], [0], [0], [1], [0, 0, 1, 1], [], []>} : vector<128x4xbf16>, vector<4x4xbf16>, vector<128x4xf32> -> vector<128x4xf32>
    %59 = vector.shape_cast %58 : vector<128x4xf32> to vector<8x16x4xf32>
    %60 = vector.extract_strided_slice %59 {offsets = [0, 2, 0], sizes = [8, 8, 4], strides = [1, 1, 1]} : vector<8x16x4xf32> to vector<8x8x4xf32>
    %61 = arith.addf %54, %60 : vector<8x8x4xf32>
    %62 = vector.extract_strided_slice %18 {offsets = [32, 0], sizes = [128, 4], strides = [1, 1]} : vector<160x4xbf16> to vector<128x4xbf16>
    %c6 = arith.constant 6 : index
    %c0_37 = arith.constant 0 : index
    %c0_38 = arith.constant 0 : index
    %63 = vector.load %arg4[%c6, %c0_37, %c0_38] : memref<9x4x4xbf16, #tpu.memory_space<vmem>>, vector<1x4x4xbf16>
    %64 = vector.shape_cast %63 : vector<1x4x4xbf16> to vector<4x4xbf16>
    %cst_39 = arith.constant dense<0.000000e+00> : vector<128x4xf32>
    %65 = tpu.matmul %62, %64, %cst_39 {dimension_numbers = #tpu.dot_dimension_numbers<[1], [0], [0], [1], [0, 0, 1, 1], [], []>} : vector<128x4xbf16>, vector<4x4xbf16>, vector<128x4xf32> -> vector<128x4xf32>
    %66 = vector.shape_cast %65 : vector<128x4xf32> to vector<8x16x4xf32>
    %67 = vector.extract_strided_slice %66 {offsets = [0, 0, 0], sizes = [8, 8, 4], strides = [1, 1, 1]} : vector<8x16x4xf32> to vector<8x8x4xf32>
    %68 = arith.addf %61, %67 : vector<8x8x4xf32>
    %69 = vector.extract_strided_slice %18 {offsets = [32, 0], sizes = [128, 4], strides = [1, 1]} : vector<160x4xbf16> to vector<128x4xbf16>
    %c7 = arith.constant 7 : index
    %c0_40 = arith.constant 0 : index
    %c0_41 = arith.constant 0 : index
    %70 = vector.load %arg4[%c7, %c0_40, %c0_41] : memref<9x4x4xbf16, #tpu.memory_space<vmem>>, vector<1x4x4xbf16>
    %71 = vector.shape_cast %70 : vector<1x4x4xbf16> to vector<4x4xbf16>
    %cst_42 = arith.constant dense<0.000000e+00> : vector<128x4xf32>
    %72 = tpu.matmul %69, %71, %cst_42 {dimension_numbers = #tpu.dot_dimension_numbers<[1], [0], [0], [1], [0, 0, 1, 1], [], []>} : vector<128x4xbf16>, vector<4x4xbf16>, vector<128x4xf32> -> vector<128x4xf32>
    %73 = vector.shape_cast %72 : vector<128x4xf32> to vector<8x16x4xf32>
    %74 = vector.extract_strided_slice %73 {offsets = [0, 1, 0], sizes = [8, 8, 4], strides = [1, 1, 1]} : vector<8x16x4xf32> to vector<8x8x4xf32>
    %75 = arith.addf %68, %74 : vector<8x8x4xf32>
    %76 = vector.extract_strided_slice %18 {offsets = [32, 0], sizes = [128, 4], strides = [1, 1]} : vector<160x4xbf16> to vector<128x4xbf16>
    %c8 = arith.constant 8 : index
    %c0_43 = arith.constant 0 : index
    %c0_44 = arith.constant 0 : index
    %77 = vector.load %arg4[%c8, %c0_43, %c0_44] : memref<9x4x4xbf16, #tpu.memory_space<vmem>>, vector<1x4x4xbf16>
    %78 = vector.shape_cast %77 : vector<1x4x4xbf16> to vector<4x4xbf16>
    %cst_45 = arith.constant dense<0.000000e+00> : vector<128x4xf32>
    %79 = tpu.matmul %76, %78, %cst_45 {dimension_numbers = #tpu.dot_dimension_numbers<[1], [0], [0], [1], [0, 0, 1, 1], [], []>} : vector<128x4xbf16>, vector<4x4xbf16>, vector<128x4xf32> -> vector<128x4xf32>
    %80 = vector.shape_cast %79 : vector<128x4xf32> to vector<8x16x4xf32>
    %81 = vector.extract_strided_slice %80 {offsets = [0, 2, 0], sizes = [8, 8, 4], strides = [1, 1, 1]} : vector<8x16x4xf32> to vector<8x8x4xf32>
    %82 = arith.addf %75, %81 : vector<8x8x4xf32>
    %83 = arith.truncf %82 : vector<8x8x4xf32> to vector<8x8x4xbf16>
    %c0_46 = arith.constant 0 : index
    %c0_47 = arith.constant 0 : index
    %c0_48 = arith.constant 0 : index
    %c0_49 = arith.constant 0 : index
    %84 = vector.load %arg5[%c0_46, %c0_47, %c0_48, %c0_49] : memref<1x8x8x4xbf16, #tpu.memory_space<vmem>>, vector<1x8x8x4xbf16>
    %85 = vector.shape_cast %84 : vector<1x8x8x4xbf16> to vector<8x8x4xbf16>
    %86 = vector.shape_cast %83 : vector<8x8x4xbf16> to vector<1x8x8x4xbf16>
    tpu.vector_store %arg5[%c0_46, %c0_47, %c0_48, %c0_49], %86 {strides = array<i32>} : memref<1x8x8x4xbf16, #tpu.memory_space<vmem>>, vector<1x8x8x4xbf16>,
    %cst_50 = arith.constant dense<0.000000e+00> : vector<4xf32>
    %87 = vector.multi_reduction <add>, %82, %cst_50 [0, 1] : vector<8x8x4xf32> to vector<4xf32>
    %88 = vector.shape_cast %87 : vector<4xf32> to vector<1x1x4xf32>
    %c0_51 = arith.constant 0 : index
    %c0_52 = arith.constant 0 : index
    %c0_53 = arith.constant 0 : index
    %89 = vector.load %arg6[%c0_51, %c0_52, %c0_53] : memref<1x1x4xf32, #tpu.memory_space<vmem>>, vector<1x1x4xf32>
    tpu.vector_store %arg6[%c0_51, %c0_52, %c0_53], %88 {strides = array<i32>} : memref<1x1x4xf32, #tpu.memory_space<vmem>>, vector<1x1x4xf32>,
    %90 = arith.mulf %82, %82 : vector<8x8x4xf32>
    %cst_54 = arith.constant dense<0.000000e+00> : vector<4xf32>
    %91 = vector.multi_reduction <add>, %90, %cst_54 [0, 1] : vector<8x8x4xf32> to vector<4xf32>
    %92 = vector.shape_cast %91 : vector<4xf32> to vector<1x1x4xf32>
    %c0_55 = arith.constant 0 : index
    %c0_56 = arith.constant 0 : index
    %c0_57 = arith.constant 0 : index
    %93 = vector.load %arg7[%c0_55, %c0_56, %c0_57] : memref<1x1x4xf32, #tpu.memory_space<vmem>>, vector<1x1x4xf32>
    tpu.vector_store %arg7[%c0_55, %c0_56, %c0_57], %92 {strides = array<i32>} : memref<1x1x4xf32, #tpu.memory_space<vmem>>, vector<1x1x4xf32>,
    return
  }
  func.func @transform_0(%arg0: i32) -> (i32, i32, i32, i32) {
    %c0_i32 = arith.constant 0 : i32
    %c0_i32_0 = arith.constant 0 : i32
    %c0_i32_1 = arith.constant 0 : i32
    %c0_i32_2 = arith.constant 0 : i32
    return %arg0, %c0_i32, %c0_i32_0, %c0_i32_1 : i32, i32, i32, i32
  }
  func.func @transform_1(%arg0: i32) -> (i32, i32) {
    %c0_i32 = arith.constant 0 : i32
    %c0_i32_0 = arith.constant 0 : i32
    %c0_i32_1 = arith.constant 0 : i32
    return %c0_i32, %c0_i32_0 : i32, i32
  }
  func.func @transform_2(%arg0: i32) -> (i32, i32) {
    %c0_i32 = arith.constant 0 : i32
    %c0_i32_0 = arith.constant 0 : i32
    %c0_i32_1 = arith.constant 0 : i32
    return %c0_i32, %c0_i32_0 : i32, i32
  }
  func.func @transform_3(%arg0: i32) -> (i32, i32, i32) {
    %c0_i32 = arith.constant 0 : i32
    %c0_i32_0 = arith.constant 0 : i32
    %c0_i32_1 = arith.constant 0 : i32
    %c0_i32_2 = arith.constant 0 : i32
    return %c0_i32, %c0_i32_0, %c0_i32_1 : i32, i32, i32
  }
  func.func @transform_4(%arg0: i32) -> (i32, i32, i32, i32) {
    %c0_i32 = arith.constant 0 : i32
    %c0_i32_0 = arith.constant 0 : i32
    %c0_i32_1 = arith.constant 0 : i32
    %c0_i32_2 = arith.constant 0 : i32
    return %arg0, %c0_i32, %c0_i32_0, %c0_i32_1 : i32, i32, i32, i32
  }
  func.func @transform_5(%arg0: i32) -> (i32, i32, i32) {
    %c0_i32 = arith.constant 0 : i32
    %c0_i32_0 = arith.constant 0 : i32
    %c0_i32_1 = arith.constant 0 : i32
    return %arg0, %c0_i32, %c0_i32_0 : i32, i32, i32
  }
  func.func @transform_6(%arg0: i32) -> (i32, i32, i32) {
    %c0_i32 = arith.constant 0 : i32
    %c0_i32_0 = arith.constant 0 : i32
    %c0_i32_1 = arith.constant 0 : i32
    return %arg0, %c0_i32, %c0_i32_0 : i32, i32, i32
  }
}

module attributes {stable_mosaic.version = 11 : i64} {
  func.func @_conv1x1_kernel(%arg0: i32, %arg1: memref<1x64x4xbf16, #tpu.memory_space<vmem>>, %arg2: memref<1x4xf32, #tpu.memory_space<vmem>>, %arg3: memref<1x4xf32, #tpu.memory_space<vmem>>, %arg4: memref<4x16xbf16, #tpu.memory_space<vmem>>, %arg5: memref<1x64x16xf32, #tpu.memory_space<vmem>>, %arg6: memref<1x1x16xf32, #tpu.memory_space<vmem>>, %arg7: memref<1x1x16xf32, #tpu.memory_space<vmem>>) attributes {dimension_semantics = [#tpu.dimension_semantics<parallel>], iteration_bounds = array<i64: 2>, scalar_prefetch = 0 : i64, scratch_operands = 0 : i64, tpu.core_type = #tpu.core_type<tc>, window_params = [{transform_indices = @transform_0, window_bounds = array<i64: 1, 64, 4>}, {pipeline_mode = #tpu.pipeline_mode<synchronous>, transform_indices = @transform_1, window_bounds = array<i64: 1, 4>}, {pipeline_mode = #tpu.pipeline_mode<synchronous>, transform_indices = @transform_2, window_bounds = array<i64: 1, 4>}, {pipeline_mode = #tpu.pipeline_mode<synchronous>, transform_indices = @transform_3, window_bounds = array<i64: 4, 16>}, {transform_indices = @transform_4, window_bounds = array<i64: 1, 64, 16>}, {transform_indices = @transform_5, window_bounds = array<i64: 1, 1, 16>}, {transform_indices = @transform_6, window_bounds = array<i64: 1, 1, 16>}]} {
    %c0 = arith.constant 0 : index
    %c0_0 = arith.constant 0 : index
    %c0_1 = arith.constant 0 : index
    %0 = vector.load %arg1[%c0, %c0_0, %c0_1] : memref<1x64x4xbf16, #tpu.memory_space<vmem>>, vector<1x64x4xbf16>
    %1 = vector.shape_cast %0 : vector<1x64x4xbf16> to vector<64x4xbf16>
    %c0_2 = arith.constant 0 : index
    %c0_3 = arith.constant 0 : index
    %2 = vector.load %arg2[%c0_2, %c0_3] : memref<1x4xf32, #tpu.memory_space<vmem>>, vector<1x4xf32>
    %3 = arith.extf %1 : vector<64x4xbf16> to vector<64x4xf32>
    %4 = vector.broadcast %2 : vector<1x4xf32> to vector<64x4xf32>
    %5 = arith.mulf %3, %4 : vector<64x4xf32>
    %c0_4 = arith.constant 0 : index
    %c0_5 = arith.constant 0 : index
    %6 = vector.load %arg3[%c0_4, %c0_5] : memref<1x4xf32, #tpu.memory_space<vmem>>, vector<1x4xf32>
    %7 = vector.broadcast %6 : vector<1x4xf32> to vector<64x4xf32>
    %8 = arith.addf %5, %7 : vector<64x4xf32>
    %cst = arith.constant 0.000000e+00 : f32
    %9 = vector.broadcast %cst : f32 to vector<64x4xf32>
    %10 = arith.maximumf %8, %9 : vector<64x4xf32>
    %11 = arith.truncf %10 : vector<64x4xf32> to vector<64x4xbf16>
    %c0_6 = arith.constant 0 : index
    %c0_7 = arith.constant 0 : index
    %12 = vector.load %arg4[%c0_6, %c0_7] : memref<4x16xbf16, #tpu.memory_space<vmem>>, vector<4x16xbf16>
    %cst_8 = arith.constant dense<0.000000e+00> : vector<64x16xf32>
    %13 = tpu.matmul %11, %12, %cst_8 {dimension_numbers = #tpu.dot_dimension_numbers<[1], [0], [0], [1], [0, 0, 1, 1], [], []>} : vector<64x4xbf16>, vector<4x16xbf16>, vector<64x16xf32> -> vector<64x16xf32>
    %c0_9 = arith.constant 0 : index
    %c0_10 = arith.constant 0 : index
    %c0_11 = arith.constant 0 : index
    %14 = vector.load %arg5[%c0_9, %c0_10, %c0_11] : memref<1x64x16xf32, #tpu.memory_space<vmem>>, vector<1x64x16xf32>
    %15 = vector.shape_cast %14 : vector<1x64x16xf32> to vector<64x16xf32>
    %16 = vector.shape_cast %13 : vector<64x16xf32> to vector<1x64x16xf32>
    tpu.vector_store %arg5[%c0_9, %c0_10, %c0_11], %16 {strides = array<i32>} : memref<1x64x16xf32, #tpu.memory_space<vmem>>, vector<1x64x16xf32>,
    %cst_12 = arith.constant dense<0.000000e+00> : vector<16xf32>
    %17 = vector.multi_reduction <add>, %13, %cst_12 [0] : vector<64x16xf32> to vector<16xf32>
    %18 = vector.shape_cast %17 : vector<16xf32> to vector<1x16xf32>
    %c0_13 = arith.constant 0 : index
    %c0_14 = arith.constant 0 : index
    %c0_15 = arith.constant 0 : index
    %19 = vector.load %arg6[%c0_13, %c0_14, %c0_15] : memref<1x1x16xf32, #tpu.memory_space<vmem>>, vector<1x1x16xf32>
    %20 = vector.shape_cast %19 : vector<1x1x16xf32> to vector<1x16xf32>
    %21 = vector.shape_cast %18 : vector<1x16xf32> to vector<1x1x16xf32>
    tpu.vector_store %arg6[%c0_13, %c0_14, %c0_15], %21 {strides = array<i32>} : memref<1x1x16xf32, #tpu.memory_space<vmem>>, vector<1x1x16xf32>,
    %22 = arith.mulf %13, %13 : vector<64x16xf32>
    %cst_16 = arith.constant dense<0.000000e+00> : vector<16xf32>
    %23 = vector.multi_reduction <add>, %22, %cst_16 [0] : vector<64x16xf32> to vector<16xf32>
    %24 = vector.shape_cast %23 : vector<16xf32> to vector<1x16xf32>
    %c0_17 = arith.constant 0 : index
    %c0_18 = arith.constant 0 : index
    %c0_19 = arith.constant 0 : index
    %25 = vector.load %arg7[%c0_17, %c0_18, %c0_19] : memref<1x1x16xf32, #tpu.memory_space<vmem>>, vector<1x1x16xf32>
    %26 = vector.shape_cast %25 : vector<1x1x16xf32> to vector<1x16xf32>
    %27 = vector.shape_cast %24 : vector<1x16xf32> to vector<1x1x16xf32>
    tpu.vector_store %arg7[%c0_17, %c0_18, %c0_19], %27 {strides = array<i32>} : memref<1x1x16xf32, #tpu.memory_space<vmem>>, vector<1x1x16xf32>,
    return
  }
  func.func @transform_0(%arg0: i32) -> (i32, i32, i32) {
    %c0_i32 = arith.constant 0 : i32
    %c0_i32_0 = arith.constant 0 : i32
    %c0_i32_1 = arith.constant 0 : i32
    return %arg0, %c0_i32, %c0_i32_0 : i32, i32, i32
  }
  func.func @transform_1(%arg0: i32) -> (i32, i32) {
    %c0_i32 = arith.constant 0 : i32
    %c0_i32_0 = arith.constant 0 : i32
    %c0_i32_1 = arith.constant 0 : i32
    return %c0_i32, %c0_i32_0 : i32, i32
  }
  func.func @transform_2(%arg0: i32) -> (i32, i32) {
    %c0_i32 = arith.constant 0 : i32
    %c0_i32_0 = arith.constant 0 : i32
    %c0_i32_1 = arith.constant 0 : i32
    return %c0_i32, %c0_i32_0 : i32, i32
  }
  func.func @transform_3(%arg0: i32) -> (i32, i32) {
    %c0_i32 = arith.constant 0 : i32
    %c0_i32_0 = arith.constant 0 : i32
    %c0_i32_1 = arith.constant 0 : i32
    return %c0_i32, %c0_i32_0 : i32, i32
  }
  func.func @transform_4(%arg0: i32) -> (i32, i32, i32) {
    %c0_i32 = arith.constant 0 : i32
    %c0_i32_0 = arith.constant 0 : i32
    %c0_i32_1 = arith.constant 0 : i32
    return %arg0, %c0_i32, %c0_i32_0 : i32, i32, i32
  }
  func.func @transform_5(%arg0: i32) -> (i32, i32, i32) {
    %c0_i32 = arith.constant 0 : i32
    %c0_i32_0 = arith.constant 0 : i32
    %c0_i32_1 = arith.constant 0 : i32
    return %arg0, %c0_i32, %c0_i32_0 : i32, i32, i32
  }
  func.func @transform_6(%arg0: i32) -> (i32, i32, i32) {
    %c0_i32 = arith.constant 0 : i32
    %c0_i32_0 = arith.constant 0 : i32
    %c0_i32_1 = arith.constant 0 : i32
    return %arg0, %c0_i32, %c0_i32_0 : i32, i32, i32
  }
}

module attributes {stable_mosaic.version = 11 : i64} {
  func.func @_conv1x1_kernel(%arg0: i32, %arg1: memref<1x64x4xf32, #tpu.memory_space<vmem>>, %arg2: memref<4x16xbf16, #tpu.memory_space<vmem>>, %arg3: memref<1x64x16xf32, #tpu.memory_space<vmem>>, %arg4: memref<1x1x16xf32, #tpu.memory_space<vmem>>, %arg5: memref<1x1x16xf32, #tpu.memory_space<vmem>>) attributes {dimension_semantics = [#tpu.dimension_semantics<parallel>], iteration_bounds = array<i64: 2>, scalar_prefetch = 0 : i64, scratch_operands = 0 : i64, tpu.core_type = #tpu.core_type<tc>, window_params = [{transform_indices = @transform_0, window_bounds = array<i64: 1, 64, 4>}, {pipeline_mode = #tpu.pipeline_mode<synchronous>, transform_indices = @transform_1, window_bounds = array<i64: 4, 16>}, {transform_indices = @transform_2, window_bounds = array<i64: 1, 64, 16>}, {transform_indices = @transform_3, window_bounds = array<i64: 1, 1, 16>}, {transform_indices = @transform_4, window_bounds = array<i64: 1, 1, 16>}]} {
    %c0 = arith.constant 0 : index
    %c0_0 = arith.constant 0 : index
    %c0_1 = arith.constant 0 : index
    %0 = vector.load %arg1[%c0, %c0_0, %c0_1] : memref<1x64x4xf32, #tpu.memory_space<vmem>>, vector<1x64x4xf32>
    %1 = vector.shape_cast %0 : vector<1x64x4xf32> to vector<64x4xf32>
    %2 = arith.truncf %1 : vector<64x4xf32> to vector<64x4xbf16>
    %c0_2 = arith.constant 0 : index
    %c0_3 = arith.constant 0 : index
    %3 = vector.load %arg2[%c0_2, %c0_3] : memref<4x16xbf16, #tpu.memory_space<vmem>>, vector<4x16xbf16>
    %cst = arith.constant dense<0.000000e+00> : vector<64x16xf32>
    %4 = tpu.matmul %2, %3, %cst {dimension_numbers = #tpu.dot_dimension_numbers<[1], [0], [0], [1], [0, 0, 1, 1], [], []>} : vector<64x4xbf16>, vector<4x16xbf16>, vector<64x16xf32> -> vector<64x16xf32>
    %c0_4 = arith.constant 0 : index
    %c0_5 = arith.constant 0 : index
    %c0_6 = arith.constant 0 : index
    %5 = vector.load %arg3[%c0_4, %c0_5, %c0_6] : memref<1x64x16xf32, #tpu.memory_space<vmem>>, vector<1x64x16xf32>
    %6 = vector.shape_cast %5 : vector<1x64x16xf32> to vector<64x16xf32>
    %7 = vector.shape_cast %4 : vector<64x16xf32> to vector<1x64x16xf32>
    tpu.vector_store %arg3[%c0_4, %c0_5, %c0_6], %7 {strides = array<i32>} : memref<1x64x16xf32, #tpu.memory_space<vmem>>, vector<1x64x16xf32>,
    %cst_7 = arith.constant dense<0.000000e+00> : vector<16xf32>
    %8 = vector.multi_reduction <add>, %4, %cst_7 [0] : vector<64x16xf32> to vector<16xf32>
    %9 = vector.shape_cast %8 : vector<16xf32> to vector<1x16xf32>
    %c0_8 = arith.constant 0 : index
    %c0_9 = arith.constant 0 : index
    %c0_10 = arith.constant 0 : index
    %10 = vector.load %arg4[%c0_8, %c0_9, %c0_10] : memref<1x1x16xf32, #tpu.memory_space<vmem>>, vector<1x1x16xf32>
    %11 = vector.shape_cast %10 : vector<1x1x16xf32> to vector<1x16xf32>
    %12 = vector.shape_cast %9 : vector<1x16xf32> to vector<1x1x16xf32>
    tpu.vector_store %arg4[%c0_8, %c0_9, %c0_10], %12 {strides = array<i32>} : memref<1x1x16xf32, #tpu.memory_space<vmem>>, vector<1x1x16xf32>,
    %13 = arith.mulf %4, %4 : vector<64x16xf32>
    %cst_11 = arith.constant dense<0.000000e+00> : vector<16xf32>
    %14 = vector.multi_reduction <add>, %13, %cst_11 [0] : vector<64x16xf32> to vector<16xf32>
    %15 = vector.shape_cast %14 : vector<16xf32> to vector<1x16xf32>
    %c0_12 = arith.constant 0 : index
    %c0_13 = arith.constant 0 : index
    %c0_14 = arith.constant 0 : index
    %16 = vector.load %arg5[%c0_12, %c0_13, %c0_14] : memref<1x1x16xf32, #tpu.memory_space<vmem>>, vector<1x1x16xf32>
    %17 = vector.shape_cast %16 : vector<1x1x16xf32> to vector<1x16xf32>
    %18 = vector.shape_cast %15 : vector<1x16xf32> to vector<1x1x16xf32>
    tpu.vector_store %arg5[%c0_12, %c0_13, %c0_14], %18 {strides = array<i32>} : memref<1x1x16xf32, #tpu.memory_space<vmem>>, vector<1x1x16xf32>,
    return
  }
  func.func @transform_0(%arg0: i32) -> (i32, i32, i32) {
    %c0_i32 = arith.constant 0 : i32
    %c0_i32_0 = arith.constant 0 : i32
    %c0_i32_1 = arith.constant 0 : i32
    return %arg0, %c0_i32, %c0_i32_0 : i32, i32, i32
  }
  func.func @transform_1(%arg0: i32) -> (i32, i32) {
    %c0_i32 = arith.constant 0 : i32
    %c0_i32_0 = arith.constant 0 : i32
    %c0_i32_1 = arith.constant 0 : i32
    return %c0_i32, %c0_i32_0 : i32, i32
  }
  func.func @transform_2(%arg0: i32) -> (i32, i32, i32) {
    %c0_i32 = arith.constant 0 : i32
    %c0_i32_0 = arith.constant 0 : i32
    %c0_i32_1 = arith.constant 0 : i32
    return %arg0, %c0_i32, %c0_i32_0 : i32, i32, i32
  }
  func.func @transform_3(%arg0: i32) -> (i32, i32, i32) {
    %c0_i32 = arith.constant 0 : i32
    %c0_i32_0 = arith.constant 0 : i32
    %c0_i32_1 = arith.constant 0 : i32
    return %arg0, %c0_i32, %c0_i32_0 : i32, i32, i32
  }
  func.func @transform_4(%arg0: i32) -> (i32, i32, i32) {
    %c0_i32 = arith.constant 0 : i32
    %c0_i32_0 = arith.constant 0 : i32
    %c0_i32_1 = arith.constant 0 : i32
    return %arg0, %c0_i32, %c0_i32_0 : i32, i32, i32
  }
}

module attributes {stable_mosaic.version = 11 : i64} {
  func.func @_residual_affine_kernel(%arg0: memref<2x8x128xf32, #tpu.memory_space<vmem>>, %arg1: memref<1x1x128xf32, #tpu.memory_space<vmem>>, %arg2: memref<1x1x128xf32, #tpu.memory_space<vmem>>, %arg3: memref<2x8x128xf32, #tpu.memory_space<vmem>>, %arg4: memref<1x1x128xf32, #tpu.memory_space<vmem>>, %arg5: memref<1x1x128xf32, #tpu.memory_space<vmem>>, %arg6: memref<2x8x128xf32, #tpu.memory_space<vmem>>) attributes {dimension_semantics = [], scalar_prefetch = 0 : i64, scratch_operands = 0 : i64, tpu.core_type = #tpu.core_type<tc>} {
    %c0 = arith.constant 0 : index
    %c0_0 = arith.constant 0 : index
    %c0_1 = arith.constant 0 : index
    %0 = vector.load %arg0[%c0, %c0_0, %c0_1] : memref<2x8x128xf32, #tpu.memory_space<vmem>>, vector<2x8x128xf32>
    %c0_2 = arith.constant 0 : index
    %c0_3 = arith.constant 0 : index
    %c0_4 = arith.constant 0 : index
    %1 = vector.load %arg1[%c0_2, %c0_3, %c0_4] : memref<1x1x128xf32, #tpu.memory_space<vmem>>, vector<1x1x128xf32>
    %2 = vector.broadcast %1 : vector<1x1x128xf32> to vector<2x8x128xf32>
    %3 = arith.mulf %0, %2 : vector<2x8x128xf32>
    %c0_5 = arith.constant 0 : index
    %c0_6 = arith.constant 0 : index
    %c0_7 = arith.constant 0 : index
    %4 = vector.load %arg2[%c0_5, %c0_6, %c0_7] : memref<1x1x128xf32, #tpu.memory_space<vmem>>, vector<1x1x128xf32>
    %5 = vector.broadcast %4 : vector<1x1x128xf32> to vector<2x8x128xf32>
    %6 = arith.addf %3, %5 : vector<2x8x128xf32>
    %c0_8 = arith.constant 0 : index
    %c0_9 = arith.constant 0 : index
    %c0_10 = arith.constant 0 : index
    %7 = vector.load %arg3[%c0_8, %c0_9, %c0_10] : memref<2x8x128xf32, #tpu.memory_space<vmem>>, vector<2x8x128xf32>
    %c0_11 = arith.constant 0 : index
    %c0_12 = arith.constant 0 : index
    %c0_13 = arith.constant 0 : index
    %8 = vector.load %arg4[%c0_11, %c0_12, %c0_13] : memref<1x1x128xf32, #tpu.memory_space<vmem>>, vector<1x1x128xf32>
    %9 = vector.broadcast %8 : vector<1x1x128xf32> to vector<2x8x128xf32>
    %10 = arith.mulf %7, %9 : vector<2x8x128xf32>
    %11 = arith.addf %6, %10 : vector<2x8x128xf32>
    %c0_14 = arith.constant 0 : index
    %c0_15 = arith.constant 0 : index
    %c0_16 = arith.constant 0 : index
    %12 = vector.load %arg5[%c0_14, %c0_15, %c0_16] : memref<1x1x128xf32, #tpu.memory_space<vmem>>, vector<1x1x128xf32>
    %13 = vector.broadcast %12 : vector<1x1x128xf32> to vector<2x8x128xf32>
    %14 = arith.addf %11, %13 : vector<2x8x128xf32>
    %cst = arith.constant 0.000000e+00 : f32
    %15 = vector.broadcast %cst : f32 to vector<2x8x128xf32>
    %16 = arith.maximumf %14, %15 : vector<2x8x128xf32>
    %c0_17 = arith.constant 0 : index
    %c0_18 = arith.constant 0 : index
    %c0_19 = arith.constant 0 : index
    %17 = vector.load %arg6[%c0_17, %c0_18, %c0_19] : memref<2x8x128xf32, #tpu.memory_space<vmem>>, vector<2x8x128xf32>
    tpu.vector_store %arg6[%c0_17, %c0_18, %c0_19], %16 {strides = array<i32>} : memref<2x8x128xf32, #tpu.memory_space<vmem>>, vector<2x8x128xf32>,
    return
  }
}

module attributes {stable_mosaic.version = 11 : i64} {
  func.func @_conv1x1_kernel(%arg0: i32, %arg1: memref<1x16x16xf32, #tpu.memory_space<vmem>>, %arg2: memref<16x32xbf16, #tpu.memory_space<vmem>>, %arg3: memref<1x16x32xf32, #tpu.memory_space<vmem>>, %arg4: memref<1x1x32xf32, #tpu.memory_space<vmem>>, %arg5: memref<1x1x32xf32, #tpu.memory_space<vmem>>) attributes {dimension_semantics = [#tpu.dimension_semantics<parallel>], iteration_bounds = array<i64: 2>, scalar_prefetch = 0 : i64, scratch_operands = 0 : i64, tpu.core_type = #tpu.core_type<tc>, window_params = [{transform_indices = @transform_0, window_bounds = array<i64: 1, 16, 16>}, {pipeline_mode = #tpu.pipeline_mode<synchronous>, transform_indices = @transform_1, window_bounds = array<i64: 16, 32>}, {transform_indices = @transform_2, window_bounds = array<i64: 1, 16, 32>}, {transform_indices = @transform_3, window_bounds = array<i64: 1, 1, 32>}, {transform_indices = @transform_4, window_bounds = array<i64: 1, 1, 32>}]} {
    %c0 = arith.constant 0 : index
    %c0_0 = arith.constant 0 : index
    %c0_1 = arith.constant 0 : index
    %0 = vector.load %arg1[%c0, %c0_0, %c0_1] : memref<1x16x16xf32, #tpu.memory_space<vmem>>, vector<1x16x16xf32>
    %1 = vector.shape_cast %0 : vector<1x16x16xf32> to vector<16x16xf32>
    %2 = arith.truncf %1 : vector<16x16xf32> to vector<16x16xbf16>
    %c0_2 = arith.constant 0 : index
    %c0_3 = arith.constant 0 : index
    %3 = vector.load %arg2[%c0_2, %c0_3] : memref<16x32xbf16, #tpu.memory_space<vmem>>, vector<16x32xbf16>
    %cst = arith.constant dense<0.000000e+00> : vector<16x32xf32>
    %4 = tpu.matmul %2, %3, %cst {dimension_numbers = #tpu.dot_dimension_numbers<[1], [0], [0], [1], [0, 0, 1, 1], [], []>} : vector<16x16xbf16>, vector<16x32xbf16>, vector<16x32xf32> -> vector<16x32xf32>
    %c0_4 = arith.constant 0 : index
    %c0_5 = arith.constant 0 : index
    %c0_6 = arith.constant 0 : index
    %5 = vector.load %arg3[%c0_4, %c0_5, %c0_6] : memref<1x16x32xf32, #tpu.memory_space<vmem>>, vector<1x16x32xf32>
    %6 = vector.shape_cast %5 : vector<1x16x32xf32> to vector<16x32xf32>
    %7 = vector.shape_cast %4 : vector<16x32xf32> to vector<1x16x32xf32>
    tpu.vector_store %arg3[%c0_4, %c0_5, %c0_6], %7 {strides = array<i32>} : memref<1x16x32xf32, #tpu.memory_space<vmem>>, vector<1x16x32xf32>,
    %cst_7 = arith.constant dense<0.000000e+00> : vector<32xf32>
    %8 = vector.multi_reduction <add>, %4, %cst_7 [0] : vector<16x32xf32> to vector<32xf32>
    %9 = vector.shape_cast %8 : vector<32xf32> to vector<1x32xf32>
    %c0_8 = arith.constant 0 : index
    %c0_9 = arith.constant 0 : index
    %c0_10 = arith.constant 0 : index
    %10 = vector.load %arg4[%c0_8, %c0_9, %c0_10] : memref<1x1x32xf32, #tpu.memory_space<vmem>>, vector<1x1x32xf32>
    %11 = vector.shape_cast %10 : vector<1x1x32xf32> to vector<1x32xf32>
    %12 = vector.shape_cast %9 : vector<1x32xf32> to vector<1x1x32xf32>
    tpu.vector_store %arg4[%c0_8, %c0_9, %c0_10], %12 {strides = array<i32>} : memref<1x1x32xf32, #tpu.memory_space<vmem>>, vector<1x1x32xf32>,
    %13 = arith.mulf %4, %4 : vector<16x32xf32>
    %cst_11 = arith.constant dense<0.000000e+00> : vector<32xf32>
    %14 = vector.multi_reduction <add>, %13, %cst_11 [0] : vector<16x32xf32> to vector<32xf32>
    %15 = vector.shape_cast %14 : vector<32xf32> to vector<1x32xf32>
    %c0_12 = arith.constant 0 : index
    %c0_13 = arith.constant 0 : index
    %c0_14 = arith.constant 0 : index
    %16 = vector.load %arg5[%c0_12, %c0_13, %c0_14] : memref<1x1x32xf32, #tpu.memory_space<vmem>>, vector<1x1x32xf32>
    %17 = vector.shape_cast %16 : vector<1x1x32xf32> to vector<1x32xf32>
    %18 = vector.shape_cast %15 : vector<1x32xf32> to vector<1x1x32xf32>
    tpu.vector_store %arg5[%c0_12, %c0_13, %c0_14], %18 {strides = array<i32>} : memref<1x1x32xf32, #tpu.memory_space<vmem>>, vector<1x1x32xf32>,
    return
  }
  func.func @transform_0(%arg0: i32) -> (i32, i32, i32) {
    %c0_i32 = arith.constant 0 : i32
    %c0_i32_0 = arith.constant 0 : i32
    %c0_i32_1 = arith.constant 0 : i32
    return %arg0, %c0_i32, %c0_i32_0 : i32, i32, i32
  }
  func.func @transform_1(%arg0: i32) -> (i32, i32) {
    %c0_i32 = arith.constant 0 : i32
    %c0_i32_0 = arith.constant 0 : i32
    %c0_i32_1 = arith.constant 0 : i32
    return %c0_i32, %c0_i32_0 : i32, i32
  }
  func.func @transform_2(%arg0: i32) -> (i32, i32, i32) {
    %c0_i32 = arith.constant 0 : i32
    %c0_i32_0 = arith.constant 0 : i32
    %c0_i32_1 = arith.constant 0 : i32
    return %arg0, %c0_i32, %c0_i32_0 : i32, i32, i32
  }
  func.func @transform_3(%arg0: i32) -> (i32, i32, i32) {
    %c0_i32 = arith.constant 0 : i32
    %c0_i32_0 = arith.constant 0 : i32
    %c0_i32_1 = arith.constant 0 : i32
    return %arg0, %c0_i32, %c0_i32_0 : i32, i32, i32
  }
  func.func @transform_4(%arg0: i32) -> (i32, i32, i32) {
    %c0_i32 = arith.constant 0 : i32
    %c0_i32_0 = arith.constant 0 : i32
    %c0_i32_1 = arith.constant 0 : i32
    return %arg0, %c0_i32, %c0_i32_0 : i32, i32, i32
  }
}

module attributes {stable_mosaic.version = 11 : i64} {
  func.func @_conv1x1_kernel(%arg0: i32, %arg1: memref<1x64x16xf32, #tpu.memory_space<vmem>>, %arg2: memref<16x8xbf16, #tpu.memory_space<vmem>>, %arg3: memref<1x64x8xbf16, #tpu.memory_space<vmem>>, %arg4: memref<1x1x8xf32, #tpu.memory_space<vmem>>, %arg5: memref<1x1x8xf32, #tpu.memory_space<vmem>>) attributes {dimension_semantics = [#tpu.dimension_semantics<parallel>], iteration_bounds = array<i64: 2>, scalar_prefetch = 0 : i64, scratch_operands = 0 : i64, tpu.core_type = #tpu.core_type<tc>, window_params = [{transform_indices = @transform_0, window_bounds = array<i64: 1, 64, 16>}, {pipeline_mode = #tpu.pipeline_mode<synchronous>, transform_indices = @transform_1, window_bounds = array<i64: 16, 8>}, {transform_indices = @transform_2, window_bounds = array<i64: 1, 64, 8>}, {transform_indices = @transform_3, window_bounds = array<i64: 1, 1, 8>}, {transform_indices = @transform_4, window_bounds = array<i64: 1, 1, 8>}]} {
    %c0 = arith.constant 0 : index
    %c0_0 = arith.constant 0 : index
    %c0_1 = arith.constant 0 : index
    %0 = vector.load %arg1[%c0, %c0_0, %c0_1] : memref<1x64x16xf32, #tpu.memory_space<vmem>>, vector<1x64x16xf32>
    %1 = vector.shape_cast %0 : vector<1x64x16xf32> to vector<64x16xf32>
    %2 = arith.truncf %1 : vector<64x16xf32> to vector<64x16xbf16>
    %c0_2 = arith.constant 0 : index
    %c0_3 = arith.constant 0 : index
    %3 = vector.load %arg2[%c0_2, %c0_3] : memref<16x8xbf16, #tpu.memory_space<vmem>>, vector<16x8xbf16>
    %cst = arith.constant dense<0.000000e+00> : vector<64x8xf32>
    %4 = tpu.matmul %2, %3, %cst {dimension_numbers = #tpu.dot_dimension_numbers<[1], [0], [0], [1], [0, 0, 1, 1], [], []>} : vector<64x16xbf16>, vector<16x8xbf16>, vector<64x8xf32> -> vector<64x8xf32>
    %5 = arith.truncf %4 : vector<64x8xf32> to vector<64x8xbf16>
    %c0_4 = arith.constant 0 : index
    %c0_5 = arith.constant 0 : index
    %c0_6 = arith.constant 0 : index
    %6 = vector.load %arg3[%c0_4, %c0_5, %c0_6] : memref<1x64x8xbf16, #tpu.memory_space<vmem>>, vector<1x64x8xbf16>
    %7 = vector.shape_cast %6 : vector<1x64x8xbf16> to vector<64x8xbf16>
    %8 = vector.shape_cast %5 : vector<64x8xbf16> to vector<1x64x8xbf16>
    tpu.vector_store %arg3[%c0_4, %c0_5, %c0_6], %8 {strides = array<i32>} : memref<1x64x8xbf16, #tpu.memory_space<vmem>>, vector<1x64x8xbf16>,
    %cst_7 = arith.constant dense<0.000000e+00> : vector<8xf32>
    %9 = vector.multi_reduction <add>, %4, %cst_7 [0] : vector<64x8xf32> to vector<8xf32>
    %10 = vector.shape_cast %9 : vector<8xf32> to vector<1x8xf32>
    %c0_8 = arith.constant 0 : index
    %c0_9 = arith.constant 0 : index
    %c0_10 = arith.constant 0 : index
    %11 = vector.load %arg4[%c0_8, %c0_9, %c0_10] : memref<1x1x8xf32, #tpu.memory_space<vmem>>, vector<1x1x8xf32>
    %12 = vector.shape_cast %11 : vector<1x1x8xf32> to vector<1x8xf32>
    %13 = vector.shape_cast %10 : vector<1x8xf32> to vector<1x1x8xf32>
    tpu.vector_store %arg4[%c0_8, %c0_9, %c0_10], %13 {strides = array<i32>} : memref<1x1x8xf32, #tpu.memory_space<vmem>>, vector<1x1x8xf32>,
    %14 = arith.mulf %4, %4 : vector<64x8xf32>
    %cst_11 = arith.constant dense<0.000000e+00> : vector<8xf32>
    %15 = vector.multi_reduction <add>, %14, %cst_11 [0] : vector<64x8xf32> to vector<8xf32>
    %16 = vector.shape_cast %15 : vector<8xf32> to vector<1x8xf32>
    %c0_12 = arith.constant 0 : index
    %c0_13 = arith.constant 0 : index
    %c0_14 = arith.constant 0 : index
    %17 = vector.load %arg5[%c0_12, %c0_13, %c0_14] : memref<1x1x8xf32, #tpu.memory_space<vmem>>, vector<1x1x8xf32>
    %18 = vector.shape_cast %17 : vector<1x1x8xf32> to vector<1x8xf32>
    %19 = vector.shape_cast %16 : vector<1x8xf32> to vector<1x1x8xf32>
    tpu.vector_store %arg5[%c0_12, %c0_13, %c0_14], %19 {strides = array<i32>} : memref<1x1x8xf32, #tpu.memory_space<vmem>>, vector<1x1x8xf32>,
    return
  }
  func.func @transform_0(%arg0: i32) -> (i32, i32, i32) {
    %c0_i32 = arith.constant 0 : i32
    %c0_i32_0 = arith.constant 0 : i32
    %c0_i32_1 = arith.constant 0 : i32
    return %arg0, %c0_i32, %c0_i32_0 : i32, i32, i32
  }
  func.func @transform_1(%arg0: i32) -> (i32, i32) {
    %c0_i32 = arith.constant 0 : i32
    %c0_i32_0 = arith.constant 0 : i32
    %c0_i32_1 = arith.constant 0 : i32
    return %c0_i32, %c0_i32_0 : i32, i32
  }
  func.func @transform_2(%arg0: i32) -> (i32, i32, i32) {
    %c0_i32 = arith.constant 0 : i32
    %c0_i32_0 = arith.constant 0 : i32
    %c0_i32_1 = arith.constant 0 : i32
    return %arg0, %c0_i32, %c0_i32_0 : i32, i32, i32
  }
  func.func @transform_3(%arg0: i32) -> (i32, i32, i32) {
    %c0_i32 = arith.constant 0 : i32
    %c0_i32_0 = arith.constant 0 : i32
    %c0_i32_1 = arith.constant 0 : i32
    return %arg0, %c0_i32, %c0_i32_0 : i32, i32, i32
  }
  func.func @transform_4(%arg0: i32) -> (i32, i32, i32) {
    %c0_i32 = arith.constant 0 : i32
    %c0_i32_0 = arith.constant 0 : i32
    %c0_i32_1 = arith.constant 0 : i32
    return %arg0, %c0_i32, %c0_i32_0 : i32, i32, i32
  }
}

module attributes {stable_mosaic.version = 11 : i64} {
  func.func @_residual_affine_kernel(%arg0: memref<2x4x128xf32, #tpu.memory_space<vmem>>, %arg1: memref<1x1x128xf32, #tpu.memory_space<vmem>>, %arg2: memref<1x1x128xf32, #tpu.memory_space<vmem>>, %arg3: memref<2x4x128xf32, #tpu.memory_space<vmem>>, %arg4: memref<1x1x128xf32, #tpu.memory_space<vmem>>, %arg5: memref<1x1x128xf32, #tpu.memory_space<vmem>>, %arg6: memref<2x4x128xf32, #tpu.memory_space<vmem>>) attributes {dimension_semantics = [], scalar_prefetch = 0 : i64, scratch_operands = 0 : i64, tpu.core_type = #tpu.core_type<tc>} {
    %c0 = arith.constant 0 : index
    %c0_0 = arith.constant 0 : index
    %c0_1 = arith.constant 0 : index
    %0 = vector.load %arg0[%c0, %c0_0, %c0_1] : memref<2x4x128xf32, #tpu.memory_space<vmem>>, vector<2x4x128xf32>
    %c0_2 = arith.constant 0 : index
    %c0_3 = arith.constant 0 : index
    %c0_4 = arith.constant 0 : index
    %1 = vector.load %arg1[%c0_2, %c0_3, %c0_4] : memref<1x1x128xf32, #tpu.memory_space<vmem>>, vector<1x1x128xf32>
    %2 = vector.broadcast %1 : vector<1x1x128xf32> to vector<2x4x128xf32>
    %3 = arith.mulf %0, %2 : vector<2x4x128xf32>
    %c0_5 = arith.constant 0 : index
    %c0_6 = arith.constant 0 : index
    %c0_7 = arith.constant 0 : index
    %4 = vector.load %arg2[%c0_5, %c0_6, %c0_7] : memref<1x1x128xf32, #tpu.memory_space<vmem>>, vector<1x1x128xf32>
    %5 = vector.broadcast %4 : vector<1x1x128xf32> to vector<2x4x128xf32>
    %6 = arith.addf %3, %5 : vector<2x4x128xf32>
    %c0_8 = arith.constant 0 : index
    %c0_9 = arith.constant 0 : index
    %c0_10 = arith.constant 0 : index
    %7 = vector.load %arg3[%c0_8, %c0_9, %c0_10] : memref<2x4x128xf32, #tpu.memory_space<vmem>>, vector<2x4x128xf32>
    %c0_11 = arith.constant 0 : index
    %c0_12 = arith.constant 0 : index
    %c0_13 = arith.constant 0 : index
    %8 = vector.load %arg4[%c0_11, %c0_12, %c0_13] : memref<1x1x128xf32, #tpu.memory_space<vmem>>, vector<1x1x128xf32>
    %9 = vector.broadcast %8 : vector<1x1x128xf32> to vector<2x4x128xf32>
    %10 = arith.mulf %7, %9 : vector<2x4x128xf32>
    %11 = arith.addf %6, %10 : vector<2x4x128xf32>
    %c0_14 = arith.constant 0 : index
    %c0_15 = arith.constant 0 : index
    %c0_16 = arith.constant 0 : index
    %12 = vector.load %arg5[%c0_14, %c0_15, %c0_16] : memref<1x1x128xf32, #tpu.memory_space<vmem>>, vector<1x1x128xf32>
    %13 = vector.broadcast %12 : vector<1x1x128xf32> to vector<2x4x128xf32>
    %14 = arith.addf %11, %13 : vector<2x4x128xf32>
    %cst = arith.constant 0.000000e+00 : f32
    %15 = vector.broadcast %cst : f32 to vector<2x4x128xf32>
    %16 = arith.maximumf %14, %15 : vector<2x4x128xf32>
    %c0_17 = arith.constant 0 : index
    %c0_18 = arith.constant 0 : index
    %c0_19 = arith.constant 0 : index
    %17 = vector.load %arg6[%c0_17, %c0_18, %c0_19] : memref<2x4x128xf32, #tpu.memory_space<vmem>>, vector<2x4x128xf32>
    tpu.vector_store %arg6[%c0_17, %c0_18, %c0_19], %16 {strides = array<i32>} : memref<2x4x128xf32, #tpu.memory_space<vmem>>, vector<2x4x128xf32>,
    return
  }
}

module attributes {stable_mosaic.version = 11 : i64} {
  func.func @_conv1x1_kernel(%arg0: i32, %arg1: memref<1x16x8xbf16, #tpu.memory_space<vmem>>, %arg2: memref<1x8xf32, #tpu.memory_space<vmem>>, %arg3: memref<1x8xf32, #tpu.memory_space<vmem>>, %arg4: memref<8x32xbf16, #tpu.memory_space<vmem>>, %arg5: memref<1x16x32xf32, #tpu.memory_space<vmem>>, %arg6: memref<1x1x32xf32, #tpu.memory_space<vmem>>, %arg7: memref<1x1x32xf32, #tpu.memory_space<vmem>>) attributes {dimension_semantics = [#tpu.dimension_semantics<parallel>], iteration_bounds = array<i64: 2>, scalar_prefetch = 0 : i64, scratch_operands = 0 : i64, tpu.core_type = #tpu.core_type<tc>, window_params = [{transform_indices = @transform_0, window_bounds = array<i64: 1, 16, 8>}, {pipeline_mode = #tpu.pipeline_mode<synchronous>, transform_indices = @transform_1, window_bounds = array<i64: 1, 8>}, {pipeline_mode = #tpu.pipeline_mode<synchronous>, transform_indices = @transform_2, window_bounds = array<i64: 1, 8>}, {pipeline_mode = #tpu.pipeline_mode<synchronous>, transform_indices = @transform_3, window_bounds = array<i64: 8, 32>}, {transform_indices = @transform_4, window_bounds = array<i64: 1, 16, 32>}, {transform_indices = @transform_5, window_bounds = array<i64: 1, 1, 32>}, {transform_indices = @transform_6, window_bounds = array<i64: 1, 1, 32>}]} {
    %c0 = arith.constant 0 : index
    %c0_0 = arith.constant 0 : index
    %c0_1 = arith.constant 0 : index
    %0 = vector.load %arg1[%c0, %c0_0, %c0_1] : memref<1x16x8xbf16, #tpu.memory_space<vmem>>, vector<1x16x8xbf16>
    %1 = vector.shape_cast %0 : vector<1x16x8xbf16> to vector<16x8xbf16>
    %c0_2 = arith.constant 0 : index
    %c0_3 = arith.constant 0 : index
    %2 = vector.load %arg2[%c0_2, %c0_3] : memref<1x8xf32, #tpu.memory_space<vmem>>, vector<1x8xf32>
    %3 = arith.extf %1 : vector<16x8xbf16> to vector<16x8xf32>
    %4 = vector.broadcast %2 : vector<1x8xf32> to vector<16x8xf32>
    %5 = arith.mulf %3, %4 : vector<16x8xf32>
    %c0_4 = arith.constant 0 : index
    %c0_5 = arith.constant 0 : index
    %6 = vector.load %arg3[%c0_4, %c0_5] : memref<1x8xf32, #tpu.memory_space<vmem>>, vector<1x8xf32>
    %7 = vector.broadcast %6 : vector<1x8xf32> to vector<16x8xf32>
    %8 = arith.addf %5, %7 : vector<16x8xf32>
    %cst = arith.constant 0.000000e+00 : f32
    %9 = vector.broadcast %cst : f32 to vector<16x8xf32>
    %10 = arith.maximumf %8, %9 : vector<16x8xf32>
    %11 = arith.truncf %10 : vector<16x8xf32> to vector<16x8xbf16>
    %c0_6 = arith.constant 0 : index
    %c0_7 = arith.constant 0 : index
    %12 = vector.load %arg4[%c0_6, %c0_7] : memref<8x32xbf16, #tpu.memory_space<vmem>>, vector<8x32xbf16>
    %cst_8 = arith.constant dense<0.000000e+00> : vector<16x32xf32>
    %13 = tpu.matmul %11, %12, %cst_8 {dimension_numbers = #tpu.dot_dimension_numbers<[1], [0], [0], [1], [0, 0, 1, 1], [], []>} : vector<16x8xbf16>, vector<8x32xbf16>, vector<16x32xf32> -> vector<16x32xf32>
    %c0_9 = arith.constant 0 : index
    %c0_10 = arith.constant 0 : index
    %c0_11 = arith.constant 0 : index
    %14 = vector.load %arg5[%c0_9, %c0_10, %c0_11] : memref<1x16x32xf32, #tpu.memory_space<vmem>>, vector<1x16x32xf32>
    %15 = vector.shape_cast %14 : vector<1x16x32xf32> to vector<16x32xf32>
    %16 = vector.shape_cast %13 : vector<16x32xf32> to vector<1x16x32xf32>
    tpu.vector_store %arg5[%c0_9, %c0_10, %c0_11], %16 {strides = array<i32>} : memref<1x16x32xf32, #tpu.memory_space<vmem>>, vector<1x16x32xf32>,
    %cst_12 = arith.constant dense<0.000000e+00> : vector<32xf32>
    %17 = vector.multi_reduction <add>, %13, %cst_12 [0] : vector<16x32xf32> to vector<32xf32>
    %18 = vector.shape_cast %17 : vector<32xf32> to vector<1x32xf32>
    %c0_13 = arith.constant 0 : index
    %c0_14 = arith.constant 0 : index
    %c0_15 = arith.constant 0 : index
    %19 = vector.load %arg6[%c0_13, %c0_14, %c0_15] : memref<1x1x32xf32, #tpu.memory_space<vmem>>, vector<1x1x32xf32>
    %20 = vector.shape_cast %19 : vector<1x1x32xf32> to vector<1x32xf32>
    %21 = vector.shape_cast %18 : vector<1x32xf32> to vector<1x1x32xf32>
    tpu.vector_store %arg6[%c0_13, %c0_14, %c0_15], %21 {strides = array<i32>} : memref<1x1x32xf32, #tpu.memory_space<vmem>>, vector<1x1x32xf32>,
    %22 = arith.mulf %13, %13 : vector<16x32xf32>
    %cst_16 = arith.constant dense<0.000000e+00> : vector<32xf32>
    %23 = vector.multi_reduction <add>, %22, %cst_16 [0] : vector<16x32xf32> to vector<32xf32>
    %24 = vector.shape_cast %23 : vector<32xf32> to vector<1x32xf32>
    %c0_17 = arith.constant 0 : index
    %c0_18 = arith.constant 0 : index
    %c0_19 = arith.constant 0 : index
    %25 = vector.load %arg7[%c0_17, %c0_18, %c0_19] : memref<1x1x32xf32, #tpu.memory_space<vmem>>, vector<1x1x32xf32>
    %26 = vector.shape_cast %25 : vector<1x1x32xf32> to vector<1x32xf32>
    %27 = vector.shape_cast %24 : vector<1x32xf32> to vector<1x1x32xf32>
    tpu.vector_store %arg7[%c0_17, %c0_18, %c0_19], %27 {strides = array<i32>} : memref<1x1x32xf32, #tpu.memory_space<vmem>>, vector<1x1x32xf32>,
    return
  }
  func.func @transform_0(%arg0: i32) -> (i32, i32, i32) {
    %c0_i32 = arith.constant 0 : i32
    %c0_i32_0 = arith.constant 0 : i32
    %c0_i32_1 = arith.constant 0 : i32
    return %arg0, %c0_i32, %c0_i32_0 : i32, i32, i32
  }
  func.func @transform_1(%arg0: i32) -> (i32, i32) {
    %c0_i32 = arith.constant 0 : i32
    %c0_i32_0 = arith.constant 0 : i32
    %c0_i32_1 = arith.constant 0 : i32
    return %c0_i32, %c0_i32_0 : i32, i32
  }
  func.func @transform_2(%arg0: i32) -> (i32, i32) {
    %c0_i32 = arith.constant 0 : i32
    %c0_i32_0 = arith.constant 0 : i32
    %c0_i32_1 = arith.constant 0 : i32
    return %c0_i32, %c0_i32_0 : i32, i32
  }
  func.func @transform_3(%arg0: i32) -> (i32, i32) {
    %c0_i32 = arith.constant 0 : i32
    %c0_i32_0 = arith.constant 0 : i32
    %c0_i32_1 = arith.constant 0 : i32
    return %c0_i32, %c0_i32_0 : i32, i32
  }
  func.func @transform_4(%arg0: i32) -> (i32, i32, i32) {
    %c0_i32 = arith.constant 0 : i32
    %c0_i32_0 = arith.constant 0 : i32
    %c0_i32_1 = arith.constant 0 : i32
    return %arg0, %c0_i32, %c0_i32_0 : i32, i32, i32
  }
  func.func @transform_5(%arg0: i32) -> (i32, i32, i32) {
    %c0_i32 = arith.constant 0 : i32
    %c0_i32_0 = arith.constant 0 : i32
    %c0_i32_1 = arith.constant 0 : i32
    return %arg0, %c0_i32, %c0_i32_0 : i32, i32, i32
  }
  func.func @transform_6(%arg0: i32) -> (i32, i32, i32) {
    %c0_i32 = arith.constant 0 : i32
    %c0_i32_0 = arith.constant 0 : i32
    %c0_i32_1 = arith.constant 0 : i32
    return %arg0, %c0_i32, %c0_i32_0 : i32, i32, i32
  }
}

module attributes {stable_mosaic.version = 11 : i64} {
  func.func @_conv_tap_kernel(%arg0: i32, %arg1: memref<1x5x16x32xbf16, #tpu.memory_space<vmem>>, %arg2: memref<4x32x8xbf16, #tpu.memory_space<vmem>>, %arg3: memref<1x4x4x8xbf16, #tpu.memory_space<vmem>>, %arg4: memref<1x1x8xf32, #tpu.memory_space<vmem>>, %arg5: memref<1x1x8xf32, #tpu.memory_space<vmem>>) attributes {dimension_semantics = [#tpu.dimension_semantics<parallel>], iteration_bounds = array<i64: 2>, scalar_prefetch = 0 : i64, scratch_operands = 0 : i64, tpu.core_type = #tpu.core_type<tc>, window_params = [{transform_indices = @transform_0, window_bounds = array<i64: 1, 5, 16, 32>}, {pipeline_mode = #tpu.pipeline_mode<synchronous>, transform_indices = @transform_1, window_bounds = array<i64: 4, 32, 8>}, {transform_indices = @transform_2, window_bounds = array<i64: 1, 4, 4, 8>}, {transform_indices = @transform_3, window_bounds = array<i64: 1, 1, 8>}, {transform_indices = @transform_4, window_bounds = array<i64: 1, 1, 8>}]} {
    %c0 = arith.constant 0 : index
    %c0_0 = arith.constant 0 : index
    %c0_1 = arith.constant 0 : index
    %c0_2 = arith.constant 0 : index
    %0 = vector.load %arg1[%c0, %c0_0, %c0_1, %c0_2] : memref<1x5x16x32xbf16, #tpu.memory_space<vmem>>, vector<1x5x16x32xbf16>
    %1 = vector.shape_cast %0 : vector<1x5x16x32xbf16> to vector<5x16x32xbf16>
    %2 = vector.shape_cast %1 : vector<5x16x32xbf16> to vector<80x32xbf16>
    %cst = arith.constant 0.000000e+00 : f32
    %3 = vector.broadcast %cst : f32 to vector<4x4x8xf32>
    %4 = vector.extract_strided_slice %2 {offsets = [0, 0], sizes = [64, 32], strides = [1, 1]} : vector<80x32xbf16> to vector<64x32xbf16>
    %c0_3 = arith.constant 0 : index
    %c0_4 = arith.constant 0 : index
    %c0_5 = arith.constant 0 : index
    %5 = vector.load %arg2[%c0_3, %c0_4, %c0_5] : memref<4x32x8xbf16, #tpu.memory_space<vmem>>, vector<1x32x8xbf16>
    %6 = vector.shape_cast %5 : vector<1x32x8xbf16> to vector<32x8xbf16>
    %cst_6 = arith.constant dense<0.000000e+00> : vector<64x8xf32>
    %7 = tpu.matmul %4, %6, %cst_6 {dimension_numbers = #tpu.dot_dimension_numbers<[1], [0], [0], [1], [0, 0, 1, 1], [], []>} : vector<64x32xbf16>, vector<32x8xbf16>, vector<64x8xf32> -> vector<64x8xf32>
    %8 = vector.shape_cast %7 : vector<64x8xf32> to vector<4x16x8xf32>
    %9 = vector.extract_strided_slice %8 {offsets = [0, 0, 0], sizes = [4, 4, 8], strides = [1, 1, 1]} : vector<4x16x8xf32> to vector<4x4x8xf32>
    %10 = arith.addf %3, %9 : vector<4x4x8xf32>
    %11 = vector.extract_strided_slice %2 {offsets = [0, 0], sizes = [64, 32], strides = [1, 1]} : vector<80x32xbf16> to vector<64x32xbf16>
    %c1 = arith.constant 1 : index
    %c0_7 = arith.constant 0 : index
    %c0_8 = arith.constant 0 : index
    %12 = vector.load %arg2[%c1, %c0_7, %c0_8] : memref<4x32x8xbf16, #tpu.memory_space<vmem>>, vector<1x32x8xbf16>
    %13 = vector.shape_cast %12 : vector<1x32x8xbf16> to vector<32x8xbf16>
    %cst_9 = arith.constant dense<0.000000e+00> : vector<64x8xf32>
    %14 = tpu.matmul %11, %13, %cst_9 {dimension_numbers = #tpu.dot_dimension_numbers<[1], [0], [0], [1], [0, 0, 1, 1], [], []>} : vector<64x32xbf16>, vector<32x8xbf16>, vector<64x8xf32> -> vector<64x8xf32>
    %15 = vector.shape_cast %14 : vector<64x8xf32> to vector<4x16x8xf32>
    %16 = vector.extract_strided_slice %15 {offsets = [0, 1, 0], sizes = [4, 4, 8], strides = [1, 1, 1]} : vector<4x16x8xf32> to vector<4x4x8xf32>
    %17 = arith.addf %10, %16 : vector<4x4x8xf32>
    %18 = vector.extract_strided_slice %2 {offsets = [16, 0], sizes = [64, 32], strides = [1, 1]} : vector<80x32xbf16> to vector<64x32xbf16>
    %c2 = arith.constant 2 : index
    %c0_10 = arith.constant 0 : index
    %c0_11 = arith.constant 0 : index
    %19 = vector.load %arg2[%c2, %c0_10, %c0_11] : memref<4x32x8xbf16, #tpu.memory_space<vmem>>, vector<1x32x8xbf16>
    %20 = vector.shape_cast %19 : vector<1x32x8xbf16> to vector<32x8xbf16>
    %cst_12 = arith.constant dense<0.000000e+00> : vector<64x8xf32>
    %21 = tpu.matmul %18, %20, %cst_12 {dimension_numbers = #tpu.dot_dimension_numbers<[1], [0], [0], [1], [0, 0, 1, 1], [], []>} : vector<64x32xbf16>, vector<32x8xbf16>, vector<64x8xf32> -> vector<64x8xf32>
    %22 = vector.shape_cast %21 : vector<64x8xf32> to vector<4x16x8xf32>
    %23 = vector.extract_strided_slice %22 {offsets = [0, 0, 0], sizes = [4, 4, 8], strides = [1, 1, 1]} : vector<4x16x8xf32> to vector<4x4x8xf32>
    %24 = arith.addf %17, %23 : vector<4x4x8xf32>
    %25 = vector.extract_strided_slice %2 {offsets = [16, 0], sizes = [64, 32], strides = [1, 1]} : vector<80x32xbf16> to vector<64x32xbf16>
    %c3 = arith.constant 3 : index
    %c0_13 = arith.constant 0 : index
    %c0_14 = arith.constant 0 : index
    %26 = vector.load %arg2[%c3, %c0_13, %c0_14] : memref<4x32x8xbf16, #tpu.memory_space<vmem>>, vector<1x32x8xbf16>
    %27 = vector.shape_cast %26 : vector<1x32x8xbf16> to vector<32x8xbf16>
    %cst_15 = arith.constant dense<0.000000e+00> : vector<64x8xf32>
    %28 = tpu.matmul %25, %27, %cst_15 {dimension_numbers = #tpu.dot_dimension_numbers<[1], [0], [0], [1], [0, 0, 1, 1], [], []>} : vector<64x32xbf16>, vector<32x8xbf16>, vector<64x8xf32> -> vector<64x8xf32>
    %29 = vector.shape_cast %28 : vector<64x8xf32> to vector<4x16x8xf32>
    %30 = vector.extract_strided_slice %29 {offsets = [0, 1, 0], sizes = [4, 4, 8], strides = [1, 1, 1]} : vector<4x16x8xf32> to vector<4x4x8xf32>
    %31 = arith.addf %24, %30 : vector<4x4x8xf32>
    %32 = arith.truncf %31 : vector<4x4x8xf32> to vector<4x4x8xbf16>
    %c0_16 = arith.constant 0 : index
    %c0_17 = arith.constant 0 : index
    %c0_18 = arith.constant 0 : index
    %c0_19 = arith.constant 0 : index
    %33 = vector.load %arg3[%c0_16, %c0_17, %c0_18, %c0_19] : memref<1x4x4x8xbf16, #tpu.memory_space<vmem>>, vector<1x4x4x8xbf16>
    %34 = vector.shape_cast %33 : vector<1x4x4x8xbf16> to vector<4x4x8xbf16>
    %35 = vector.shape_cast %32 : vector<4x4x8xbf16> to vector<1x4x4x8xbf16>
    tpu.vector_store %arg3[%c0_16, %c0_17, %c0_18, %c0_19], %35 {strides = array<i32>} : memref<1x4x4x8xbf16, #tpu.memory_space<vmem>>, vector<1x4x4x8xbf16>,
    %cst_20 = arith.constant dense<0.000000e+00> : vector<8xf32>
    %36 = vector.multi_reduction <add>, %31, %cst_20 [0, 1] : vector<4x4x8xf32> to vector<8xf32>
    %37 = vector.shape_cast %36 : vector<8xf32> to vector<1x1x8xf32>
    %c0_21 = arith.constant 0 : index
    %c0_22 = arith.constant 0 : index
    %c0_23 = arith.constant 0 : index
    %38 = vector.load %arg4[%c0_21, %c0_22, %c0_23] : memref<1x1x8xf32, #tpu.memory_space<vmem>>, vector<1x1x8xf32>
    tpu.vector_store %arg4[%c0_21, %c0_22, %c0_23], %37 {strides = array<i32>} : memref<1x1x8xf32, #tpu.memory_space<vmem>>, vector<1x1x8xf32>,
    %39 = arith.mulf %31, %31 : vector<4x4x8xf32>
    %cst_24 = arith.constant dense<0.000000e+00> : vector<8xf32>
    %40 = vector.multi_reduction <add>, %39, %cst_24 [0, 1] : vector<4x4x8xf32> to vector<8xf32>
    %41 = vector.shape_cast %40 : vector<8xf32> to vector<1x1x8xf32>
    %c0_25 = arith.constant 0 : index
    %c0_26 = arith.constant 0 : index
    %c0_27 = arith.constant 0 : index
    %42 = vector.load %arg5[%c0_25, %c0_26, %c0_27] : memref<1x1x8xf32, #tpu.memory_space<vmem>>, vector<1x1x8xf32>
    tpu.vector_store %arg5[%c0_25, %c0_26, %c0_27], %41 {strides = array<i32>} : memref<1x1x8xf32, #tpu.memory_space<vmem>>, vector<1x1x8xf32>,
    return
  }
  func.func @transform_0(%arg0: i32) -> (i32, i32, i32, i32) {
    %c0_i32 = arith.constant 0 : i32
    %c0_i32_0 = arith.constant 0 : i32
    %c0_i32_1 = arith.constant 0 : i32
    %c0_i32_2 = arith.constant 0 : i32
    return %arg0, %c0_i32, %c0_i32_0, %c0_i32_1 : i32, i32, i32, i32
  }
  func.func @transform_1(%arg0: i32) -> (i32, i32, i32) {
    %c0_i32 = arith.constant 0 : i32
    %c0_i32_0 = arith.constant 0 : i32
    %c0_i32_1 = arith.constant 0 : i32
    %c0_i32_2 = arith.constant 0 : i32
    return %c0_i32, %c0_i32_0, %c0_i32_1 : i32, i32, i32
  }
  func.func @transform_2(%arg0: i32) -> (i32, i32, i32, i32) {
    %c0_i32 = arith.constant 0 : i32
    %c0_i32_0 = arith.constant 0 : i32
    %c0_i32_1 = arith.constant 0 : i32
    %c0_i32_2 = arith.constant 0 : i32
    return %arg0, %c0_i32, %c0_i32_0, %c0_i32_1 : i32, i32, i32, i32
  }
  func.func @transform_3(%arg0: i32) -> (i32, i32, i32) {
    %c0_i32 = arith.constant 0 : i32
    %c0_i32_0 = arith.constant 0 : i32
    %c0_i32_1 = arith.constant 0 : i32
    return %arg0, %c0_i32, %c0_i32_0 : i32, i32, i32
  }
  func.func @transform_4(%arg0: i32) -> (i32, i32, i32) {
    %c0_i32 = arith.constant 0 : i32
    %c0_i32_0 = arith.constant 0 : i32
    %c0_i32_1 = arith.constant 0 : i32
    return %arg0, %c0_i32, %c0_i32_0 : i32, i32, i32
  }
}

module attributes {stable_mosaic.version = 11 : i64} {
  func.func @_conv1x1_kernel(%arg0: i32, %arg1: memref<1x4x32xf32, #tpu.memory_space<vmem>>, %arg2: memref<32x64xbf16, #tpu.memory_space<vmem>>, %arg3: memref<1x4x64xf32, #tpu.memory_space<vmem>>, %arg4: memref<1x1x64xf32, #tpu.memory_space<vmem>>, %arg5: memref<1x1x64xf32, #tpu.memory_space<vmem>>) attributes {dimension_semantics = [#tpu.dimension_semantics<parallel>], iteration_bounds = array<i64: 2>, scalar_prefetch = 0 : i64, scratch_operands = 0 : i64, tpu.core_type = #tpu.core_type<tc>, window_params = [{transform_indices = @transform_0, window_bounds = array<i64: 1, 4, 32>}, {pipeline_mode = #tpu.pipeline_mode<synchronous>, transform_indices = @transform_1, window_bounds = array<i64: 32, 64>}, {transform_indices = @transform_2, window_bounds = array<i64: 1, 4, 64>}, {transform_indices = @transform_3, window_bounds = array<i64: 1, 1, 64>}, {transform_indices = @transform_4, window_bounds = array<i64: 1, 1, 64>}]} {
    %c0 = arith.constant 0 : index
    %c0_0 = arith.constant 0 : index
    %c0_1 = arith.constant 0 : index
    %0 = vector.load %arg1[%c0, %c0_0, %c0_1] : memref<1x4x32xf32, #tpu.memory_space<vmem>>, vector<1x4x32xf32>
    %1 = vector.shape_cast %0 : vector<1x4x32xf32> to vector<4x32xf32>
    %2 = arith.truncf %1 : vector<4x32xf32> to vector<4x32xbf16>
    %c0_2 = arith.constant 0 : index
    %c0_3 = arith.constant 0 : index
    %3 = vector.load %arg2[%c0_2, %c0_3] : memref<32x64xbf16, #tpu.memory_space<vmem>>, vector<32x64xbf16>
    %cst = arith.constant dense<0.000000e+00> : vector<4x64xf32>
    %4 = tpu.matmul %2, %3, %cst {dimension_numbers = #tpu.dot_dimension_numbers<[1], [0], [0], [1], [0, 0, 1, 1], [], []>} : vector<4x32xbf16>, vector<32x64xbf16>, vector<4x64xf32> -> vector<4x64xf32>
    %c0_4 = arith.constant 0 : index
    %c0_5 = arith.constant 0 : index
    %c0_6 = arith.constant 0 : index
    %5 = vector.load %arg3[%c0_4, %c0_5, %c0_6] : memref<1x4x64xf32, #tpu.memory_space<vmem>>, vector<1x4x64xf32>
    %6 = vector.shape_cast %5 : vector<1x4x64xf32> to vector<4x64xf32>
    %7 = vector.shape_cast %4 : vector<4x64xf32> to vector<1x4x64xf32>
    tpu.vector_store %arg3[%c0_4, %c0_5, %c0_6], %7 {strides = array<i32>} : memref<1x4x64xf32, #tpu.memory_space<vmem>>, vector<1x4x64xf32>,
    %cst_7 = arith.constant dense<0.000000e+00> : vector<64xf32>
    %8 = vector.multi_reduction <add>, %4, %cst_7 [0] : vector<4x64xf32> to vector<64xf32>
    %9 = vector.shape_cast %8 : vector<64xf32> to vector<1x64xf32>
    %c0_8 = arith.constant 0 : index
    %c0_9 = arith.constant 0 : index
    %c0_10 = arith.constant 0 : index
    %10 = vector.load %arg4[%c0_8, %c0_9, %c0_10] : memref<1x1x64xf32, #tpu.memory_space<vmem>>, vector<1x1x64xf32>
    %11 = vector.shape_cast %10 : vector<1x1x64xf32> to vector<1x64xf32>
    %12 = vector.shape_cast %9 : vector<1x64xf32> to vector<1x1x64xf32>
    tpu.vector_store %arg4[%c0_8, %c0_9, %c0_10], %12 {strides = array<i32>} : memref<1x1x64xf32, #tpu.memory_space<vmem>>, vector<1x1x64xf32>,
    %13 = arith.mulf %4, %4 : vector<4x64xf32>
    %cst_11 = arith.constant dense<0.000000e+00> : vector<64xf32>
    %14 = vector.multi_reduction <add>, %13, %cst_11 [0] : vector<4x64xf32> to vector<64xf32>
    %15 = vector.shape_cast %14 : vector<64xf32> to vector<1x64xf32>
    %c0_12 = arith.constant 0 : index
    %c0_13 = arith.constant 0 : index
    %c0_14 = arith.constant 0 : index
    %16 = vector.load %arg5[%c0_12, %c0_13, %c0_14] : memref<1x1x64xf32, #tpu.memory_space<vmem>>, vector<1x1x64xf32>
    %17 = vector.shape_cast %16 : vector<1x1x64xf32> to vector<1x64xf32>
    %18 = vector.shape_cast %15 : vector<1x64xf32> to vector<1x1x64xf32>
    tpu.vector_store %arg5[%c0_12, %c0_13, %c0_14], %18 {strides = array<i32>} : memref<1x1x64xf32, #tpu.memory_space<vmem>>, vector<1x1x64xf32>,
    return
  }
  func.func @transform_0(%arg0: i32) -> (i32, i32, i32) {
    %c0_i32 = arith.constant 0 : i32
    %c0_i32_0 = arith.constant 0 : i32
    %c0_i32_1 = arith.constant 0 : i32
    return %arg0, %c0_i32, %c0_i32_0 : i32, i32, i32
  }
  func.func @transform_1(%arg0: i32) -> (i32, i32) {
    %c0_i32 = arith.constant 0 : i32
    %c0_i32_0 = arith.constant 0 : i32
    %c0_i32_1 = arith.constant 0 : i32
    return %c0_i32, %c0_i32_0 : i32, i32
  }
  func.func @transform_2(%arg0: i32) -> (i32, i32, i32) {
    %c0_i32 = arith.constant 0 : i32
    %c0_i32_0 = arith.constant 0 : i32
    %c0_i32_1 = arith.constant 0 : i32
    return %arg0, %c0_i32, %c0_i32_0 : i32, i32, i32
  }
  func.func @transform_3(%arg0: i32) -> (i32, i32, i32) {
    %c0_i32 = arith.constant 0 : i32
    %c0_i32_0 = arith.constant 0 : i32
    %c0_i32_1 = arith.constant 0 : i32
    return %arg0, %c0_i32, %c0_i32_0 : i32, i32, i32
  }
  func.func @transform_4(%arg0: i32) -> (i32, i32, i32) {
    %c0_i32 = arith.constant 0 : i32
    %c0_i32_0 = arith.constant 0 : i32
    %c0_i32_1 = arith.constant 0 : i32
    return %arg0, %c0_i32, %c0_i32_0 : i32, i32, i32
  }
}

module attributes {stable_mosaic.version = 11 : i64} {
  func.func @_conv1x1_kernel(%arg0: i32, %arg1: memref<1x16x32xf32, #tpu.memory_space<vmem>>, %arg2: memref<32x16xbf16, #tpu.memory_space<vmem>>, %arg3: memref<1x16x16xbf16, #tpu.memory_space<vmem>>, %arg4: memref<1x1x16xf32, #tpu.memory_space<vmem>>, %arg5: memref<1x1x16xf32, #tpu.memory_space<vmem>>) attributes {dimension_semantics = [#tpu.dimension_semantics<parallel>], iteration_bounds = array<i64: 2>, scalar_prefetch = 0 : i64, scratch_operands = 0 : i64, tpu.core_type = #tpu.core_type<tc>, window_params = [{transform_indices = @transform_0, window_bounds = array<i64: 1, 16, 32>}, {pipeline_mode = #tpu.pipeline_mode<synchronous>, transform_indices = @transform_1, window_bounds = array<i64: 32, 16>}, {transform_indices = @transform_2, window_bounds = array<i64: 1, 16, 16>}, {transform_indices = @transform_3, window_bounds = array<i64: 1, 1, 16>}, {transform_indices = @transform_4, window_bounds = array<i64: 1, 1, 16>}]} {
    %c0 = arith.constant 0 : index
    %c0_0 = arith.constant 0 : index
    %c0_1 = arith.constant 0 : index
    %0 = vector.load %arg1[%c0, %c0_0, %c0_1] : memref<1x16x32xf32, #tpu.memory_space<vmem>>, vector<1x16x32xf32>
    %1 = vector.shape_cast %0 : vector<1x16x32xf32> to vector<16x32xf32>
    %2 = arith.truncf %1 : vector<16x32xf32> to vector<16x32xbf16>
    %c0_2 = arith.constant 0 : index
    %c0_3 = arith.constant 0 : index
    %3 = vector.load %arg2[%c0_2, %c0_3] : memref<32x16xbf16, #tpu.memory_space<vmem>>, vector<32x16xbf16>
    %cst = arith.constant dense<0.000000e+00> : vector<16x16xf32>
    %4 = tpu.matmul %2, %3, %cst {dimension_numbers = #tpu.dot_dimension_numbers<[1], [0], [0], [1], [0, 0, 1, 1], [], []>} : vector<16x32xbf16>, vector<32x16xbf16>, vector<16x16xf32> -> vector<16x16xf32>
    %5 = arith.truncf %4 : vector<16x16xf32> to vector<16x16xbf16>
    %c0_4 = arith.constant 0 : index
    %c0_5 = arith.constant 0 : index
    %c0_6 = arith.constant 0 : index
    %6 = vector.load %arg3[%c0_4, %c0_5, %c0_6] : memref<1x16x16xbf16, #tpu.memory_space<vmem>>, vector<1x16x16xbf16>
    %7 = vector.shape_cast %6 : vector<1x16x16xbf16> to vector<16x16xbf16>
    %8 = vector.shape_cast %5 : vector<16x16xbf16> to vector<1x16x16xbf16>
    tpu.vector_store %arg3[%c0_4, %c0_5, %c0_6], %8 {strides = array<i32>} : memref<1x16x16xbf16, #tpu.memory_space<vmem>>, vector<1x16x16xbf16>,
    %cst_7 = arith.constant dense<0.000000e+00> : vector<16xf32>
    %9 = vector.multi_reduction <add>, %4, %cst_7 [0] : vector<16x16xf32> to vector<16xf32>
    %10 = vector.shape_cast %9 : vector<16xf32> to vector<1x16xf32>
    %c0_8 = arith.constant 0 : index
    %c0_9 = arith.constant 0 : index
    %c0_10 = arith.constant 0 : index
    %11 = vector.load %arg4[%c0_8, %c0_9, %c0_10] : memref<1x1x16xf32, #tpu.memory_space<vmem>>, vector<1x1x16xf32>
    %12 = vector.shape_cast %11 : vector<1x1x16xf32> to vector<1x16xf32>
    %13 = vector.shape_cast %10 : vector<1x16xf32> to vector<1x1x16xf32>
    tpu.vector_store %arg4[%c0_8, %c0_9, %c0_10], %13 {strides = array<i32>} : memref<1x1x16xf32, #tpu.memory_space<vmem>>, vector<1x1x16xf32>,
    %14 = arith.mulf %4, %4 : vector<16x16xf32>
    %cst_11 = arith.constant dense<0.000000e+00> : vector<16xf32>
    %15 = vector.multi_reduction <add>, %14, %cst_11 [0] : vector<16x16xf32> to vector<16xf32>
    %16 = vector.shape_cast %15 : vector<16xf32> to vector<1x16xf32>
    %c0_12 = arith.constant 0 : index
    %c0_13 = arith.constant 0 : index
    %c0_14 = arith.constant 0 : index
    %17 = vector.load %arg5[%c0_12, %c0_13, %c0_14] : memref<1x1x16xf32, #tpu.memory_space<vmem>>, vector<1x1x16xf32>
    %18 = vector.shape_cast %17 : vector<1x1x16xf32> to vector<1x16xf32>
    %19 = vector.shape_cast %16 : vector<1x16xf32> to vector<1x1x16xf32>
    tpu.vector_store %arg5[%c0_12, %c0_13, %c0_14], %19 {strides = array<i32>} : memref<1x1x16xf32, #tpu.memory_space<vmem>>, vector<1x1x16xf32>,
    return
  }
  func.func @transform_0(%arg0: i32) -> (i32, i32, i32) {
    %c0_i32 = arith.constant 0 : i32
    %c0_i32_0 = arith.constant 0 : i32
    %c0_i32_1 = arith.constant 0 : i32
    return %arg0, %c0_i32, %c0_i32_0 : i32, i32, i32
  }
  func.func @transform_1(%arg0: i32) -> (i32, i32) {
    %c0_i32 = arith.constant 0 : i32
    %c0_i32_0 = arith.constant 0 : i32
    %c0_i32_1 = arith.constant 0 : i32
    return %c0_i32, %c0_i32_0 : i32, i32
  }
  func.func @transform_2(%arg0: i32) -> (i32, i32, i32) {
    %c0_i32 = arith.constant 0 : i32
    %c0_i32_0 = arith.constant 0 : i32
    %c0_i32_1 = arith.constant 0 : i32
    return %arg0, %c0_i32, %c0_i32_0 : i32, i32, i32
  }
  func.func @transform_3(%arg0: i32) -> (i32, i32, i32) {
    %c0_i32 = arith.constant 0 : i32
    %c0_i32_0 = arith.constant 0 : i32
    %c0_i32_1 = arith.constant 0 : i32
    return %arg0, %c0_i32, %c0_i32_0 : i32, i32, i32
  }
  func.func @transform_4(%arg0: i32) -> (i32, i32, i32) {
    %c0_i32 = arith.constant 0 : i32
    %c0_i32_0 = arith.constant 0 : i32
    %c0_i32_1 = arith.constant 0 : i32
    return %arg0, %c0_i32, %c0_i32_0 : i32, i32, i32
  }
}

module attributes {stable_mosaic.version = 11 : i64} {
  func.func @_residual_affine_kernel(%arg0: memref<2x2x128xf32, #tpu.memory_space<vmem>>, %arg1: memref<1x1x128xf32, #tpu.memory_space<vmem>>, %arg2: memref<1x1x128xf32, #tpu.memory_space<vmem>>, %arg3: memref<2x2x128xf32, #tpu.memory_space<vmem>>, %arg4: memref<1x1x128xf32, #tpu.memory_space<vmem>>, %arg5: memref<1x1x128xf32, #tpu.memory_space<vmem>>, %arg6: memref<2x2x128xf32, #tpu.memory_space<vmem>>) attributes {dimension_semantics = [], scalar_prefetch = 0 : i64, scratch_operands = 0 : i64, tpu.core_type = #tpu.core_type<tc>} {
    %c0 = arith.constant 0 : index
    %c0_0 = arith.constant 0 : index
    %c0_1 = arith.constant 0 : index
    %0 = vector.load %arg0[%c0, %c0_0, %c0_1] : memref<2x2x128xf32, #tpu.memory_space<vmem>>, vector<2x2x128xf32>
    %c0_2 = arith.constant 0 : index
    %c0_3 = arith.constant 0 : index
    %c0_4 = arith.constant 0 : index
    %1 = vector.load %arg1[%c0_2, %c0_3, %c0_4] : memref<1x1x128xf32, #tpu.memory_space<vmem>>, vector<1x1x128xf32>
    %2 = vector.broadcast %1 : vector<1x1x128xf32> to vector<2x2x128xf32>
    %3 = arith.mulf %0, %2 : vector<2x2x128xf32>
    %c0_5 = arith.constant 0 : index
    %c0_6 = arith.constant 0 : index
    %c0_7 = arith.constant 0 : index
    %4 = vector.load %arg2[%c0_5, %c0_6, %c0_7] : memref<1x1x128xf32, #tpu.memory_space<vmem>>, vector<1x1x128xf32>
    %5 = vector.broadcast %4 : vector<1x1x128xf32> to vector<2x2x128xf32>
    %6 = arith.addf %3, %5 : vector<2x2x128xf32>
    %c0_8 = arith.constant 0 : index
    %c0_9 = arith.constant 0 : index
    %c0_10 = arith.constant 0 : index
    %7 = vector.load %arg3[%c0_8, %c0_9, %c0_10] : memref<2x2x128xf32, #tpu.memory_space<vmem>>, vector<2x2x128xf32>
    %c0_11 = arith.constant 0 : index
    %c0_12 = arith.constant 0 : index
    %c0_13 = arith.constant 0 : index
    %8 = vector.load %arg4[%c0_11, %c0_12, %c0_13] : memref<1x1x128xf32, #tpu.memory_space<vmem>>, vector<1x1x128xf32>
    %9 = vector.broadcast %8 : vector<1x1x128xf32> to vector<2x2x128xf32>
    %10 = arith.mulf %7, %9 : vector<2x2x128xf32>
    %11 = arith.addf %6, %10 : vector<2x2x128xf32>
    %c0_14 = arith.constant 0 : index
    %c0_15 = arith.constant 0 : index
    %c0_16 = arith.constant 0 : index
    %12 = vector.load %arg5[%c0_14, %c0_15, %c0_16] : memref<1x1x128xf32, #tpu.memory_space<vmem>>, vector<1x1x128xf32>
    %13 = vector.broadcast %12 : vector<1x1x128xf32> to vector<2x2x128xf32>
    %14 = arith.addf %11, %13 : vector<2x2x128xf32>
    %cst = arith.constant 0.000000e+00 : f32
    %15 = vector.broadcast %cst : f32 to vector<2x2x128xf32>
    %16 = arith.maximumf %14, %15 : vector<2x2x128xf32>
    %c0_17 = arith.constant 0 : index
    %c0_18 = arith.constant 0 : index
    %c0_19 = arith.constant 0 : index
    %17 = vector.load %arg6[%c0_17, %c0_18, %c0_19] : memref<2x2x128xf32, #tpu.memory_space<vmem>>, vector<2x2x128xf32>
    tpu.vector_store %arg6[%c0_17, %c0_18, %c0_19], %16 {strides = array<i32>} : memref<2x2x128xf32, #tpu.memory_space<vmem>>, vector<2x2x128xf32>,
    return
  }
}

module attributes {stable_mosaic.version = 11 : i64} {
  func.func @_conv_tap_kernel(%arg0: i32, %arg1: memref<1x3x16x64xbf16, #tpu.memory_space<vmem>>, %arg2: memref<4x64x16xbf16, #tpu.memory_space<vmem>>, %arg3: memref<1x2x2x16xbf16, #tpu.memory_space<vmem>>, %arg4: memref<1x1x16xf32, #tpu.memory_space<vmem>>, %arg5: memref<1x1x16xf32, #tpu.memory_space<vmem>>) attributes {dimension_semantics = [#tpu.dimension_semantics<parallel>], iteration_bounds = array<i64: 2>, scalar_prefetch = 0 : i64, scratch_operands = 0 : i64, tpu.core_type = #tpu.core_type<tc>, window_params = [{transform_indices = @transform_0, window_bounds = array<i64: 1, 3, 16, 64>}, {pipeline_mode = #tpu.pipeline_mode<synchronous>, transform_indices = @transform_1, window_bounds = array<i64: 4, 64, 16>}, {transform_indices = @transform_2, window_bounds = array<i64: 1, 2, 2, 16>}, {transform_indices = @transform_3, window_bounds = array<i64: 1, 1, 16>}, {transform_indices = @transform_4, window_bounds = array<i64: 1, 1, 16>}]} {
    %c0 = arith.constant 0 : index
    %c0_0 = arith.constant 0 : index
    %c0_1 = arith.constant 0 : index
    %c0_2 = arith.constant 0 : index
    %0 = vector.load %arg1[%c0, %c0_0, %c0_1, %c0_2] : memref<1x3x16x64xbf16, #tpu.memory_space<vmem>>, vector<1x3x16x64xbf16>
    %1 = vector.shape_cast %0 : vector<1x3x16x64xbf16> to vector<3x16x64xbf16>
    %2 = vector.shape_cast %1 : vector<3x16x64xbf16> to vector<48x64xbf16>
    %cst = arith.constant 0.000000e+00 : f32
    %3 = vector.broadcast %cst : f32 to vector<2x2x16xf32>
    %4 = vector.extract_strided_slice %2 {offsets = [0, 0], sizes = [32, 64], strides = [1, 1]} : vector<48x64xbf16> to vector<32x64xbf16>
    %c0_3 = arith.constant 0 : index
    %c0_4 = arith.constant 0 : index
    %c0_5 = arith.constant 0 : index
    %5 = vector.load %arg2[%c0_3, %c0_4, %c0_5] : memref<4x64x16xbf16, #tpu.memory_space<vmem>>, vector<1x64x16xbf16>
    %6 = vector.shape_cast %5 : vector<1x64x16xbf16> to vector<64x16xbf16>
    %cst_6 = arith.constant dense<0.000000e+00> : vector<32x16xf32>
    %7 = tpu.matmul %4, %6, %cst_6 {dimension_numbers = #tpu.dot_dimension_numbers<[1], [0], [0], [1], [0, 0, 1, 1], [], []>} : vector<32x64xbf16>, vector<64x16xbf16>, vector<32x16xf32> -> vector<32x16xf32>
    %8 = vector.shape_cast %7 : vector<32x16xf32> to vector<2x16x16xf32>
    %9 = vector.extract_strided_slice %8 {offsets = [0, 0, 0], sizes = [2, 2, 16], strides = [1, 1, 1]} : vector<2x16x16xf32> to vector<2x2x16xf32>
    %10 = arith.addf %3, %9 : vector<2x2x16xf32>
    %11 = vector.extract_strided_slice %2 {offsets = [0, 0], sizes = [32, 64], strides = [1, 1]} : vector<48x64xbf16> to vector<32x64xbf16>
    %c1 = arith.constant 1 : index
    %c0_7 = arith.constant 0 : index
    %c0_8 = arith.constant 0 : index
    %12 = vector.load %arg2[%c1, %c0_7, %c0_8] : memref<4x64x16xbf16, #tpu.memory_space<vmem>>, vector<1x64x16xbf16>
    %13 = vector.shape_cast %12 : vector<1x64x16xbf16> to vector<64x16xbf16>
    %cst_9 = arith.constant dense<0.000000e+00> : vector<32x16xf32>
    %14 = tpu.matmul %11, %13, %cst_9 {dimension_numbers = #tpu.dot_dimension_numbers<[1], [0], [0], [1], [0, 0, 1, 1], [], []>} : vector<32x64xbf16>, vector<64x16xbf16>, vector<32x16xf32> -> vector<32x16xf32>
    %15 = vector.shape_cast %14 : vector<32x16xf32> to vector<2x16x16xf32>
    %16 = vector.extract_strided_slice %15 {offsets = [0, 1, 0], sizes = [2, 2, 16], strides = [1, 1, 1]} : vector<2x16x16xf32> to vector<2x2x16xf32>
    %17 = arith.addf %10, %16 : vector<2x2x16xf32>
    %18 = vector.extract_strided_slice %2 {offsets = [16, 0], sizes = [32, 64], strides = [1, 1]} : vector<48x64xbf16> to vector<32x64xbf16>
    %c2 = arith.constant 2 : index
    %c0_10 = arith.constant 0 : index
    %c0_11 = arith.constant 0 : index
    %19 = vector.load %arg2[%c2, %c0_10, %c0_11] : memref<4x64x16xbf16, #tpu.memory_space<vmem>>, vector<1x64x16xbf16>
    %20 = vector.shape_cast %19 : vector<1x64x16xbf16> to vector<64x16xbf16>
    %cst_12 = arith.constant dense<0.000000e+00> : vector<32x16xf32>
    %21 = tpu.matmul %18, %20, %cst_12 {dimension_numbers = #tpu.dot_dimension_numbers<[1], [0], [0], [1], [0, 0, 1, 1], [], []>} : vector<32x64xbf16>, vector<64x16xbf16>, vector<32x16xf32> -> vector<32x16xf32>
    %22 = vector.shape_cast %21 : vector<32x16xf32> to vector<2x16x16xf32>
    %23 = vector.extract_strided_slice %22 {offsets = [0, 0, 0], sizes = [2, 2, 16], strides = [1, 1, 1]} : vector<2x16x16xf32> to vector<2x2x16xf32>
    %24 = arith.addf %17, %23 : vector<2x2x16xf32>
    %25 = vector.extract_strided_slice %2 {offsets = [16, 0], sizes = [32, 64], strides = [1, 1]} : vector<48x64xbf16> to vector<32x64xbf16>
    %c3 = arith.constant 3 : index
    %c0_13 = arith.constant 0 : index
    %c0_14 = arith.constant 0 : index
    %26 = vector.load %arg2[%c3, %c0_13, %c0_14] : memref<4x64x16xbf16, #tpu.memory_space<vmem>>, vector<1x64x16xbf16>
    %27 = vector.shape_cast %26 : vector<1x64x16xbf16> to vector<64x16xbf16>
    %cst_15 = arith.constant dense<0.000000e+00> : vector<32x16xf32>
    %28 = tpu.matmul %25, %27, %cst_15 {dimension_numbers = #tpu.dot_dimension_numbers<[1], [0], [0], [1], [0, 0, 1, 1], [], []>} : vector<32x64xbf16>, vector<64x16xbf16>, vector<32x16xf32> -> vector<32x16xf32>
    %29 = vector.shape_cast %28 : vector<32x16xf32> to vector<2x16x16xf32>
    %30 = vector.extract_strided_slice %29 {offsets = [0, 1, 0], sizes = [2, 2, 16], strides = [1, 1, 1]} : vector<2x16x16xf32> to vector<2x2x16xf32>
    %31 = arith.addf %24, %30 : vector<2x2x16xf32>
    %32 = arith.truncf %31 : vector<2x2x16xf32> to vector<2x2x16xbf16>
    %c0_16 = arith.constant 0 : index
    %c0_17 = arith.constant 0 : index
    %c0_18 = arith.constant 0 : index
    %c0_19 = arith.constant 0 : index
    %33 = vector.load %arg3[%c0_16, %c0_17, %c0_18, %c0_19] : memref<1x2x2x16xbf16, #tpu.memory_space<vmem>>, vector<1x2x2x16xbf16>
    %34 = vector.shape_cast %33 : vector<1x2x2x16xbf16> to vector<2x2x16xbf16>
    %35 = vector.shape_cast %32 : vector<2x2x16xbf16> to vector<1x2x2x16xbf16>
    tpu.vector_store %arg3[%c0_16, %c0_17, %c0_18, %c0_19], %35 {strides = array<i32>} : memref<1x2x2x16xbf16, #tpu.memory_space<vmem>>, vector<1x2x2x16xbf16>,
    %cst_20 = arith.constant dense<0.000000e+00> : vector<16xf32>
    %36 = vector.multi_reduction <add>, %31, %cst_20 [0, 1] : vector<2x2x16xf32> to vector<16xf32>
    %37 = vector.shape_cast %36 : vector<16xf32> to vector<1x1x16xf32>
    %c0_21 = arith.constant 0 : index
    %c0_22 = arith.constant 0 : index
    %c0_23 = arith.constant 0 : index
    %38 = vector.load %arg4[%c0_21, %c0_22, %c0_23] : memref<1x1x16xf32, #tpu.memory_space<vmem>>, vector<1x1x16xf32>
    tpu.vector_store %arg4[%c0_21, %c0_22, %c0_23], %37 {strides = array<i32>} : memref<1x1x16xf32, #tpu.memory_space<vmem>>, vector<1x1x16xf32>,
    %39 = arith.mulf %31, %31 : vector<2x2x16xf32>
    %cst_24 = arith.constant dense<0.000000e+00> : vector<16xf32>
    %40 = vector.multi_reduction <add>, %39, %cst_24 [0, 1] : vector<2x2x16xf32> to vector<16xf32>
    %41 = vector.shape_cast %40 : vector<16xf32> to vector<1x1x16xf32>
    %c0_25 = arith.constant 0 : index
    %c0_26 = arith.constant 0 : index
    %c0_27 = arith.constant 0 : index
    %42 = vector.load %arg5[%c0_25, %c0_26, %c0_27] : memref<1x1x16xf32, #tpu.memory_space<vmem>>, vector<1x1x16xf32>
    tpu.vector_store %arg5[%c0_25, %c0_26, %c0_27], %41 {strides = array<i32>} : memref<1x1x16xf32, #tpu.memory_space<vmem>>, vector<1x1x16xf32>,
    return
  }
  func.func @transform_0(%arg0: i32) -> (i32, i32, i32, i32) {
    %c0_i32 = arith.constant 0 : i32
    %c0_i32_0 = arith.constant 0 : i32
    %c0_i32_1 = arith.constant 0 : i32
    %c0_i32_2 = arith.constant 0 : i32
    return %arg0, %c0_i32, %c0_i32_0, %c0_i32_1 : i32, i32, i32, i32
  }
  func.func @transform_1(%arg0: i32) -> (i32, i32, i32) {
    %c0_i32 = arith.constant 0 : i32
    %c0_i32_0 = arith.constant 0 : i32
    %c0_i32_1 = arith.constant 0 : i32
    %c0_i32_2 = arith.constant 0 : i32
    return %c0_i32, %c0_i32_0, %c0_i32_1 : i32, i32, i32
  }
  func.func @transform_2(%arg0: i32) -> (i32, i32, i32, i32) {
    %c0_i32 = arith.constant 0 : i32
    %c0_i32_0 = arith.constant 0 : i32
    %c0_i32_1 = arith.constant 0 : i32
    %c0_i32_2 = arith.constant 0 : i32
    return %arg0, %c0_i32, %c0_i32_0, %c0_i32_1 : i32, i32, i32, i32
  }
  func.func @transform_3(%arg0: i32) -> (i32, i32, i32) {
    %c0_i32 = arith.constant 0 : i32
    %c0_i32_0 = arith.constant 0 : i32
    %c0_i32_1 = arith.constant 0 : i32
    return %arg0, %c0_i32, %c0_i32_0 : i32, i32, i32
  }
  func.func @transform_4(%arg0: i32) -> (i32, i32, i32) {
    %c0_i32 = arith.constant 0 : i32
    %c0_i32_0 = arith.constant 0 : i32
    %c0_i32_1 = arith.constant 0 : i32
    return %arg0, %c0_i32, %c0_i32_0 : i32, i32, i32
  }
}

module attributes {stable_mosaic.version = 11 : i64} {
  func.func @_conv1x1_kernel(%arg0: i32, %arg1: memref<1x4x16xbf16, #tpu.memory_space<vmem>>, %arg2: memref<1x16xf32, #tpu.memory_space<vmem>>, %arg3: memref<1x16xf32, #tpu.memory_space<vmem>>, %arg4: memref<16x64xbf16, #tpu.memory_space<vmem>>, %arg5: memref<1x4x64xf32, #tpu.memory_space<vmem>>, %arg6: memref<1x1x64xf32, #tpu.memory_space<vmem>>, %arg7: memref<1x1x64xf32, #tpu.memory_space<vmem>>) attributes {dimension_semantics = [#tpu.dimension_semantics<parallel>], iteration_bounds = array<i64: 2>, scalar_prefetch = 0 : i64, scratch_operands = 0 : i64, tpu.core_type = #tpu.core_type<tc>, window_params = [{transform_indices = @transform_0, window_bounds = array<i64: 1, 4, 16>}, {pipeline_mode = #tpu.pipeline_mode<synchronous>, transform_indices = @transform_1, window_bounds = array<i64: 1, 16>}, {pipeline_mode = #tpu.pipeline_mode<synchronous>, transform_indices = @transform_2, window_bounds = array<i64: 1, 16>}, {pipeline_mode = #tpu.pipeline_mode<synchronous>, transform_indices = @transform_3, window_bounds = array<i64: 16, 64>}, {transform_indices = @transform_4, window_bounds = array<i64: 1, 4, 64>}, {transform_indices = @transform_5, window_bounds = array<i64: 1, 1, 64>}, {transform_indices = @transform_6, window_bounds = array<i64: 1, 1, 64>}]} {
    %c0 = arith.constant 0 : index
    %c0_0 = arith.constant 0 : index
    %c0_1 = arith.constant 0 : index
    %0 = vector.load %arg1[%c0, %c0_0, %c0_1] : memref<1x4x16xbf16, #tpu.memory_space<vmem>>, vector<1x4x16xbf16>
    %1 = vector.shape_cast %0 : vector<1x4x16xbf16> to vector<4x16xbf16>
    %c0_2 = arith.constant 0 : index
    %c0_3 = arith.constant 0 : index
    %2 = vector.load %arg2[%c0_2, %c0_3] : memref<1x16xf32, #tpu.memory_space<vmem>>, vector<1x16xf32>
    %3 = arith.extf %1 : vector<4x16xbf16> to vector<4x16xf32>
    %4 = vector.broadcast %2 : vector<1x16xf32> to vector<4x16xf32>
    %5 = arith.mulf %3, %4 : vector<4x16xf32>
    %c0_4 = arith.constant 0 : index
    %c0_5 = arith.constant 0 : index
    %6 = vector.load %arg3[%c0_4, %c0_5] : memref<1x16xf32, #tpu.memory_space<vmem>>, vector<1x16xf32>
    %7 = vector.broadcast %6 : vector<1x16xf32> to vector<4x16xf32>
    %8 = arith.addf %5, %7 : vector<4x16xf32>
    %cst = arith.constant 0.000000e+00 : f32
    %9 = vector.broadcast %cst : f32 to vector<4x16xf32>
    %10 = arith.maximumf %8, %9 : vector<4x16xf32>
    %11 = arith.truncf %10 : vector<4x16xf32> to vector<4x16xbf16>
    %c0_6 = arith.constant 0 : index
    %c0_7 = arith.constant 0 : index
    %12 = vector.load %arg4[%c0_6, %c0_7] : memref<16x64xbf16, #tpu.memory_space<vmem>>, vector<16x64xbf16>
    %cst_8 = arith.constant dense<0.000000e+00> : vector<4x64xf32>
    %13 = tpu.matmul %11, %12, %cst_8 {dimension_numbers = #tpu.dot_dimension_numbers<[1], [0], [0], [1], [0, 0, 1, 1], [], []>} : vector<4x16xbf16>, vector<16x64xbf16>, vector<4x64xf32> -> vector<4x64xf32>
    %c0_9 = arith.constant 0 : index
    %c0_10 = arith.constant 0 : index
    %c0_11 = arith.constant 0 : index
    %14 = vector.load %arg5[%c0_9, %c0_10, %c0_11] : memref<1x4x64xf32, #tpu.memory_space<vmem>>, vector<1x4x64xf32>
    %15 = vector.shape_cast %14 : vector<1x4x64xf32> to vector<4x64xf32>
    %16 = vector.shape_cast %13 : vector<4x64xf32> to vector<1x4x64xf32>
    tpu.vector_store %arg5[%c0_9, %c0_10, %c0_11], %16 {strides = array<i32>} : memref<1x4x64xf32, #tpu.memory_space<vmem>>, vector<1x4x64xf32>,
    %cst_12 = arith.constant dense<0.000000e+00> : vector<64xf32>
    %17 = vector.multi_reduction <add>, %13, %cst_12 [0] : vector<4x64xf32> to vector<64xf32>
    %18 = vector.shape_cast %17 : vector<64xf32> to vector<1x64xf32>
    %c0_13 = arith.constant 0 : index
    %c0_14 = arith.constant 0 : index
    %c0_15 = arith.constant 0 : index
    %19 = vector.load %arg6[%c0_13, %c0_14, %c0_15] : memref<1x1x64xf32, #tpu.memory_space<vmem>>, vector<1x1x64xf32>
    %20 = vector.shape_cast %19 : vector<1x1x64xf32> to vector<1x64xf32>
    %21 = vector.shape_cast %18 : vector<1x64xf32> to vector<1x1x64xf32>
    tpu.vector_store %arg6[%c0_13, %c0_14, %c0_15], %21 {strides = array<i32>} : memref<1x1x64xf32, #tpu.memory_space<vmem>>, vector<1x1x64xf32>,
    %22 = arith.mulf %13, %13 : vector<4x64xf32>
    %cst_16 = arith.constant dense<0.000000e+00> : vector<64xf32>
    %23 = vector.multi_reduction <add>, %22, %cst_16 [0] : vector<4x64xf32> to vector<64xf32>
    %24 = vector.shape_cast %23 : vector<64xf32> to vector<1x64xf32>
    %c0_17 = arith.constant 0 : index
    %c0_18 = arith.constant 0 : index
    %c0_19 = arith.constant 0 : index
    %25 = vector.load %arg7[%c0_17, %c0_18, %c0_19] : memref<1x1x64xf32, #tpu.memory_space<vmem>>, vector<1x1x64xf32>
    %26 = vector.shape_cast %25 : vector<1x1x64xf32> to vector<1x64xf32>
    %27 = vector.shape_cast %24 : vector<1x64xf32> to vector<1x1x64xf32>
    tpu.vector_store %arg7[%c0_17, %c0_18, %c0_19], %27 {strides = array<i32>} : memref<1x1x64xf32, #tpu.memory_space<vmem>>, vector<1x1x64xf32>,
    return
  }
  func.func @transform_0(%arg0: i32) -> (i32, i32, i32) {
    %c0_i32 = arith.constant 0 : i32
    %c0_i32_0 = arith.constant 0 : i32
    %c0_i32_1 = arith.constant 0 : i32
    return %arg0, %c0_i32, %c0_i32_0 : i32, i32, i32
  }
  func.func @transform_1(%arg0: i32) -> (i32, i32) {
    %c0_i32 = arith.constant 0 : i32
    %c0_i32_0 = arith.constant 0 : i32
    %c0_i32_1 = arith.constant 0 : i32
    return %c0_i32, %c0_i32_0 : i32, i32
  }
  func.func @transform_2(%arg0: i32) -> (i32, i32) {
    %c0_i32 = arith.constant 0 : i32
    %c0_i32_0 = arith.constant 0 : i32
    %c0_i32_1 = arith.constant 0 : i32
    return %c0_i32, %c0_i32_0 : i32, i32
  }
  func.func @transform_3(%arg0: i32) -> (i32, i32) {
    %c0_i32 = arith.constant 0 : i32
    %c0_i32_0 = arith.constant 0 : i32
    %c0_i32_1 = arith.constant 0 : i32
    return %c0_i32, %c0_i32_0 : i32, i32
  }
  func.func @transform_4(%arg0: i32) -> (i32, i32, i32) {
    %c0_i32 = arith.constant 0 : i32
    %c0_i32_0 = arith.constant 0 : i32
    %c0_i32_1 = arith.constant 0 : i32
    return %arg0, %c0_i32, %c0_i32_0 : i32, i32, i32
  }
  func.func @transform_5(%arg0: i32) -> (i32, i32, i32) {
    %c0_i32 = arith.constant 0 : i32
    %c0_i32_0 = arith.constant 0 : i32
    %c0_i32_1 = arith.constant 0 : i32
    return %arg0, %c0_i32, %c0_i32_0 : i32, i32, i32
  }
  func.func @transform_6(%arg0: i32) -> (i32, i32, i32) {
    %c0_i32 = arith.constant 0 : i32
    %c0_i32_0 = arith.constant 0 : i32
    %c0_i32_1 = arith.constant 0 : i32
    return %arg0, %c0_i32, %c0_i32_0 : i32, i32, i32
  }
}

module attributes {stable_mosaic.version = 11 : i64} {
  func.func @_conv1x1_kernel(%arg0: i32, %arg1: memref<1x1x64xf32, #tpu.memory_space<vmem>>, %arg2: memref<64x128xbf16, #tpu.memory_space<vmem>>, %arg3: memref<1x1x128xf32, #tpu.memory_space<vmem>>, %arg4: memref<1x1x128xf32, #tpu.memory_space<vmem>>, %arg5: memref<1x1x128xf32, #tpu.memory_space<vmem>>) attributes {dimension_semantics = [#tpu.dimension_semantics<parallel>], iteration_bounds = array<i64: 2>, scalar_prefetch = 0 : i64, scratch_operands = 0 : i64, tpu.core_type = #tpu.core_type<tc>, window_params = [{transform_indices = @transform_0, window_bounds = array<i64: 1, 1, 64>}, {pipeline_mode = #tpu.pipeline_mode<synchronous>, transform_indices = @transform_1, window_bounds = array<i64: 64, 128>}, {transform_indices = @transform_2, window_bounds = array<i64: 1, 1, 128>}, {transform_indices = @transform_3, window_bounds = array<i64: 1, 1, 128>}, {transform_indices = @transform_4, window_bounds = array<i64: 1, 1, 128>}]} {
    %c0 = arith.constant 0 : index
    %c0_0 = arith.constant 0 : index
    %c0_1 = arith.constant 0 : index
    %0 = vector.load %arg1[%c0, %c0_0, %c0_1] : memref<1x1x64xf32, #tpu.memory_space<vmem>>, vector<1x1x64xf32>
    %1 = vector.shape_cast %0 : vector<1x1x64xf32> to vector<1x64xf32>
    %2 = arith.truncf %1 : vector<1x64xf32> to vector<1x64xbf16>
    %c0_2 = arith.constant 0 : index
    %c0_3 = arith.constant 0 : index
    %3 = vector.load %arg2[%c0_2, %c0_3] : memref<64x128xbf16, #tpu.memory_space<vmem>>, vector<64x128xbf16>
    %cst = arith.constant dense<0.000000e+00> : vector<1x128xf32>
    %4 = tpu.matmul %2, %3, %cst {dimension_numbers = #tpu.dot_dimension_numbers<[1], [0], [0], [1], [0, 0, 1, 1], [], []>} : vector<1x64xbf16>, vector<64x128xbf16>, vector<1x128xf32> -> vector<1x128xf32>
    %c0_4 = arith.constant 0 : index
    %c0_5 = arith.constant 0 : index
    %c0_6 = arith.constant 0 : index
    %5 = vector.load %arg3[%c0_4, %c0_5, %c0_6] : memref<1x1x128xf32, #tpu.memory_space<vmem>>, vector<1x1x128xf32>
    %6 = vector.shape_cast %5 : vector<1x1x128xf32> to vector<1x128xf32>
    %7 = vector.shape_cast %4 : vector<1x128xf32> to vector<1x1x128xf32>
    tpu.vector_store %arg3[%c0_4, %c0_5, %c0_6], %7 {strides = array<i32>} : memref<1x1x128xf32, #tpu.memory_space<vmem>>, vector<1x1x128xf32>,
    %cst_7 = arith.constant dense<0.000000e+00> : vector<128xf32>
    %8 = vector.multi_reduction <add>, %4, %cst_7 [0] : vector<1x128xf32> to vector<128xf32>
    %9 = vector.shape_cast %8 : vector<128xf32> to vector<1x128xf32>
    %c0_8 = arith.constant 0 : index
    %c0_9 = arith.constant 0 : index
    %c0_10 = arith.constant 0 : index
    %10 = vector.load %arg4[%c0_8, %c0_9, %c0_10] : memref<1x1x128xf32, #tpu.memory_space<vmem>>, vector<1x1x128xf32>
    %11 = vector.shape_cast %10 : vector<1x1x128xf32> to vector<1x128xf32>
    %12 = vector.shape_cast %9 : vector<1x128xf32> to vector<1x1x128xf32>
    tpu.vector_store %arg4[%c0_8, %c0_9, %c0_10], %12 {strides = array<i32>} : memref<1x1x128xf32, #tpu.memory_space<vmem>>, vector<1x1x128xf32>,
    %13 = arith.mulf %4, %4 : vector<1x128xf32>
    %cst_11 = arith.constant dense<0.000000e+00> : vector<128xf32>
    %14 = vector.multi_reduction <add>, %13, %cst_11 [0] : vector<1x128xf32> to vector<128xf32>
    %15 = vector.shape_cast %14 : vector<128xf32> to vector<1x128xf32>
    %c0_12 = arith.constant 0 : index
    %c0_13 = arith.constant 0 : index
    %c0_14 = arith.constant 0 : index
    %16 = vector.load %arg5[%c0_12, %c0_13, %c0_14] : memref<1x1x128xf32, #tpu.memory_space<vmem>>, vector<1x1x128xf32>
    %17 = vector.shape_cast %16 : vector<1x1x128xf32> to vector<1x128xf32>
    %18 = vector.shape_cast %15 : vector<1x128xf32> to vector<1x1x128xf32>
    tpu.vector_store %arg5[%c0_12, %c0_13, %c0_14], %18 {strides = array<i32>} : memref<1x1x128xf32, #tpu.memory_space<vmem>>, vector<1x1x128xf32>,
    return
  }
  func.func @transform_0(%arg0: i32) -> (i32, i32, i32) {
    %c0_i32 = arith.constant 0 : i32
    %c0_i32_0 = arith.constant 0 : i32
    %c0_i32_1 = arith.constant 0 : i32
    return %arg0, %c0_i32, %c0_i32_0 : i32, i32, i32
  }
  func.func @transform_1(%arg0: i32) -> (i32, i32) {
    %c0_i32 = arith.constant 0 : i32
    %c0_i32_0 = arith.constant 0 : i32
    %c0_i32_1 = arith.constant 0 : i32
    return %c0_i32, %c0_i32_0 : i32, i32
  }
  func.func @transform_2(%arg0: i32) -> (i32, i32, i32) {
    %c0_i32 = arith.constant 0 : i32
    %c0_i32_0 = arith.constant 0 : i32
    %c0_i32_1 = arith.constant 0 : i32
    return %arg0, %c0_i32, %c0_i32_0 : i32, i32, i32
  }
  func.func @transform_3(%arg0: i32) -> (i32, i32, i32) {
    %c0_i32 = arith.constant 0 : i32
    %c0_i32_0 = arith.constant 0 : i32
    %c0_i32_1 = arith.constant 0 : i32
    return %arg0, %c0_i32, %c0_i32_0 : i32, i32, i32
  }
  func.func @transform_4(%arg0: i32) -> (i32, i32, i32) {
    %c0_i32 = arith.constant 0 : i32
    %c0_i32_0 = arith.constant 0 : i32
    %c0_i32_1 = arith.constant 0 : i32
    return %arg0, %c0_i32, %c0_i32_0 : i32, i32, i32
  }
}

module attributes {stable_mosaic.version = 11 : i64} {
  func.func @_conv1x1_kernel(%arg0: i32, %arg1: memref<1x4x64xf32, #tpu.memory_space<vmem>>, %arg2: memref<64x32xbf16, #tpu.memory_space<vmem>>, %arg3: memref<1x4x32xbf16, #tpu.memory_space<vmem>>, %arg4: memref<1x1x32xf32, #tpu.memory_space<vmem>>, %arg5: memref<1x1x32xf32, #tpu.memory_space<vmem>>) attributes {dimension_semantics = [#tpu.dimension_semantics<parallel>], iteration_bounds = array<i64: 2>, scalar_prefetch = 0 : i64, scratch_operands = 0 : i64, tpu.core_type = #tpu.core_type<tc>, window_params = [{transform_indices = @transform_0, window_bounds = array<i64: 1, 4, 64>}, {pipeline_mode = #tpu.pipeline_mode<synchronous>, transform_indices = @transform_1, window_bounds = array<i64: 64, 32>}, {transform_indices = @transform_2, window_bounds = array<i64: 1, 4, 32>}, {transform_indices = @transform_3, window_bounds = array<i64: 1, 1, 32>}, {transform_indices = @transform_4, window_bounds = array<i64: 1, 1, 32>}]} {
    %c0 = arith.constant 0 : index
    %c0_0 = arith.constant 0 : index
    %c0_1 = arith.constant 0 : index
    %0 = vector.load %arg1[%c0, %c0_0, %c0_1] : memref<1x4x64xf32, #tpu.memory_space<vmem>>, vector<1x4x64xf32>
    %1 = vector.shape_cast %0 : vector<1x4x64xf32> to vector<4x64xf32>
    %2 = arith.truncf %1 : vector<4x64xf32> to vector<4x64xbf16>
    %c0_2 = arith.constant 0 : index
    %c0_3 = arith.constant 0 : index
    %3 = vector.load %arg2[%c0_2, %c0_3] : memref<64x32xbf16, #tpu.memory_space<vmem>>, vector<64x32xbf16>
    %cst = arith.constant dense<0.000000e+00> : vector<4x32xf32>
    %4 = tpu.matmul %2, %3, %cst {dimension_numbers = #tpu.dot_dimension_numbers<[1], [0], [0], [1], [0, 0, 1, 1], [], []>} : vector<4x64xbf16>, vector<64x32xbf16>, vector<4x32xf32> -> vector<4x32xf32>
    %5 = arith.truncf %4 : vector<4x32xf32> to vector<4x32xbf16>
    %c0_4 = arith.constant 0 : index
    %c0_5 = arith.constant 0 : index
    %c0_6 = arith.constant 0 : index
    %6 = vector.load %arg3[%c0_4, %c0_5, %c0_6] : memref<1x4x32xbf16, #tpu.memory_space<vmem>>, vector<1x4x32xbf16>
    %7 = vector.shape_cast %6 : vector<1x4x32xbf16> to vector<4x32xbf16>
    %8 = vector.shape_cast %5 : vector<4x32xbf16> to vector<1x4x32xbf16>
    tpu.vector_store %arg3[%c0_4, %c0_5, %c0_6], %8 {strides = array<i32>} : memref<1x4x32xbf16, #tpu.memory_space<vmem>>, vector<1x4x32xbf16>,
    %cst_7 = arith.constant dense<0.000000e+00> : vector<32xf32>
    %9 = vector.multi_reduction <add>, %4, %cst_7 [0] : vector<4x32xf32> to vector<32xf32>
    %10 = vector.shape_cast %9 : vector<32xf32> to vector<1x32xf32>
    %c0_8 = arith.constant 0 : index
    %c0_9 = arith.constant 0 : index
    %c0_10 = arith.constant 0 : index
    %11 = vector.load %arg4[%c0_8, %c0_9, %c0_10] : memref<1x1x32xf32, #tpu.memory_space<vmem>>, vector<1x1x32xf32>
    %12 = vector.shape_cast %11 : vector<1x1x32xf32> to vector<1x32xf32>
    %13 = vector.shape_cast %10 : vector<1x32xf32> to vector<1x1x32xf32>
    tpu.vector_store %arg4[%c0_8, %c0_9, %c0_10], %13 {strides = array<i32>} : memref<1x1x32xf32, #tpu.memory_space<vmem>>, vector<1x1x32xf32>,
    %14 = arith.mulf %4, %4 : vector<4x32xf32>
    %cst_11 = arith.constant dense<0.000000e+00> : vector<32xf32>
    %15 = vector.multi_reduction <add>, %14, %cst_11 [0] : vector<4x32xf32> to vector<32xf32>
    %16 = vector.shape_cast %15 : vector<32xf32> to vector<1x32xf32>
    %c0_12 = arith.constant 0 : index
    %c0_13 = arith.constant 0 : index
    %c0_14 = arith.constant 0 : index
    %17 = vector.load %arg5[%c0_12, %c0_13, %c0_14] : memref<1x1x32xf32, #tpu.memory_space<vmem>>, vector<1x1x32xf32>
    %18 = vector.shape_cast %17 : vector<1x1x32xf32> to vector<1x32xf32>
    %19 = vector.shape_cast %16 : vector<1x32xf32> to vector<1x1x32xf32>
    tpu.vector_store %arg5[%c0_12, %c0_13, %c0_14], %19 {strides = array<i32>} : memref<1x1x32xf32, #tpu.memory_space<vmem>>, vector<1x1x32xf32>,
    return
  }
  func.func @transform_0(%arg0: i32) -> (i32, i32, i32) {
    %c0_i32 = arith.constant 0 : i32
    %c0_i32_0 = arith.constant 0 : i32
    %c0_i32_1 = arith.constant 0 : i32
    return %arg0, %c0_i32, %c0_i32_0 : i32, i32, i32
  }
  func.func @transform_1(%arg0: i32) -> (i32, i32) {
    %c0_i32 = arith.constant 0 : i32
    %c0_i32_0 = arith.constant 0 : i32
    %c0_i32_1 = arith.constant 0 : i32
    return %c0_i32, %c0_i32_0 : i32, i32
  }
  func.func @transform_2(%arg0: i32) -> (i32, i32, i32) {
    %c0_i32 = arith.constant 0 : i32
    %c0_i32_0 = arith.constant 0 : i32
    %c0_i32_1 = arith.constant 0 : i32
    return %arg0, %c0_i32, %c0_i32_0 : i32, i32, i32
  }
  func.func @transform_3(%arg0: i32) -> (i32, i32, i32) {
    %c0_i32 = arith.constant 0 : i32
    %c0_i32_0 = arith.constant 0 : i32
    %c0_i32_1 = arith.constant 0 : i32
    return %arg0, %c0_i32, %c0_i32_0 : i32, i32, i32
  }
  func.func @transform_4(%arg0: i32) -> (i32, i32, i32) {
    %c0_i32 = arith.constant 0 : i32
    %c0_i32_0 = arith.constant 0 : i32
    %c0_i32_1 = arith.constant 0 : i32
    return %arg0, %c0_i32, %c0_i32_0 : i32, i32, i32
  }
}

module attributes {stable_mosaic.version = 11 : i64} {
  func.func @_conv_tap_kernel(%arg0: i32, %arg1: memref<1x2x16x128xbf16, #tpu.memory_space<vmem>>, %arg2: memref<4x128x32xbf16, #tpu.memory_space<vmem>>, %arg3: memref<1x1x1x32xbf16, #tpu.memory_space<vmem>>, %arg4: memref<1x1x32xf32, #tpu.memory_space<vmem>>, %arg5: memref<1x1x32xf32, #tpu.memory_space<vmem>>) attributes {dimension_semantics = [#tpu.dimension_semantics<parallel>], iteration_bounds = array<i64: 2>, scalar_prefetch = 0 : i64, scratch_operands = 0 : i64, tpu.core_type = #tpu.core_type<tc>, window_params = [{transform_indices = @transform_0, window_bounds = array<i64: 1, 2, 16, 128>}, {pipeline_mode = #tpu.pipeline_mode<synchronous>, transform_indices = @transform_1, window_bounds = array<i64: 4, 128, 32>}, {transform_indices = @transform_2, window_bounds = array<i64: 1, 1, 1, 32>}, {transform_indices = @transform_3, window_bounds = array<i64: 1, 1, 32>}, {transform_indices = @transform_4, window_bounds = array<i64: 1, 1, 32>}]} {
    %c0 = arith.constant 0 : index
    %c0_0 = arith.constant 0 : index
    %c0_1 = arith.constant 0 : index
    %c0_2 = arith.constant 0 : index
    %0 = vector.load %arg1[%c0, %c0_0, %c0_1, %c0_2] : memref<1x2x16x128xbf16, #tpu.memory_space<vmem>>, vector<1x2x16x128xbf16>
    %1 = vector.shape_cast %0 : vector<1x2x16x128xbf16> to vector<2x16x128xbf16>
    %2 = vector.shape_cast %1 : vector<2x16x128xbf16> to vector<32x128xbf16>
    %cst = arith.constant 0.000000e+00 : f32
    %3 = vector.broadcast %cst : f32 to vector<1x1x32xf32>
    %4 = vector.extract_strided_slice %2 {offsets = [0, 0], sizes = [16, 128], strides = [1, 1]} : vector<32x128xbf16> to vector<16x128xbf16>
    %c0_3 = arith.constant 0 : index
    %c0_4 = arith.constant 0 : index
    %c0_5 = arith.constant 0 : index
    %5 = vector.load %arg2[%c0_3, %c0_4, %c0_5] : memref<4x128x32xbf16, #tpu.memory_space<vmem>>, vector<1x128x32xbf16>
    %6 = vector.shape_cast %5 : vector<1x128x32xbf16> to vector<128x32xbf16>
    %cst_6 = arith.constant dense<0.000000e+00> : vector<16x32xf32>
    %7 = tpu.matmul %4, %6, %cst_6 {dimension_numbers = #tpu.dot_dimension_numbers<[1], [0], [0], [1], [0, 0, 1, 1], [], []>} : vector<16x128xbf16>, vector<128x32xbf16>, vector<16x32xf32> -> vector<16x32xf32>
    %8 = vector.shape_cast %7 : vector<16x32xf32> to vector<1x16x32xf32>
    %9 = vector.extract_strided_slice %8 {offsets = [0, 0, 0], sizes = [1, 1, 32], strides = [1, 1, 1]} : vector<1x16x32xf32> to vector<1x1x32xf32>
    %10 = arith.addf %3, %9 : vector<1x1x32xf32>
    %11 = vector.extract_strided_slice %2 {offsets = [0, 0], sizes = [16, 128], strides = [1, 1]} : vector<32x128xbf16> to vector<16x128xbf16>
    %c1 = arith.constant 1 : index
    %c0_7 = arith.constant 0 : index
    %c0_8 = arith.constant 0 : index
    %12 = vector.load %arg2[%c1, %c0_7, %c0_8] : memref<4x128x32xbf16, #tpu.memory_space<vmem>>, vector<1x128x32xbf16>
    %13 = vector.shape_cast %12 : vector<1x128x32xbf16> to vector<128x32xbf16>
    %cst_9 = arith.constant dense<0.000000e+00> : vector<16x32xf32>
    %14 = tpu.matmul %11, %13, %cst_9 {dimension_numbers = #tpu.dot_dimension_numbers<[1], [0], [0], [1], [0, 0, 1, 1], [], []>} : vector<16x128xbf16>, vector<128x32xbf16>, vector<16x32xf32> -> vector<16x32xf32>
    %15 = vector.shape_cast %14 : vector<16x32xf32> to vector<1x16x32xf32>
    %16 = vector.extract_strided_slice %15 {offsets = [0, 1, 0], sizes = [1, 1, 32], strides = [1, 1, 1]} : vector<1x16x32xf32> to vector<1x1x32xf32>
    %17 = arith.addf %10, %16 : vector<1x1x32xf32>
    %18 = vector.extract_strided_slice %2 {offsets = [16, 0], sizes = [16, 128], strides = [1, 1]} : vector<32x128xbf16> to vector<16x128xbf16>
    %c2 = arith.constant 2 : index
    %c0_10 = arith.constant 0 : index
    %c0_11 = arith.constant 0 : index
    %19 = vector.load %arg2[%c2, %c0_10, %c0_11] : memref<4x128x32xbf16, #tpu.memory_space<vmem>>, vector<1x128x32xbf16>
    %20 = vector.shape_cast %19 : vector<1x128x32xbf16> to vector<128x32xbf16>
    %cst_12 = arith.constant dense<0.000000e+00> : vector<16x32xf32>
    %21 = tpu.matmul %18, %20, %cst_12 {dimension_numbers = #tpu.dot_dimension_numbers<[1], [0], [0], [1], [0, 0, 1, 1], [], []>} : vector<16x128xbf16>, vector<128x32xbf16>, vector<16x32xf32> -> vector<16x32xf32>
    %22 = vector.shape_cast %21 : vector<16x32xf32> to vector<1x16x32xf32>
    %23 = vector.extract_strided_slice %22 {offsets = [0, 0, 0], sizes = [1, 1, 32], strides = [1, 1, 1]} : vector<1x16x32xf32> to vector<1x1x32xf32>
    %24 = arith.addf %17, %23 : vector<1x1x32xf32>
    %25 = vector.extract_strided_slice %2 {offsets = [16, 0], sizes = [16, 128], strides = [1, 1]} : vector<32x128xbf16> to vector<16x128xbf16>
    %c3 = arith.constant 3 : index
    %c0_13 = arith.constant 0 : index
    %c0_14 = arith.constant 0 : index
    %26 = vector.load %arg2[%c3, %c0_13, %c0_14] : memref<4x128x32xbf16, #tpu.memory_space<vmem>>, vector<1x128x32xbf16>
    %27 = vector.shape_cast %26 : vector<1x128x32xbf16> to vector<128x32xbf16>
    %cst_15 = arith.constant dense<0.000000e+00> : vector<16x32xf32>
    %28 = tpu.matmul %25, %27, %cst_15 {dimension_numbers = #tpu.dot_dimension_numbers<[1], [0], [0], [1], [0, 0, 1, 1], [], []>} : vector<16x128xbf16>, vector<128x32xbf16>, vector<16x32xf32> -> vector<16x32xf32>
    %29 = vector.shape_cast %28 : vector<16x32xf32> to vector<1x16x32xf32>
    %30 = vector.extract_strided_slice %29 {offsets = [0, 1, 0], sizes = [1, 1, 32], strides = [1, 1, 1]} : vector<1x16x32xf32> to vector<1x1x32xf32>
    %31 = arith.addf %24, %30 : vector<1x1x32xf32>
    %32 = arith.truncf %31 : vector<1x1x32xf32> to vector<1x1x32xbf16>
    %c0_16 = arith.constant 0 : index
    %c0_17 = arith.constant 0 : index
    %c0_18 = arith.constant 0 : index
    %c0_19 = arith.constant 0 : index
    %33 = vector.load %arg3[%c0_16, %c0_17, %c0_18, %c0_19] : memref<1x1x1x32xbf16, #tpu.memory_space<vmem>>, vector<1x1x1x32xbf16>
    %34 = vector.shape_cast %33 : vector<1x1x1x32xbf16> to vector<1x1x32xbf16>
    %35 = vector.shape_cast %32 : vector<1x1x32xbf16> to vector<1x1x1x32xbf16>
    tpu.vector_store %arg3[%c0_16, %c0_17, %c0_18, %c0_19], %35 {strides = array<i32>} : memref<1x1x1x32xbf16, #tpu.memory_space<vmem>>, vector<1x1x1x32xbf16>,
    %cst_20 = arith.constant dense<0.000000e+00> : vector<32xf32>
    %36 = vector.multi_reduction <add>, %31, %cst_20 [0, 1] : vector<1x1x32xf32> to vector<32xf32>
    %37 = vector.shape_cast %36 : vector<32xf32> to vector<1x1x32xf32>
    %c0_21 = arith.constant 0 : index
    %c0_22 = arith.constant 0 : index
    %c0_23 = arith.constant 0 : index
    %38 = vector.load %arg4[%c0_21, %c0_22, %c0_23] : memref<1x1x32xf32, #tpu.memory_space<vmem>>, vector<1x1x32xf32>
    tpu.vector_store %arg4[%c0_21, %c0_22, %c0_23], %37 {strides = array<i32>} : memref<1x1x32xf32, #tpu.memory_space<vmem>>, vector<1x1x32xf32>,
    %39 = arith.mulf %31, %31 : vector<1x1x32xf32>
    %cst_24 = arith.constant dense<0.000000e+00> : vector<32xf32>
    %40 = vector.multi_reduction <add>, %39, %cst_24 [0, 1] : vector<1x1x32xf32> to vector<32xf32>
    %41 = vector.shape_cast %40 : vector<32xf32> to vector<1x1x32xf32>
    %c0_25 = arith.constant 0 : index
    %c0_26 = arith.constant 0 : index
    %c0_27 = arith.constant 0 : index
    %42 = vector.load %arg5[%c0_25, %c0_26, %c0_27] : memref<1x1x32xf32, #tpu.memory_space<vmem>>, vector<1x1x32xf32>
    tpu.vector_store %arg5[%c0_25, %c0_26, %c0_27], %41 {strides = array<i32>} : memref<1x1x32xf32, #tpu.memory_space<vmem>>, vector<1x1x32xf32>,
    return
  }
  func.func @transform_0(%arg0: i32) -> (i32, i32, i32, i32) {
    %c0_i32 = arith.constant 0 : i32
    %c0_i32_0 = arith.constant 0 : i32
    %c0_i32_1 = arith.constant 0 : i32
    %c0_i32_2 = arith.constant 0 : i32
    return %arg0, %c0_i32, %c0_i32_0, %c0_i32_1 : i32, i32, i32, i32
  }
  func.func @transform_1(%arg0: i32) -> (i32, i32, i32) {
    %c0_i32 = arith.constant 0 : i32
    %c0_i32_0 = arith.constant 0 : i32
    %c0_i32_1 = arith.constant 0 : i32
    %c0_i32_2 = arith.constant 0 : i32
    return %c0_i32, %c0_i32_0, %c0_i32_1 : i32, i32, i32
  }
  func.func @transform_2(%arg0: i32) -> (i32, i32, i32, i32) {
    %c0_i32 = arith.constant 0 : i32
    %c0_i32_0 = arith.constant 0 : i32
    %c0_i32_1 = arith.constant 0 : i32
    %c0_i32_2 = arith.constant 0 : i32
    return %arg0, %c0_i32, %c0_i32_0, %c0_i32_1 : i32, i32, i32, i32
  }
  func.func @transform_3(%arg0: i32) -> (i32, i32, i32) {
    %c0_i32 = arith.constant 0 : i32
    %c0_i32_0 = arith.constant 0 : i32
    %c0_i32_1 = arith.constant 0 : i32
    return %arg0, %c0_i32, %c0_i32_0 : i32, i32, i32
  }
  func.func @transform_4(%arg0: i32) -> (i32, i32, i32) {
    %c0_i32 = arith.constant 0 : i32
    %c0_i32_0 = arith.constant 0 : i32
    %c0_i32_1 = arith.constant 0 : i32
    return %arg0, %c0_i32, %c0_i32_0 : i32, i32, i32
  }
}

module attributes {stable_mosaic.version = 11 : i64} {
  func.func @_conv1x1_kernel(%arg0: i32, %arg1: memref<1x1x32xbf16, #tpu.memory_space<vmem>>, %arg2: memref<1x32xf32, #tpu.memory_space<vmem>>, %arg3: memref<1x32xf32, #tpu.memory_space<vmem>>, %arg4: memref<32x128xbf16, #tpu.memory_space<vmem>>, %arg5: memref<1x1x128xf32, #tpu.memory_space<vmem>>, %arg6: memref<1x1x128xf32, #tpu.memory_space<vmem>>, %arg7: memref<1x1x128xf32, #tpu.memory_space<vmem>>) attributes {dimension_semantics = [#tpu.dimension_semantics<parallel>], iteration_bounds = array<i64: 2>, scalar_prefetch = 0 : i64, scratch_operands = 0 : i64, tpu.core_type = #tpu.core_type<tc>, window_params = [{transform_indices = @transform_0, window_bounds = array<i64: 1, 1, 32>}, {pipeline_mode = #tpu.pipeline_mode<synchronous>, transform_indices = @transform_1, window_bounds = array<i64: 1, 32>}, {pipeline_mode = #tpu.pipeline_mode<synchronous>, transform_indices = @transform_2, window_bounds = array<i64: 1, 32>}, {pipeline_mode = #tpu.pipeline_mode<synchronous>, transform_indices = @transform_3, window_bounds = array<i64: 32, 128>}, {transform_indices = @transform_4, window_bounds = array<i64: 1, 1, 128>}, {transform_indices = @transform_5, window_bounds = array<i64: 1, 1, 128>}, {transform_indices = @transform_6, window_bounds = array<i64: 1, 1, 128>}]} {
    %c0 = arith.constant 0 : index
    %c0_0 = arith.constant 0 : index
    %c0_1 = arith.constant 0 : index
    %0 = vector.load %arg1[%c0, %c0_0, %c0_1] : memref<1x1x32xbf16, #tpu.memory_space<vmem>>, vector<1x1x32xbf16>
    %1 = vector.shape_cast %0 : vector<1x1x32xbf16> to vector<1x32xbf16>
    %c0_2 = arith.constant 0 : index
    %c0_3 = arith.constant 0 : index
    %2 = vector.load %arg2[%c0_2, %c0_3] : memref<1x32xf32, #tpu.memory_space<vmem>>, vector<1x32xf32>
    %3 = arith.extf %1 : vector<1x32xbf16> to vector<1x32xf32>
    %4 = arith.mulf %3, %2 : vector<1x32xf32>
    %c0_4 = arith.constant 0 : index
    %c0_5 = arith.constant 0 : index
    %5 = vector.load %arg3[%c0_4, %c0_5] : memref<1x32xf32, #tpu.memory_space<vmem>>, vector<1x32xf32>
    %6 = arith.addf %4, %5 : vector<1x32xf32>
    %cst = arith.constant 0.000000e+00 : f32
    %7 = vector.broadcast %cst : f32 to vector<1x32xf32>
    %8 = arith.maximumf %6, %7 : vector<1x32xf32>
    %9 = arith.truncf %8 : vector<1x32xf32> to vector<1x32xbf16>
    %c0_6 = arith.constant 0 : index
    %c0_7 = arith.constant 0 : index
    %10 = vector.load %arg4[%c0_6, %c0_7] : memref<32x128xbf16, #tpu.memory_space<vmem>>, vector<32x128xbf16>
    %cst_8 = arith.constant dense<0.000000e+00> : vector<1x128xf32>
    %11 = tpu.matmul %9, %10, %cst_8 {dimension_numbers = #tpu.dot_dimension_numbers<[1], [0], [0], [1], [0, 0, 1, 1], [], []>} : vector<1x32xbf16>, vector<32x128xbf16>, vector<1x128xf32> -> vector<1x128xf32>
    %c0_9 = arith.constant 0 : index
    %c0_10 = arith.constant 0 : index
    %c0_11 = arith.constant 0 : index
    %12 = vector.load %arg5[%c0_9, %c0_10, %c0_11] : memref<1x1x128xf32, #tpu.memory_space<vmem>>, vector<1x1x128xf32>
    %13 = vector.shape_cast %12 : vector<1x1x128xf32> to vector<1x128xf32>
    %14 = vector.shape_cast %11 : vector<1x128xf32> to vector<1x1x128xf32>
    tpu.vector_store %arg5[%c0_9, %c0_10, %c0_11], %14 {strides = array<i32>} : memref<1x1x128xf32, #tpu.memory_space<vmem>>, vector<1x1x128xf32>,
    %cst_12 = arith.constant dense<0.000000e+00> : vector<128xf32>
    %15 = vector.multi_reduction <add>, %11, %cst_12 [0] : vector<1x128xf32> to vector<128xf32>
    %16 = vector.shape_cast %15 : vector<128xf32> to vector<1x128xf32>
    %c0_13 = arith.constant 0 : index
    %c0_14 = arith.constant 0 : index
    %c0_15 = arith.constant 0 : index
    %17 = vector.load %arg6[%c0_13, %c0_14, %c0_15] : memref<1x1x128xf32, #tpu.memory_space<vmem>>, vector<1x1x128xf32>
    %18 = vector.shape_cast %17 : vector<1x1x128xf32> to vector<1x128xf32>
    %19 = vector.shape_cast %16 : vector<1x128xf32> to vector<1x1x128xf32>
    tpu.vector_store %arg6[%c0_13, %c0_14, %c0_15], %19 {strides = array<i32>} : memref<1x1x128xf32, #tpu.memory_space<vmem>>, vector<1x1x128xf32>,
    %20 = arith.mulf %11, %11 : vector<1x128xf32>
    %cst_16 = arith.constant dense<0.000000e+00> : vector<128xf32>
    %21 = vector.multi_reduction <add>, %20, %cst_16 [0] : vector<1x128xf32> to vector<128xf32>
    %22 = vector.shape_cast %21 : vector<128xf32> to vector<1x128xf32>
    %c0_17 = arith.constant 0 : index
    %c0_18 = arith.constant 0 : index
    %c0_19 = arith.constant 0 : index
    %23 = vector.load %arg7[%c0_17, %c0_18, %c0_19] : memref<1x1x128xf32, #tpu.memory_space<vmem>>, vector<1x1x128xf32>
    %24 = vector.shape_cast %23 : vector<1x1x128xf32> to vector<1x128xf32>
    %25 = vector.shape_cast %22 : vector<1x128xf32> to vector<1x1x128xf32>
    tpu.vector_store %arg7[%c0_17, %c0_18, %c0_19], %25 {strides = array<i32>} : memref<1x1x128xf32, #tpu.memory_space<vmem>>, vector<1x1x128xf32>,
    return
  }
  func.func @transform_0(%arg0: i32) -> (i32, i32, i32) {
    %c0_i32 = arith.constant 0 : i32
    %c0_i32_0 = arith.constant 0 : i32
    %c0_i32_1 = arith.constant 0 : i32
    return %arg0, %c0_i32, %c0_i32_0 : i32, i32, i32
  }
  func.func @transform_1(%arg0: i32) -> (i32, i32) {
    %c0_i32 = arith.constant 0 : i32
    %c0_i32_0 = arith.constant 0 : i32
    %c0_i32_1 = arith.constant 0 : i32
    return %c0_i32, %c0_i32_0 : i32, i32
  }
  func.func @transform_2(%arg0: i32) -> (i32, i32) {
    %c0_i32 = arith.constant 0 : i32
    %c0_i32_0 = arith.constant 0 : i32
    %c0_i32_1 = arith.constant 0 : i32
    return %c0_i32, %c0_i32_0 : i32, i32
  }
  func.func @transform_3(%arg0: i32) -> (i32, i32) {
    %c0_i32 = arith.constant 0 : i32
    %c0_i32_0 = arith.constant 0 : i32
    %c0_i32_1 = arith.constant 0 : i32
    return %c0_i32, %c0_i32_0 : i32, i32
  }
  func.func @transform_4(%arg0: i32) -> (i32, i32, i32) {
    %c0_i32 = arith.constant 0 : i32
    %c0_i32_0 = arith.constant 0 : i32
    %c0_i32_1 = arith.constant 0 : i32
    return %arg0, %c0_i32, %c0_i32_0 : i32, i32, i32
  }
  func.func @transform_5(%arg0: i32) -> (i32, i32, i32) {
    %c0_i32 = arith.constant 0 : i32
    %c0_i32_0 = arith.constant 0 : i32
    %c0_i32_1 = arith.constant 0 : i32
    return %arg0, %c0_i32, %c0_i32_0 : i32, i32, i32
  }
  func.func @transform_6(%arg0: i32) -> (i32, i32, i32) {
    %c0_i32 = arith.constant 0 : i32
    %c0_i32_0 = arith.constant 0 : i32
    %c0_i32_1 = arith.constant 0 : i32
    return %arg0, %c0_i32, %c0_i32_0 : i32, i32, i32
  }
}

module attributes {stable_mosaic.version = 11 : i64} {
  func.func @_residual_affine_kernel(%arg0: memref<2x1x128xf32, #tpu.memory_space<vmem>>, %arg1: memref<1x1x128xf32, #tpu.memory_space<vmem>>, %arg2: memref<1x1x128xf32, #tpu.memory_space<vmem>>, %arg3: memref<2x1x128xf32, #tpu.memory_space<vmem>>, %arg4: memref<1x1x128xf32, #tpu.memory_space<vmem>>, %arg5: memref<1x1x128xf32, #tpu.memory_space<vmem>>, %arg6: memref<2x1x128xf32, #tpu.memory_space<vmem>>) attributes {dimension_semantics = [], scalar_prefetch = 0 : i64, scratch_operands = 0 : i64, tpu.core_type = #tpu.core_type<tc>} {
    %c0 = arith.constant 0 : index
    %c0_0 = arith.constant 0 : index
    %c0_1 = arith.constant 0 : index
    %0 = vector.load %arg0[%c0, %c0_0, %c0_1] : memref<2x1x128xf32, #tpu.memory_space<vmem>>, vector<2x1x128xf32>
    %c0_2 = arith.constant 0 : index
    %c0_3 = arith.constant 0 : index
    %c0_4 = arith.constant 0 : index
    %1 = vector.load %arg1[%c0_2, %c0_3, %c0_4] : memref<1x1x128xf32, #tpu.memory_space<vmem>>, vector<1x1x128xf32>
    %2 = vector.broadcast %1 : vector<1x1x128xf32> to vector<2x1x128xf32>
    %3 = arith.mulf %0, %2 : vector<2x1x128xf32>
    %c0_5 = arith.constant 0 : index
    %c0_6 = arith.constant 0 : index
    %c0_7 = arith.constant 0 : index
    %4 = vector.load %arg2[%c0_5, %c0_6, %c0_7] : memref<1x1x128xf32, #tpu.memory_space<vmem>>, vector<1x1x128xf32>
    %5 = vector.broadcast %4 : vector<1x1x128xf32> to vector<2x1x128xf32>
    %6 = arith.addf %3, %5 : vector<2x1x128xf32>
    %c0_8 = arith.constant 0 : index
    %c0_9 = arith.constant 0 : index
    %c0_10 = arith.constant 0 : index
    %7 = vector.load %arg3[%c0_8, %c0_9, %c0_10] : memref<2x1x128xf32, #tpu.memory_space<vmem>>, vector<2x1x128xf32>
    %c0_11 = arith.constant 0 : index
    %c0_12 = arith.constant 0 : index
    %c0_13 = arith.constant 0 : index
    %8 = vector.load %arg4[%c0_11, %c0_12, %c0_13] : memref<1x1x128xf32, #tpu.memory_space<vmem>>, vector<1x1x128xf32>
    %9 = vector.broadcast %8 : vector<1x1x128xf32> to vector<2x1x128xf32>
    %10 = arith.mulf %7, %9 : vector<2x1x128xf32>
    %11 = arith.addf %6, %10 : vector<2x1x128xf32>
    %c0_14 = arith.constant 0 : index
    %c0_15 = arith.constant 0 : index
    %c0_16 = arith.constant 0 : index
    %12 = vector.load %arg5[%c0_14, %c0_15, %c0_16] : memref<1x1x128xf32, #tpu.memory_space<vmem>>, vector<1x1x128xf32>
    %13 = vector.broadcast %12 : vector<1x1x128xf32> to vector<2x1x128xf32>
    %14 = arith.addf %11, %13 : vector<2x1x128xf32>
    %cst = arith.constant 0.000000e+00 : f32
    %15 = vector.broadcast %cst : f32 to vector<2x1x128xf32>
    %16 = arith.maximumf %14, %15 : vector<2x1x128xf32>
    %c0_17 = arith.constant 0 : index
    %c0_18 = arith.constant 0 : index
    %c0_19 = arith.constant 0 : index
    %17 = vector.load %arg6[%c0_17, %c0_18, %c0_19] : memref<2x1x128xf32, #tpu.memory_space<vmem>>, vector<2x1x128xf32>
    tpu.vector_store %arg6[%c0_17, %c0_18, %c0_19], %16 {strides = array<i32>} : memref<2x1x128xf32, #tpu.memory_space<vmem>>, vector<2x1x128xf32>,
    return
  }
}

module attributes {stable_mosaic.version = 11 : i64} {
  func.func @_pool_linear_kernel(%arg0: memref<2x1x128xf32, #tpu.memory_space<vmem>>, %arg1: memref<128x10xbf16, #tpu.memory_space<vmem>>, %arg2: memref<1x10xf32, #tpu.memory_space<vmem>>, %arg3: memref<2x10xf32, #tpu.memory_space<vmem>>) attributes {dimension_semantics = [], scalar_prefetch = 0 : i64, scratch_operands = 0 : i64, tpu.core_type = #tpu.core_type<tc>} {
    %c0 = arith.constant 0 : index
    %c0_0 = arith.constant 0 : index
    %c0_1 = arith.constant 0 : index
    %0 = vector.load %arg0[%c0, %c0_0, %c0_1] : memref<2x1x128xf32, #tpu.memory_space<vmem>>, vector<2x1x128xf32>
    %cst = arith.constant dense<0.000000e+00> : vector<2x128xf32>
    %1 = vector.multi_reduction <add>, %0, %cst [1] : vector<2x1x128xf32> to vector<2x128xf32>
    %cst_2 = arith.constant 1.000000e+00 : f32
    %2 = vector.broadcast %cst_2 : f32 to vector<2x128xf32>
    %3 = arith.mulf %1, %2 : vector<2x128xf32>
    %4 = arith.truncf %3 : vector<2x128xf32> to vector<2x128xbf16>
    %c0_3 = arith.constant 0 : index
    %c0_4 = arith.constant 0 : index
    %5 = vector.load %arg1[%c0_3, %c0_4] : memref<128x10xbf16, #tpu.memory_space<vmem>>, vector<128x10xbf16>
    %cst_5 = arith.constant dense<0.000000e+00> : vector<2x10xf32>
    %6 = tpu.matmul %4, %5, %cst_5 {dimension_numbers = #tpu.dot_dimension_numbers<[1], [0], [0], [1], [0, 0, 1, 1], [], []>} : vector<2x128xbf16>, vector<128x10xbf16>, vector<2x10xf32> -> vector<2x10xf32>
    %c0_6 = arith.constant 0 : index
    %c0_7 = arith.constant 0 : index
    %7 = vector.load %arg2[%c0_6, %c0_7] : memref<1x10xf32, #tpu.memory_space<vmem>>, vector<1x10xf32>
    %8 = vector.broadcast %7 : vector<1x10xf32> to vector<2x10xf32>
    %9 = arith.addf %6, %8 : vector<2x10xf32>
    %c0_8 = arith.constant 0 : index
    %c0_9 = arith.constant 0 : index
    %10 = vector.load %arg3[%c0_8, %c0_9] : memref<2x10xf32, #tpu.memory_space<vmem>>, vector<2x10xf32>
    tpu.vector_store %arg3[%c0_8, %c0_9], %9 {strides = array<i32>} : memref<2x10xf32, #tpu.memory_space<vmem>>, vector<2x10xf32>,
    return
  }
}

</mosaic_0001>

<bundles_post_ra>
// kernel: resnet_forward.25
= control target key start
LH: loop header
LB: loop body
LE: loop exit
PB: predicated region body
PF: predicated region fallthrough
CT: control target
= control target key end

     0   :  { %s603_s15 = smov 0   ;;  %s673_s0 = inlined_call_operand.vmem [shape: f32[2,64,4], index: 0, kind: input, shape index: {}]   ;;  %s674_s1 = inlined_call_operand.vmem [shape: bf16[4,4], index: 1, kind: input, shape index: {}]   ;;  %s675_s2 = inlined_call_operand.vmem [shape: bf16[2,64,4], index: 2, kind: output, shape index: {0}]   ;;  %s676_s3 = inlined_call_operand.vmem [shape: f32[2,1,4], index: 3, kind: output, shape index: {1}]   ;;  %s677_s4 = inlined_call_operand.vmem [shape: f32[2,1,4], index: 4, kind: output, shape index: {2}]  }
   0x1 LB: > { %s510_s16 = sadd.s32 4294967295, %s576_s15   ;;  %p514_p0 = scmp.ge.s32.totalorder %s576_s15, 1  ;;  %s576_s15 = sphi %s603_s15, %s15_s15  }
   0x2   : > { %p167_p1 = scmp.lt.s32.totalorder %s576_s15, 3 }
   0x4   : > { %p168_p2 = pnand %p514_p0, %p167_p1 }
   0x5   : > { %p199_p3 = scmp.lt.s32.totalorder (!%p168_p2), %s510_s16, 1 }
   0x6   : > { %171 = sbr.rel (%p168_p2) target bundleno = 247 (0xf7), region = 28 }
   0xb   : > { %v228_v0 = vld [vmem:[%s674_s1] sm:$0x3]  ;;  %vm242_vm0 = vcmask 1041408   ;;  %s679_s16 = smov (!%p199_p3, %s510_s16), 1  ;;  %vm229_vm1 = vcmask 31744   ;;  %vm343_vm2 = vcmask 27648  }
   0xc   : > { %560 = vmatprep.subr.msk.bf16.mxu0 %vm242_vm0, %v228_v0  ;;  %v244_v1 = vsel %vm242_vm0, %v228_v0, 0  ;;  %561 = vmatprep.subr.msk.bf16.mxu1 %vm242_vm0, %v228_v0  ;;  %s533_s19 = sshll.u32 %s679_s16, 6  ;;  %s534_s23 = sshll.u32 %s679_s16, 5  ;;  %vm373_vm3 = vcmask 24576  }
   0xd   : > { %549 = vmatpush3.bf16.msra.mxu0 %v244_v1  ;;  %559 = vmatpush3.bf16.msra.mxu1 %v244_v1  ;;  %s203_s22 = scalar_lea.vmem %s673_s0, %s533_s19  ;;  %s628_s26 = scalar_lea.vmem %s675_s2, %s534_s23 }
   0xe   : > { %v216_v2 = vld [vmem:[%s203_s22] sm:$0xff]  ;;  %v217_v3 = vld [vmem:[%s203_s22 + $0x8] sm:$0xff]  ;;  %v218_v4 = vld [vmem:[%s203_s22 + $0x10] sm:$0xff]  ;;  %s211_s29 = scalar_lea.vmem %s676_s3, %s679_s16  ;;  %s214_s6 = scalar_lea.vmem %s677_s4, %s679_s16 }
   0xf   : > { %v224_v5 = vpack.c.bf16 %v217_v3, %v216_v2  ;;  %v219_v6 = vld [vmem:[%s203_s22 + $0x18] sm:$0xff]  ;;  %v220_v7 = vld [vmem:[%s203_s22 + $0x20] sm:$0xff]  ;;  %v221_v8 = vld [vmem:[%s203_s22 + $0x28] sm:$0xff] }
  0x10   : > { %v225_v9 = vpack.c.bf16 %v219_v6, %v218_v4  ;;  %v226_v10 = vpack.c.bf16 %v221_v8, %v220_v7  ;;  %v222_v11 = vld [vmem:[%s203_s22 + $0x30] sm:$0xff]  ;;  %v223_v12 = vld [vmem:[%s203_s22 + $0x38] sm:$0xff] }
  0x11   : > { %550 = vmatprep.mubr.msk.bf16.mxu0 %vm229_vm1, %v224_v5  ;;  %v227_v13 = vpack.c.bf16 %v223_v12, %v222_v11 }
  0x12   : > { %551 = vmatmul.mubr.msk.bf16.vlgmr.msra.gmra.mxu0 %vm229_vm1, %v225_v9  ;;  %554 = vmatprep.mubr.msk.bf16.mxu1 %vm229_vm1, %v226_v10 }
  0x13   : > { %555 = vmatmul.mubr.msk.bf16.vlgmr.msra.gmra.mxu1 %vm229_vm1, %v227_v13 }
  0xd2   : > { %v552_v14 = vpop.f32.mrf.mxu0 }
  0xd3   : > { %v537_v15 = vpack.c.bf16 %v552_v14, %v552_v14  ;;  %v556_v16 = vpop.f32.mrf.mxu1  ;;  %v377_v26 = vmul.f32 %v552_v14, %v552_v14  ;;  %v355_v36 = vsel %vm229_vm1, %v552_v14, 0.0 }
  0xd4   : > { %v280_v17 = vpop.f32.mrf.mxu0  ;;  %v541_v18 = vpack.c.bf16 %v556_v16, %v556_v16  ;;  %v381_v52 = vmul.f32 %v556_v16, %v556_v16  ;;  %v363_v57 = vsel %vm229_vm1, %v556_v16, 0.0 }
  0xd5   : > { %346 = vst.msk [vmem:[%s628_s26 + $0x8] sm:$0xf] %vm343_vm2, %v537_v15  ;;  %v535_v19 = vpack.c.bf16 %v280_v17, %v280_v17  ;;  %v296_v20 = vpop.f32.mrf.mxu1  ;;  %v375_v23 = vmul.f32 %v280_v17, %v280_v17  ;;  %v352_v29 = vsel %vm229_vm1, %v280_v17, 0.0  ;;  %v386_v42 = vsel %vm229_vm1, %v377_v26, 0.0 }
  0xd6   : > { %350 = vst.msk [vmem:[%s628_s26 + $0x18] sm:$0xf] %vm343_vm2, %v541_v18  ;;  %v553_v21 = vpop.f32.mrf.mxu0  ;;  %v539_v22 = vpack.c.bf16 %v296_v20, %v296_v20  ;;  %v379_v44 = vmul.f32 %v296_v20, %v296_v20  ;;  %v359_v48 = vsel %vm229_vm1, %v296_v20, 0.0  ;;  %v394_v62 = vsel %vm229_vm1, %v381_v52, 0.0 }
  0xd7   : > { %344 = vst.msk [vmem:[%s628_s26] sm:$0xf] %vm343_vm2, %v535_v19  ;;  %v538_v24 = vpack.c.bf16 %v553_v21, %v553_v21  ;;  %v557_v25 = vpop.f32.mrf.mxu1  ;;  %v383_v37 = vsel %vm229_vm1, %v375_v23, 0.0  ;;  %v378_v38 = vmul.f32 %v553_v21, %v553_v21  ;;  %v357_v43 = vsel %vm229_vm1, %v553_v21, 0.0 }
  0xd8   : > { %348 = vst.msk [vmem:[%s628_s26 + $0x10] sm:$0xf] %vm343_vm2, %v539_v22  ;;  %v283_v27 = vpop.f32.mrf.mxu0  ;;  %v542_v28 = vpack.c.bf16 %v557_v25, %v557_v25  ;;  %v390_v53 = vsel %vm229_vm1, %v379_v44, 0.0  ;;  %v382_v58 = vmul.f32 %v557_v25, %v557_v25  ;;  %v365_v63 = vsel %vm229_vm1, %v557_v25, 0.0 }
  0xd9   : > { %347 = vst.msk [vmem:[%s628_s26 + $0xc] sm:$0xf] %vm343_vm2, %v538_v24  ;;  %v536_v30 = vpack.c.bf16 %v283_v27, %v283_v27  ;;  %v353_v31 = vsel %vm229_vm1, %v283_v27, 0.0  ;;  %v376_v32 = vmul.f32 %v283_v27, %v283_v27  ;;  %v299_v33 = vpop.f32.mrf.mxu1  ;;  %v388_v47 = vsel %vm229_vm1, %v378_v38, 0.0 }
  0xda   : > { %v354_v34 = vadd.f32 %v353_v31, %v352_v29  ;;  %351 = vst.msk [vmem:[%s628_s26 + $0x1c] sm:$0xf] %vm343_vm2, %v542_v28  ;;  %v540_v35 = vpack.c.bf16 %v299_v33, %v299_v33  ;;  %v380_v49 = vmul.f32 %v299_v33, %v299_v33  ;;  %v361_v54 = vsel %vm229_vm1, %v299_v33, 0.0 }
  0xdb   : > { %345 = vst.msk [vmem:[%s628_s26 + $0x4] sm:$0xf] %vm343_vm2, %v536_v30  ;;  %v384_v39 = vsel %vm229_vm1, %v376_v32, 0.0  ;;  %v396_v2 = vsel %vm229_vm1, %v382_v58, 0.0 }
  0xdc   : > { %v356_v40 = vadd.f32 %v355_v36, %v354_v34  ;;  %v385_v41 = vadd.f32 %v384_v39, %v383_v37  ;;  %349 = vst.msk [vmem:[%s628_s26 + $0x14] sm:$0xf] %vm343_vm2, %v540_v35  ;;  %v392_v59 = vsel %vm229_vm1, %v380_v49, 0.0 }
  0xde   : > { %v387_v45 = vadd.f32 %v386_v42, %v385_v41  ;;  %v358_v46 = vadd.f32 %v357_v43, %v356_v40 }
  0xe0   : > { %v360_v50 = vadd.f32 %v359_v48, %v358_v46  ;;  %v389_v51 = vadd.f32 %v388_v47, %v387_v45 }
  0xe2   : > { %v362_v55 = vadd.f32 %v361_v54, %v360_v50  ;;  %v391_v56 = vadd.f32 %v390_v53, %v389_v51 }
  0xe4   : > { %v364_v60 = vadd.f32 %v363_v57, %v362_v55  ;;  %v393_v61 = vadd.f32 %v392_v59, %v391_v56 }
  0xe6   : > { %v366_v0 = vadd.f32 %v365_v63, %v364_v60  ;;  %v395_v1 = vadd.f32 %v394_v62, %v393_v61 }
  0xe8   : > { %v367_v3 = vrot.slane %v366_v0, 4  ;;  %v397_v4 = vadd.f32 %v396_v2, %v395_v1 }
  0xea   : > { %v368_v5 = vadd.f32 %v367_v3, %v366_v0  ;;  %v398_v6 = vrot.slane %v397_v4, 4 }
  0xec   : > { %v369_v7 = vrot.slane %v368_v5, 2  ;;  %v399_v8 = vadd.f32 %v398_v6, %v397_v4 }
  0xee   : > { %v370_v9 = vadd.f32 %v369_v7, %v368_v5  ;;  %v400_v10 = vrot.slane %v399_v8, 2 }
  0xf0   : > { %v371_v11 = vrot.slane %v370_v9, 1  ;;  %v401_v12 = vadd.f32 %v400_v10, %v399_v8 }
  0xf2   : > { %v372_v13 = vadd.f32 %v371_v11, %v370_v9  ;;  %v402_v14 = vrot.slane %v401_v12, 1 }
  0xf4   : > { %374 = vst.msk [vmem:[%s211_s29] sm:$0x1] %vm373_vm3, %v372_v13  ;;  %v403_v15 = vadd.f32 %v402_v14, %v401_v12 }
  0xf6   : > { %404 = vst.msk [vmem:[%s214_s6] sm:$0x1] %vm373_vm3, %v403_v15 }
  0xf7 PF: > { %s15_s15 = sadd.s32 1, %s576_s15  }
  0xf8   : > { %p12_p4 = scmp.ge.s32.totalorder %s15_s15, 4  }
  0xfa   :  { %14 = sbr.rel (!%p12_p4) target bundleno = 1 (0x1), region = 82 }

// kernel: resnet_forward.24
= control target key start
LH: loop header
LB: loop body
LE: loop exit
PB: predicated region body
PF: predicated region fallthrough
CT: control target
= control target key end

     0   :  { %s463_s6 = smov 0   ;;  %s656_s0 = inlined_call_operand.vmem [shape: f32[2,9,2,9,8], index: 0, kind: input, shape index: {}]   ;;  %s657_s1 = inlined_call_operand.vmem [shape: f32[2,8,8,4], index: 1, kind: output, shape index: {}]  }
   0x1 LB: > { %s391_s7 = sadd.s32 4294967295, %s450_s6   ;;  %p395_p0 = scmp.ge.s32.totalorder %s450_s6, 1  ;;  %s450_s6 = sphi %s463_s6, %s11_s6  }
   0x2   : > { %p87_p1 = scmp.lt.s32.totalorder %s450_s6, 3 }
   0x4   : > { %p88_p2 = pnand %p395_p0, %p87_p1 }
   0x5   : > { %p107_p3 = scmp.lt.s32.totalorder (!%p88_p2), %s391_s7, 1  ;;  %s452_s12 = smov (!%p88_p2), 124  }
   0x6   : > { %91 = sbr.rel (%p88_p2) target bundleno = 181 (0xb5), region = 24 }
   0xb   : > { %s659_s7 = smov (!%p107_p3, %s391_s7), 1  ;;  %vm327_vm0 = vcmask 31744  }
   0xc   : > { %s434_s8 = smul.u32 288, %s659_s7  ;;  %s433_s13 = sshll.u32 %s659_s7, 6 }
   0xd   : > { %s620_s16 = scalar_lea.vmem %s657_s1, %s433_s13 }
   0xe   : > { %s477_s11 = scalar_lea.vmem %s656_s0, %s434_s8 }
   0xf   : > { %v480_v0 = vld [vmem:[%s477_s11 + $0x40] sm:$0xff]  ;;  %v400_v8 = vld [vmem:[%s477_s11 + $0x30] sm:$0xff] }
  0x10   : > { %v117_v1 = vld [vmem:[%s477_s11] sm:$0xff]  ;;  %137 = vrot.lane.b32.xlu1 %v480_v0, %s452_s12  ;;  %v399_v9 = vld [vmem:[%s477_s11 + $0x10] sm:$0xff] }
  0x11   : > { %133 = vrot.lane.b32.xlu0 %v117_v1, %s452_s12  ;;  %v487_v2 = vld [vmem:[%s477_s11 + $0x60] sm:$0xff]  ;;  %v521_v10 = vld [vmem:[%s477_s11 + $0x70] sm:$0xff] }
  0x12   : > { %v490_v3 = vld [vmem:[%s477_s11 + $0x20] sm:$0xff]  ;;  %v524_v11 = vld [vmem:[%s477_s11 + $0x50] sm:$0xff] }
  0x13   : > { %v497_v4 = vld [vmem:[%s477_s11 + $0xa0] sm:$0xff]  ;;  %v531_v12 = vld [vmem:[%s477_s11 + $0xb0] sm:$0xff] }
  0x14   : > { %139 = vrot.lane.b32.xlu1 %v487_v2, %s452_s12  ;;  %v500_v5 = vld [vmem:[%s477_s11 + $0x80] sm:$0xff]  ;;  %v534_v13 = vld [vmem:[%s477_s11 + $0x90] sm:$0xff] }
  0x15   : > { %135 = vrot.lane.b32.xlu0 %v490_v3, %s452_s12  ;;  %v507_v6 = vld [vmem:[%s477_s11 + $0xe0] sm:$0xff]  ;;  %v541_v14 = vld [vmem:[%s477_s11 + $0xf0] sm:$0xff] }
  0x16   : > { %v510_v7 = vld [vmem:[%s477_s11 + $0xc0] sm:$0xff]  ;;  %v544_v15 = vld [vmem:[%s477_s11 + $0xd0] sm:$0xff] }
  0x17   : > { %v563_v16 = vld [vmem:[%s477_s11 + $0x100] sm:$0xff]  ;;  %v408_v51 = vld [vmem:[%s477_s11 + $0x31] sm:$0xff] }
  0x18   : > { %143 = vrot.lane.b32.xlu1 %v497_v4, %s452_s12  ;;  %v165_v27 = vld [vmem:[%s477_s11 + $0x1] sm:$0xff]  ;;  %v407_v52 = vld [vmem:[%s477_s11 + $0x11] sm:$0xff] }
  0x19   : > { %141 = vrot.lane.b32.xlu0 %v500_v5, %s452_s12  ;;  %v572_v28 = vld [vmem:[%s477_s11 + $0x21] sm:$0xff] }
  0x1a   : > { %v577_v33 = vld [vmem:[%s477_s11 + $0x41] sm:$0xff] }
  0x1b   : > { %v580_v35 = vld [vmem:[%s477_s11 + $0x61] sm:$0xff] }
  0x1c   : > { %147 = vrot.lane.b32.xlu1 %v507_v6, %s452_s12  ;;  %v588_v43 = vld [vmem:[%s477_s11 + $0xa1] sm:$0xff] }
  0x1d   : > { %145 = vrot.lane.b32.xlu0 %v510_v7, %s452_s12  ;;  %v591_v44 = vld [vmem:[%s477_s11 + $0x81] sm:$0xff] }
  0x1e   : > { %v602_v59 = vld [vmem:[%s477_s11 + $0xe1] sm:$0xff] }
  0x1f   : > { %v171_v60 = vld [vmem:[%s477_s11 + $0xc1] sm:$0xff] }
  0x20   : > { %208 = vrot.lane.b32.xlu1 %v400_v8, %s452_s12 }
  0x21   : > { %206 = vrot.lane.b32.xlu0 %v399_v9, %s452_s12 }
  0x24   : > { %212 = vrot.lane.b32.xlu1 %v521_v10, %s452_s12 }
  0x25   : > { %210 = vrot.lane.b32.xlu0 %v524_v11, %s452_s12 }
  0x28   : > { %216 = vrot.lane.b32.xlu1 %v531_v12, %s452_s12 }
  0x29   : > { %214 = vrot.lane.b32.xlu0 %v534_v13, %s452_s12 }
  0x2c   : > { %220 = vrot.lane.b32.xlu1 %v541_v14, %s452_s12 }
  0x2d   : > { %218 = vrot.lane.b32.xlu0 %v544_v15, %s452_s12 }
  0x30   : > { %281 = vrot.lane.b32.xlu1 %v480_v0, %s452_s12 }
  0x31   : > { %279 = vrot.lane.b32.xlu0 %v490_v3, %s452_s12 }
  0x34   : > { %285 = vrot.lane.b32.xlu1 %v500_v5, %s452_s12 }
  0x35   : > { %283 = vrot.lane.b32.xlu0 %v487_v2, %s452_s12 }
  0x38   : > { %289 = vrot.lane.b32.xlu1 %v510_v7, %s452_s12 }
  0x39   : > { %287 = vrot.lane.b32.xlu0 %v497_v4, %s452_s12 }
  0x3c   : > { %293 = vrot.lane.b32.xlu1 %v563_v16, %s452_s12 }
  0x3d   : > { %291 = vrot.lane.b32.xlu0 %v507_v6, %s452_s12 }
  0x82   : > { %v138_v17 = vpop.permute.xlu1 %137 }
  0x83   : > { %v134_v18 = vpop.permute.xlu0 %133  ;;  %v159_v29 = vmax.f32 %v480_v0, %v138_v17 }
  0x84   : > { %v157_v25 = vmax.f32 %v117_v1, %v134_v18 }
  0x85   : > { %v175_v37 = vmax.f32 %v159_v29, %v577_v33 }
  0x86   : > { %v140_v19 = vpop.permute.xlu1 %139  ;;  %v173_v34 = vmax.f32 %v157_v25, %v165_v27  ;;  %v412_v25 = vld [vmem:[%s477_s11 + $0xb1] sm:$0xff] }
  0x87   : > { %v136_v20 = vpop.permute.xlu0 %135  ;;  %v160_v30 = vmax.f32 %v487_v2, %v140_v19  ;;  %v192_v54 = vmax.f32 %v175_v37, %v524_v11 }
  0x88   : > { %v158_v26 = vmax.f32 %v490_v3, %v136_v20  ;;  %v190_v46 = vmax.f32 %v173_v34, %v399_v9  ;;  %v409_v9 = vld [vmem:[%s477_s11 + $0x51] sm:$0xff] }
  0x89   : > { %v176_v38 = vmax.f32 %v160_v30, %v580_v35 }
  0x8a   : > { %v144_v21 = vpop.permute.xlu1 %143  ;;  %v174_v36 = vmax.f32 %v158_v26, %v572_v28  ;;  %v411_v26 = vld [vmem:[%s477_s11 + $0x91] sm:$0xff] }
  0x8b   : > { %v142_v22 = vpop.permute.xlu0 %141  ;;  %v162_v39 = vmax.f32 %v497_v4, %v144_v21  ;;  %v193_v53 = vmax.f32 %v176_v38, %v521_v10 }
  0x8c   : > { %v161_v40 = vmax.f32 %v500_v5, %v142_v22  ;;  %v191_v45 = vmax.f32 %v174_v36, %v400_v8  ;;  %v410_v8 = vld [vmem:[%s477_s11 + $0x71] sm:$0xff] }
  0x8d   : > { %v178_v49 = vmax.f32 %v162_v39, %v588_v43 }
  0x8e   : > { %v148_v23 = vpop.permute.xlu1 %147  ;;  %v177_v50 = vmax.f32 %v161_v40, %v591_v44  ;;  %v414_v40 = vld [vmem:[%s477_s11 + $0xf1] sm:$0xff] }
  0x8f   : > { %v146_v24 = vpop.permute.xlu0 %145  ;;  %v164_v57 = vmax.f32 %v507_v6, %v148_v23  ;;  %v195_v10 = vmax.f32 %v178_v49, %v531_v12 }
  0x90   : > { %v163_v58 = vmax.f32 %v510_v7, %v146_v24  ;;  %v194_v11 = vmax.f32 %v177_v50, %v534_v13 }
  0x91   : > { %v180_v19 = vmax.f32 %v164_v57, %v602_v59 }
  0x92   : > { %v209_v31 = vpop.permute.xlu1 %208  ;;  %v179_v20 = vmax.f32 %v163_v58, %v171_v60 }
  0x93   : > { %v207_v32 = vpop.permute.xlu0 %206  ;;  %v231_v47 = vmax.f32 %v191_v45, %v209_v31  ;;  %v197_v30 = vmax.f32 %v180_v19, %v541_v14 }
  0x94   : > { %v230_v48 = vmax.f32 %v190_v46, %v207_v32  ;;  %v196_v31 = vmax.f32 %v179_v20, %v544_v15 }
  0x95   : > { %v247_v63 = vmax.f32 %v231_v47, %v408_v51 }
  0x96   : > { %v213_v41 = vpop.permute.xlu1 %212  ;;  %v246_v1 = vmax.f32 %v230_v48, %v407_v52 }
  0x97   : > { %v211_v42 = vpop.permute.xlu0 %210  ;;  %v233_v61 = vmax.f32 %v193_v53, %v213_v41  ;;  %v264_v27 = vmax.f32 %v247_v63, %v480_v0  ;;  %v413_v41 = vld [vmem:[%s477_s11 + $0xd1] sm:$0xff] }
  0x98   : > { %v232_v62 = vmax.f32 %v192_v54, %v211_v42  ;;  %v263_v29 = vmax.f32 %v246_v1, %v490_v3 }
  0x99   : > { %v249_v21 = vmax.f32 %v233_v61, %v410_v8 }
  0x9a   : > { %v217_v55 = vpop.permute.xlu1 %216  ;;  %v248_v22 = vmax.f32 %v232_v62, %v409_v9 }
  0x9b   : > { %v215_v56 = vpop.permute.xlu0 %214  ;;  %v235_v23 = vmax.f32 %v195_v10, %v217_v55  ;;  %v266_v0 = vmax.f32 %v249_v21, %v500_v5  ;;  %v430_v55 = vld [vmem:[%s477_s11 + $0x101] sm:$0xff] }
  0x9c   : > { %v234_v24 = vmax.f32 %v194_v11, %v215_v56  ;;  %v265_v3 = vmax.f32 %v248_v22, %v487_v2 }
  0x9d   : > { %v251_v36 = vmax.f32 %v235_v23, %v412_v25 }
  0x9e   : > { %v221_v17 = vpop.permute.xlu1 %220  ;;  %v250_v37 = vmax.f32 %v234_v24, %v411_v26 }
  0x9f   : > { %v219_v18 = vpop.permute.xlu0 %218  ;;  %v237_v38 = vmax.f32 %v197_v30, %v221_v17  ;;  %v268_v2 = vmax.f32 %v251_v36, %v510_v7 }
  0xa0   : > { %v236_v39 = vmax.f32 %v196_v31, %v219_v18  ;;  %v267_v47 = vmax.f32 %v250_v37, %v497_v4 }
  0xa2   : > { %v282_v12 = vpop.permute.xlu1 %281  ;;  %v252_v48 = vmax.f32 %v236_v39, %v413_v41 }
  0xa3   : > { %v280_v13 = vpop.permute.xlu0 %279  ;;  %v304_v32 = vmax.f32 %v264_v27, %v282_v12 }
  0xa4   : > { %v303_v34 = vmax.f32 %v263_v29, %v280_v13 }
  0xa5   : > { %v320_v14 = vmax.f32 %v304_v32, %v577_v33  ;;  %v253_v33 = vmax.f32 %v237_v38, %v414_v40 }
  0xa6   : > { %v319_v15 = vmax.f32 %v303_v34, %v572_v28  ;;  %v286_v42 = vpop.permute.xlu1 %285 }
  0xa7   : > { %v284_v45 = vpop.permute.xlu0 %283  ;;  %329 = vst.msk [vmem:[%s620_s16 + $0x8] sm:$0xff] %vm327_vm0, %v320_v14  ;;  %v306_v46 = vmax.f32 %v266_v0, %v286_v42  ;;  %v270_v54 = vmax.f32 %v253_v33, %v563_v16 }
  0xa8   : > { %328 = vst.msk [vmem:[%s620_s16] sm:$0xff] %vm327_vm0, %v319_v15  ;;  %v305_v5 = vmax.f32 %v265_v3, %v284_v45 }
  0xa9   : > { %v322_v28 = vmax.f32 %v306_v46, %v591_v44  ;;  %v269_v44 = vmax.f32 %v252_v48, %v507_v6 }
  0xaa   : > { %v321_v49 = vmax.f32 %v305_v5, %v580_v35  ;;  %v290_v50 = vpop.permute.xlu1 %289 }
  0xab   : > { %v288_v51 = vpop.permute.xlu0 %287  ;;  %331 = vst.msk [vmem:[%s620_s16 + $0x18] sm:$0xff] %vm327_vm0, %v322_v28  ;;  %v308_v52 = vmax.f32 %v268_v2, %v290_v50 }
  0xac   : > { %330 = vst.msk [vmem:[%s620_s16 + $0x10] sm:$0xff] %vm327_vm0, %v321_v49  ;;  %v307_v7 = vmax.f32 %v267_v47, %v288_v51 }
  0xad   : > { %v324_v53 = vmax.f32 %v308_v52, %v171_v60 }
  0xae   : > { %v323_v4 = vmax.f32 %v307_v7, %v588_v43  ;;  %v294_v56 = vpop.permute.xlu1 %293 }
  0xaf   : > { %v292_v35 = vpop.permute.xlu0 %291  ;;  %333 = vst.msk [vmem:[%s620_s16 + $0x28] sm:$0xff] %vm327_vm0, %v324_v53  ;;  %v310_v57 = vmax.f32 %v270_v54, %v294_v56 }
  0xb0   : > { %332 = vst.msk [vmem:[%s620_s16 + $0x20] sm:$0xff] %vm327_vm0, %v323_v4  ;;  %v309_v58 = vmax.f32 %v269_v44, %v292_v35 }
  0xb1   : > { %v326_v61 = vmax.f32 %v310_v57, %v430_v55 }
  0xb2   : > { %v325_v62 = vmax.f32 %v309_v58, %v602_v59 }
  0xb3   : > { %335 = vst.msk [vmem:[%s620_s16 + $0x38] sm:$0xff] %vm327_vm0, %v326_v61 }
  0xb4   : > { %334 = vst.msk [vmem:[%s620_s16 + $0x30] sm:$0xff] %vm327_vm0, %v325_v62 }
  0xb5 PF: > { %s11_s6 = sadd.s32 1, %s450_s6  }
  0xb6   : > { %p8_p4 = scmp.ge.s32.totalorder %s11_s6, 4  }
  0xb8   :  { %10 = sbr.rel (!%p8_p4) target bundleno = 1 (0x1), region = 56 }

// kernel: tile.63
= control target key start
LH: loop header
LB: loop body
LE: loop exit
PB: predicated region body
PF: predicated region fallthrough
CT: control target
= control target key end

     0   :  { %s22_s0 = inlined_call_operand.vmem [shape: f32[16], index: 0, kind: input, shape index: {}]   ;;  %s23_s1 = inlined_call_operand.vmem [shape: f32[8,16], index: 1, kind: output, shape index: {}]  }
   0x1   :  { %v4_v0 = vld [vmem:[%s22_s0] ss:$0 sm:$0xff] }
   0x2   :  { %5 = vst [vmem:[%s23_s1] sm:$0xff] %v4_v0 }

// kernel: tile.64
= control target key start
LH: loop header
LB: loop body
LE: loop exit
PB: predicated region body
PF: predicated region fallthrough
CT: control target
= control target key end

     0   :  { %s69_s10 = smov 112   ;;  %s70_s11 = smov 80   ;;  %vm3_vm0 = vcmask 130048   ;;  %vm9_vm1 = vcmask 1048448   ;;  %vm15_vm2 = vcmask 917248   ;;  %vm21_vm3 = vcmask 786048   ;;  %s113_s0 = inlined_call_operand.vmem [shape: f32[8,16], index: 0, kind: input, shape index: {}]   ;;  %s114_s1 = inlined_call_operand.vmem [shape: f32[1,1,128], index: 1, kind: output, shape index: {}]  }
   0x1   :  { %v55_v0 = vld [vmem:[%s113_s0 + $0x7] sm:$0x1]   ;;  %v57_v1 = vld [vmem:[%s113_s0 + $0x5] sm:$0x1]   ;;  %v56_v2 = vld [vmem:[%s113_s0 + $0x6] sm:$0x1]  }
   0x2   :  { %7 = vrot.lane.b32.xlu0 %v55_v0, %s69_s10  ;;  %19 = vrot.lane.b32.xlu1 %v57_v1, %s70_s11  ;;  %v58_v3 = vld [vmem:[%s113_s0 + $0x4] sm:$0x1]   ;;  %v2_v4 = vld [vmem:[%s113_s0] sm:$0x1]   ;;  %s71_s18 = smov 96   ;;  %s72_s19 = smov 64  }
   0x3   :  { %4 = vst.msk [vmem:[#allocation0] sm:$0x1] %vm3_vm0, %v2_v4   ;;  %v59_v5 = vld [vmem:[%s113_s0 + $0x3] sm:$0x1]   ;;  %v60_v6 = vld [vmem:[%s113_s0 + $0x2] sm:$0x1]  }
   0x4   :  { %s73_s24 = smov 48   ;;  %s74_s25 = smov 32   ;;  %v61_v7 = vld [vmem:[%s113_s0 + $0x1] sm:$0x1]   ;;  %vm27_vm4 = vcmask 654848   ;;  %vm33_vm5 = vcmask 523648  }
   0x5   :  { %s75_s0 = smov 16   ;;  %vm39_vm6 = vcmask 392448   ;;  %vm45_vm7 = vcmask 261248  }
   0x6   :  { %13 = vrot.lane.b32.xlu0 %v56_v2, %s71_s18  ;;  %25 = vrot.lane.b32.xlu1 %v58_v3, %s72_s19 }
   0xa   :  { %31 = vrot.lane.b32.xlu0 %v59_v5, %s73_s24  ;;  %37 = vrot.lane.b32.xlu1 %v60_v6, %s74_s25 }
   0xe   :  { %43 = vrot.lane.b32.xlu0 %v61_v7, %s75_s0 }
  0x74   :  { %v8_v8 = vpop.permute.xlu0 %7   ;;  %v20_v9 = vpop.permute.xlu1 %19  }
  0x75   :  { %10 = vst.msk [vmem:[#allocation0] sm:$0x1] %vm9_vm1, %v8_v8  }
  0x78   :  { %v14_v10 = vpop.permute.xlu0 %13   ;;  %v26_v11 = vpop.permute.xlu1 %25  }
  0x79   :  { %16 = vst.msk [vmem:[#allocation0] sm:$0x1] %vm15_vm2, %v14_v10  }
  0x7a   :  { %22 = vst.msk [vmem:[#allocation0] sm:$0x1] %vm21_vm3, %v20_v9  }
  0x7b   :  { %28 = vst.msk [vmem:[#allocation0] sm:$0x1] %vm27_vm4, %v26_v11  }
  0x7c   :  { %v32_v12 = vpop.permute.xlu0 %31   ;;  %v38_v13 = vpop.permute.xlu1 %37  }
  0x7d   :  { %34 = vst.msk [vmem:[#allocation0] sm:$0x1] %vm33_vm5, %v32_v12  }
  0x7e   :  { %40 = vst.msk [vmem:[#allocation0] sm:$0x1] %vm39_vm6, %v38_v13  }
  0x80   :  { %v44_v14 = vpop.permute.xlu0 %43  }
  0x81   :  { %46 = vst.msk [vmem:[#allocation0] sm:$0x1] %vm45_vm7, %v44_v14  }
  0x88   :  { %v51_v15 = vld [vmem:[#allocation0] sm:$0x1] }
  0x89   :  { %54 = vst [vmem:[%s114_s1] sm:$0x1] %v51_v15 }

// kernel: resnet_forward.27
= control target key start
LH: loop header
LB: loop body
LE: loop exit
PB: predicated region body
PF: predicated region fallthrough
CT: control target
= control target key end

     0   :  { %s686_s21 = smov 0   ;;  %s752_s0 = inlined_call_operand.vmem [shape: bf16[2,64,4], index: 0, kind: input, shape index: {}]   ;;  %s753_s1 = inlined_call_operand.vmem [shape: f32[1,4], index: 1, kind: input, shape index: {}]   ;;  %s754_s2 = inlined_call_operand.vmem [shape: f32[1,4], index: 2, kind: input, shape index: {}]   ;;  %s755_s3 = inlined_call_operand.vmem [shape: bf16[4,16], index: 3, kind: input, shape index: {}]   ;;  %s756_s4 = inlined_call_operand.vmem [shape: f32[2,64,16], index: 4, kind: output, shape index: {0}]   ;;  %s757_s5 = inlined_call_operand.vmem [shape: f32[2,1,16], index: 5, kind: output, shape index: {1}]   ;;  %s758_s6 = inlined_call_operand.vmem [shape: f32[2,1,16], index: 6, kind: output, shape index: {2}]  }
   0x1 LB: > { %s578_s22 = sadd.s32 4294967295, %s649_s21   ;;  %p582_p0 = scmp.ge.s32.totalorder %s649_s21, 1  ;;  %s649_s21 = sphi %s686_s21, %s17_s21  }
   0x2   : > { %p217_p1 = scmp.lt.s32.totalorder %s649_s21, 3 }
   0x4   : > { %p218_p2 = pnand %p582_p0, %p217_p1 }
   0x5   : > { %p253_p3 = scmp.lt.s32.totalorder (!%p218_p2), %s578_s22, 1 }
   0x6   : > { %221 = sbr.rel (%p218_p2) target bundleno = 255 (0xff), region = 36 }
   0xb   : > { %v328_v0 = vld [vmem:[%s755_s3] sm:$0x3]  ;;  %vm342_vm0 = vcmask 1041408   ;;  %s760_s22 = smov (!%p253_p3, %s578_s22), 1  ;;  %vm329_vm1 = vcmask 31744   ;;  %vm411_vm2 = vcmask 130048  }
   0xc   : > { %633 = vmatprep.subr.msk.bf16.mxu0 %vm342_vm0, %v328_v0  ;;  %v344_v1 = vsel %vm342_vm0, %v328_v0, 0  ;;  %634 = vmatprep.subr.msk.bf16.mxu1 %vm342_vm0, %v328_v0  ;;  %s595_s25 = sshll.u32 %s760_s22, 5  ;;  %v587_v2 = vld [vmem:[%s753_s1] ss:$0 sm:$0xff]  ;;  %s596_s9 = sshll.u32 %s760_s22, 6  ;;  %vm441_vm3 = vcmask 122880  }
   0xd   : > { %622 = vmatpush3.bf16.msra.mxu0 %v344_v1  ;;  %632 = vmatpush3.bf16.msra.mxu1 %v344_v1  ;;  %s257_s28 = scalar_lea.vmem %s752_s0, %s595_s25  ;;  %v588_v11 = vld [vmem:[%s754_s2] ss:$0 sm:$0xff]  ;;  %s262_s12 = scalar_lea.vmem %s756_s4, %s596_s9 }
   0xe   : > { %v598_v3 = vld [vmem:[%s257_s28] sm:$0xff]   ;;  %v613_v4 = vld [vmem:[%s257_s28 + $0x8] sm:$0xff]   ;;  %v614_v5 = vld [vmem:[%s257_s28 + $0x10] sm:$0xff]   ;;  %s265_s15 = scalar_lea.vmem %s757_s5, %s760_s22  ;;  %s268_s18 = scalar_lea.vmem %s758_s6, %s760_s22 }
   0xf   : > { %v599_v6 = vunpack.c.l.bf16 %v598_v3  ;;  %v600_v7 = vunpack.c.h.bf16 %v598_v3  ;;  %v603_v8 = vunpack.c.l.bf16 %v613_v4  ;;  %v604_v9 = vunpack.c.h.bf16 %v613_v4  ;;  %v615_v10 = vld [vmem:[%s257_s28 + $0x18] sm:$0xff]  }
  0x10   : > { %v607_v12 = vunpack.c.l.bf16 %v614_v5  ;;  %v608_v13 = vunpack.c.h.bf16 %v614_v5  ;;  %v611_v14 = vunpack.c.l.bf16 %v615_v10  ;;  %v612_v15 = vunpack.c.h.bf16 %v615_v10 }
  0x11   : > { %v293_v16 = vmul.f32 %v599_v6, %v587_v2  ;;  %v294_v17 = vmul.f32 %v600_v7, %v587_v2  ;;  %v295_v18 = vmul.f32 %v603_v8, %v587_v2  ;;  %v296_v19 = vmul.f32 %v604_v9, %v587_v2 }
  0x12   : > { %v297_v20 = vmul.f32 %v607_v12, %v587_v2  ;;  %v298_v21 = vmul.f32 %v608_v13, %v587_v2  ;;  %v299_v22 = vmul.f32 %v611_v14, %v587_v2  ;;  %v300_v23 = vmul.f32 %v612_v15, %v587_v2 }
  0x13   : > { %v308_v24 = vadd.f32 %v588_v11, %v293_v16  ;;  %v309_v25 = vadd.f32 %v588_v11, %v294_v17  ;;  %v310_v26 = vadd.f32 %v588_v11, %v295_v18  ;;  %v311_v27 = vadd.f32 %v588_v11, %v296_v19 }
  0x14   : > { %v312_v28 = vadd.f32 %v588_v11, %v297_v20  ;;  %v313_v29 = vadd.f32 %v588_v11, %v298_v21  ;;  %v314_v30 = vadd.f32 %v588_v11, %v299_v22  ;;  %v315_v31 = vadd.f32 %v588_v11, %v300_v23 }
  0x15   : > { %v316_v32 = vmax.f32 %v308_v24, 0.0  ;;  %v317_v33 = vmax.f32 %v309_v25, 0.0  ;;  %v318_v34 = vmax.f32 %v310_v26, 0.0  ;;  %v319_v35 = vmax.f32 %v311_v27, 0.0 }
  0x16   : > { %v320_v36 = vmax.f32 %v312_v28, 0.0  ;;  %v321_v37 = vmax.f32 %v313_v29, 0.0  ;;  %v322_v38 = vmax.f32 %v314_v30, 0.0  ;;  %v323_v39 = vmax.f32 %v315_v31, 0.0 }
  0x17   : > { %v324_v40 = vpack.c.bf16 %v317_v33, %v316_v32  ;;  %v325_v41 = vpack.c.bf16 %v319_v35, %v318_v34 }
  0x18   : > { %v326_v42 = vpack.c.bf16 %v321_v37, %v320_v36  ;;  %v327_v43 = vpack.c.bf16 %v323_v39, %v322_v38 }
  0x19   : > { %623 = vmatprep.mubr.msk.bf16.mxu0 %vm329_vm1, %v324_v40 }
  0x1a   : > { %624 = vmatmul.mubr.msk.bf16.vlgmr.msra.gmra.mxu0 %vm329_vm1, %v325_v41  ;;  %627 = vmatprep.mubr.msk.bf16.mxu1 %vm329_vm1, %v326_v42 }
  0x1b   : > { %628 = vmatmul.mubr.msk.bf16.vlgmr.msra.gmra.mxu1 %vm329_vm1, %v327_v43 }
  0xda   : > { %v625_v44 = vpop.f32.mrf.mxu0 }
  0xdb   : > { %414 = vst.msk [vmem:[%s262_s12 + $0x10] sm:$0xff] %vm411_vm2, %v625_v44  ;;  %v629_v45 = vpop.f32.mrf.mxu1  ;;  %v445_v52 = vmul.f32 %v625_v44, %v625_v44  ;;  %v423_v58 = vsel %vm411_vm2, %v625_v44, 0.0 }
  0xdc   : > { %v380_v46 = vpop.f32.mrf.mxu0  ;;  %418 = vst.msk [vmem:[%s262_s12 + $0x30] sm:$0xff] %vm411_vm2, %v629_v45  ;;  %v449_v10 = vmul.f32 %v629_v45, %v629_v45  ;;  %v431_v15 = vsel %vm411_vm2, %v629_v45, 0.0 }
  0xdd   : > { %412 = vst.msk [vmem:[%s262_s12] sm:$0xff] %vm411_vm2, %v380_v46  ;;  %v396_v47 = vpop.f32.mrf.mxu1  ;;  %v443_v49 = vmul.f32 %v380_v46, %v380_v46  ;;  %v420_v53 = vsel %vm411_vm2, %v380_v46, 0.0  ;;  %v454_v0 = vsel %vm411_vm2, %v445_v52, 0.0 }
  0xde   : > { %v626_v48 = vpop.f32.mrf.mxu0  ;;  %416 = vst.msk [vmem:[%s262_s12 + $0x20] sm:$0xff] %vm411_vm2, %v396_v47  ;;  %v447_v2 = vmul.f32 %v396_v47, %v396_v47  ;;  %v427_v6 = vsel %vm411_vm2, %v396_v47, 0.0  ;;  %v462_v20 = vsel %vm411_vm2, %v449_v10, 0.0 }
  0xdf   : > { %415 = vst.msk [vmem:[%s262_s12 + $0x18] sm:$0xff] %vm411_vm2, %v626_v48  ;;  %v630_v50 = vpop.f32.mrf.mxu1  ;;  %v451_v59 = vsel %vm411_vm2, %v443_v49, 0.0  ;;  %v446_v60 = vmul.f32 %v626_v48, %v626_v48  ;;  %v425_v1 = vsel %vm411_vm2, %v626_v48, 0.0 }
  0xe0   : > { %v383_v51 = vpop.f32.mrf.mxu0  ;;  %419 = vst.msk [vmem:[%s262_s12 + $0x38] sm:$0xff] %vm411_vm2, %v630_v50  ;;  %v458_v11 = vsel %vm411_vm2, %v447_v2, 0.0  ;;  %v450_v16 = vmul.f32 %v630_v50, %v630_v50  ;;  %v433_v21 = vsel %vm411_vm2, %v630_v50, 0.0 }
  0xe1   : > { %413 = vst.msk [vmem:[%s262_s12 + $0x8] sm:$0xff] %vm411_vm2, %v383_v51  ;;  %v421_v54 = vsel %vm411_vm2, %v383_v51, 0.0  ;;  %v444_v55 = vmul.f32 %v383_v51, %v383_v51  ;;  %v399_v56 = vpop.f32.mrf.mxu1  ;;  %v456_v5 = vsel %vm411_vm2, %v446_v60, 0.0 }
  0xe2   : > { %v422_v57 = vadd.f32 %v421_v54, %v420_v53  ;;  %417 = vst.msk [vmem:[%s262_s12 + $0x28] sm:$0xff] %vm411_vm2, %v399_v56  ;;  %v448_v7 = vmul.f32 %v399_v56, %v399_v56  ;;  %v429_v12 = vsel %vm411_vm2, %v399_v56, 0.0  ;;  %v464_v24 = vsel %vm411_vm2, %v450_v16, 0.0 }
  0xe3   : > { %v452_v61 = vsel %vm411_vm2, %v444_v55, 0.0 }
  0xe4   : > { %v424_v62 = vadd.f32 %v423_v58, %v422_v57  ;;  %v453_v63 = vadd.f32 %v452_v61, %v451_v59  ;;  %v460_v17 = vsel %vm411_vm2, %v448_v7, 0.0 }
  0xe6   : > { %v455_v3 = vadd.f32 %v454_v0, %v453_v63  ;;  %v426_v4 = vadd.f32 %v425_v1, %v424_v62 }
  0xe8   : > { %v428_v8 = vadd.f32 %v427_v6, %v426_v4  ;;  %v457_v9 = vadd.f32 %v456_v5, %v455_v3 }
  0xea   : > { %v430_v13 = vadd.f32 %v429_v12, %v428_v8  ;;  %v459_v14 = vadd.f32 %v458_v11, %v457_v9 }
  0xec   : > { %v432_v18 = vadd.f32 %v431_v15, %v430_v13  ;;  %v461_v19 = vadd.f32 %v460_v17, %v459_v14 }
  0xee   : > { %v434_v22 = vadd.f32 %v433_v21, %v432_v18  ;;  %v463_v23 = vadd.f32 %v462_v20, %v461_v19 }
  0xf0   : > { %v435_v25 = vrot.slane %v434_v22, 4  ;;  %v465_v26 = vadd.f32 %v464_v24, %v463_v23 }
  0xf2   : > { %v436_v27 = vadd.f32 %v435_v25, %v434_v22  ;;  %v466_v28 = vrot.slane %v465_v26, 4 }
  0xf4   : > { %v437_v29 = vrot.slane %v436_v27, 2  ;;  %v467_v30 = vadd.f32 %v466_v28, %v465_v26 }
  0xf6   : > { %v438_v31 = vadd.f32 %v437_v29, %v436_v27  ;;  %v468_v32 = vrot.slane %v467_v30, 2 }
  0xf8   : > { %v439_v33 = vrot.slane %v438_v31, 1  ;;  %v469_v34 = vadd.f32 %v468_v32, %v467_v30 }
  0xfa   : > { %v440_v35 = vadd.f32 %v439_v33, %v438_v31  ;;  %v470_v36 = vrot.slane %v469_v34, 1 }
  0xfc   : > { %442 = vst.msk [vmem:[%s265_s15] sm:$0x1] %vm441_vm3, %v440_v35  ;;  %v471_v37 = vadd.f32 %v470_v36, %v469_v34 }
  0xfe   : > { %472 = vst.msk [vmem:[%s268_s18] sm:$0x1] %vm441_vm3, %v471_v37 }
  0xff PF: > { %s17_s21 = sadd.s32 1, %s649_s21  }
 0x100   : > { %p14_p4 = scmp.ge.s32.totalorder %s17_s21, 4  }
 0x102   :  { %16 = sbr.rel (!%p14_p4) target bundleno = 1 (0x1), region = 90 }

// kernel: resnet_forward.26
= control target key start
LH: loop header
LB: loop body
LE: loop exit
PB: predicated region body
PF: predicated region fallthrough
CT: control target
= control target key end

     0   :  { %s2267_s21 = smov 0   ;;  %s2713_s0 = inlined_call_operand.vmem [shape: bf16[2,8,8,4], index: 0, kind: input, shape index: {}]   ;;  %s2714_s1 = inlined_call_operand.vmem [shape: f32[1,4], index: 1, kind: input, shape index: {}]   ;;  %s2715_s2 = inlined_call_operand.vmem [shape: f32[1,4], index: 2, kind: input, shape index: {}]   ;;  %s2716_s3 = inlined_call_operand.vmem [shape: bf16[9,4,4], index: 3, kind: input, shape index: {}]   ;;  %s2717_s4 = inlined_call_operand.vmem [shape: bf16[2,8,8,4], index: 4, kind: output, shape index: {0}]   ;;  %s2718_s5 = inlined_call_operand.vmem [shape: f32[2,1,4], index: 5, kind: output, shape index: {1}]   ;;  %s2719_s6 = inlined_call_operand.vmem [shape: f32[2,1,4], index: 6, kind: output, shape index: {2}]  }
   0x1 LB: > { %s1845_s22 = sadd.s32 4294967295, %s2229_s21   ;;  %p1849_p0 = scmp.ge.s32.totalorder %s2229_s21, 1  ;;  %s2229_s21 = sphi %s2267_s21, %s17_s21  }
   0x2   : > { %p217_p1 = scmp.lt.s32.totalorder %s2229_s21, 3 }
   0x4   : > { %p218_p2 = pnand %p1849_p0, %p217_p1 }
   0x5   : > { %p2280_p3 = scmp.lt.s32.totalorder (!%p218_p2), %s1845_s22, 1 }
   0x6   : > { %221 = sbr.rel (%p218_p2) target bundleno = 398 (0x18e), region = 36 }
   0xb   : > { %v384_v0 = vld [vmem:[%s2716_s3] sm:$0x3]  ;;  %vm409_vm0 = vcmask 1041408   ;;  %vm324_vm1 = vcmask 31744   ;;  %v2231_v2 = vmov 0.0   ;;  %s2722_s22 = smov (!%p2280_p3, %s1845_s22), 1 }
   0xc   : > { %2204 = vmatprep.subr.msk.bf16.mxu0 %vm409_vm0, %v384_v0  ;;  %2205 = vmatprep.subr.msk.bf16.mxu1 %vm409_vm0, %v384_v0  ;;  %v411_v1 = vsel %vm409_vm0, %v384_v0, 0  ;;  %325 = vst.msk [vmem:[#allocation2] sm:$0xff] %vm324_vm1, %v2231_v2  ;;  %326 = vst.msk [vmem:[#allocation2 + $0x8] sm:$0xff] %vm324_vm1, %v2231_v2  ;;  %v2316_v3 = vld [vmem:[%s2716_s3 + $0x2] sm:$0x3]  ;;  %s1938_s30 = sshll.u32 %s2722_s22, 5  ;;  %s268_s12 = scalar_lea.vmem %s2719_s6, %s2722_s22 }
   0xd   : > { %327 = vst.msk [vmem:[#allocation2 + $0x10] sm:$0xff] %vm324_vm1, %v2231_v2  ;;  %328 = vst.msk [vmem:[#allocation2 + $0x18] sm:$0xff] %vm324_vm1, %v2231_v2  ;;  %2041 = vmatpush3.bf16.msra.mxu0 %v411_v1  ;;  %2203 = vmatpush3.bf16.msra.mxu1 %v411_v1  ;;  %v1873_v4 = vld [vmem:[%s2716_s3 + $0x4] sm:$0x3]  ;;  %s257_s9 = scalar_lea.vmem %s2713_s0, %s1938_s30  ;;  %v1854_v5 = vld [vmem:[%s2714_s1] ss:$0 sm:$0xff]  ;;  %s2648_s7 = scalar_lea.vmem %s2717_s4, %s1938_s30 }
   0xe   : > { %329 = vst.msk [vmem:[#allocation2 + $0x20] sm:$0xff] %vm324_vm1, %v2231_v2  ;;  %330 = vst.msk [vmem:[#allocation2 + $0x28] sm:$0xff] %vm324_vm1, %v2231_v2  ;;  %2206 = vmatprep.subr.msk.bf16.mxu1 %vm409_vm0, %v2316_v3  ;;  %2207 = vmatprep.subr.msk.bf16.mxu0 %vm409_vm0, %v1873_v4  ;;  %v1941_v6 = vld [vmem:[%s257_s9] sm:$0xff]   ;;  %v1956_v7 = vld [vmem:[%s257_s9 + $0x8] sm:$0xff]   ;;  %v672_v53 = vsel %vm409_vm0, %v1873_v4, 0  ;;  %v513_v58 = vsel %vm409_vm0, %v2316_v3, 0 }
   0xf   : > { %331 = vst.msk [vmem:[#allocation2 + $0x30] sm:$0xff] %vm324_vm1, %v2231_v2  ;;  %332 = vst.msk [vmem:[#allocation2 + $0x38] sm:$0xff] %vm324_vm1, %v2231_v2  ;;  %v1957_v8 = vld [vmem:[%s257_s9 + $0x10] sm:$0xff]   ;;  %v1942_v9 = vunpack.c.l.bf16 %v1941_v6  ;;  %v1943_v10 = vunpack.c.h.bf16 %v1941_v6  ;;  %v1946_v11 = vunpack.c.l.bf16 %v1956_v7  ;;  %v1947_v12 = vunpack.c.h.bf16 %v1956_v7  ;;  %v1958_v13 = vld [vmem:[%s257_s9 + $0x18] sm:$0xff]   ;;  %s265_s9 = scalar_lea.vmem %s2718_s5, %s2722_s22 }
  0x10   : > { %333 = vst.msk [vmem:[#allocation2 + $0x40] sm:$0xff] %vm324_vm1, %v2231_v2  ;;  %334 = vst.msk [vmem:[#allocation2 + $0x48] sm:$0xff] %vm324_vm1, %v2231_v2  ;;  %v1950_v16 = vunpack.c.l.bf16 %v1957_v8  ;;  %v1951_v17 = vunpack.c.h.bf16 %v1957_v8  ;;  %v1954_v18 = vunpack.c.l.bf16 %v1958_v13  ;;  %v1855_v19 = vld [vmem:[%s2715_s2] ss:$0 sm:$0xff]  ;;  %v1955_v20 = vunpack.c.h.bf16 %v1958_v13  ;;  %v1882_v62 = vld [vmem:[%s2716_s3 + $0x6] sm:$0x3] }
  0x11   : > { %335 = vst.msk [vmem:[#allocation2 + $0x50] sm:$0xff] %vm324_vm1, %v2231_v2  ;;  %336 = vst.msk [vmem:[#allocation2 + $0x58] sm:$0xff] %vm324_vm1, %v2231_v2  ;;  %v293_v22 = vmul.f32 %v1942_v9, %v1854_v5  ;;  %v294_v23 = vmul.f32 %v1943_v10, %v1854_v5  ;;  %v295_v24 = vmul.f32 %v1946_v11, %v1854_v5  ;;  %v1909_v8 = vld [vmem:[%s2716_s3 + $0xc] sm:$0x3]  ;;  %v834_v9 = vsel %vm409_vm0, %v1882_v62, 0 }
  0x12   : > { %337 = vst.msk [vmem:[#allocation2 + $0x60] sm:$0xff] %vm324_vm1, %v2231_v2  ;;  %338 = vst.msk [vmem:[#allocation2 + $0x68] sm:$0xff] %vm324_vm1, %v2231_v2  ;;  %v296_v25 = vmul.f32 %v1947_v12, %v1854_v5  ;;  %v297_v26 = vmul.f32 %v1950_v16, %v1854_v5  ;;  %v298_v27 = vmul.f32 %v1951_v17, %v1854_v5  ;;  %v1900_v10 = vld [vmem:[%s2716_s3 + $0xa] sm:$0x3]  ;;  %v1255_v11 = vsel %vm409_vm0, %v1909_v8, 0 }
  0x13   : > { %339 = vst.msk [vmem:[#allocation2 + $0x70] sm:$0xff] %vm324_vm1, %v2231_v2  ;;  %340 = vst.msk [vmem:[#allocation2 + $0x78] sm:$0xff] %vm324_vm1, %v2231_v2  ;;  %v354_v14 = vld [vmem:[#allocation2] sm:$0xff]  ;;  %v355_v15 = vld [vmem:[#allocation2 + $0x8] sm:$0xff]  ;;  %v299_v28 = vmul.f32 %v1954_v18, %v1854_v5  ;;  %v308_v29 = vadd.f32 %v1855_v19, %v293_v22  ;;  %v309_v30 = vadd.f32 %v1855_v19, %v294_v23  ;;  %v1094_v13 = vsel %vm409_vm0, %v1900_v10, 0 }
  0x14   : > { %341 = vst.msk [vmem:[#allocation2 + $0x80] sm:$0xff] %vm324_vm1, %v2231_v2  ;;  %342 = vst.msk [vmem:[#allocation2 + $0x88] sm:$0xff] %vm324_vm1, %v2231_v2  ;;  %v2336_v21 = vpack.c.bf16 %v355_v15, %v354_v14  ;;  %v310_v31 = vadd.f32 %v1855_v19, %v295_v24  ;;  %v300_v32 = vmul.f32 %v1955_v20, %v1854_v5  ;;  %v1927_v12 = vld [vmem:[%s2716_s3 + $0x10] sm:$0x3]  ;;  %v1918_v14 = vld [vmem:[%s2716_s3 + $0xe] sm:$0x3] }
  0x15   : > { %343 = vst.msk [vmem:[#allocation2 + $0x90] sm:$0xff] %vm324_vm1, %v2231_v2  ;;  %344 = vst.msk [vmem:[#allocation2 + $0x98] sm:$0xff] %vm324_vm1, %v2231_v2  ;;  %v311_v33 = vadd.f32 %v1855_v19, %v296_v25  ;;  %v312_v34 = vadd.f32 %v1855_v19, %v297_v26  ;;  %v313_v35 = vadd.f32 %v1855_v19, %v298_v27  ;;  %v316_v37 = vmax.f32 %v308_v29, 0.0  ;;  %v1891_v2 = vld [vmem:[%s2716_s3 + $0x8] sm:$0x3] }
  0x16   : > { %2042 = vmatprep.mubr.msk.bf16.mxu0 %vm324_vm1, %v2336_v21  ;;  %v314_v36 = vadd.f32 %v1855_v19, %v299_v28  ;;  %v317_v38 = vmax.f32 %v309_v30, 0.0  ;;  %v318_v39 = vmax.f32 %v310_v31, 0.0  ;;  %v315_v40 = vadd.f32 %v1855_v19, %v300_v32 }
  0x17   : > { %v319_v41 = vmax.f32 %v311_v33, 0.0  ;;  %v320_v42 = vmax.f32 %v312_v34, 0.0  ;;  %v321_v43 = vmax.f32 %v313_v35, 0.0  ;;  %346 = vst.msk [vmem:[#allocation2 + $0x11] sm:$0xff] %vm324_vm1, %v316_v37  ;;  %v936_v7 = vsel %vm409_vm0, %v1891_v2, 0 }
  0x18   : > { %v322_v44 = vmax.f32 %v314_v36, 0.0  ;;  %347 = vst.msk [vmem:[#allocation2 + $0x21] sm:$0xff] %vm324_vm1, %v317_v38  ;;  %348 = vst.msk [vmem:[#allocation2 + $0x31] sm:$0xff] %vm324_vm1, %v318_v39  ;;  %v323_v45 = vmax.f32 %v315_v40, 0.0  ;;  %v1515_v18 = vsel %vm409_vm0, %v1927_v12, 0  ;;  %v1357_v19 = vsel %vm409_vm0, %v1918_v14, 0 }
  0x19   : > { %349 = vst.msk [vmem:[#allocation2 + $0x41] sm:$0xff] %vm324_vm1, %v319_v41  ;;  %350 = vst.msk [vmem:[#allocation2 + $0x51] sm:$0xff] %vm324_vm1, %v320_v42  ;;  %vm787_vm2 = vcmask 1045504   ;;  %vm628_vm3 = vcmask 1046528   ;;  %vm1678_vm4 = vcmask 27648   ;;  %vm1708_vm5 = vcmask 24576  }
  0x1a   : > { %351 = vst.msk [vmem:[#allocation2 + $0x61] sm:$0xff] %vm324_vm1, %v321_v43  ;;  %352 = vst.msk [vmem:[#allocation2 + $0x71] sm:$0xff] %vm324_vm1, %v322_v44 }
  0x1b   : > { %353 = vst.msk [vmem:[#allocation2 + $0x81] sm:$0xff] %vm324_vm1, %v323_v45 }
  0x1c   : > { %v372_v20 = vld [vmem:[#allocation2 + $0x90] sm:$0xff] }
  0x1e   : > { %v356_v46 = vld [vmem:[#allocation2 + $0x10] sm:$0xff]  ;;  %v357_v47 = vld [vmem:[#allocation2 + $0x18] sm:$0xff] }
  0x1f   : > { %v358_v48 = vld [vmem:[#allocation2 + $0x20] sm:$0xff]  ;;  %v2348_v49 = vpack.c.bf16 %v357_v47, %v356_v46  ;;  %v359_v56 = vld [vmem:[#allocation2 + $0x28] sm:$0xff]  ;;  %v360_v63 = vld [vmem:[#allocation2 + $0x30] sm:$0xff] }
  0x20   : > { %v362_v50 = vld [vmem:[#allocation2 + $0x40] sm:$0xff]  ;;  %v363_v51 = vld [vmem:[#allocation2 + $0x48] sm:$0xff]  ;;  %v364_v52 = vld [vmem:[#allocation2 + $0x50] sm:$0xff]  ;;  %v2359_v59 = vpack.c.bf16 %v359_v56, %v358_v48 }
  0x21   : > { %v2351_v54 = vpack.c.bf16 %v363_v51, %v362_v50  ;;  %v365_v55 = vld [vmem:[#allocation2 + $0x58] sm:$0xff]  ;;  %2043 = vmatmul.mubr.msk.bf16.vlgmr.msra.gmra.mxu0 %vm324_vm1, %v2348_v49  ;;  %v366_v60 = vld [vmem:[#allocation2 + $0x60] sm:$0xff]  ;;  %v367_v61 = vld [vmem:[#allocation2 + $0x68] sm:$0xff] }
  0x22   : > { %v2355_v57 = vpack.c.bf16 %v365_v55, %v364_v52  ;;  %2077 = vmatpush3.bf16.msra.mxu0 %v672_v53  ;;  %v361_v0 = vld [vmem:[#allocation2 + $0x38] sm:$0xff]  ;;  %v2366_v1 = vpack.c.bf16 %v367_v61, %v366_v60  ;;  %2046 = vmatprep.mubr.msk.bf16.mxu0 %vm324_vm1, %v2359_v59  ;;  %v368_v3 = vld [vmem:[#allocation2 + $0x70] sm:$0xff]  ;;  %v370_v15 = vld [vmem:[#allocation2 + $0x80] sm:$0xff] }
  0x23   : > { %2050 = vmatprep.mubr.msk.bf16.mxu1 %vm324_vm1, %v2351_v54  ;;  %v369_v4 = vld [vmem:[#allocation2 + $0x78] sm:$0xff]  ;;  %v2377_v5 = vpack.c.bf16 %v361_v0, %v360_v63  ;;  %2209 = vmatprep.subr.msk.bf16.mxu0 %vm409_vm0, %v1891_v2  ;;  %v371_v16 = vld [vmem:[#allocation2 + $0x88] sm:$0xff] }
  0x24   : > { %2051 = vmatmul.mubr.msk.bf16.vlgmr.msra.gmra.mxu1 %vm324_vm1, %v2355_v57  ;;  %v2381_v6 = vpack.c.bf16 %v369_v4, %v368_v3  ;;  %v382_v17 = vpack.c.bf16 %v371_v16, %v370_v15 }
  0x25   : > { %2059 = vmatpush3.bf16.msra.mxu1 %v513_v58  ;;  %2054 = vmatprep.mubr.msk.bf16.mxu1 %vm324_vm1, %v2366_v1 }
  0x26   : > { %2208 = vmatprep.subr.msk.bf16.mxu1 %vm409_vm0, %v1882_v62 }
  0x29   : > { %2047 = vmatmul.mubr.msk.bf16.gmra.mxu0 %vm324_vm1, %v2377_v5 }
  0x2a   : > { %2078 = vmatprep.mubr.msk.bf16.mxu0 %vm324_vm1, %v2336_v21 }
  0x2c   : > { %2055 = vmatmul.mubr.msk.bf16.gmra.mxu1 %vm324_vm1, %v2381_v6 }
  0x2d   : > { %2060 = vmatprep.mubr.msk.bf16.mxu1 %vm324_vm1, %v2336_v21  ;;  %v373_v21 = vld [vmem:[#allocation2 + $0x98] sm:$0xff] }
  0x2e   : > { %v383_v22 = vpack.c.bf16 %v373_v21, %v372_v20 }
  0x31   : > { %2079 = vmatmul.mubr.msk.bf16.vlgmr.msra.gmra.mxu0 %vm324_vm1, %v2348_v49 }
  0x32   : > { %2113 = vmatpush3.bf16.msra.mxu0 %v936_v7  ;;  %2082 = vmatprep.mubr.msk.bf16.mxu0 %vm324_vm1, %v2359_v59 }
  0x33   : > { %2211 = vmatprep.subr.msk.bf16.mxu0 %vm409_vm0, %v1909_v8 }
  0x34   : > { %2061 = vmatmul.mubr.msk.bf16.vlgmr.msra.gmra.mxu1 %vm324_vm1, %v2348_v49 }
  0x35   : > { %2095 = vmatpush3.bf16.msra.mxu1 %v834_v9  ;;  %2064 = vmatprep.mubr.msk.bf16.mxu1 %vm324_vm1, %v2359_v59 }
  0x36   : > { %2210 = vmatprep.subr.msk.bf16.mxu1 %vm409_vm0, %v1900_v10 }
  0x39   : > { %2083 = vmatmul.mubr.msk.bf16.gmra.mxu0 %vm324_vm1, %v2377_v5 }
  0x3a   : > { %2086 = vmatprep.mubr.msk.bf16.mxu0 %vm324_vm1, %v2351_v54 }
  0x3c   : > { %2065 = vmatmul.mubr.msk.bf16.gmra.mxu1 %vm324_vm1, %v2377_v5 }
  0x3d   : > { %2068 = vmatprep.mubr.msk.bf16.mxu1 %vm324_vm1, %v2351_v54 }
  0x41   : > { %2087 = vmatmul.mubr.msk.bf16.gmra.mxu0 %vm324_vm1, %v2355_v57 }
  0x42   : > { %2090 = vmatprep.mubr.msk.bf16.mxu0 %vm324_vm1, %v2366_v1 }
  0x44   : > { %2069 = vmatmul.mubr.msk.bf16.gmra.mxu1 %vm324_vm1, %v2355_v57 }
  0x45   : > { %2072 = vmatprep.mubr.msk.bf16.mxu1 %vm324_vm1, %v2366_v1 }
  0x49   : > { %2091 = vmatmul.mubr.msk.bf16.gmra.mxu0 %vm324_vm1, %v2381_v6 }
  0x4a   : > { %2114 = vmatprep.mubr.msk.bf16.mxu0 %vm324_vm1, %v2348_v49 }
  0x4c   : > { %2073 = vmatmul.mubr.msk.bf16.gmra.mxu1 %vm324_vm1, %v2381_v6 }
  0x4d   : > { %2096 = vmatprep.mubr.msk.bf16.mxu1 %vm324_vm1, %v2348_v49 }
  0x51   : > { %2115 = vmatmul.mubr.msk.bf16.vlgmr.msra.gmra.mxu0 %vm324_vm1, %v2359_v59 }
  0x52   : > { %2149 = vmatpush3.bf16.msra.mxu0 %v1255_v11  ;;  %2118 = vmatprep.mubr.msk.bf16.mxu0 %vm324_vm1, %v2377_v5 }
  0x53   : > { %2213 = vmatprep.subr.msk.bf16.mxu0 %vm409_vm0, %v1927_v12 }
  0x54   : > { %2097 = vmatmul.mubr.msk.bf16.vlgmr.msra.gmra.mxu1 %vm324_vm1, %v2359_v59 }
  0x55   : > { %2131 = vmatpush3.bf16.msra.mxu1 %v1094_v13  ;;  %2100 = vmatprep.mubr.msk.bf16.mxu1 %vm324_vm1, %v2377_v5 }
  0x56   : > { %2212 = vmatprep.subr.msk.bf16.mxu1 %vm409_vm0, %v1918_v14 }
  0x59   : > { %2119 = vmatmul.mubr.msk.bf16.gmra.mxu0 %vm324_vm1, %v2351_v54 }
  0x5a   : > { %2122 = vmatprep.mubr.msk.bf16.mxu0 %vm324_vm1, %v2355_v57 }
  0x5c   : > { %2101 = vmatmul.mubr.msk.bf16.gmra.mxu1 %vm324_vm1, %v2351_v54 }
  0x5d   : > { %2104 = vmatprep.mubr.msk.bf16.mxu1 %vm324_vm1, %v2355_v57 }
  0x61   : > { %2123 = vmatmul.mubr.msk.bf16.gmra.mxu0 %vm324_vm1, %v2366_v1 }
  0x62   : > { %2126 = vmatprep.mubr.msk.bf16.mxu0 %vm324_vm1, %v2381_v6 }
  0x64   : > { %2105 = vmatmul.mubr.msk.bf16.gmra.mxu1 %vm324_vm1, %v2366_v1 }
  0x65   : > { %2108 = vmatprep.mubr.msk.bf16.mxu1 %vm324_vm1, %v2381_v6 }
  0x69   : > { %2127 = vmatmul.mubr.msk.bf16.gmra.mxu0 %vm324_vm1, %v382_v17 }
  0x6a   : > { %2150 = vmatprep.mubr.msk.bf16.mxu0 %vm324_vm1, %v2359_v59 }
  0x6c   : > { %2109 = vmatmul.mubr.msk.bf16.gmra.mxu1 %vm324_vm1, %v382_v17 }
  0x6d   : > { %2132 = vmatprep.mubr.msk.bf16.mxu1 %vm324_vm1, %v2348_v49 }
  0x71   : > { %2151 = vmatmul.mubr.msk.bf16.vlgmr.msra.gmra.mxu0 %vm324_vm1, %v2377_v5 }
  0x72   : > { %2185 = vmatpush3.bf16.msra.mxu0 %v1515_v18  ;;  %2154 = vmatprep.mubr.msk.bf16.mxu0 %vm324_vm1, %v2351_v54 }
  0x74   : > { %2133 = vmatmul.mubr.msk.bf16.vlgmr.msra.gmra.mxu1 %vm324_vm1, %v2359_v59 }
  0x75   : > { %2167 = vmatpush3.bf16.msra.mxu1 %v1357_v19  ;;  %2136 = vmatprep.mubr.msk.bf16.mxu1 %vm324_vm1, %v2377_v5 }
  0x79   : > { %2155 = vmatmul.mubr.msk.bf16.gmra.mxu0 %vm324_vm1, %v2355_v57 }
  0x7a   : > { %2158 = vmatprep.mubr.msk.bf16.mxu0 %vm324_vm1, %v2366_v1 }
  0x7c   : > { %2137 = vmatmul.mubr.msk.bf16.gmra.mxu1 %vm324_vm1, %v2351_v54 }
  0x7d   : > { %2140 = vmatprep.mubr.msk.bf16.mxu1 %vm324_vm1, %v2355_v57 }
  0x81   : > { %2159 = vmatmul.mubr.msk.bf16.gmra.mxu0 %vm324_vm1, %v2381_v6 }
  0x82   : > { %2162 = vmatprep.mubr.msk.bf16.mxu0 %vm324_vm1, %v382_v17 }
  0x84   : > { %2141 = vmatmul.mubr.msk.bf16.gmra.mxu1 %vm324_vm1, %v2366_v1 }
  0x85   : > { %2144 = vmatprep.mubr.msk.bf16.mxu1 %vm324_vm1, %v2381_v6 }
  0x89   : > { %2163 = vmatmul.mubr.msk.bf16.gmra.mxu0 %vm324_vm1, %v383_v22 }
  0x8a   : > { %2186 = vmatprep.mubr.msk.bf16.mxu0 %vm324_vm1, %v2359_v59 }
  0x8c   : > { %2145 = vmatmul.mubr.msk.bf16.gmra.mxu1 %vm324_vm1, %v382_v17 }
  0x8d   : > { %2168 = vmatprep.mubr.msk.bf16.mxu1 %vm324_vm1, %v2359_v59 }
  0x91   : > { %2187 = vmatmul.mubr.msk.bf16.vlgmr.msra.gmra.mxu0 %vm324_vm1, %v2377_v5 }
  0x92   : > { %2190 = vmatprep.mubr.msk.bf16.mxu0 %vm324_vm1, %v2351_v54 }
  0x94   : > { %2169 = vmatmul.mubr.msk.bf16.vlgmr.msra.gmra.mxu1 %vm324_vm1, %v2377_v5 }
  0x95   : > { %2172 = vmatprep.mubr.msk.bf16.mxu1 %vm324_vm1, %v2351_v54 }
  0x99   : > { %2191 = vmatmul.mubr.msk.bf16.gmra.mxu0 %vm324_vm1, %v2355_v57 }
  0x9a   : > { %2194 = vmatprep.mubr.msk.bf16.mxu0 %vm324_vm1, %v2366_v1 }
  0x9c   : > { %2173 = vmatmul.mubr.msk.bf16.gmra.mxu1 %vm324_vm1, %v2355_v57 }
  0x9d   : > { %2176 = vmatprep.mubr.msk.bf16.mxu1 %vm324_vm1, %v2366_v1 }
  0xa1   : > { %2195 = vmatmul.mubr.msk.bf16.gmra.mxu0 %vm324_vm1, %v2381_v6 }
  0xa2   : > { %2198 = vmatprep.mubr.msk.bf16.mxu0 %vm324_vm1, %v382_v17 }
  0xa4   : > { %2177 = vmatmul.mubr.msk.bf16.gmra.mxu1 %vm324_vm1, %v2381_v6 }
  0xa5   : > { %2180 = vmatprep.mubr.msk.bf16.mxu1 %vm324_vm1, %v382_v17 }
  0xa9   : > { %2199 = vmatmul.mubr.msk.bf16.gmra.mxu0 %vm324_vm1, %v383_v22 }
  0xac   : > { %2181 = vmatmul.mubr.msk.bf16.gmra.mxu1 %vm324_vm1, %v383_v22 }
  0xe1   : > { %v2044_v23 = vpop.f32.mrf.mxu0 }
  0xe3   : > { %v447_v25 = vpop.f32.mrf.mxu0 }
  0xe4   : > { %v2528_v24 = vpop.f32.mrf.mxu1 }
  0xe5   : > { %v2045_v27 = vpop.f32.mrf.mxu0 }
  0xe6   : > { %v2530_v26 = vpop.f32.mrf.mxu1 }
  0xe7   : > { %v450_v29 = vpop.f32.mrf.mxu0 }
  0xe8   : > { %v2053_v28 = vpop.f32.mrf.mxu1 }
  0xe9   : > { %v2048_v31 = vpop.f32.mrf.mxu0 }
  0xea   : > { %v478_v30 = vpop.f32.mrf.mxu1 }
  0xeb   : > { %v461_v33 = vpop.f32.mrf.mxu0 }
  0xec   : > { %v2532_v32 = vpop.f32.mrf.mxu1 }
  0xed   : > { %v2049_v35 = vpop.f32.mrf.mxu0 }
  0xee   : > { %v2534_v34 = vpop.f32.mrf.mxu1 }
  0xef   : > { %v464_v37 = vpop.f32.mrf.mxu0 }
  0xf0   : > { %v2057_v36 = vpop.f32.mrf.mxu1 }
  0xf1   : > { %v2080_v39 = vpop.f32.mrf.mxu0 }
  0xf2   : > { %v492_v38 = vpop.f32.mrf.mxu1  ;;  %v791_v42 = vrot.slane %v2080_v39, 2 }
  0xf3   : > { %v708_v41 = vpop.f32.mrf.mxu0 }
  0xf4   : > { %v2062_v40 = vpop.f32.mrf.mxu1  ;;  %v788_v49 = vrot.slane %v708_v41, 2 }
  0xf5   : > { %v2081_v44 = vpop.f32.mrf.mxu0  ;;  %v632_v46 = vrot.slane %v2062_v40, 1 }
  0xf6   : > { %v549_v43 = vpop.f32.mrf.mxu1  ;;  %v792_v45 = vrot.slane %v2081_v44, 2 }
  0xf7   : > { %v711_v48 = vpop.f32.mrf.mxu0  ;;  %v629_v55 = vrot.slane %v549_v43, 1 }
  0xf8   : > { %v2063_v47 = vpop.f32.mrf.mxu1  ;;  %v789_v51 = vrot.slane %v711_v48, 2  ;;  %v793_v52 = vsel %vm787_vm2, %v791_v42, %v792_v45 }
  0xf9   : > { %v633_v50 = vrot.slane %v2063_v47, 1  ;;  %v2084_v54 = vpop.f32.mrf.mxu0 }
  0xfa   : > { %v552_v53 = vpop.f32.mrf.mxu1  ;;  %v790_v58 = vsel %vm787_vm2, %v788_v49, %v789_v51  ;;  %v797_v63 = vrot.slane %v2084_v54, 2 }
  0xfb   : > { %v634_v56 = vsel %vm628_vm3, %v632_v46, %v633_v50  ;;  %v630_v57 = vrot.slane %v552_v53, 1  ;;  %v724_v60 = vpop.f32.mrf.mxu0 }
  0xfc   : > { %v2066_v59 = vpop.f32.mrf.mxu1  ;;  %v662_v61 = vadd.f32 %v2044_v23, %v634_v56  ;;  %v794_v9 = vrot.slane %v724_v60, 2 }
  0xfd   : > { %v631_v62 = vsel %vm628_vm3, %v629_v55, %v630_v57  ;;  %v2085_v1 = vpop.f32.mrf.mxu0  ;;  %v638_v5 = vrot.slane %v2066_v59, 1 }
  0xfe   : > { %v565_v0 = vpop.f32.mrf.mxu1  ;;  %v2540_v2 = vadd.f32 %v793_v52, %v662_v61  ;;  %v661_v3 = vadd.f32 %v631_v62, %v447_v25  ;;  %v798_v4 = vrot.slane %v2085_v1, 2 }
  0xff   : > { %v727_v7 = vpop.f32.mrf.mxu0  ;;  %v635_v15 = vrot.slane %v565_v0, 1 }
 0x100   : > { %v2067_v6 = vpop.f32.mrf.mxu1  ;;  %v2542_v8 = vadd.f32 %v790_v58, %v661_v3  ;;  %v795_v11 = vrot.slane %v727_v7, 2  ;;  %v799_v12 = vsel %vm787_vm2, %v797_v63, %v798_v4 }
 0x101   : > { %v639_v10 = vrot.slane %v2067_v6, 1  ;;  %v2088_v14 = vpop.f32.mrf.mxu0 }
 0x102   : > { %v568_v13 = vpop.f32.mrf.mxu1  ;;  %v796_v18 = vsel %vm787_vm2, %v794_v9, %v795_v11  ;;  %v803_v23 = vrot.slane %v2088_v14, 2 }
 0x103   : > { %v640_v16 = vsel %vm628_vm3, %v638_v5, %v639_v10  ;;  %v636_v17 = vrot.slane %v568_v13, 1  ;;  %v740_v20 = vpop.f32.mrf.mxu0 }
 0x104   : > { %v2070_v19 = vpop.f32.mrf.mxu1  ;;  %v664_v21 = vadd.f32 %v2048_v31, %v640_v16  ;;  %v800_v39 = vrot.slane %v740_v20, 2 }
 0x105   : > { %v637_v22 = vsel %vm628_vm3, %v635_v15, %v636_v17  ;;  %v2089_v27 = vpop.f32.mrf.mxu0  ;;  %v644_v35 = vrot.slane %v2070_v19, 1 }
 0x106   : > { %v581_v25 = vpop.f32.mrf.mxu1  ;;  %v2548_v28 = vadd.f32 %v799_v12, %v664_v21  ;;  %v663_v29 = vadd.f32 %v637_v22, %v461_v33  ;;  %v804_v30 = vrot.slane %v2089_v27, 2 }
 0x107   : > { %v743_v37 = vpop.f32.mrf.mxu0  ;;  %v641_v44 = vrot.slane %v581_v25, 1 }
 0x108   : > { %v2071_v36 = vpop.f32.mrf.mxu1  ;;  %v2550_v38 = vadd.f32 %v796_v18, %v663_v29  ;;  %v801_v41 = vrot.slane %v743_v37, 2  ;;  %v805_v42 = vsel %vm787_vm2, %v803_v23, %v804_v30 }
 0x109   : > { %v645_v40 = vrot.slane %v2071_v36, 1  ;;  %v2092_v43 = vpop.f32.mrf.mxu0 }
 0x10a   : > { %v584_v31 = vpop.f32.mrf.mxu1  ;;  %v802_v47 = vsel %vm787_vm2, %v800_v39, %v801_v41  ;;  %v809_v51 = vrot.slane %v2092_v43, 2 }
 0x10b   : > { %v646_v45 = vsel %vm628_vm3, %v644_v35, %v645_v40  ;;  %v642_v46 = vrot.slane %v584_v31, 1  ;;  %v756_v48 = vpop.f32.mrf.mxu0 }
 0x10c   : > { %v2074_v33 = vpop.f32.mrf.mxu1  ;;  %v666_v49 = vadd.f32 %v2528_v24, %v646_v45  ;;  %v806_v61 = vrot.slane %v756_v48, 2 }
 0x10d   : > { %v643_v50 = vsel %vm628_vm3, %v641_v44, %v642_v46  ;;  %v2093_v53 = vpop.f32.mrf.mxu0  ;;  %v650_v57 = vrot.slane %v2074_v33, 1 }
 0x10e   : > { %v597_v52 = vpop.f32.mrf.mxu1  ;;  %v2557_v54 = vadd.f32 %v805_v42, %v666_v49  ;;  %v665_v55 = vadd.f32 %v643_v50, %v2530_v26  ;;  %v810_v56 = vrot.slane %v2093_v53, 2 }
 0x10f   : > { %v759_v59 = vpop.f32.mrf.mxu0  ;;  %v647_v3 = vrot.slane %v597_v52, 1 }
 0x110   : > { %v2075_v58 = vpop.f32.mrf.mxu1  ;;  %v2560_v60 = vadd.f32 %v802_v47, %v665_v55  ;;  %v807_v63 = vrot.slane %v759_v59, 2  ;;  %v811_v24 = vsel %vm787_vm2, %v809_v51, %v810_v56 }
 0x111   : > { %v651_v62 = vrot.slane %v2075_v58, 1  ;;  %v2116_v1 = vpop.f32.mrf.mxu0 }
 0x112   : > { %v600_v0 = vpop.f32.mrf.mxu1  ;;  %v808_v6 = vsel %vm787_vm2, %v806_v61, %v807_v63  ;;  %v1054_v11 = vrot.slane %v2116_v1, 1 }
 0x113   : > { %v652_v4 = vsel %vm628_vm3, %v650_v57, %v651_v62  ;;  %v648_v5 = vrot.slane %v600_v0, 1  ;;  %v972_v7 = vpop.f32.mrf.mxu0 }
 0x114   : > { %v2098_v26 = vpop.f32.mrf.mxu1  ;;  %v668_v9 = vadd.f32 %v2532_v32, %v652_v4  ;;  %v1051_v21 = vrot.slane %v972_v7, 1 }
 0x115   : > { %v649_v10 = vsel %vm628_vm3, %v647_v3, %v648_v5  ;;  %v2117_v13 = vpop.f32.mrf.mxu0  ;;  %v926_v17 = vadd.f32 %v2098_v26, %v2540_v2 }
 0x116   : > { %v870_v12 = vpop.f32.mrf.mxu1  ;;  %v827_v14 = vadd.f32 %v811_v24, %v668_v9  ;;  %v667_v15 = vadd.f32 %v649_v10, %v2534_v34  ;;  %v1055_v16 = vrot.slane %v2117_v13, 1 }
 0x117   : > { %v975_v19 = vpop.f32.mrf.mxu0  ;;  %v925_v32 = vadd.f32 %v870_v12, %v2542_v8 }
 0x118   : > { %v2099_v18 = vpop.f32.mrf.mxu1  ;;  %v826_v20 = vadd.f32 %v808_v6, %v667_v15  ;;  %v1056_v22 = vsel %vm628_vm3, %v1054_v11, %v1055_v16  ;;  %v1052_v23 = vrot.slane %v975_v19, 1 }
 0x119   : > { %v2571_v25 = vadd.f32 %v1056_v22, %v926_v17  ;;  %v2120_v29 = vpop.f32.mrf.mxu0 }
 0x11a   : > { %v873_v27 = vpop.f32.mrf.mxu1  ;;  %v1053_v30 = vsel %vm628_vm3, %v1051_v21, %v1052_v23  ;;  %v1060_v2 = vrot.slane %v2120_v29, 1 }
 0x11b   : > { %v2574_v35 = vadd.f32 %v1053_v30, %v925_v32  ;;  %v988_v36 = vpop.f32.mrf.mxu0 }
 0x11c   : > { %v2102_v34 = vpop.f32.mrf.mxu1  ;;  %v1057_v43 = vrot.slane %v988_v36, 1 }
 0x11d   : > { %v2121_v39 = vpop.f32.mrf.mxu0  ;;  %v928_v41 = vadd.f32 %v2102_v34, %v2548_v28 }
 0x11e   : > { %v884_v37 = vpop.f32.mrf.mxu1  ;;  %v1061_v40 = vrot.slane %v2121_v39, 1 }
 0x11f   : > { %v991_v31 = vpop.f32.mrf.mxu0  ;;  %v927_v45 = vadd.f32 %v884_v37, %v2550_v38 }
 0x120   : > { %v2103_v42 = vpop.f32.mrf.mxu1  ;;  %v1062_v8 = vsel %vm628_vm3, %v1060_v2, %v1061_v40  ;;  %v1058_v44 = vrot.slane %v991_v31, 1 }
 0x121   : > { %v2579_v46 = vadd.f32 %v1062_v8, %v928_v41  ;;  %v2124_v33 = vpop.f32.mrf.mxu0 }
 0x122   : > { %v887_v47 = vpop.f32.mrf.mxu1  ;;  %v1059_v48 = vsel %vm628_vm3, %v1057_v43, %v1058_v44  ;;  %v1066_v52 = vrot.slane %v2124_v33, 1 }
 0x123   : > { %v2582_v49 = vadd.f32 %v1059_v48, %v927_v45  ;;  %v1004_v51 = vpop.f32.mrf.mxu0 }
 0x124   : > { %v2106_v50 = vpop.f32.mrf.mxu1  ;;  %v1063_v59 = vrot.slane %v1004_v51, 1 }
 0x125   : > { %v2125_v53 = vpop.f32.mrf.mxu0  ;;  %v930_v56 = vadd.f32 %v2106_v50, %v2557_v54 }
 0x126   : > { %v898_v28 = vpop.f32.mrf.mxu1  ;;  %v1067_v55 = vrot.slane %v2125_v53, 1 }
 0x127   : > { %v1007_v58 = vpop.f32.mrf.mxu0  ;;  %v929_v62 = vadd.f32 %v898_v28, %v2560_v60 }
 0x128   : > { %v2107_v57 = vpop.f32.mrf.mxu1  ;;  %v1068_v38 = vsel %vm628_vm3, %v1066_v52, %v1067_v55  ;;  %v1064_v61 = vrot.slane %v1007_v58, 1 }
 0x129   : > { %v2587_v63 = vadd.f32 %v1068_v38, %v930_v56  ;;  %v2128_v0 = vpop.f32.mrf.mxu0 }
 0x12a   : > { %v901_v24 = vpop.f32.mrf.mxu1  ;;  %v1065_v1 = vsel %vm628_vm3, %v1063_v59, %v1064_v61  ;;  %v1072_v6 = vrot.slane %v2128_v0, 1 }
 0x12b   : > { %v2590_v3 = vadd.f32 %v1065_v1, %v929_v62  ;;  %v1020_v5 = vpop.f32.mrf.mxu0 }
 0x12c   : > { %v2110_v4 = vpop.f32.mrf.mxu1  ;;  %v1069_v12 = vrot.slane %v1020_v5, 1 }
 0x12d   : > { %v2129_v26 = vpop.f32.mrf.mxu0  ;;  %v932_v9 = vadd.f32 %v2110_v4, %v827_v14 }
 0x12e   : > { %v912_v54 = vpop.f32.mrf.mxu1  ;;  %v1073_v7 = vrot.slane %v2129_v26, 1 }
 0x12f   : > { %v1023_v11 = vpop.f32.mrf.mxu0  ;;  %v931_v15 = vadd.f32 %v912_v54, %v826_v20 }
 0x130   : > { %v2111_v10 = vpop.f32.mrf.mxu1  ;;  %v1074_v60 = vsel %vm628_vm3, %v1072_v6, %v1073_v7  ;;  %v1070_v13 = vrot.slane %v1023_v11, 1 }
 0x131   : > { %v2593_v16 = vadd.f32 %v1074_v60, %v932_v9  ;;  %v2595_v18 = vpop.f32.mrf.mxu0 }
 0x132   : > { %v915_v17 = vpop.f32.mrf.mxu1  ;;  %v1071_v19 = vsel %vm628_vm3, %v1069_v12, %v1070_v13 }
 0x133   : > { %v2598_v21 = vadd.f32 %v1071_v19, %v931_v15  ;;  %v2600_v23 = vpop.f32.mrf.mxu0 }
 0x134   : > { %v2134_v22 = vpop.f32.mrf.mxu1 }
 0x135   : > { %v2153_v32 = vpop.f32.mrf.mxu0  ;;  %v1212_v58 = vrot.slane %v2134_v22, 2 }
 0x136   : > { %v1130_v14 = vpop.f32.mrf.mxu1 }
 0x137   : > { %v1294_v29 = vpop.f32.mrf.mxu0  ;;  %v1209_v61 = vrot.slane %v1130_v14, 2 }
 0x138   : > { %v2135_v27 = vpop.f32.mrf.mxu1 }
 0x139   : > { %v2602_v34 = vpop.f32.mrf.mxu0  ;;  %v1213_v53 = vrot.slane %v2135_v27, 2 }
 0x13a   : > { %v1133_v30 = vpop.f32.mrf.mxu1 }
 0x13b   : > { %v2604_v36 = vpop.f32.mrf.mxu0  ;;  %v1210_v55 = vrot.slane %v1133_v30, 2  ;;  %v1214_v0 = vsel %vm787_vm2, %v1212_v58, %v1213_v53 }
 0x13c   : > { %v2138_v20 = vpop.f32.mrf.mxu1  ;;  %v1242_v9 = vadd.f32 %v1214_v0, %v2571_v25 }
 0x13d   : > { %v2157_v37 = vpop.f32.mrf.mxu0  ;;  %v1218_v1 = vrot.slane %v2138_v20, 2  ;;  %v1211_v5 = vsel %vm787_vm2, %v1209_v61, %v1210_v55 }
 0x13e   : > { %v1146_v2 = vpop.f32.mrf.mxu1  ;;  %v1241_v13 = vadd.f32 %v1211_v5, %v2574_v35  ;;  %v1347_v35 = vadd.f32 %v2595_v18, %v1242_v9 }
 0x13f   : > { %v1308_v40 = vpop.f32.mrf.mxu0  ;;  %v1215_v4 = vrot.slane %v1146_v2, 2 }
 0x140   : > { %v2139_v39 = vpop.f32.mrf.mxu1 }
 0x141   : > { %v2606_v42 = vpop.f32.mrf.mxu0  ;;  %v1219_v59 = vrot.slane %v2139_v39, 2 }
 0x142   : > { %v1149_v41 = vpop.f32.mrf.mxu1 }
 0x143   : > { %v2608_v43 = vpop.f32.mrf.mxu0  ;;  %v1216_v38 = vrot.slane %v1149_v41, 2  ;;  %v1220_v26 = vsel %vm787_vm2, %v1218_v1, %v1219_v59 }
 0x144   : > { %v2142_v31 = vpop.f32.mrf.mxu1  ;;  %v1244_v15 = vadd.f32 %v1220_v26, %v2579_v46 }
 0x145   : > { %v2161_v44 = vpop.f32.mrf.mxu0  ;;  %v1217_v7 = vsel %vm787_vm2, %v1215_v4, %v1216_v38  ;;  %v1224_v19 = vrot.slane %v2142_v31, 2 }
 0x146   : > { %v1162_v8 = vpop.f32.mrf.mxu1  ;;  %v1243_v17 = vadd.f32 %v1217_v7, %v2582_v49  ;;  %v1346_v44 = vadd.f32 %v2600_v23, %v1241_v13 }
 0x147   : > { %v1322_v47 = vpop.f32.mrf.mxu0  ;;  %v1221_v22 = vrot.slane %v1162_v8, 2 }
 0x148   : > { %v2143_v45 = vpop.f32.mrf.mxu1 }
 0x149   : > { %v2610_v48 = vpop.f32.mrf.mxu0  ;;  %v1225_v10 = vrot.slane %v2143_v45, 2 }
 0x14a   : > { %v1165_v33 = vpop.f32.mrf.mxu1 }
 0x14b   : > { %v2614_v51 = vpop.f32.mrf.mxu0  ;;  %v1222_v11 = vrot.slane %v1165_v33, 2  ;;  %v1226_v25 = vsel %vm787_vm2, %v1224_v19, %v1225_v10  ;;  %v1349_v33 = vadd.f32 %v2602_v34, %v1244_v15 }
 0x14c   : > { %v2612_v50 = vpop.f32.mrf.mxu1 }
 0x14d   : > { %v2165_v28 = vpop.f32.mrf.mxu0  ;;  %v1223_v2 = vsel %vm787_vm2, %v1221_v22, %v1222_v11  ;;  %v1230_v53 = vrot.slane %v2612_v50, 2 }
 0x14e   : > { %v2616_v52 = vpop.f32.mrf.mxu1  ;;  %v1348_v28 = vadd.f32 %v2604_v36, %v1243_v17  ;;  %v1245_v58 = vadd.f32 %v1223_v2, %v2590_v3 }
 0x14f   : > { %v1336_v57 = vpop.f32.mrf.mxu0 }
 0x150   : > { %v2147_v56 = vpop.f32.mrf.mxu1  ;;  %v1246_v57 = vadd.f32 %v1226_v25, %v2587_v63 }
 0x151   : > { %v2188_v24 = vpop.f32.mrf.mxu0  ;;  %v1231_v37 = vrot.slane %v2147_v56, 2 }
 0x152   : > { %v2618_v62 = vpop.f32.mrf.mxu1  ;;  %v1633_v27 = vrot.slane %v2188_v24, 2  ;;  %v1227_v24 = vrot.slane %v2616_v52, 2 }
 0x153   : > { %v1551_v54 = vpop.f32.mrf.mxu0  ;;  %v1232_v34 = vsel %vm787_vm2, %v1230_v53, %v1231_v37  ;;  %v1228_v36 = vrot.slane %v2618_v62, 2 }
 0x154   : > { %v2170_v6 = vpop.f32.mrf.mxu1  ;;  %v1630_v18 = vrot.slane %v1551_v54, 2 }
 0x155   : > { %v2189_v60 = vpop.f32.mrf.mxu0  ;;  %v1475_v29 = vrot.slane %v2170_v6, 1  ;;  %v1229_v19 = vsel %vm787_vm2, %v1227_v24, %v1228_v36 }
 0x156   : > { %v1393_v12 = vpop.f32.mrf.mxu1  ;;  %v1634_v30 = vrot.slane %v2189_v60, 2 }
 0x157   : > { %v1554_v32 = vpop.f32.mrf.mxu0  ;;  %v1472_v46 = vrot.slane %v1393_v12, 1 }
 0x158   : > { %v2171_v14 = vpop.f32.mrf.mxu1  ;;  %v1631_v41 = vrot.slane %v1554_v32, 2  ;;  %v1635_v55 = vsel %vm787_vm2, %v1633_v27, %v1634_v30 }
 0x159   : > { %v1476_v20 = vrot.slane %v2171_v14, 1  ;;  %v2192_v40 = vpop.f32.mrf.mxu0 }
 0x15a   : > { %v1396_v39 = vpop.f32.mrf.mxu1  ;;  %v1632_v63 = vsel %vm787_vm2, %v1630_v18, %v1631_v41  ;;  %v1639_v1 = vrot.slane %v2192_v40, 2  ;;  %v1351_v41 = vadd.f32 %v2606_v42, %v1246_v57 }
 0x15b   : > { %v1477_v49 = vsel %vm628_vm3, %v1475_v29, %v1476_v20  ;;  %v1473_v31 = vrot.slane %v1396_v39, 1  ;;  %v1567_v47 = vpop.f32.mrf.mxu0 }
 0x15c   : > { %v1505_v8 = vadd.f32 %v1477_v49, %v1347_v35  ;;  %v2174_v45 = vpop.f32.mrf.mxu1  ;;  %v1636_v20 = vrot.slane %v1567_v47, 2 }
 0x15d   : > { %v1474_v56 = vsel %vm628_vm3, %v1472_v46, %v1473_v31  ;;  %v2193_v61 = vpop.f32.mrf.mxu0  ;;  %v1481_v52 = vrot.slane %v2174_v45, 1  ;;  %v1248_v46 = vadd.f32 %v1232_v34, %v2593_v16  ;;  %v1350_v31 = vadd.f32 %v2608_v43, %v1245_v58 }
 0x15e   : > { %v1663_v59 = vadd.f32 %v1635_v55, %v1505_v8  ;;  %v1504_v23 = vadd.f32 %v1474_v56, %v1346_v44  ;;  %v1409_v38 = vpop.f32.mrf.mxu1  ;;  %v1640_v54 = vrot.slane %v2193_v61, 2  ;;  %v1247_v8 = vadd.f32 %v1229_v19, %v2598_v21 }
 0x15f   : > { %v1570_v5 = vpop.f32.mrf.mxu0  ;;  %v1478_v6 = vrot.slane %v1409_v38, 1 }
 0x160   : > { %v1671_v3 = vpack.c.bf16 %v1663_v59, %v1663_v59  ;;  %v1711_v50 = vmul.f32 %v1663_v59, %v1663_v59  ;;  %v1662_v0 = vadd.f32 %v1632_v63, %v1504_v23  ;;  %v2175_v4 = vpop.f32.mrf.mxu1  ;;  %v1688_v26 = vsel %vm324_vm1, %v1663_v59, 0.0 }
 0x161   : > { %v1482_v62 = vrot.slane %v2175_v4, 1  ;;  %v2196_v12 = vpop.f32.mrf.mxu0  ;;  %v1637_v15 = vrot.slane %v1570_v5, 2  ;;  %v1641_v25 = vsel %vm787_vm2, %v1639_v1, %v1640_v54 }
 0x162   : > { %1680 = vst.msk [vmem:[%s2648_s7 + $0x4] sm:$0xf] %vm1678_vm4, %v1671_v3  ;;  %v1670_v7 = vpack.c.bf16 %v1662_v0, %v1662_v0  ;;  %v1687_v9 = vsel %vm324_vm1, %v1662_v0, 0.0  ;;  %v1710_v10 = vmul.f32 %v1662_v0, %v1662_v0  ;;  %v1412_v11 = vpop.f32.mrf.mxu1  ;;  %v1719_v22 = vsel %vm324_vm1, %v1711_v50, 0.0 }
 0x163   : > { %v1689_v60 = vadd.f32 %v1688_v26, %v1687_v9  ;;  %v1483_v13 = vsel %vm628_vm3, %v1481_v52, %v1482_v62  ;;  %v1479_v17 = vrot.slane %v1412_v11, 1  ;;  %v1583_v29 = vpop.f32.mrf.mxu0  ;;  %v1638_v49 = vsel %vm787_vm2, %v1636_v20, %v1637_v15 }
 0x164   : > { %1679 = vst.msk [vmem:[%s2648_s7] sm:$0xf] %vm1678_vm4, %v1670_v7  ;;  %v1718_v14 = vsel %vm324_vm1, %v1710_v10, 0.0  ;;  %v1507_v32 = vadd.f32 %v1483_v13, %v1349_v33  ;;  %v2178_v27 = vpop.f32.mrf.mxu1  ;;  %v1645_v47 = vrot.slane %v2196_v12, 2  ;;  %v1642_v36 = vrot.slane %v1583_v29, 2 }
 0x165   : > { %v1720_v30 = vadd.f32 %v1719_v22, %v1718_v14  ;;  %v1480_v2 = vsel %vm628_vm3, %v1478_v6, %v1479_v17  ;;  %v2197_v40 = vpop.f32.mrf.mxu0  ;;  %v1487_v18 = vrot.slane %v2178_v27, 1  ;;  %v1353_v10 = vadd.f32 %v2610_v48, %v1248_v46 }
 0x166   : > { %v1665_v37 = vadd.f32 %v1641_v25, %v1507_v32  ;;  %v1506_v35 = vadd.f32 %v1480_v2, %v1348_v28  ;;  %v1425_v39 = vpop.f32.mrf.mxu1  ;;  %v1646_v55 = vrot.slane %v2197_v40, 2  ;;  %v1352_v17 = vadd.f32 %v2614_v51, %v1247_v8 }
 0x167   : > { %v1586_v53 = vpop.f32.mrf.mxu0  ;;  %v1484_v28 = vrot.slane %v1425_v39, 1 }
 0x168   : > { %v1673_v44 = vpack.c.bf16 %v1665_v37, %v1665_v37  ;;  %v1664_v45 = vadd.f32 %v1638_v49, %v1506_v35  ;;  %v2179_v33 = vpop.f32.mrf.mxu1  ;;  %v1713_v16 = vmul.f32 %v1665_v37, %v1665_v37  ;;  %v1643_v38 = vrot.slane %v1586_v53, 2 }
 0x169   : > { %v1488_v56 = vrot.slane %v2179_v33, 1  ;;  %v2200_v58 = vpop.f32.mrf.mxu0  ;;  %v1692_v24 = vsel %vm324_vm1, %v1665_v37, 0.0  ;;  %v1647_v1 = vsel %vm787_vm2, %v1645_v47, %v1646_v55 }
 0x16a   : > { %1682 = vst.msk [vmem:[%s2648_s7 + $0xc] sm:$0xf] %vm1678_vm4, %v1673_v44  ;;  %v1672_v59 = vpack.c.bf16 %v1664_v45, %v1664_v45  ;;  %v1690_v42 = vsel %vm324_vm1, %v1664_v45, 0.0  ;;  %v1712_v57 = vmul.f32 %v1664_v45, %v1664_v45  ;;  %v1428_v43 = vpop.f32.mrf.mxu1  ;;  %v1723_v52 = vsel %vm324_vm1, %v1713_v16, 0.0 }
 0x16b   : > { %v1691_v21 = vadd.f32 %v1690_v42, %v1689_v60  ;;  %v1489_v23 = vsel %vm628_vm3, %v1487_v18, %v1488_v56  ;;  %v1485_v61 = vrot.slane %v1428_v43, 1  ;;  %v1599_v50 = vpop.f32.mrf.mxu0  ;;  %v1644_v7 = vsel %vm787_vm2, %v1642_v36, %v1643_v38 }
 0x16c   : > { %1681 = vst.msk [vmem:[%s2648_s7 + $0x8] sm:$0xf] %vm1678_vm4, %v1672_v59  ;;  %v1721_v34 = vsel %vm324_vm1, %v1712_v57, 0.0  ;;  %v1509_v63 = vadd.f32 %v1489_v23, %v1351_v41  ;;  %v2182_v3 = vpop.f32.mrf.mxu1  ;;  %v1651_v60 = vrot.slane %v2200_v58, 2  ;;  %v1648_v40 = vrot.slane %v1599_v50, 2 }
 0x16d   : > { %v1722_v0 = vadd.f32 %v1721_v34, %v1720_v30  ;;  %v1486_v4 = vsel %vm628_vm3, %v1484_v28, %v1485_v61  ;;  %v1693_v5 = vadd.f32 %v1692_v24, %v1691_v21  ;;  %v2201_v26 = vpop.f32.mrf.mxu0  ;;  %v1493_v19 = vrot.slane %v2182_v3, 1 }
 0x16e   : > { %v1667_v6 = vadd.f32 %v1647_v1, %v1509_v63  ;;  %v1508_v54 = vadd.f32 %v1486_v4, %v1350_v31  ;;  %v1441_v62 = vpop.f32.mrf.mxu1  ;;  %v1652_v14 = vrot.slane %v2201_v26, 2 }
 0x16f   : > { %v1724_v9 = vadd.f32 %v1723_v52, %v1722_v0  ;;  %v1602_v15 = vpop.f32.mrf.mxu0  ;;  %v1490_v22 = vrot.slane %v1441_v62, 1 }
 0x170   : > { %v1675_v11 = vpack.c.bf16 %v1667_v6, %v1667_v6  ;;  %v1666_v12 = vadd.f32 %v1644_v7, %v1508_v54  ;;  %v2183_v13 = vpop.f32.mrf.mxu1  ;;  %v1715_v27 = vmul.f32 %v1667_v6, %v1667_v6  ;;  %v1649_v37 = vrot.slane %v1602_v15, 2 }
 0x171   : > { %v1494_v32 = vrot.slane %v2183_v13, 1  ;;  %v1696_v51 = vsel %vm324_vm1, %v1667_v6, 0.0  ;;  %v1653_v41 = vsel %vm787_vm2, %v1651_v60, %v1652_v14 }
 0x172   : > { %1684 = vst.msk [vmem:[%s2648_s7 + $0x14] sm:$0xf] %vm1678_vm4, %v1675_v11  ;;  %v1674_v29 = vpack.c.bf16 %v1666_v12, %v1666_v12  ;;  %v1694_v30 = vsel %vm324_vm1, %v1666_v12, 0.0  ;;  %v1714_v20 = vmul.f32 %v1666_v12, %v1666_v12  ;;  %v1444_v48 = vpop.f32.mrf.mxu1  ;;  %v1727_v44 = vsel %vm324_vm1, %v1715_v27, 0.0 }
 0x173   : > { %v1695_v25 = vadd.f32 %v1694_v30, %v1693_v5  ;;  %v1495_v2 = vsel %vm628_vm3, %v1493_v19, %v1494_v32  ;;  %v1491_v35 = vrot.slane %v1444_v48, 1  ;;  %v1650_v33 = vsel %vm787_vm2, %v1648_v40, %v1649_v37 }
 0x174   : > { %1683 = vst.msk [vmem:[%s2648_s7 + $0x10] sm:$0xf] %vm1678_vm4, %v1674_v29  ;;  %v1725_v39 = vsel %vm324_vm1, %v1714_v20, 0.0  ;;  %v1511_v46 = vadd.f32 %v1495_v2, %v1353_v10 }
 0x175   : > { %v1726_v49 = vadd.f32 %v1725_v39, %v1724_v9  ;;  %v1492_v31 = vsel %vm628_vm3, %v1490_v22, %v1491_v35  ;;  %v1697_v8 = vadd.f32 %v1696_v51, %v1695_v25 }
 0x176   : > { %v1669_v45 = vadd.f32 %v1653_v41, %v1511_v46  ;;  %v1510_v47 = vadd.f32 %v1492_v31, %v1352_v17 }
 0x177   : > { %v1728_v53 = vadd.f32 %v1727_v44, %v1726_v49 }
 0x178   : > { %v1677_v18 = vpack.c.bf16 %v1669_v45, %v1669_v45  ;;  %v1668_v28 = vadd.f32 %v1650_v33, %v1510_v47  ;;  %v1717_v55 = vmul.f32 %v1669_v45, %v1669_v45  ;;  %v1700_v57 = vsel %vm324_vm1, %v1669_v45, 0.0 }
 0x17a   : > { %1686 = vst.msk [vmem:[%s2648_s7 + $0x1c] sm:$0xf] %vm1678_vm4, %v1677_v18  ;;  %v1676_v56 = vpack.c.bf16 %v1668_v28, %v1668_v28  ;;  %v1698_v16 = vsel %vm324_vm1, %v1668_v28, 0.0  ;;  %v1716_v59 = vmul.f32 %v1668_v28, %v1668_v28  ;;  %v1731_v23 = vsel %vm324_vm1, %v1717_v55, 0.0 }
 0x17b   : > { %v1699_v42 = vadd.f32 %v1698_v16, %v1697_v8 }
 0x17c   : > { %1685 = vst.msk [vmem:[%s2648_s7 + $0x18] sm:$0xf] %vm1678_vm4, %v1676_v56  ;;  %v1729_v43 = vsel %vm324_vm1, %v1716_v59, 0.0 }
 0x17d   : > { %v1701_v58 = vadd.f32 %v1700_v57, %v1699_v42  ;;  %v1730_v21 = vadd.f32 %v1729_v43, %v1728_v53 }
 0x17f   : > { %v1702_v38 = vrot.slane %v1701_v58, 4  ;;  %v1732_v61 = vadd.f32 %v1731_v23, %v1730_v21 }
 0x181   : > { %v1703_v24 = vadd.f32 %v1702_v38, %v1701_v58  ;;  %v1733_v34 = vrot.slane %v1732_v61, 4 }
 0x183   : > { %v1704_v36 = vrot.slane %v1703_v24, 2  ;;  %v1734_v63 = vadd.f32 %v1733_v34, %v1732_v61 }
 0x185   : > { %v1705_v3 = vadd.f32 %v1704_v36, %v1703_v24  ;;  %v1735_v50 = vrot.slane %v1734_v63, 2 }
 0x187   : > { %v1706_v0 = vrot.slane %v1705_v3, 1  ;;  %v1736_v1 = vadd.f32 %v1735_v50, %v1734_v63 }
 0x189   : > { %v1707_v4 = vadd.f32 %v1706_v0, %v1705_v3  ;;  %v1737_v5 = vrot.slane %v1736_v1, 1 }
 0x18b   : > { %1709 = vst.msk [vmem:[%s265_s9] sm:$0x1] %vm1708_vm5, %v1707_v4  ;;  %v1738_v52 = vadd.f32 %v1737_v5, %v1736_v1 }
 0x18d   : > { %1739 = vst.msk [vmem:[%s268_s12] sm:$0x1] %vm1708_vm5, %v1738_v52 }
 0x18e PF: > { %s17_s21 = sadd.s32 1, %s2229_s21  }
 0x18f   : > { %p14_p4 = scmp.ge.s32.totalorder %s17_s21, 4  }
 0x191   :  { %16 = sbr.rel (!%p14_p4) target bundleno = 1 (0x1), region = 99 }

// kernel: resnet_forward.28
= control target key start
LH: loop header
LB: loop body
LE: loop exit
PB: predicated region body
PF: predicated region fallthrough
CT: control target
= control target key end

     0   :  { %s555_s15 = smov 0   ;;  %s610_s0 = inlined_call_operand.vmem [shape: f32[2,64,4], index: 0, kind: input, shape index: {}]   ;;  %s611_s1 = inlined_call_operand.vmem [shape: bf16[4,16], index: 1, kind: input, shape index: {}]   ;;  %s612_s2 = inlined_call_operand.vmem [shape: f32[2,64,16], index: 2, kind: output, shape index: {0}]   ;;  %s613_s3 = inlined_call_operand.vmem [shape: f32[2,1,16], index: 3, kind: output, shape index: {1}]   ;;  %s614_s4 = inlined_call_operand.vmem [shape: f32[2,1,16], index: 4, kind: output, shape index: {2}]  }
   0x1 LB: > { %s478_s16 = sadd.s32 4294967295, %s528_s15   ;;  %p482_p0 = scmp.ge.s32.totalorder %s528_s15, 1  ;;  %s528_s15 = sphi %s555_s15, %s15_s15  }
   0x2   : > { %p167_p1 = scmp.lt.s32.totalorder %s528_s15, 3 }
   0x4   : > { %p168_p2 = pnand %p482_p0, %p167_p1 }
   0x5   : > { %p199_p3 = scmp.lt.s32.totalorder (!%p168_p2), %s478_s16, 1 }
   0x6   : > { %171 = sbr.rel (%p168_p2) target bundleno = 247 (0xf7), region = 28 }
   0xb   : > { %v228_v0 = vld [vmem:[%s611_s1] sm:$0x3]  ;;  %vm242_vm0 = vcmask 1041408   ;;  %s616_s16 = smov (!%p199_p3, %s478_s16), 1  ;;  %vm229_vm1 = vcmask 31744   ;;  %vm311_vm2 = vcmask 130048  }
   0xc   : > { %512 = vmatprep.subr.msk.bf16.mxu0 %vm242_vm0, %v228_v0  ;;  %v244_v1 = vsel %vm242_vm0, %v228_v0, 0  ;;  %513 = vmatprep.subr.msk.bf16.mxu1 %vm242_vm0, %v228_v0  ;;  %s493_s19 = sshll.u32 %s616_s16, 6  ;;  %s211_s28 = scalar_lea.vmem %s613_s3, %s616_s16  ;;  %vm341_vm3 = vcmask 122880  }
   0xd   : > { %501 = vmatpush3.bf16.msra.mxu0 %v244_v1  ;;  %511 = vmatpush3.bf16.msra.mxu1 %v244_v1  ;;  %s203_s22 = scalar_lea.vmem %s610_s0, %s493_s19  ;;  %s208_s25 = scalar_lea.vmem %s612_s2, %s493_s19 }
   0xe   : > { %v216_v2 = vld [vmem:[%s203_s22] sm:$0xff]  ;;  %v217_v3 = vld [vmem:[%s203_s22 + $0x8] sm:$0xff]  ;;  %v218_v4 = vld [vmem:[%s203_s22 + $0x10] sm:$0xff]  ;;  %s214_s5 = scalar_lea.vmem %s614_s4, %s616_s16 }
   0xf   : > { %v224_v5 = vpack.c.bf16 %v217_v3, %v216_v2  ;;  %v219_v6 = vld [vmem:[%s203_s22 + $0x18] sm:$0xff]  ;;  %v220_v7 = vld [vmem:[%s203_s22 + $0x20] sm:$0xff]  ;;  %v221_v8 = vld [vmem:[%s203_s22 + $0x28] sm:$0xff] }
  0x10   : > { %v225_v9 = vpack.c.bf16 %v219_v6, %v218_v4  ;;  %v226_v10 = vpack.c.bf16 %v221_v8, %v220_v7  ;;  %v222_v11 = vld [vmem:[%s203_s22 + $0x30] sm:$0xff]  ;;  %v223_v12 = vld [vmem:[%s203_s22 + $0x38] sm:$0xff] }
  0x11   : > { %502 = vmatprep.mubr.msk.bf16.mxu0 %vm229_vm1, %v224_v5  ;;  %v227_v13 = vpack.c.bf16 %v223_v12, %v222_v11 }
  0x12   : > { %503 = vmatmul.mubr.msk.bf16.vlgmr.msra.gmra.mxu0 %vm229_vm1, %v225_v9  ;;  %506 = vmatprep.mubr.msk.bf16.mxu1 %vm229_vm1, %v226_v10 }
  0x13   : > { %507 = vmatmul.mubr.msk.bf16.vlgmr.msra.gmra.mxu1 %vm229_vm1, %v227_v13 }
  0xd2   : > { %v504_v14 = vpop.f32.mrf.mxu0 }
  0xd3   : > { %314 = vst.msk [vmem:[%s208_s25 + $0x10] sm:$0xff] %vm311_vm2, %v504_v14  ;;  %v508_v15 = vpop.f32.mrf.mxu1  ;;  %v345_v22 = vmul.f32 %v504_v14, %v504_v14  ;;  %v323_v28 = vsel %vm311_vm2, %v504_v14, 0.0 }
  0xd4   : > { %v280_v16 = vpop.f32.mrf.mxu0  ;;  %318 = vst.msk [vmem:[%s208_s25 + $0x30] sm:$0xff] %vm311_vm2, %v508_v15  ;;  %v349_v44 = vmul.f32 %v508_v15, %v508_v15  ;;  %v331_v49 = vsel %vm311_vm2, %v508_v15, 0.0 }
  0xd5   : > { %312 = vst.msk [vmem:[%s208_s25] sm:$0xff] %vm311_vm2, %v280_v16  ;;  %v296_v17 = vpop.f32.mrf.mxu1  ;;  %v343_v19 = vmul.f32 %v280_v16, %v280_v16  ;;  %v320_v23 = vsel %vm311_vm2, %v280_v16, 0.0  ;;  %v354_v34 = vsel %vm311_vm2, %v345_v22, 0.0 }
  0xd6   : > { %v505_v18 = vpop.f32.mrf.mxu0  ;;  %316 = vst.msk [vmem:[%s208_s25 + $0x20] sm:$0xff] %vm311_vm2, %v296_v17  ;;  %v347_v36 = vmul.f32 %v296_v17, %v296_v17  ;;  %v327_v40 = vsel %vm311_vm2, %v296_v17, 0.0  ;;  %v362_v54 = vsel %vm311_vm2, %v349_v44, 0.0 }
  0xd7   : > { %315 = vst.msk [vmem:[%s208_s25 + $0x18] sm:$0xff] %vm311_vm2, %v505_v18  ;;  %v509_v20 = vpop.f32.mrf.mxu1  ;;  %v351_v29 = vsel %vm311_vm2, %v343_v19, 0.0  ;;  %v346_v30 = vmul.f32 %v505_v18, %v505_v18  ;;  %v325_v35 = vsel %vm311_vm2, %v505_v18, 0.0 }
  0xd8   : > { %v283_v21 = vpop.f32.mrf.mxu0  ;;  %319 = vst.msk [vmem:[%s208_s25 + $0x38] sm:$0xff] %vm311_vm2, %v509_v20  ;;  %v358_v45 = vsel %vm311_vm2, %v347_v36, 0.0  ;;  %v350_v50 = vmul.f32 %v509_v20, %v509_v20  ;;  %v333_v55 = vsel %vm311_vm2, %v509_v20, 0.0 }
  0xd9   : > { %313 = vst.msk [vmem:[%s208_s25 + $0x8] sm:$0xff] %vm311_vm2, %v283_v21  ;;  %v321_v24 = vsel %vm311_vm2, %v283_v21, 0.0  ;;  %v344_v25 = vmul.f32 %v283_v21, %v283_v21  ;;  %v299_v26 = vpop.f32.mrf.mxu1  ;;  %v356_v39 = vsel %vm311_vm2, %v346_v30, 0.0 }
  0xda   : > { %v322_v27 = vadd.f32 %v321_v24, %v320_v23  ;;  %317 = vst.msk [vmem:[%s208_s25 + $0x28] sm:$0xff] %vm311_vm2, %v299_v26  ;;  %v348_v41 = vmul.f32 %v299_v26, %v299_v26  ;;  %v329_v46 = vsel %vm311_vm2, %v299_v26, 0.0  ;;  %v364_v58 = vsel %vm311_vm2, %v350_v50, 0.0 }
  0xdb   : > { %v352_v31 = vsel %vm311_vm2, %v344_v25, 0.0 }
  0xdc   : > { %v324_v32 = vadd.f32 %v323_v28, %v322_v27  ;;  %v353_v33 = vadd.f32 %v352_v31, %v351_v29  ;;  %v360_v51 = vsel %vm311_vm2, %v348_v41, 0.0 }
  0xde   : > { %v355_v37 = vadd.f32 %v354_v34, %v353_v33  ;;  %v326_v38 = vadd.f32 %v325_v35, %v324_v32 }
  0xe0   : > { %v328_v42 = vadd.f32 %v327_v40, %v326_v38  ;;  %v357_v43 = vadd.f32 %v356_v39, %v355_v37 }
  0xe2   : > { %v330_v47 = vadd.f32 %v329_v46, %v328_v42  ;;  %v359_v48 = vadd.f32 %v358_v45, %v357_v43 }
  0xe4   : > { %v332_v52 = vadd.f32 %v331_v49, %v330_v47  ;;  %v361_v53 = vadd.f32 %v360_v51, %v359_v48 }
  0xe6   : > { %v334_v56 = vadd.f32 %v333_v55, %v332_v52  ;;  %v363_v57 = vadd.f32 %v362_v54, %v361_v53 }
  0xe8   : > { %v335_v59 = vrot.slane %v334_v56, 4  ;;  %v365_v60 = vadd.f32 %v364_v58, %v363_v57 }
  0xea   : > { %v336_v61 = vadd.f32 %v335_v59, %v334_v56  ;;  %v366_v62 = vrot.slane %v365_v60, 4 }
  0xec   : > { %v337_v63 = vrot.slane %v336_v61, 2  ;;  %v367_v0 = vadd.f32 %v366_v62, %v365_v60 }
  0xee   : > { %v338_v1 = vadd.f32 %v337_v63, %v336_v61  ;;  %v368_v2 = vrot.slane %v367_v0, 2 }
  0xf0   : > { %v339_v3 = vrot.slane %v338_v1, 1  ;;  %v369_v4 = vadd.f32 %v368_v2, %v367_v0 }
  0xf2   : > { %v340_v5 = vadd.f32 %v339_v3, %v338_v1  ;;  %v370_v6 = vrot.slane %v369_v4, 1 }
  0xf4   : > { %342 = vst.msk [vmem:[%s211_s28] sm:$0x1] %vm341_vm3, %v340_v5  ;;  %v371_v7 = vadd.f32 %v370_v6, %v369_v4 }
  0xf6   : > { %372 = vst.msk [vmem:[%s214_s5] sm:$0x1] %vm341_vm3, %v371_v7 }
  0xf7 PF: > { %s15_s15 = sadd.s32 1, %s528_s15  }
  0xf8   : > { %p12_p4 = scmp.ge.s32.totalorder %s15_s15, 4  }
  0xfa   :  { %14 = sbr.rel (!%p12_p4) target bundleno = 1 (0x1), region = 82 }

// kernel: resnet_forward.23
= control target key start
LH: loop header
LB: loop body
LE: loop exit
PB: predicated region body
PF: predicated region fallthrough
CT: control target
= control target key end

     0   :  { %s5190_s15 = smov 0   ;;  %s6757_s0 = inlined_call_operand.vmem [shape: f32[2,16,16,3], index: 0, kind: input, shape index: {}]   ;;  %s6758_s1 = inlined_call_operand.vmem [shape: bf16[9,3,4], index: 1, kind: input, shape index: {}]   ;;  %s6759_s2 = inlined_call_operand.vmem [shape: f32[2,16,16,4], index: 2, kind: output, shape index: {0}]   ;;  %s6760_s3 = inlined_call_operand.vmem [shape: f32[2,1,4], index: 3, kind: output, shape index: {1}]   ;;  %s6761_s4 = inlined_call_operand.vmem [shape: f32[2,1,4], index: 4, kind: output, shape index: {2}]  }
   0x1 LB: > { %s4231_s16 = sadd.s32 4294967295, %s5161_s15   ;;  %p4235_p0 = scmp.ge.s32.totalorder %s5161_s15, 1  ;;  %s5161_s15 = sphi %s5190_s15, %s15_s15  }
   0x2   : > { %p167_p1 = scmp.lt.s32.totalorder %s5161_s15, 3 }
   0x4   : > { %p168_p2 = pnand %p4235_p0, %p167_p1 }
   0x6   : > { %171 = sbr.rel (%p168_p2) target bundleno = 703 (0x2bf), region = 28 }
   0xb   : > { %v5201_v0 = vld [vmem:[%s6758_s1] sm:$0x3]  ;;  %vm490_vm0 = vcmask 1040384   ;;  %vm491_vm1 = vcmask 1041408   ;;  %vm248_vm2 = vcmask 23552   ;;  %v5163_v1 = vmov 65535  }
   0xc   : > { %v492_v2 = vsel %vm490_vm0, 4294967295, %v5163_v1  ;;  %p5205_p3 = scmp.lt.s32.totalorder %s4231_s16, 1  ;;  %v4264_v3 = vld [vmem:[%s6758_s1 + $0x2] sm:$0x3]  ;;  %v5164_v5 = vmov 0.0   ;;  %vm1611_vm3 = vcmask 1043456  }
   0xd   : > { %v5212_v4 = vsel %vm491_vm1, %v492_v2, 0  ;;  %249 = vst.msk [vmem:[#allocation2] sm:$0xff] %vm248_vm2, %v5164_v5  ;;  %250 = vst.msk [vmem:[#allocation2 + $0x8] sm:$0xff] %vm248_vm2, %v5164_v5  ;;  %v4289_v6 = vld [vmem:[%s6758_s1 + $0x4] sm:$0x3]  ;;  %vm1439_vm4 = vcmask 1045504  }
   0xe   : > { %251 = vst.msk [vmem:[#allocation2 + $0x10] sm:$0xff] %vm248_vm2, %v5164_v5  ;;  %252 = vst.msk [vmem:[#allocation2 + $0x18] sm:$0xff] %vm248_vm2, %v5164_v5  ;;  %v495_v7 = vand.u32 %v5212_v4, %v5201_v0  ;;  %s6877_s16 = smov (!%p5205_p3, %s4231_s16), 1  ;;  %v5280_v8 = vand.u32 %v4264_v3, %v5212_v4  ;;  %v5283_v9 = vand.u32 %v4289_v6, %v5212_v4  ;;  %v4314_v29 = vld [vmem:[%s6758_s1 + $0x6] sm:$0x3]  ;;  %vm1016_vm5 = vcmask 1046528  }
   0xf   : > { %253 = vst.msk [vmem:[#allocation2 + $0x20] sm:$0xff] %vm248_vm2, %v5164_v5  ;;  %254 = vst.msk [vmem:[#allocation2 + $0x28] sm:$0xff] %vm248_vm2, %v5164_v5  ;;  %s4466_s24 = sshll.u32 %s6877_s16, 8  ;;  %v4339_v33 = vld [vmem:[%s6758_s1 + $0x8] sm:$0x3]  ;;  %v5355_v48 = vand.u32 %v4314_v29, %v5212_v4  ;;  %vm3920_vm6 = vcmask 31744   ;;  %s211_s21 = scalar_lea.vmem %s6760_s3, %s6877_s16 }
  0x10   : > { %255 = vst.msk [vmem:[#allocation2 + $0x30] sm:$0xff] %vm248_vm2, %v5164_v5  ;;  %256 = vst.msk [vmem:[#allocation2 + $0x38] sm:$0xff] %vm248_vm2, %v5164_v5  ;;  %4693 = vmatprep.subr.bf16.mxu0 %v495_v7  ;;  %5143 = vmatprep.subr.bf16.mxu1 %v495_v7  ;;  %s5291_s27 = scalar_lea.vmem %s6757_s0, %s4466_s24  ;;  %v5365_v52 = vand.u32 %v4339_v33, %v5212_v4  ;;  %s6487_s18 = scalar_lea.vmem %s6759_s2, %s4466_s24  ;;  %vm4022_vm7 = vcmask 24576  }
  0x11   : > { %257 = vst.msk [vmem:[#allocation2 + $0x40] sm:$0xff] %vm248_vm2, %v5164_v5  ;;  %258 = vst.msk [vmem:[#allocation2 + $0x48] sm:$0xff] %vm248_vm2, %v5164_v5  ;;  %4694 = vmatpush3.bf16.msra.mxu0 %v495_v7  ;;  %5144 = vmatpush3.bf16.msra.mxu1 %v495_v7  ;;  %v216_v10 = vld [vmem:[%s5291_s27] sm:$0xff]  ;;  %v230_v11 = vld [vmem:[%s5291_s27 + $0x70] sm:$0xff]  ;;  %s214_s24 = scalar_lea.vmem %s6761_s4, %s6877_s16 }
  0x12   : > { %259 = vst.msk [vmem:[#allocation2 + $0x50] sm:$0xff] %vm248_vm2, %v5164_v5  ;;  %260 = vst.msk [vmem:[#allocation2 + $0x58] sm:$0xff] %vm248_vm2, %v5164_v5  ;;  %v231_v12 = vld [vmem:[%s5291_s27 + $0x78] sm:$0xff]  ;;  %4743 = vmatprep.subr.bf16.mxu1 %v5280_v8  ;;  %4793 = vmatprep.subr.bf16.mxu0 %v5283_v9  ;;  %v232_v13 = vld [vmem:[%s5291_s27 + $0x80] sm:$0xff] }
  0x13   : > { %261 = vst.msk [vmem:[#allocation2 + $0x60] sm:$0xff] %vm248_vm2, %v5164_v5  ;;  %262 = vst.msk [vmem:[#allocation2 + $0x68] sm:$0xff] %vm248_vm2, %v5164_v5  ;;  %v217_v14 = vld [vmem:[%s5291_s27 + $0x8] sm:$0xff]  ;;  %v218_v15 = vld [vmem:[%s5291_s27 + $0x10] sm:$0xff] }
  0x14   : > { %263 = vst.msk [vmem:[#allocation2 + $0x70] sm:$0xff] %vm248_vm2, %v5164_v5  ;;  %264 = vst.msk [vmem:[#allocation2 + $0x78] sm:$0xff] %vm248_vm2, %v5164_v5  ;;  %v336_v16 = vld [vmem:[#allocation2] sm:$0xff]  ;;  %v337_v17 = vld [vmem:[#allocation2 + $0x8] sm:$0xff] }
  0x15   : > { %265 = vst.msk [vmem:[#allocation2 + $0x80] sm:$0xff] %vm248_vm2, %v5164_v5  ;;  %266 = vst.msk [vmem:[#allocation2 + $0x88] sm:$0xff] %vm248_vm2, %v5164_v5  ;;  %v5307_v18 = vpack.c.bf16 %v337_v17, %v336_v16  ;;  %v219_v19 = vld [vmem:[%s5291_s27 + $0x18] sm:$0xff]  ;;  %v233_v20 = vld [vmem:[%s5291_s27 + $0x88] sm:$0xff] }
  0x16   : > { %267 = vst.msk [vmem:[#allocation2 + $0x90] sm:$0xff] %vm248_vm2, %v5164_v5  ;;  %268 = vst.msk [vmem:[#allocation2 + $0x98] sm:$0xff] %vm248_vm2, %v5164_v5  ;;  %v234_v21 = vld [vmem:[%s5291_s27 + $0x90] sm:$0xff]  ;;  %v235_v23 = vld [vmem:[%s5291_s27 + $0x98] sm:$0xff] }
  0x17   : > { %269 = vst.msk [vmem:[#allocation2 + $0xa0] sm:$0xff] %vm248_vm2, %v5164_v5  ;;  %270 = vst.msk [vmem:[#allocation2 + $0xa8] sm:$0xff] %vm248_vm2, %v5164_v5  ;;  %v338_v22 = vld [vmem:[#allocation2 + $0x10] sm:$0xff]  ;;  %v220_v24 = vld [vmem:[%s5291_s27 + $0x20] sm:$0xff]  ;;  %4695 = vmatprep.mubr.msk.bf16.mxu0 %vm248_vm2, %v5307_v18 }
  0x18   : > { %271 = vst.msk [vmem:[#allocation2 + $0xb0] sm:$0xff] %vm248_vm2, %v5164_v5  ;;  %272 = vst.msk [vmem:[#allocation2 + $0xb8] sm:$0xff] %vm248_vm2, %v5164_v5  ;;  %v221_v25 = vld [vmem:[%s5291_s27 + $0x28] sm:$0xff]  ;;  %v236_v26 = vld [vmem:[%s5291_s27 + $0xa0] sm:$0xff] }
  0x19   : > { %273 = vst.msk [vmem:[#allocation2 + $0xc0] sm:$0xff] %vm248_vm2, %v5164_v5  ;;  %274 = vst.msk [vmem:[#allocation2 + $0xc8] sm:$0xff] %vm248_vm2, %v5164_v5  ;;  %v237_v27 = vld [vmem:[%s5291_s27 + $0xa8] sm:$0xff]  ;;  %v222_v28 = vld [vmem:[%s5291_s27 + $0x30] sm:$0xff] }
  0x1a   : > { %275 = vst.msk [vmem:[#allocation2 + $0xd0] sm:$0xff] %vm248_vm2, %v5164_v5  ;;  %276 = vst.msk [vmem:[#allocation2 + $0xd8] sm:$0xff] %vm248_vm2, %v5164_v5  ;;  %v223_v30 = vld [vmem:[%s5291_s27 + $0x38] sm:$0xff]  ;;  %v224_v31 = vld [vmem:[%s5291_s27 + $0x40] sm:$0xff] }
  0x1b   : > { %277 = vst.msk [vmem:[#allocation2 + $0xe0] sm:$0xff] %vm248_vm2, %v5164_v5  ;;  %278 = vst.msk [vmem:[#allocation2 + $0xe8] sm:$0xff] %vm248_vm2, %v5164_v5  ;;  %v238_v32 = vld [vmem:[%s5291_s27 + $0xb0] sm:$0xff]  ;;  %v239_v34 = vld [vmem:[%s5291_s27 + $0xb8] sm:$0xff] }
  0x1c   : > { %279 = vst.msk [vmem:[#allocation2 + $0xf0] sm:$0xff] %vm248_vm2, %v5164_v5  ;;  %280 = vst.msk [vmem:[#allocation2 + $0xf8] sm:$0xff] %vm248_vm2, %v5164_v5  ;;  %v240_v35 = vld [vmem:[%s5291_s27 + $0xc0] sm:$0xff]  ;;  %v225_v36 = vld [vmem:[%s5291_s27 + $0x48] sm:$0xff] }
  0x1d   : > { %281 = vst.msk [vmem:[#allocation2 + $0x100] sm:$0xff] %vm248_vm2, %v5164_v5  ;;  %282 = vst.msk [vmem:[#allocation2 + $0x108] sm:$0xff] %vm248_vm2, %v5164_v5  ;;  %v226_v47 = vld [vmem:[%s5291_s27 + $0x50] sm:$0xff]  ;;  %v244_v17 = vld [vmem:[%s5291_s27 + $0xe0] sm:$0xff] }
  0x1e   : > { %283 = vst.msk [vmem:[#allocation2 + $0x110] sm:$0xff] %vm248_vm2, %v5164_v5  ;;  %284 = vst.msk [vmem:[#allocation2 + $0x118] sm:$0xff] %vm248_vm2, %v5164_v5 }
  0x1f   : > { %285 = vst.msk [vmem:[#allocation2 + $0x120] sm:$0xff] %vm248_vm2, %v5164_v5  ;;  %286 = vst.msk [vmem:[#allocation2 + $0x128] sm:$0xff] %vm248_vm2, %v5164_v5 }
  0x20   : > { %287 = vst.msk [vmem:[#allocation2 + $0x130] sm:$0xff] %vm248_vm2, %v5164_v5  ;;  %288 = vst.msk [vmem:[#allocation2 + $0x138] sm:$0xff] %vm248_vm2, %v5164_v5 }
  0x21   : > { %289 = vst.msk [vmem:[#allocation2 + $0x140] sm:$0xff] %vm248_vm2, %v5164_v5  ;;  %290 = vst.msk [vmem:[#allocation2 + $0x148] sm:$0xff] %vm248_vm2, %v5164_v5 }
  0x22   : > { %291 = vst.msk [vmem:[#allocation2 + $0x150] sm:$0xff] %vm248_vm2, %v5164_v5  ;;  %292 = vst.msk [vmem:[#allocation2 + $0x158] sm:$0xff] %vm248_vm2, %v5164_v5 }
  0x23   : > { %293 = vst.msk [vmem:[#allocation2 + $0x160] sm:$0xff] %vm248_vm2, %v5164_v5  ;;  %294 = vst.msk [vmem:[#allocation2 + $0x168] sm:$0xff] %vm248_vm2, %v5164_v5 }
  0x24   : > { %295 = vst.msk [vmem:[#allocation2 + $0x170] sm:$0xff] %vm248_vm2, %v5164_v5  ;;  %296 = vst.msk [vmem:[#allocation2 + $0x178] sm:$0xff] %vm248_vm2, %v5164_v5 }
  0x25   : > { %297 = vst.msk [vmem:[#allocation2 + $0x180] sm:$0xff] %vm248_vm2, %v5164_v5  ;;  %298 = vst.msk [vmem:[#allocation2 + $0x188] sm:$0xff] %vm248_vm2, %v5164_v5 }
  0x26   : > { %299 = vst.msk [vmem:[#allocation2 + $0x190] sm:$0xff] %vm248_vm2, %v5164_v5  ;;  %300 = vst.msk [vmem:[#allocation2 + $0x198] sm:$0xff] %vm248_vm2, %v5164_v5 }
  0x27   : > { %301 = vst.msk [vmem:[#allocation2 + $0x1a0] sm:$0xff] %vm248_vm2, %v5164_v5  ;;  %302 = vst.msk [vmem:[#allocation2 + $0x1a8] sm:$0xff] %vm248_vm2, %v5164_v5  ;;  %v227_v5 = vld [vmem:[%s5291_s27 + $0x58] sm:$0xff] }
  0x28   : > { %304 = vst.msk [vmem:[#allocation2 + $0x19] sm:$0xff] %vm248_vm2, %v216_v10  ;;  %318 = vst.msk [vmem:[#allocation2 + $0xc1] sm:$0xff] %vm248_vm2, %v230_v11  ;;  %v242_v10 = vld [vmem:[%s5291_s27 + $0xd0] sm:$0xff]  ;;  %v243_v11 = vld [vmem:[%s5291_s27 + $0xd8] sm:$0xff] }
  0x29   : > { %319 = vst.msk [vmem:[#allocation2 + $0xc9] sm:$0xff] %vm248_vm2, %v231_v12  ;;  %320 = vst.msk [vmem:[#allocation2 + $0xd9] sm:$0xff] %vm248_vm2, %v232_v13  ;;  %v228_v12 = vld [vmem:[%s5291_s27 + $0x60] sm:$0xff]  ;;  %v229_v13 = vld [vmem:[%s5291_s27 + $0x68] sm:$0xff] }
  0x2a   : > { %305 = vst.msk [vmem:[#allocation2 + $0x21] sm:$0xff] %vm248_vm2, %v217_v14  ;;  %306 = vst.msk [vmem:[#allocation2 + $0x31] sm:$0xff] %vm248_vm2, %v218_v15 }
  0x2b   : > { %307 = vst.msk [vmem:[#allocation2 + $0x39] sm:$0xff] %vm248_vm2, %v219_v19  ;;  %321 = vst.msk [vmem:[#allocation2 + $0xe1] sm:$0xff] %vm248_vm2, %v233_v20  ;;  %v245_v19 = vld [vmem:[%s5291_s27 + $0xe8] sm:$0xff] }
  0x2c   : > { %322 = vst.msk [vmem:[#allocation2 + $0xf1] sm:$0xff] %vm248_vm2, %v234_v21  ;;  %323 = vst.msk [vmem:[#allocation2 + $0xf9] sm:$0xff] %vm248_vm2, %v235_v23 }
  0x2d   : > { %308 = vst.msk [vmem:[#allocation2 + $0x49] sm:$0xff] %vm248_vm2, %v220_v24  ;;  %309 = vst.msk [vmem:[#allocation2 + $0x51] sm:$0xff] %vm248_vm2, %v221_v25 }
  0x2e   : > { %324 = vst.msk [vmem:[#allocation2 + $0x109] sm:$0xff] %vm248_vm2, %v236_v26  ;;  %325 = vst.msk [vmem:[#allocation2 + $0x111] sm:$0xff] %vm248_vm2, %v237_v27 }
  0x2f   : > { %310 = vst.msk [vmem:[#allocation2 + $0x61] sm:$0xff] %vm248_vm2, %v222_v28  ;;  %311 = vst.msk [vmem:[#allocation2 + $0x69] sm:$0xff] %vm248_vm2, %v223_v30  ;;  %v339_v37 = vld [vmem:[#allocation2 + $0x18] sm:$0xff]  ;;  %v360_v38 = vld [vmem:[#allocation2 + $0xc0] sm:$0xff] }
  0x30   : > { %312 = vst.msk [vmem:[#allocation2 + $0x79] sm:$0xff] %vm248_vm2, %v224_v31  ;;  %326 = vst.msk [vmem:[#allocation2 + $0x121] sm:$0xff] %vm248_vm2, %v238_v32  ;;  %v361_v39 = vld [vmem:[#allocation2 + $0xc8] sm:$0xff]  ;;  %v5347_v40 = vpack.c.bf16 %v339_v37, %v338_v22  ;;  %v362_v42 = vld [vmem:[#allocation2 + $0xd0] sm:$0xff] }
  0x31   : > { %327 = vst.msk [vmem:[#allocation2 + $0x129] sm:$0xff] %vm248_vm2, %v239_v34  ;;  %328 = vst.msk [vmem:[#allocation2 + $0x139] sm:$0xff] %vm248_vm2, %v240_v35  ;;  %v5349_v41 = vpack.c.bf16 %v361_v39, %v360_v38  ;;  %v363_v43 = vld [vmem:[#allocation2 + $0xd8] sm:$0xff]  ;;  %v340_v44 = vld [vmem:[#allocation2 + $0x20] sm:$0xff] }
  0x32   : > { %313 = vst.msk [vmem:[#allocation2 + $0x81] sm:$0xff] %vm248_vm2, %v225_v36  ;;  %v5351_v45 = vpack.c.bf16 %v363_v43, %v362_v42  ;;  %v341_v46 = vld [vmem:[#allocation2 + $0x28] sm:$0xff]  ;;  %4696 = vmatmul.mubr.msk.bf16.vlgmr.msra.gmra.mxu0 %vm248_vm2, %v5347_v40  ;;  %v364_v50 = vld [vmem:[#allocation2 + $0xe0] sm:$0xff]  ;;  %314 = vst.msk [vmem:[#allocation2 + $0x91] sm:$0xff] %vm248_vm2, %v226_v47  ;;  %v1612_v14 = vrot.slane %v5347_v40, 4 }
  0x33   : > { %4719 = vmatprep.mubr.msk.bf16.mxu1 %vm248_vm2, %v5349_v41  ;;  %v5361_v49 = vpack.c.bf16 %v341_v46, %v340_v44  ;;  %v365_v51 = vld [vmem:[#allocation2 + $0xe8] sm:$0xff]  ;;  %4794 = vmatpush3.bf16.msra.mxu0 %v5283_v9  ;;  %v342_v53 = vld [vmem:[#allocation2 + $0x30] sm:$0xff]  ;;  %v343_v54 = vld [vmem:[#allocation2 + $0x38] sm:$0xff]  ;;  %315 = vst.msk [vmem:[#allocation2 + $0x99] sm:$0xff] %vm248_vm2, %v227_v5 }
  0x34   : > { %4720 = vmatmul.mubr.msk.bf16.vlgmr.msra.gmra.mxu1 %vm248_vm2, %v5351_v45  ;;  %v5370_v55 = vpack.c.bf16 %v365_v51, %v364_v50  ;;  %v366_v56 = vld [vmem:[#allocation2 + $0xf0] sm:$0xff]  ;;  %v367_v57 = vld [vmem:[#allocation2 + $0xf8] sm:$0xff]  ;;  %v344_v58 = vld [vmem:[#allocation2 + $0x40] sm:$0xff]  ;;  %v5378_v62 = vpack.c.bf16 %v343_v54, %v342_v53  ;;  %4893 = vmatprep.subr.bf16.mxu0 %v5365_v52  ;;  %330 = vst.msk [vmem:[#allocation2 + $0x151] sm:$0xff] %vm248_vm2, %v242_v10 }
  0x35   : > { %4744 = vmatpush3.bf16.msra.mxu1 %v5280_v8  ;;  %4699 = vmatprep.mubr.msk.bf16.mxu0 %vm248_vm2, %v5361_v49  ;;  %v345_v59 = vld [vmem:[#allocation2 + $0x48] sm:$0xff]  ;;  %v368_v60 = vld [vmem:[#allocation2 + $0x100] sm:$0xff]  ;;  %v5381_v63 = vpack.c.bf16 %v367_v57, %v366_v56  ;;  %v346_v2 = vld [vmem:[#allocation2 + $0x50] sm:$0xff]  ;;  %v1613_v15 = vrot.slane %v5361_v49, 4  ;;  %331 = vst.msk [vmem:[#allocation2 + $0x159] sm:$0xff] %vm248_vm2, %v243_v11 }
  0x36   : > { %4723 = vmatprep.mubr.msk.bf16.mxu1 %vm248_vm2, %v5370_v55  ;;  %v369_v61 = vld [vmem:[#allocation2 + $0x108] sm:$0xff]  ;;  %4843 = vmatprep.subr.bf16.mxu1 %v5355_v48  ;;  %6795 = vst [vmem:[#allocation3_spill] sm:$0xff] %v5378_v62  ;;  %v5383_v0 = vpack.c.bf16 %v345_v59, %v344_v58  ;;  %v347_v3 = vld [vmem:[#allocation2 + $0x58] sm:$0xff]  ;;  %v370_v6 = vld [vmem:[#allocation2 + $0x110] sm:$0xff] }
  0x37   : > { %v5385_v1 = vpack.c.bf16 %v369_v61, %v368_v60  ;;  %v371_v7 = vld [vmem:[#allocation2 + $0x118] sm:$0xff]  ;;  %v348_v8 = vld [vmem:[#allocation2 + $0x60] sm:$0xff]  ;;  %v241_v9 = vld [vmem:[%s5291_s27 + $0xc8] sm:$0xff]  ;;  %316 = vst.msk [vmem:[#allocation2 + $0xa9] sm:$0xff] %vm248_vm2, %v228_v12  ;;  %v5416_v22 = vsel %vm1611_vm3, %v1612_v14, %v1613_v15  ;;  %v5418_v23 = vpack.c.bf16 %v347_v3, %v346_v2 }
  0x38   : > { %6796 = vst [vmem:[#allocation4_spill] sm:$0xff] %v5383_v0  ;;  %329 = vst.msk [vmem:[#allocation2 + $0x141] sm:$0xff] %vm248_vm2, %v241_v9  ;;  %v349_v16 = vld [vmem:[#allocation2 + $0x68] sm:$0xff]  ;;  %v372_v20 = vld [vmem:[#allocation2 + $0x120] sm:$0xff]  ;;  %v5420_v24 = vpack.c.bf16 %v371_v7, %v370_v6 }
  0x39   : > { %317 = vst.msk [vmem:[#allocation2 + $0xb1] sm:$0xff] %vm248_vm2, %v229_v13  ;;  %v373_v21 = vld [vmem:[#allocation2 + $0x128] sm:$0xff]  ;;  %332 = vst.msk [vmem:[#allocation2 + $0x169] sm:$0xff] %vm248_vm2, %v244_v17  ;;  %v5422_v25 = vpack.c.bf16 %v349_v16, %v348_v8  ;;  %v350_v27 = vld [vmem:[#allocation2 + $0x70] sm:$0xff] }
  0x3a   : > { %4700 = vmatmul.mubr.msk.bf16.gmra.mxu0 %vm248_vm2, %v5378_v62  ;;  %333 = vst.msk [vmem:[#allocation2 + $0x171] sm:$0xff] %vm248_vm2, %v245_v19  ;;  %6797 = vst [vmem:[#allocation5_spill] sm:$0xff] %v5418_v23  ;;  %v5424_v26 = vpack.c.bf16 %v373_v21, %v372_v20  ;;  %v351_v28 = vld [vmem:[#allocation2 + $0x78] sm:$0xff]  ;;  %v374_v29 = vld [vmem:[#allocation2 + $0x130] sm:$0xff] }
  0x3b   : > { %4703 = vmatprep.mubr.msk.bf16.mxu0 %vm248_vm2, %v5383_v0  ;;  %6798 = vst [vmem:[#allocation6_spill] sm:$0xff] %v5422_v25  ;;  %v375_v30 = vld [vmem:[#allocation2 + $0x138] sm:$0xff]  ;;  %v352_v31 = vld [vmem:[#allocation2 + $0x80] sm:$0xff]  ;;  %v353_v32 = vld [vmem:[#allocation2 + $0x88] sm:$0xff]  ;;  %v5434_v35 = vpack.c.bf16 %v351_v28, %v350_v27 }
  0x3c   : > { %4724 = vmatmul.mubr.msk.bf16.gmra.mxu1 %vm248_vm2, %v5381_v63  ;;  %v5436_v36 = vpack.c.bf16 %v375_v30, %v374_v29  ;;  %v5438_v37 = vpack.c.bf16 %v353_v32, %v352_v31  ;;  %v354_v39 = vld [vmem:[#allocation2 + $0x90] sm:$0xff]  ;;  %v355_v42 = vld [vmem:[#allocation2 + $0x98] sm:$0xff]  ;;  %v356_v43 = vld [vmem:[#allocation2 + $0xa0] sm:$0xff]  ;;  %v1633_v32 = vrot.slane %v5349_v41, 4 }
  0x3d   : > { %4727 = vmatprep.mubr.msk.bf16.mxu1 %vm248_vm2, %v5385_v1  ;;  %6799 = vst [vmem:[#allocation7_spill] sm:$0xff] %v5434_v35  ;;  %v378_v44 = vld [vmem:[#allocation2 + $0x150] sm:$0xff]  ;;  %v379_v46 = vld [vmem:[#allocation2 + $0x158] sm:$0xff]  ;;  %v380_v50 = vld [vmem:[#allocation2 + $0x160] sm:$0xff]  ;;  %v5450_v53 = vpack.c.bf16 %v355_v42, %v354_v39  ;;  %v1623_v17 = vrot.slane %v5434_v35, 4  ;;  %v1635_v39 = vrot.slane %v5351_v45, 4 }
  0x3e   : > { %v357_v47 = vld [vmem:[#allocation2 + $0xa8] sm:$0xff]  ;;  %v5452_v54 = vpack.c.bf16 %v379_v46, %v378_v44  ;;  %v4439_v11 = vld [vmem:[%s6758_s1 + $0x10] sm:$0x3]  ;;  %v1625_v19 = vrot.slane %v5438_v37, 4  ;;  %v1637_v42 = vrot.slane %v5370_v55, 4  ;;  %v1639_v46 = vrot.slane %v5381_v63, 4 }
  0x3f   : > { %v376_v33 = vld [vmem:[#allocation2 + $0x140] sm:$0xff]  ;;  %v377_v34 = vld [vmem:[#allocation2 + $0x148] sm:$0xff]  ;;  %v5454_v56 = vpack.c.bf16 %v357_v47, %v356_v43  ;;  %v5616_v14 = vand.u32 %v4439_v11, %v5212_v4  ;;  %v1627_v27 = vrot.slane %v5450_v53, 4  ;;  %v5695_v43 = vsel %vm1611_vm3, %v1633_v32, %v1635_v39 }
  0x40   : > { %v5440_v38 = vpack.c.bf16 %v377_v34, %v376_v33  ;;  %v381_v51 = vld [vmem:[#allocation2 + $0x168] sm:$0xff]  ;;  %6801 = vst [vmem:[#allocation9_spill] sm:$0xff] %v5452_v54  ;;  %v358_v58 = vld [vmem:[#allocation2 + $0xb0] sm:$0xff]  ;;  %v359_v59 = vld [vmem:[#allocation2 + $0xb8] sm:$0xff]  ;;  %v5650_v21 = vsel %vm1611_vm3, %v1623_v17, %v1625_v19  ;;  %v5698_v44 = vsel %vm1611_vm3, %v1635_v39, %v1637_v42  ;;  %v1641_v47 = vrot.slane %v5385_v1, 4 }
  0x41   : > { %v5456_v57 = vpack.c.bf16 %v381_v51, %v380_v50  ;;  %v382_v60 = vld [vmem:[#allocation2 + $0x170] sm:$0xff]  ;;  %v383_v61 = vld [vmem:[#allocation2 + $0x178] sm:$0xff]  ;;  %v5466_v2 = vpack.c.bf16 %v359_v59, %v358_v58  ;;  %v4364_v5 = vld [vmem:[%s6758_s1 + $0xa] sm:$0x3]  ;;  %v1629_v28 = vrot.slane %v5454_v56, 4  ;;  %v5663_v29 = vsel %vm1611_vm3, %v1625_v19, %v1627_v27 }
  0x42   : > { %4704 = vmatmul.mubr.msk.bf16.gmra.mxu0 %vm248_vm2, %v5418_v23  ;;  %6800 = vst [vmem:[#allocation8_spill] sm:$0xff] %v5440_v38  ;;  %v5468_v3 = vpack.c.bf16 %v383_v61, %v382_v60  ;;  %v4389_v6 = vld [vmem:[%s6758_s1 + $0xc] sm:$0x3]  ;;  %v5485_v7 = vand.u32 %v4364_v5, %v5212_v4  ;;  %v4414_v9 = vld [vmem:[%s6758_s1 + $0xe] sm:$0x3]  ;;  %v5711_v50 = vsel %vm1611_vm3, %v1637_v42, %v1639_v46  ;;  %v1643_v60 = vrot.slane %v5420_v24, 4 }
  0x43   : > { %4707 = vmatprep.mubr.msk.bf16.mxu0 %vm248_vm2, %v5422_v25  ;;  %6802 = vst [vmem:[#allocation10_spill] sm:$0xff] %v5456_v57  ;;  %v5490_v8 = vand.u32 %v4389_v6, %v5212_v4  ;;  %v5611_v13 = vand.u32 %v4414_v9, %v5212_v4  ;;  %v5666_v30 = vsel %vm1611_vm3, %v1627_v27, %v1629_v28  ;;  %v1631_v31 = vrot.slane %v5466_v2, 4 }
  0x44   : > { %4728 = vmatmul.mubr.msk.bf16.gmra.mxu1 %vm248_vm2, %v5420_v24  ;;  %6803 = vst [vmem:[#allocation11_spill] sm:$0xff] %v5468_v3  ;;  %v5714_v51 = vsel %vm1611_vm3, %v1639_v46, %v1641_v47  ;;  %v1645_v5 = vrot.slane %v5424_v26, 4 }
  0x45   : > { %4731 = vmatprep.mubr.msk.bf16.mxu1 %vm248_vm2, %v5424_v26  ;;  %v5679_v33 = vsel %vm1611_vm3, %v1629_v28, %v1631_v31  ;;  %v5682_v34 = vsel %vm1611_vm3, %v1631_v31, %v1633_v32 }
  0x4a   : > { %4708 = vmatmul.mubr.msk.bf16.gmra.mxu0 %vm248_vm2, %v5434_v35 }
  0x4b   : > { %4711 = vmatprep.mubr.msk.bf16.mxu0 %vm248_vm2, %v5438_v37 }
  0x4c   : > { %4732 = vmatmul.mubr.msk.bf16.gmra.mxu1 %vm248_vm2, %v5436_v36 }
  0x4d   : > { %4735 = vmatprep.mubr.msk.bf16.mxu1 %vm248_vm2, %v5440_v38 }
  0x52   : > { %4712 = vmatmul.mubr.msk.bf16.gmra.mxu0 %vm248_vm2, %v5450_v53 }
  0x53   : > { %4715 = vmatprep.mubr.msk.bf16.mxu0 %vm248_vm2, %v5454_v56 }
  0x54   : > { %4736 = vmatmul.mubr.msk.bf16.gmra.mxu1 %vm248_vm2, %v5452_v54 }
  0x55   : > { %4739 = vmatprep.mubr.msk.bf16.mxu1 %vm248_vm2, %v5456_v57 }
  0x5a   : > { %4716 = vmatmul.mubr.msk.bf16.gmra.mxu0 %vm248_vm2, %v5466_v2 }
  0x5b   : > { %4795 = vmatprep.mubr.msk.bf16.mxu0 %vm248_vm2, %v5307_v18 }
  0x5c   : > { %4740 = vmatmul.mubr.msk.bf16.gmra.mxu1 %vm248_vm2, %v5468_v3 }
  0x5d   : > { %4745 = vmatprep.mubr.msk.bf16.mxu1 %vm248_vm2, %v5307_v18  ;;  %v246_v18 = vld [vmem:[%s5291_s27 + $0xf0] sm:$0xff] }
  0x5e   : > { %334 = vst.msk [vmem:[#allocation2 + $0x181] sm:$0xff] %vm248_vm2, %v246_v18  ;;  %v5735_v18 = vsel %vm1611_vm3, %v1641_v47, %v1643_v60 }
  0x62   : > { %4796 = vmatmul.mubr.msk.bf16.vlgmr.msra.gmra.mxu0 %vm248_vm2, %v5347_v40 }
  0x63   : > { %4894 = vmatpush3.bf16.msra.mxu0 %v5365_v52  ;;  %4799 = vmatprep.mubr.msk.bf16.mxu0 %vm248_vm2, %v5361_v49  ;;  %v1617_v52 = vrot.slane %v5383_v0, 4 }
  0x64   : > { %4746 = vmatmul.mubr.msk.bf16.vlgmr.msra.gmra.mxu1 %vm248_vm2, %v5347_v40  ;;  %4993 = vmatprep.subr.bf16.mxu0 %v5490_v8  ;;  %v247_v40 = vld [vmem:[%s5291_s27 + $0xf8] sm:$0xff] }
  0x65   : > { %4844 = vmatpush3.bf16.msra.mxu1 %v5355_v48  ;;  %4749 = vmatprep.mubr.msk.bf16.mxu1 %vm248_vm2, %v5361_v49  ;;  %335 = vst.msk [vmem:[#allocation2 + $0x189] sm:$0xff] %vm248_vm2, %v247_v40  ;;  %v1615_v48 = vrot.slane %v5378_v62, 4  ;;  %v1619_v49 = vrot.slane %v5418_v23, 4 }
  0x66   : > { %4943 = vmatprep.subr.bf16.mxu1 %v5485_v7 }
  0x67   : > { %v5602_v10 = vsel %vm1611_vm3, %v1613_v15, %v1615_v48  ;;  %v5608_v12 = vsel %vm1611_vm3, %v1615_v48, %v1617_v52  ;;  %v1621_v15 = vrot.slane %v5422_v25, 4  ;;  %v5631_v4 = vsel %vm1611_vm3, %v1617_v52, %v1619_v49 }
  0x68   : > { %v5740_v48 = vsel %vm1611_vm3, %v1643_v60, %v1645_v5  ;;  %v1653_v60 = vrot.slane %v5456_v57, 4 }
  0x69   : > { %v5634_v16 = vsel %vm1611_vm3, %v1619_v49, %v1621_v15  ;;  %v5647_v20 = vsel %vm1611_vm3, %v1621_v15, %v1623_v17  ;;  %6806 = vst [vmem:[#allocation14_spill] sm:$0xff] %v5740_v48  ;;  %v1647_v49 = vrot.slane %v5436_v36, 4  ;;  %v1649_v17 = vrot.slane %v5440_v38, 4 }
  0x6a   : > { %4800 = vmatmul.mubr.msk.bf16.gmra.mxu0 %vm248_vm2, %v5378_v62 }
  0x6b   : > { %4803 = vmatprep.mubr.msk.bf16.mxu0 %vm248_vm2, %v5383_v0  ;;  %v5767_v31 = vsel %vm1611_vm3, %v1645_v5, %v1647_v49  ;;  %v5770_v39 = vsel %vm1611_vm3, %v1647_v49, %v1649_v17  ;;  %v384_v49 = vld [vmem:[#allocation2 + $0x180] sm:$0xff] }
  0x6c   : > { %4750 = vmatmul.mubr.msk.bf16.gmra.mxu1 %vm248_vm2, %v5378_v62  ;;  %6811 = vst [vmem:[#allocation19_spill] sm:$0xff] %v5767_v31  ;;  %6812 = vst [vmem:[#allocation20_spill] sm:$0xff] %v5770_v39 }
  0x6d   : > { %4753 = vmatprep.mubr.msk.bf16.mxu1 %vm248_vm2, %v5383_v0 }
  0x72   : > { %4804 = vmatmul.mubr.msk.bf16.gmra.mxu0 %vm248_vm2, %v5418_v23 }
  0x73   : > { %4807 = vmatprep.mubr.msk.bf16.mxu0 %vm248_vm2, %v5422_v25 }
  0x74   : > { %4754 = vmatmul.mubr.msk.bf16.gmra.mxu1 %vm248_vm2, %v5418_v23 }
  0x75   : > { %4757 = vmatprep.mubr.msk.bf16.mxu1 %vm248_vm2, %v5422_v25 }
  0x7a   : > { %4808 = vmatmul.mubr.msk.bf16.gmra.mxu0 %vm248_vm2, %v5434_v35 }
  0x7b   : > { %4811 = vmatprep.mubr.msk.bf16.mxu0 %vm248_vm2, %v5438_v37 }
  0x7c   : > { %4758 = vmatmul.mubr.msk.bf16.gmra.mxu1 %vm248_vm2, %v5434_v35 }
  0x7d   : > { %4761 = vmatprep.mubr.msk.bf16.mxu1 %vm248_vm2, %v5438_v37 }
  0x82   : > { %4812 = vmatmul.mubr.msk.bf16.gmra.mxu0 %vm248_vm2, %v5450_v53 }
  0x83   : > { %4815 = vmatprep.mubr.msk.bf16.mxu0 %vm248_vm2, %v5454_v56 }
  0x84   : > { %4762 = vmatmul.mubr.msk.bf16.gmra.mxu1 %vm248_vm2, %v5450_v53 }
  0x85   : > { %4765 = vmatprep.mubr.msk.bf16.mxu1 %vm248_vm2, %v5454_v56 }
  0x8a   : > { %4816 = vmatmul.mubr.msk.bf16.gmra.mxu0 %vm248_vm2, %v5466_v2 }
  0x8b   : > { %4819 = vmatprep.mubr.msk.bf16.mxu0 %vm248_vm2, %v5349_v41 }
  0x8c   : > { %4766 = vmatmul.mubr.msk.bf16.gmra.mxu1 %vm248_vm2, %v5466_v2 }
  0x8d   : > { %4769 = vmatprep.mubr.msk.bf16.mxu1 %vm248_vm2, %v5349_v41 }
  0x92   : > { %4820 = vmatmul.mubr.msk.bf16.gmra.mxu0 %vm248_vm2, %v5351_v45 }
  0x93   : > { %4823 = vmatprep.mubr.msk.bf16.mxu0 %vm248_vm2, %v5370_v55 }
  0x94   : > { %4770 = vmatmul.mubr.msk.bf16.gmra.mxu1 %vm248_vm2, %v5351_v45 }
  0x95   : > { %4773 = vmatprep.mubr.msk.bf16.mxu1 %vm248_vm2, %v5370_v55 }
  0x9a   : > { %4824 = vmatmul.mubr.msk.bf16.gmra.mxu0 %vm248_vm2, %v5381_v63 }
  0x9b   : > { %4827 = vmatprep.mubr.msk.bf16.mxu0 %vm248_vm2, %v5385_v1 }
  0x9c   : > { %4774 = vmatmul.mubr.msk.bf16.gmra.mxu1 %vm248_vm2, %v5381_v63 }
  0x9d   : > { %4777 = vmatprep.mubr.msk.bf16.mxu1 %vm248_vm2, %v5385_v1 }
  0xa2   : > { %4828 = vmatmul.mubr.msk.bf16.gmra.mxu0 %vm248_vm2, %v5420_v24 }
  0xa3   : > { %4831 = vmatprep.mubr.msk.bf16.mxu0 %vm248_vm2, %v5424_v26 }
  0xa4   : > { %4778 = vmatmul.mubr.msk.bf16.gmra.mxu1 %vm248_vm2, %v5420_v24 }
  0xa5   : > { %4781 = vmatprep.mubr.msk.bf16.mxu1 %vm248_vm2, %v5424_v26 }
  0xaa   : > { %4832 = vmatmul.mubr.msk.bf16.gmra.mxu0 %vm248_vm2, %v5436_v36 }
  0xab   : > { %4835 = vmatprep.mubr.msk.bf16.mxu0 %vm248_vm2, %v5440_v38 }
  0xac   : > { %4782 = vmatmul.mubr.msk.bf16.gmra.mxu1 %vm248_vm2, %v5436_v36 }
  0xad   : > { %4785 = vmatprep.mubr.msk.bf16.mxu1 %vm248_vm2, %v5440_v38 }
  0xb2   : > { %4836 = vmatmul.mubr.msk.bf16.gmra.mxu0 %vm248_vm2, %v5452_v54 }
  0xb3   : > { %4839 = vmatprep.mubr.msk.bf16.mxu0 %vm248_vm2, %v5456_v57 }
  0xb4   : > { %4786 = vmatmul.mubr.msk.bf16.gmra.mxu1 %vm248_vm2, %v5452_v54 }
  0xb5   : > { %4789 = vmatprep.mubr.msk.bf16.mxu1 %vm248_vm2, %v5456_v57 }
  0xba   : > { %4840 = vmatmul.mubr.msk.bf16.gmra.mxu0 %vm248_vm2, %v5468_v3 }
  0xbb   : > { %4895 = vmatprep.mubr.msk.bf16.mxu0 %vm248_vm2, %v5416_v22 }
  0xbc   : > { %4790 = vmatmul.mubr.msk.bf16.gmra.mxu1 %vm248_vm2, %v5468_v3 }
  0xbd   : > { %4845 = vmatprep.mubr.msk.bf16.mxu1 %vm248_vm2, %v5416_v22 }
  0xc2   : > { %4896 = vmatmul.mubr.msk.bf16.vlgmr.msra.gmra.mxu0 %vm248_vm2, %v5602_v10 }
  0xc3   : > { %4994 = vmatpush3.bf16.msra.mxu0 %v5490_v8  ;;  %4899 = vmatprep.mubr.msk.bf16.mxu0 %vm248_vm2, %v5608_v12 }
  0xc4   : > { %4846 = vmatmul.mubr.msk.bf16.vlgmr.msra.gmra.mxu1 %vm248_vm2, %v5602_v10  ;;  %5093 = vmatprep.subr.bf16.mxu0 %v5616_v14 }
  0xc5   : > { %4944 = vmatpush3.bf16.msra.mxu1 %v5485_v7  ;;  %4849 = vmatprep.mubr.msk.bf16.mxu1 %vm248_vm2, %v5608_v12 }
  0xc6   : > { %5043 = vmatprep.subr.bf16.mxu1 %v5611_v13 }
  0xca   : > { %4900 = vmatmul.mubr.msk.bf16.gmra.mxu0 %vm248_vm2, %v5631_v4 }
  0xcb   : > { %4903 = vmatprep.mubr.msk.bf16.mxu0 %vm248_vm2, %v5634_v16 }
  0xcc   : > { %4850 = vmatmul.mubr.msk.bf16.gmra.mxu1 %vm248_vm2, %v5631_v4 }
  0xcd   : > { %4853 = vmatprep.mubr.msk.bf16.mxu1 %vm248_vm2, %v5634_v16 }
  0xd2   : > { %4904 = vmatmul.mubr.msk.bf16.gmra.mxu0 %vm248_vm2, %v5647_v20 }
  0xd3   : > { %4907 = vmatprep.mubr.msk.bf16.mxu0 %vm248_vm2, %v5650_v21 }
  0xd4   : > { %4854 = vmatmul.mubr.msk.bf16.gmra.mxu1 %vm248_vm2, %v5647_v20 }
  0xd5   : > { %4857 = vmatprep.mubr.msk.bf16.mxu1 %vm248_vm2, %v5650_v21 }
  0xda   : > { %4908 = vmatmul.mubr.msk.bf16.gmra.mxu0 %vm248_vm2, %v5663_v29 }
  0xdb   : > { %4911 = vmatprep.mubr.msk.bf16.mxu0 %vm248_vm2, %v5666_v30 }
  0xdc   : > { %4858 = vmatmul.mubr.msk.bf16.gmra.mxu1 %vm248_vm2, %v5663_v29 }
  0xdd   : > { %4861 = vmatprep.mubr.msk.bf16.mxu1 %vm248_vm2, %v5666_v30 }
  0xe2   : > { %4912 = vmatmul.mubr.msk.bf16.gmra.mxu0 %vm248_vm2, %v5679_v33 }
  0xe3   : > { %4915 = vmatprep.mubr.msk.bf16.mxu0 %vm248_vm2, %v5682_v34 }
  0xe4   : > { %4862 = vmatmul.mubr.msk.bf16.gmra.mxu1 %vm248_vm2, %v5679_v33 }
  0xe5   : > { %4865 = vmatprep.mubr.msk.bf16.mxu1 %vm248_vm2, %v5682_v34 }
  0xea   : > { %4916 = vmatmul.mubr.msk.bf16.gmra.mxu0 %vm248_vm2, %v5695_v43 }
  0xeb   : > { %4919 = vmatprep.mubr.msk.bf16.mxu0 %vm248_vm2, %v5698_v44 }
  0xec   : > { %4866 = vmatmul.mubr.msk.bf16.gmra.mxu1 %vm248_vm2, %v5695_v43 }
  0xed   : > { %4869 = vmatprep.mubr.msk.bf16.mxu1 %vm248_vm2, %v5698_v44 }
  0xf2   : > { %v4697_v58 = vpop.f32.mrf.mxu0  ;;  %4920 = vmatmul.mubr.msk.bf16.gmra.mxu0 %vm248_vm2, %v5711_v50 }
  0xf3   : > { %4923 = vmatprep.mubr.msk.bf16.mxu0 %vm248_vm2, %v5714_v51  ;;  %v1651_v58 = vrot.slane %v5452_v54, 4 }
  0xf4   : > { %v4721_v59 = vpop.f32.mrf.mxu1  ;;  %4870 = vmatmul.mubr.msk.bf16.gmra.mxu1 %vm248_vm2, %v5711_v50  ;;  %v5723_v61 = vpop.f32.mrf.mxu0 }
  0xf5   : > { %4873 = vmatprep.mubr.msk.bf16.mxu1 %vm248_vm2, %v5714_v51 }
  0xf6   : > { %v5728_v6 = vpop.f32.mrf.mxu1  ;;  %v5730_v7 = vpop.f32.mrf.mxu0 }
  0xf7   : > { %6804 = vst [vmem:[#allocation12_spill] sm:$0xff] %v5728_v6 }
  0xf8   : > { %v5732_v8 = vpop.f32.mrf.mxu1  ;;  %v5737_v40 = vpop.f32.mrf.mxu0 }
  0xf9   : > { %6805 = vst [vmem:[#allocation13_spill] sm:$0xff] %v5732_v8 }
  0xfa   : > { %v5742_v52 = vpop.f32.mrf.mxu1  ;;  %v5744_v9 = vpop.f32.mrf.mxu0  ;;  %4924 = vmatmul.mubr.msk.bf16.gmra.mxu0 %vm248_vm2, %v5735_v18 }
  0xfb   : > { %6807 = vst [vmem:[#allocation15_spill] sm:$0xff] %v5742_v52  ;;  %4927 = vmatprep.mubr.msk.bf16.mxu0 %vm248_vm2, %v5740_v48 }
  0xfc   : > { %v5748_v11 = vpop.f32.mrf.mxu1  ;;  %4874 = vmatmul.mubr.msk.bf16.gmra.mxu1 %vm248_vm2, %v5735_v18  ;;  %v5755_v15 = vpop.f32.mrf.mxu0 }
  0xfd   : > { %6808 = vst [vmem:[#allocation16_spill] sm:$0xff] %v5748_v11  ;;  %4877 = vmatprep.mubr.msk.bf16.mxu1 %vm248_vm2, %v5740_v48  ;;  %v5792_v11 = vsel %vm1611_vm3, %v1651_v58, %v1653_v60 }
  0xfe   : > { %v5760_v19 = vpop.f32.mrf.mxu1  ;;  %v5762_v27 = vpop.f32.mrf.mxu0  ;;  %6815 = vst [vmem:[#allocation23_spill] sm:$0xff] %v5792_v11 }
  0xff   : > { %6809 = vst [vmem:[#allocation17_spill] sm:$0xff] %v5760_v19 }
 0x100   : > { %v5764_v28 = vpop.f32.mrf.mxu1  ;;  %v549_v32 = vpop.f32.mrf.mxu0 }
 0x101   : > { %6810 = vst [vmem:[#allocation18_spill] sm:$0xff] %v5764_v28  ;;  %v385_v32 = vld [vmem:[#allocation2 + $0x188] sm:$0xff] }
 0x102   : > { %v637_v42 = vpop.f32.mrf.mxu1  ;;  %v5772_v46 = vpop.f32.mrf.mxu0  ;;  %4928 = vmatmul.mubr.msk.bf16.gmra.mxu0 %vm248_vm2, %v5767_v31  ;;  %v5794_v54 = vpack.c.bf16 %v385_v32, %v384_v49  ;;  %v387_v49 = vld [vmem:[#allocation2 + $0x198] sm:$0xff] }
 0x103   : > { %4931 = vmatprep.mubr.msk.bf16.mxu0 %vm248_vm2, %v5770_v39 }
 0x104   : > { %v5776_v47 = vpop.f32.mrf.mxu1  ;;  %4878 = vmatmul.mubr.msk.bf16.gmra.mxu1 %vm248_vm2, %v5767_v31  ;;  %v561_v59 = vpop.f32.mrf.mxu0  ;;  %6816 = vst [vmem:[#allocation24_spill] sm:$0xff] %v5794_v54 }
 0x105   : > { %6813 = vst [vmem:[#allocation21_spill] sm:$0xff] %v5776_v47  ;;  %4881 = vmatprep.mubr.msk.bf16.mxu1 %vm248_vm2, %v5770_v39  ;;  %v5787_v47 = vsel %vm1611_vm3, %v1649_v17, %v1651_v58  ;;  %v1655_v17 = vrot.slane %v5468_v3, 4  ;;  %v1657_v58 = vrot.slane %v5794_v54, 4 }
 0x106   : > { %v649_v5 = vpop.f32.mrf.mxu1  ;;  %v4706_v42 = vpop.f32.mrf.mxu0  ;;  %6814 = vst [vmem:[#allocation22_spill] sm:$0xff] %v5787_v47 }
 0x107   : > { %v5824_v57 = vsel %vm1611_vm3, %v1655_v17, %v1657_v58 }
 0x108   : > { %v4730_v28 = vpop.f32.mrf.mxu1  ;;  %v5789_v19 = vpop.f32.mrf.mxu0  ;;  %6822 = vst [vmem:[#allocation30_spill] sm:$0xff] %v5824_v57 }
 0x10a   : > { %v5796_v59 = vpop.f32.mrf.mxu1  ;;  %v4709_v39 = vpop.f32.mrf.mxu0  ;;  %4932 = vmatmul.mubr.msk.bf16.gmra.mxu0 %vm248_vm2, %v5787_v47 }
 0x10b   : > { %6817 = vst [vmem:[#allocation25_spill] sm:$0xff] %v5796_v59  ;;  %4935 = vmatprep.mubr.msk.bf16.mxu0 %vm248_vm2, %v5792_v11  ;;  %v386_v39 = vld [vmem:[#allocation2 + $0x190] sm:$0xff]  ;;  %v5817_v59 = vsel %vm1611_vm3, %v1653_v60, %v1655_v17 }
 0x10c   : > { %v4733_v5 = vpop.f32.mrf.mxu1  ;;  %4882 = vmatmul.mubr.msk.bf16.gmra.mxu1 %vm248_vm2, %v5787_v47  ;;  %v5805_v28 = vpop.f32.mrf.mxu0  ;;  %6820 = vst [vmem:[#allocation28_spill] sm:$0xff] %v5817_v59  ;;  %v5819_v47 = vpack.c.bf16 %v387_v49, %v386_v39 }
 0x10d   : > { %4885 = vmatprep.mubr.msk.bf16.mxu1 %vm248_vm2, %v5792_v11 }
 0x10e   : > { %v5810_v32 = vpop.f32.mrf.mxu1  ;;  %v5812_v42 = vpop.f32.mrf.mxu0  ;;  %6821 = vst [vmem:[#allocation29_spill] sm:$0xff] %v5819_v47  ;;  %v1659_v60 = vrot.slane %v5819_v47, 4 }
 0x10f   : > { %6818 = vst [vmem:[#allocation26_spill] sm:$0xff] %v5810_v32 }
 0x110   : > { %v5814_v5 = vpop.f32.mrf.mxu1  ;;  %v5821_v3 = vpop.f32.mrf.mxu0 }
 0x111   : > { %6819 = vst [vmem:[#allocation27_spill] sm:$0xff] %v5814_v5 }
 0x112   : > { %v5826_v11 = vpop.f32.mrf.mxu1  ;;  %v5828_v54 = vpop.f32.mrf.mxu0  ;;  %4936 = vmatmul.mubr.msk.bf16.gmra.mxu0 %vm248_vm2, %v5817_v59 }
 0x113   : > { %6823 = vst [vmem:[#allocation31_spill] sm:$0xff] %v5826_v11  ;;  %4939 = vmatprep.mubr.msk.bf16.mxu0 %vm248_vm2, %v5824_v57 }
 0x114   : > { %v5832_v32 = vpop.f32.mrf.mxu1  ;;  %4886 = vmatmul.mubr.msk.bf16.gmra.mxu1 %vm248_vm2, %v5817_v59  ;;  %v5839_v39 = vpop.f32.mrf.mxu0 }
 0x115   : > { %6824 = vst [vmem:[#allocation32_spill] sm:$0xff] %v5832_v32  ;;  %4889 = vmatprep.mubr.msk.bf16.mxu1 %vm248_vm2, %v5824_v57  ;;  %v5850_v32 = vsel %vm1611_vm3, %v1657_v58, %v1659_v60 }
 0x116   : > { %v5843_v17 = vpop.f32.mrf.mxu1  ;;  %v5845_v49 = vpop.f32.mrf.mxu0  ;;  %6827 = vst [vmem:[#allocation35_spill] sm:$0xff] %v5850_v32 }
 0x117   : > { %6825 = vst [vmem:[#allocation33_spill] sm:$0xff] %v5843_v17 }
 0x118   : > { %v5847_v5 = vpop.f32.mrf.mxu1  ;;  %v593_v11 = vpop.f32.mrf.mxu0 }
 0x119   : > { %6826 = vst [vmem:[#allocation34_spill] sm:$0xff] %v5847_v5 }
 0x11a   : > { %v681_v59 = vpop.f32.mrf.mxu1  ;;  %v5852_v31 = vpop.f32.mrf.mxu0  ;;  %4940 = vmatmul.mubr.msk.bf16.gmra.mxu0 %vm248_vm2, %v5850_v32 }
 0x11b   : > { %4995 = vmatprep.mubr.msk.bf16.mxu0 %vm248_vm2, %v5378_v62 }
 0x11c   : > { %v5856_v47 = vpop.f32.mrf.mxu1  ;;  %4890 = vmatmul.mubr.msk.bf16.gmra.mxu1 %vm248_vm2, %v5850_v32  ;;  %v605_v17 = vpop.f32.mrf.mxu0 }
 0x11d   : > { %6828 = vst [vmem:[#allocation36_spill] sm:$0xff] %v5856_v47  ;;  %4945 = vmatprep.mubr.msk.bf16.mxu1 %vm248_vm2, %v5416_v22 }
 0x11e   : > { %v693_v58 = vpop.f32.mrf.mxu1  ;;  %v4718_v11 = vpop.f32.mrf.mxu0 }
 0x120   : > { %v4742_v59 = vpop.f32.mrf.mxu1  ;;  %v5864_v60 = vpop.f32.mrf.mxu0 }
 0x122   : > { %v5866_v5 = vpop.f32.mrf.mxu1  ;;  %v4797_v57 = vpop.f32.mrf.mxu0  ;;  %4996 = vmatmul.mubr.msk.bf16.vlgmr.msra.gmra.mxu0 %vm248_vm2, %v5383_v0 }
 0x123   : > { %6829 = vst [vmem:[#allocation37_spill] sm:$0xff] %v5866_v5  ;;  %5094 = vmatpush3.bf16.msra.mxu0 %v5616_v14  ;;  %4999 = vmatprep.mubr.msk.bf16.mxu0 %vm248_vm2, %v5418_v23  ;;  %v1443_v5 = vrot.slane %v4797_v57, 2 }
 0x124   : > { %v4747_v47 = vpop.f32.mrf.mxu1  ;;  %4946 = vmatmul.mubr.msk.bf16.vlgmr.msra.gmra.mxu1 %vm248_vm2, %v5602_v10  ;;  %v1200_v22 = vpop.f32.mrf.mxu0 }
 0x125   : > { %5044 = vmatpush3.bf16.msra.mxu1 %v5611_v13  ;;  %4949 = vmatprep.mubr.msk.bf16.mxu1 %vm248_vm2, %v5608_v12  ;;  %v1440_v0 = vrot.slane %v1200_v22, 2  ;;  %v1020_v14 = vrot.slane %v4747_v47, 1 }
 0x126   : > { %v777_v17 = vpop.f32.mrf.mxu1  ;;  %v4798_v58 = vpop.f32.mrf.mxu0 }
 0x127   : > { %v1017_v32 = vrot.slane %v777_v17, 1  ;;  %v1445_v22 = vrot.slane %v4798_v58, 2 }
 0x128   : > { %v4748_v11 = vpop.f32.mrf.mxu1  ;;  %v1203_v59 = vpop.f32.mrf.mxu0 }
 0x129   : > { %v1441_v62 = vrot.slane %v1203_v59, 2  ;;  %v1022_v52 = vrot.slane %v4748_v11, 1 }
 0x12a   : > { %v780_v10 = vpop.f32.mrf.mxu1  ;;  %v4801_v38 = vpop.f32.mrf.mxu0  ;;  %5000 = vmatmul.mubr.msk.bf16.gmra.mxu0 %vm248_vm2, %v5422_v25 }
 0x12b   : > { %v1018_v13 = vrot.slane %v780_v10, 1  ;;  %5003 = vmatprep.mubr.msk.bf16.mxu0 %vm248_vm2, %v5434_v35  ;;  %v1442_v57 = vsel %vm1439_vm4, %v1440_v0, %v1441_v62  ;;  %v1444_v12 = vsel %vm1439_vm4, %v1441_v62, %v1443_v5  ;;  %v1450_v10 = vrot.slane %v4801_v38, 2 }
 0x12c   : > { %v4751_v23 = vpop.f32.mrf.mxu1  ;;  %4950 = vmatmul.mubr.msk.bf16.gmra.mxu1 %vm248_vm2, %v5631_v4  ;;  %v1216_v17 = vpop.f32.mrf.mxu0 }
 0x12d   : > { %v1021_v47 = vsel %vm1016_vm5, %v1018_v13, %v1020_v14  ;;  %4953 = vmatprep.mubr.msk.bf16.mxu1 %vm248_vm2, %v5634_v16  ;;  %v1019_v59 = vsel %vm1016_vm5, %v1017_v32, %v1018_v13  ;;  %v1446_v25 = vrot.slane %v1216_v17, 2  ;;  %v1027_v16 = vrot.slane %v4751_v23, 1 }
 0x12e   : > { %v793_v8 = vpop.f32.mrf.mxu1  ;;  %v1129_v4 = vadd.f32 %v1019_v59, %v5723_v61  ;;  %v1130_v35 = vadd.f32 %v1021_v47, %v5737_v40  ;;  %v4802_v6 = vpop.f32.mrf.mxu0 }
 0x12f   : > { %v1023_v0 = vrot.slane %v793_v8, 1  ;;  %v1451_v62 = vrot.slane %v4802_v6, 2  ;;  %v1447_v14 = vsel %vm1439_vm4, %v1445_v22, %v1446_v25 }
 0x130   : > { %v4752_v5 = vpop.f32.mrf.mxu1  ;;  %v5892_v58 = vadd.f32 %v1442_v57, %v1129_v4  ;;  %v5895_v48 = vadd.f32 %v1444_v12, %v1130_v35  ;;  %v1219_v13 = vpop.f32.mrf.mxu0 }
 0x131   : > { %v1024_v38 = vsel %vm1016_vm5, %v1022_v52, %v1023_v0  ;;  %v1028_v32 = vrot.slane %v4752_v5, 1  ;;  %v1448_v17 = vrot.slane %v1219_v13, 2  ;;  %v1452_v8 = vsel %vm1439_vm4, %v1450_v10, %v1451_v62 }
 0x132   : > { %v796_v61 = vpop.f32.mrf.mxu1  ;;  %v1131_v40 = vadd.f32 %v5730_v7, %v1024_v38  ;;  %v4805_v57 = vpop.f32.mrf.mxu0  ;;  %5004 = vmatmul.mubr.msk.bf16.gmra.mxu0 %vm248_vm2, %v5438_v37 }
 0x133   : > { %v1029_v6 = vsel %vm1016_vm5, %v1027_v16, %v1028_v32  ;;  %v1025_v11 = vrot.slane %v796_v61, 1  ;;  %5007 = vmatprep.mubr.msk.bf16.mxu0 %vm248_vm2, %v5450_v53  ;;  %v1449_v52 = vsel %vm1439_vm4, %v1446_v25, %v1448_v17  ;;  %v1456_v47 = vrot.slane %v4805_v57, 2 }
 0x134   : > { %v4755_v35 = vpop.f32.mrf.mxu1  ;;  %4954 = vmatmul.mubr.msk.bf16.gmra.mxu1 %vm248_vm2, %v5647_v20  ;;  %v5907_v23 = vadd.f32 %v1447_v14, %v1131_v40  ;;  %v1133_v7 = vadd.f32 %v5744_v9, %v1029_v6  ;;  %v1232_v12 = vpop.f32.mrf.mxu0 }
 0x135   : > { %4957 = vmatprep.mubr.msk.bf16.mxu1 %vm248_vm2, %v5650_v21  ;;  %v1026_v22 = vsel %vm1016_vm5, %v1023_v0, %v1025_v11  ;;  %v1453_v59 = vrot.slane %v1232_v12, 2  ;;  %v1033_v13 = vrot.slane %v4755_v35, 1 }
 0x136   : > { %v809_v10 = vpop.f32.mrf.mxu1  ;;  %v5914_v4 = vadd.f32 %v1452_v8, %v1133_v7  ;;  %v1132_v20 = vadd.f32 %v1026_v22, %v5755_v15  ;;  %v4806_v14 = vpop.f32.mrf.mxu0 }
 0x137   : > { %v1030_v5 = vrot.slane %v809_v10, 1  ;;  %v1458_v16 = vrot.slane %v4806_v14, 2  ;;  %v1454_v25 = vsel %vm1439_vm4, %v1451_v62, %v1453_v59 }
 0x138   : > { %v4756_v38 = vpop.f32.mrf.mxu1  ;;  %v5917_v9 = vadd.f32 %v1449_v52, %v1132_v20  ;;  %v1235_v0 = vpop.f32.mrf.mxu0 }
 0x139   : > { %v1031_v21 = vsel %vm1016_vm5, %v1028_v32, %v1030_v5  ;;  %v1035_v17 = vrot.slane %v4756_v38, 1  ;;  %v1455_v61 = vrot.slane %v1235_v0, 2  ;;  %v1459_v6 = vsel %vm1439_vm4, %v1456_v47, %v1458_v16 }
 0x13a   : > { %v812_v40 = vpop.f32.mrf.mxu1  ;;  %v1134_v8 = vadd.f32 %v5762_v27, %v1031_v21  ;;  %v4809_v57 = vpop.f32.mrf.mxu0  ;;  %5008 = vmatmul.mubr.msk.bf16.gmra.mxu0 %vm248_vm2, %v5454_v56 }
 0x13b   : > { %v1036_v15 = vsel %vm1016_vm5, %v1033_v13, %v1035_v17  ;;  %v1032_v11 = vrot.slane %v812_v40, 1  ;;  %5011 = vmatprep.mubr.msk.bf16.mxu0 %vm248_vm2, %v5466_v2  ;;  %v1457_v32 = vsel %vm1439_vm4, %v1455_v61, %v1456_v47  ;;  %v1463_v14 = vrot.slane %v4809_v57, 2 }
 0x13c   : > { %v4759_v7 = vpop.f32.mrf.mxu1  ;;  %4958 = vmatmul.mubr.msk.bf16.gmra.mxu1 %vm248_vm2, %v5663_v29  ;;  %v5930_v62 = vadd.f32 %v1454_v25, %v1134_v8  ;;  %v1136_v27 = vadd.f32 %v5772_v46, %v1036_v15  ;;  %v1248_v52 = vpop.f32.mrf.mxu0 }
 0x13d   : > { %v1034_v35 = vsel %vm1016_vm5, %v1032_v11, %v1033_v13  ;;  %4961 = vmatprep.mubr.msk.bf16.mxu1 %vm248_vm2, %v5666_v30  ;;  %v1460_v46 = vrot.slane %v1248_v52, 2  ;;  %v1040_v38 = vrot.slane %v4759_v7, 1 }
 0x13e   : > { %v825_v12 = vpop.f32.mrf.mxu1  ;;  %v5937_v22 = vadd.f32 %v1459_v6, %v1136_v27  ;;  %v1135_v29 = vadd.f32 %v1034_v35, %v5789_v19  ;;  %v4810_v59 = vpop.f32.mrf.mxu0 }
 0x13f   : > { %v1037_v25 = vrot.slane %v825_v12, 1  ;;  %v1465_v0 = vrot.slane %v4810_v59, 2 }
 0x140   : > { %v4760_v10 = vpop.f32.mrf.mxu1  ;;  %v5940_v20 = vadd.f32 %v1457_v32, %v1135_v29  ;;  %v1251_v5 = vpop.f32.mrf.mxu0 }
 0x141   : > { %v1461_v16 = vrot.slane %v1251_v5, 2  ;;  %v1042_v7 = vrot.slane %v4760_v10, 1 }
 0x142   : > { %v828_v47 = vpop.f32.mrf.mxu1  ;;  %v4813_v21 = vpop.f32.mrf.mxu0  ;;  %5012 = vmatmul.mubr.msk.bf16.gmra.mxu0 %vm248_vm2, %v5349_v41 }
 0x143   : > { %v1038_v13 = vrot.slane %v828_v47, 1  ;;  %5015 = vmatprep.mubr.msk.bf16.mxu0 %vm248_vm2, %v5351_v45  ;;  %v1462_v19 = vsel %vm1439_vm4, %v1460_v46, %v1461_v16  ;;  %v1464_v17 = vsel %vm1439_vm4, %v1461_v16, %v1463_v14  ;;  %v1470_v6 = vrot.slane %v4813_v21, 2 }
 0x144   : > { %v4763_v30 = vpop.f32.mrf.mxu1  ;;  %4962 = vmatmul.mubr.msk.bf16.gmra.mxu1 %vm248_vm2, %v5679_v33  ;;  %v1264_v40 = vpop.f32.mrf.mxu0 }
 0x145   : > { %v1041_v61 = vsel %vm1016_vm5, %v1038_v13, %v1040_v38  ;;  %4965 = vmatprep.mubr.msk.bf16.mxu1 %vm248_vm2, %v5682_v34  ;;  %v1039_v8 = vsel %vm1016_vm5, %v1037_v25, %v1038_v13  ;;  %v1466_v15 = vrot.slane %v1264_v40, 2  ;;  %v1047_v34 = vrot.slane %v4763_v30, 1 }
 0x146   : > { %v841_v11 = vpop.f32.mrf.mxu1  ;;  %v1137_v33 = vadd.f32 %v1039_v8, %v5805_v28  ;;  %v1138_v57 = vadd.f32 %v1041_v61, %v5821_v3  ;;  %v4814_v32 = vpop.f32.mrf.mxu0 }
 0x147   : > { %v1043_v27 = vrot.slane %v841_v11, 1  ;;  %v1471_v35 = vrot.slane %v4814_v32, 2  ;;  %v1467_v29 = vsel %vm1439_vm4, %v1465_v0, %v1466_v15 }
 0x148   : > { %v4764_v52 = vpop.f32.mrf.mxu1  ;;  %v5956_v12 = vadd.f32 %v1462_v19, %v1137_v33  ;;  %v5959_v59 = vadd.f32 %v1464_v17, %v1138_v57  ;;  %v1267_v46 = vpop.f32.mrf.mxu0 }
 0x149   : > { %v1044_v5 = vsel %vm1016_vm5, %v1042_v7, %v1043_v27  ;;  %v1048_v14 = vrot.slane %v4764_v52, 1  ;;  %v1468_v16 = vrot.slane %v1267_v46, 2  ;;  %v1472_v10 = vsel %vm1439_vm4, %v1470_v6, %v1471_v35 }
 0x14a   : > { %v844_v28 = vpop.f32.mrf.mxu1  ;;  %v1139_v3 = vadd.f32 %v5812_v42, %v1044_v5  ;;  %v4817_v25 = vpop.f32.mrf.mxu0  ;;  %5016 = vmatmul.mubr.msk.bf16.gmra.mxu0 %vm248_vm2, %v5370_v55 }
 0x14b   : > { %v1049_v47 = vsel %vm1016_vm5, %v1047_v34, %v1048_v14  ;;  %v1045_v38 = vrot.slane %v844_v28, 1  ;;  %5019 = vmatprep.mubr.msk.bf16.mxu0 %vm248_vm2, %v5381_v63  ;;  %v1469_v30 = vsel %vm1439_vm4, %v1466_v15, %v1468_v16  ;;  %v1476_v0 = vrot.slane %v4817_v25, 2 }
 0x14c   : > { %v4767_v13 = vpop.f32.mrf.mxu1  ;;  %4966 = vmatmul.mubr.msk.bf16.gmra.mxu1 %vm248_vm2, %v5695_v43  ;;  %v5971_v21 = vadd.f32 %v1467_v29, %v1139_v3  ;;  %v1141_v42 = vadd.f32 %v5828_v54, %v1049_v47  ;;  %v1280_v19 = vpop.f32.mrf.mxu0 }
 0x14d   : > { %4969 = vmatprep.mubr.msk.bf16.mxu1 %vm248_vm2, %v5698_v44  ;;  %v1046_v17 = vsel %vm1016_vm5, %v1043_v27, %v1045_v38  ;;  %v1473_v61 = vrot.slane %v1280_v19, 2  ;;  %v1053_v7 = vrot.slane %v4767_v13, 1 }
 0x14e   : > { %v857_v40 = vpop.f32.mrf.mxu1  ;;  %v5978_v8 = vadd.f32 %v1472_v10, %v1141_v42  ;;  %v1140_v43 = vadd.f32 %v1046_v17, %v5839_v39  ;;  %v4818_v11 = vpop.f32.mrf.mxu0 }
 0x14f   : > { %v1050_v6 = vrot.slane %v857_v40, 1  ;;  %v1478_v33 = vrot.slane %v4818_v11, 2  ;;  %v1474_v15 = vsel %vm1439_vm4, %v1471_v35, %v1473_v61 }
 0x150   : > { %v4768_v57 = vpop.f32.mrf.mxu1  ;;  %v5981_v54 = vadd.f32 %v1469_v30, %v1140_v43  ;;  %v1283_v27 = vpop.f32.mrf.mxu0 }
 0x151   : > { %v1051_v44 = vsel %vm1016_vm5, %v1048_v14, %v1050_v6  ;;  %v1055_v32 = vrot.slane %v4768_v57, 1  ;;  %v1475_v52 = vrot.slane %v1283_v27, 2  ;;  %v1479_v5 = vsel %vm1439_vm4, %v1476_v0, %v1478_v33 }
 0x152   : > { %v860_v29 = vpop.f32.mrf.mxu1  ;;  %v1142_v34 = vadd.f32 %v5845_v49, %v1051_v44  ;;  %v4821_v16 = vpop.f32.mrf.mxu0  ;;  %5020 = vmatmul.mubr.msk.bf16.gmra.mxu0 %vm248_vm2, %v5385_v1 }
 0x153   : > { %v1056_v39 = vsel %vm1016_vm5, %v1053_v7, %v1055_v32  ;;  %v1052_v46 = vrot.slane %v860_v29, 1  ;;  %5023 = vmatprep.mubr.msk.bf16.mxu0 %vm248_vm2, %v5420_v24  ;;  %v1477_v14 = vsel %vm1439_vm4, %v1475_v52, %v1476_v0  ;;  %v1483_v19 = vrot.slane %v4821_v16, 2 }
 0x154   : > { %v4771_v28 = vpop.f32.mrf.mxu1  ;;  %4970 = vmatmul.mubr.msk.bf16.gmra.mxu1 %vm248_vm2, %v5711_v50  ;;  %v5994_v35 = vadd.f32 %v1474_v15, %v1142_v34  ;;  %v1144_v49 = vadd.f32 %v5852_v31, %v1056_v39  ;;  %v1296_v10 = vpop.f32.mrf.mxu0  ;;  %v6832_v34 = vld [vmem:[#allocation15_spill] sm:$0xff] }
 0x155   : > { %v1054_v3 = vsel %vm1016_vm5, %v1052_v46, %v1053_v7  ;;  %4973 = vmatprep.mubr.msk.bf16.mxu1 %vm248_vm2, %v5714_v51  ;;  %v1480_v31 = vrot.slane %v1296_v10, 2  ;;  %v1060_v61 = vrot.slane %v4771_v28, 1  ;;  %v6830_v7 = vld [vmem:[#allocation14_spill] sm:$0xff] }
 0x156   : > { %v873_v47 = vpop.f32.mrf.mxu1  ;;  %v6001_v38 = vadd.f32 %v1479_v5, %v1144_v49  ;;  %v1143_v50 = vadd.f32 %v1054_v3, %v5864_v60  ;;  %v4822_v25 = vpop.f32.mrf.mxu0 }
 0x157   : > { %v1057_v40 = vrot.slane %v873_v47, 1  ;;  %v1485_v33 = vrot.slane %v4822_v25, 2 }
 0x158   : > { %v4772_v13 = vpop.f32.mrf.mxu1  ;;  %v6004_v42 = vadd.f32 %v1477_v14, %v1143_v50  ;;  %v1299_v30 = vpop.f32.mrf.mxu0 }
 0x159   : > { %v1481_v17 = vrot.slane %v1299_v30, 2  ;;  %v1062_v39 = vrot.slane %v4772_v13, 1 }
 0x15a   : > { %v876_v0 = vpop.f32.mrf.mxu1  ;;  %v4825_v6 = vpop.f32.mrf.mxu0  ;;  %5024 = vmatmul.mubr.msk.bf16.gmra.mxu0 %vm248_vm2, %v5424_v26 }
 0x15b   : > { %v1058_v43 = vrot.slane %v876_v0, 1  ;;  %5027 = vmatprep.mubr.msk.bf16.mxu0 %vm248_vm2, %v5436_v36  ;;  %v1482_v60 = vsel %vm1439_vm4, %v1480_v31, %v1481_v17  ;;  %v1484_v11 = vsel %vm1439_vm4, %v1481_v17, %v1483_v19  ;;  %v1490_v32 = vrot.slane %v4825_v6, 2  ;;  %v6833_v17 = vld [vmem:[#allocation13_spill] sm:$0xff]  ;;  %v6834_v6 = vld [vmem:[#allocation8_spill] sm:$0xff] }
 0x15c   : > { %v4775_v51 = vpop.f32.mrf.mxu1  ;;  %4974 = vmatmul.mubr.msk.bf16.gmra.mxu1 %vm248_vm2, %v5735_v18  ;;  %v1312_v15 = vpop.f32.mrf.mxu0  ;;  %v6831_v18 = vld [vmem:[#allocation12_spill] sm:$0xff] }
 0x15d   : > { %v1061_v57 = vsel %vm1016_vm5, %v1058_v43, %v1060_v61  ;;  %4977 = vmatprep.mubr.msk.bf16.mxu1 %vm248_vm2, %v6830_v7  ;;  %v1059_v44 = vsel %vm1016_vm5, %v1057_v40, %v1058_v43  ;;  %v1486_v27 = vrot.slane %v1312_v15, 2  ;;  %v1067_v47 = vrot.slane %v4775_v51, 1  ;;  %v6836_v51 = vld [vmem:[#allocation9_spill] sm:$0xff] }
 0x15e   : > { %v889_v52 = vpop.f32.mrf.mxu1  ;;  %v1145_v29 = vadd.f32 %v1059_v44, %v6831_v18  ;;  %v1146_v5 = vadd.f32 %v1061_v57, %v6832_v34  ;;  %v4826_v16 = vpop.f32.mrf.mxu0  ;;  %v6837_v57 = vld [vmem:[#allocation16_spill] sm:$0xff] }
 0x15f   : > { %v1063_v46 = vrot.slane %v889_v52, 1  ;;  %v1491_v28 = vrot.slane %v4826_v16, 2  ;;  %v1487_v3 = vsel %vm1439_vm4, %v1485_v33, %v1486_v27 }
 0x160   : > { %v4776_v49 = vpop.f32.mrf.mxu1  ;;  %v6020_v14 = vadd.f32 %v1482_v60, %v1145_v29  ;;  %v6023_v10 = vadd.f32 %v1484_v11, %v1146_v5  ;;  %v1315_v30 = vpop.f32.mrf.mxu0  ;;  %v6835_v11 = vld [vmem:[#allocation19_spill] sm:$0xff] }
 0x161   : > { %v1064_v50 = vsel %vm1016_vm5, %v1062_v39, %v1063_v46  ;;  %v1068_v25 = vrot.slane %v4776_v49, 1  ;;  %v1488_v19 = vrot.slane %v1315_v30, 2  ;;  %v1492_v13 = vsel %vm1439_vm4, %v1490_v32, %v1491_v28  ;;  %v6838_v32 = vld [vmem:[#allocation20_spill] sm:$0xff]  ;;  %v6839_v39 = vld [vmem:[#allocation17_spill] sm:$0xff] }
 0x162   : > { %v892_v31 = vpop.f32.mrf.mxu1  ;;  %v1147_v0 = vadd.f32 %v6833_v17, %v1064_v50  ;;  %v4829_v43 = vpop.f32.mrf.mxu0  ;;  %5028 = vmatmul.mubr.msk.bf16.gmra.mxu0 %vm248_vm2, %v6834_v6 }
 0x163   : > { %v1069_v61 = vsel %vm1016_vm5, %v1067_v47, %v1068_v25  ;;  %v1065_v40 = vrot.slane %v892_v31, 1  ;;  %5031 = vmatprep.mubr.msk.bf16.mxu0 %vm248_vm2, %v6836_v51  ;;  %v1489_v7 = vsel %vm1439_vm4, %v1486_v27, %v1488_v19  ;;  %v1496_v18 = vrot.slane %v4829_v43, 2 }
 0x164   : > { %v4779_v60 = vpop.f32.mrf.mxu1  ;;  %4978 = vmatmul.mubr.msk.bf16.gmra.mxu1 %vm248_vm2, %v6835_v11  ;;  %v6035_v33 = vadd.f32 %v1487_v3, %v1147_v0  ;;  %v1149_v15 = vadd.f32 %v6837_v57, %v1069_v61  ;;  %v1328_v44 = vpop.f32.mrf.mxu0 }
 0x165   : > { %4981 = vmatprep.mubr.msk.bf16.mxu1 %vm248_vm2, %v6838_v32  ;;  %v1066_v52 = vsel %vm1016_vm5, %v1063_v46, %v1065_v40  ;;  %v1493_v29 = vrot.slane %v1328_v44, 2  ;;  %v1073_v19 = vrot.slane %v4779_v60, 1  ;;  %v6840_v40 = vld [vmem:[#allocation18_spill] sm:$0xff]  ;;  %v6844_v32 = vld [vmem:[#allocation21_spill] sm:$0xff] }
 0x166   : > { %v905_v34 = vpop.f32.mrf.mxu1  ;;  %v6042_v5 = vadd.f32 %v1492_v13, %v1149_v15  ;;  %v1148_v16 = vadd.f32 %v1066_v52, %v6839_v39  ;;  %v4830_v3 = vpop.f32.mrf.mxu0  ;;  %v6841_v44 = vld [vmem:[#allocation10_spill] sm:$0xff]  ;;  %v6845_v39 = vld [vmem:[#allocation23_spill] sm:$0xff] }
 0x167   : > { %v1070_v49 = vrot.slane %v905_v34, 1  ;;  %v1498_v47 = vrot.slane %v4830_v3, 2  ;;  %v1494_v27 = vsel %vm1439_vm4, %v1491_v28, %v1493_v29  ;;  %v6842_v28 = vld [vmem:[#allocation22_spill] sm:$0xff] }
 0x168   : > { %v4780_v50 = vpop.f32.mrf.mxu1  ;;  %v6045_v30 = vadd.f32 %v1489_v7, %v1148_v16  ;;  %v1331_v46 = vpop.f32.mrf.mxu0 }
 0x169   : > { %v1071_v31 = vsel %vm1016_vm5, %v1068_v25, %v1070_v49  ;;  %v1075_v17 = vrot.slane %v4780_v50, 1  ;;  %v1495_v0 = vrot.slane %v1331_v46, 2  ;;  %v1499_v43 = vsel %vm1439_vm4, %v1496_v18, %v1498_v47  ;;  %v6843_v25 = vld [vmem:[#allocation11_spill] sm:$0xff]  ;;  %v6847_v47 = vld [vmem:[#allocation25_spill] sm:$0xff] }
 0x16a   : > { %v908_v61 = vpop.f32.mrf.mxu1  ;;  %v1150_v13 = vadd.f32 %v6840_v40, %v1071_v31  ;;  %v4833_v15 = vpop.f32.mrf.mxu0  ;;  %5032 = vmatmul.mubr.msk.bf16.gmra.mxu0 %vm248_vm2, %v6841_v44 }
 0x16b   : > { %v1076_v11 = vsel %vm1016_vm5, %v1073_v19, %v1075_v17  ;;  %v1072_v57 = vrot.slane %v908_v61, 1  ;;  %5035 = vmatprep.mubr.msk.bf16.mxu0 %vm248_vm2, %v6843_v25  ;;  %v1497_v29 = vsel %vm1439_vm4, %v1495_v0, %v1496_v18  ;;  %v1503_v61 = vrot.slane %v4833_v15, 2  ;;  %v6854_v25 = vld [vmem:[#allocation31_spill] sm:$0xff] }
 0x16c   : > { %v4783_v7 = vpop.f32.mrf.mxu1  ;;  %4982 = vmatmul.mubr.msk.bf16.gmra.mxu1 %vm248_vm2, %v6842_v28  ;;  %v6058_v60 = vadd.f32 %v1494_v27, %v1150_v13  ;;  %v1152_v52 = vadd.f32 %v6844_v32, %v1076_v11  ;;  %v1344_v34 = vpop.f32.mrf.mxu0 }
 0x16d   : > { %4985 = vmatprep.mubr.msk.bf16.mxu1 %vm248_vm2, %v6845_v39  ;;  %v1074_v16 = vsel %vm1016_vm5, %v1072_v57, %v1073_v19  ;;  %v1500_v40 = vrot.slane %v1344_v34, 2  ;;  %v1080_v0 = vrot.slane %v4783_v7, 1  ;;  %v6849_v39 = vld [vmem:[#allocation24_spill] sm:$0xff]  ;;  %v6851_v57 = vld [vmem:[#allocation29_spill] sm:$0xff] }
 0x16e   : > { %v921_v49 = vpop.f32.mrf.mxu1  ;;  %v6065_v3 = vadd.f32 %v1499_v43, %v1152_v52  ;;  %v1151_v50 = vadd.f32 %v1074_v16, %v6847_v47  ;;  %v4834_v31 = vpop.f32.mrf.mxu0  ;;  %v6850_v43 = vld [vmem:[#allocation28_spill] sm:$0xff]  ;;  %v388_v52 = vld [vmem:[#allocation2 + $0x1a0] sm:$0xff] }
 0x16f   : > { %v1077_v11 = vrot.slane %v921_v49, 1  ;;  %v1505_v7 = vrot.slane %v4834_v31, 2  ;;  %v6852_v49 = vld [vmem:[#allocation30_spill] sm:$0xff] }
 0x170   : > { %6846 = vst [vmem:[#allocation14_spill] sm:$0xff] %v6065_v3  ;;  %v4784_v17 = vpop.f32.mrf.mxu1  ;;  %v6068_v46 = vadd.f32 %v1497_v29, %v1151_v50  ;;  %v1347_v27 = vpop.f32.mrf.mxu0  ;;  %v389_v29 = vld [vmem:[#allocation2 + $0x1a8] sm:$0xff] }
 0x171   : > { %v1501_v13 = vrot.slane %v1347_v27, 2 }
 0x172   : > { %6848 = vst [vmem:[#allocation12_spill] sm:$0xff] %v6068_v46  ;;  %v924_v18 = vpop.f32.mrf.mxu1  ;;  %v4837_v32 = vpop.f32.mrf.mxu0  ;;  %5036 = vmatmul.mubr.msk.bf16.gmra.mxu0 %vm248_vm2, %v6849_v39  ;;  %v6853_v39 = vld [vmem:[#allocation26_spill] sm:$0xff]  ;;  %v1082_v46 = vrot.slane %v4784_v17, 1  ;;  %v6856_v17 = vld [vmem:[#allocation27_spill] sm:$0xff] }
 0x173   : > { %v1078_v28 = vrot.slane %v924_v18, 1  ;;  %5039 = vmatprep.mubr.msk.bf16.mxu0 %vm248_vm2, %v6851_v57  ;;  %v1502_v15 = vsel %vm1439_vm4, %v1500_v40, %v1501_v13  ;;  %v1504_v34 = vsel %vm1439_vm4, %v1501_v13, %v1503_v61  ;;  %v1510_v27 = vrot.slane %v4837_v32, 2 }
 0x174   : > { %v4787_v19 = vpop.f32.mrf.mxu1  ;;  %4986 = vmatmul.mubr.msk.bf16.gmra.mxu1 %vm248_vm2, %v6850_v43  ;;  %v1360_v16 = vpop.f32.mrf.mxu0  ;;  %v6084_v61 = vpack.c.bf16 %v389_v29, %v388_v52 }
 0x175   : > { %4989 = vmatprep.mubr.msk.bf16.mxu1 %vm248_vm2, %v6852_v49  ;;  %v1079_v47 = vsel %vm1016_vm5, %v1077_v11, %v1078_v28  ;;  %v1081_v50 = vsel %vm1016_vm5, %v1078_v28, %v1080_v0  ;;  %v1506_v18 = vrot.slane %v1360_v16, 2  ;;  %v1087_v0 = vrot.slane %v4787_v19, 1 }
 0x176   : > { %v937_v43 = vpop.f32.mrf.mxu1  ;;  %v1153_v57 = vadd.f32 %v1079_v47, %v6853_v39  ;;  %v1154_v44 = vadd.f32 %v1081_v50, %v6854_v25  ;;  %v4838_v3 = vpop.f32.mrf.mxu0  ;;  %6855 = vst [vmem:[#allocation15_spill] sm:$0xff] %v6084_v61 }
 0x177   : > { %v1083_v40 = vrot.slane %v937_v43, 1  ;;  %v1511_v31 = vrot.slane %v4838_v3, 2  ;;  %v1507_v11 = vsel %vm1439_vm4, %v1505_v7, %v1506_v18 }
 0x178   : > { %v4788_v13 = vpop.f32.mrf.mxu1  ;;  %v6086_v51 = vadd.f32 %v1502_v15, %v1153_v57  ;;  %v6089_v49 = vadd.f32 %v1504_v34, %v1154_v44  ;;  %v1363_v39 = vpop.f32.mrf.mxu0  ;;  %v6857_v15 = vld [vmem:[#allocation35_spill] sm:$0xff]  ;;  %v6859_v34 = vld [vmem:[#allocation32_spill] sm:$0xff] }
 0x179   : > { %v1084_v28 = vsel %vm1016_vm5, %v1082_v46, %v1083_v40  ;;  %v1088_v32 = vrot.slane %v4788_v13, 1  ;;  %v1508_v16 = vrot.slane %v1363_v39, 2  ;;  %v1512_v52 = vsel %vm1439_vm4, %v1510_v27, %v1511_v31  ;;  %v6858_v46 = vld [vmem:[#allocation3_spill] sm:$0xff] }
 0x17a   : > { %v940_v25 = vpop.f32.mrf.mxu1  ;;  %v1155_v47 = vadd.f32 %v6856_v17, %v1084_v28  ;;  %v4841_v57 = vpop.f32.mrf.mxu0  ;;  %5040 = vmatmul.mubr.msk.bf16.gmra.mxu0 %vm248_vm2, %v6084_v61 }
 0x17b   : > { %v1089_v3 = vsel %vm1016_vm5, %v1087_v0, %v1088_v32  ;;  %v1085_v29 = vrot.slane %v940_v25, 1  ;;  %5095 = vmatprep.mubr.msk.bf16.mxu0 %vm248_vm2, %v6858_v46  ;;  %v1509_v50 = vsel %vm1439_vm4, %v1506_v18, %v1508_v16  ;;  %v1516_v13 = vrot.slane %v4841_v57, 2  ;;  %v6860_v25 = vld [vmem:[#allocation33_spill] sm:$0xff] }
 0x17c   : > { %v4791_v44 = vpop.f32.mrf.mxu1  ;;  %4990 = vmatmul.mubr.msk.bf16.gmra.mxu1 %vm248_vm2, %v6857_v15  ;;  %v6101_v19 = vadd.f32 %v1507_v11, %v1155_v47  ;;  %v1157_v7 = vadd.f32 %v6859_v34, %v1089_v3  ;;  %v1376_v27 = vpop.f32.mrf.mxu0 }
 0x17d   : > { %5045 = vmatprep.mubr.msk.bf16.mxu1 %vm248_vm2, %v6858_v46  ;;  %v1086_v43 = vsel %vm1016_vm5, %v1083_v40, %v1085_v29  ;;  %v1513_v0 = vrot.slane %v1376_v27, 2  ;;  %v1093_v16 = vrot.slane %v4791_v44, 1  ;;  %v6861_v27 = vld [vmem:[#allocation34_spill] sm:$0xff] }
 0x17e   : > { %v953_v28 = vpop.f32.mrf.mxu1  ;;  %v6108_v39 = vadd.f32 %v1512_v52, %v1157_v7  ;;  %v1156_v17 = vadd.f32 %v1086_v43, %v6860_v25  ;;  %v4842_v11 = vpop.f32.mrf.mxu0 }
 0x17f   : > { %v1090_v15 = vrot.slane %v953_v28, 1  ;;  %v1518_v47 = vrot.slane %v4842_v11, 2  ;;  %v1514_v18 = vsel %vm1439_vm4, %v1511_v31, %v1513_v0  ;;  %v6862_v11 = vld [vmem:[#allocation4_spill] sm:$0xff]  ;;  %v6863_v31 = vld [vmem:[#allocation5_spill] sm:$0xff] }
 0x180   : > { %v4792_v61 = vpop.f32.mrf.mxu1  ;;  %v6111_v3 = vadd.f32 %v1509_v50, %v1156_v17  ;;  %v1379_v40 = vpop.f32.mrf.mxu0 }
 0x181   : > { %v1091_v46 = vsel %vm1016_vm5, %v1088_v32, %v1090_v15  ;;  %v1095_v34 = vrot.slane %v4792_v61, 1  ;;  %v1515_v29 = vrot.slane %v1379_v40, 2  ;;  %v1519_v7 = vsel %vm1439_vm4, %v1516_v13, %v1518_v47  ;;  %v6864_v32 = vld [vmem:[#allocation36_spill] sm:$0xff] }
 0x182   : > { %v956_v57 = vpop.f32.mrf.mxu1  ;;  %v1158_v52 = vadd.f32 %v6861_v27, %v1091_v46  ;;  %v4897_v25 = vpop.f32.mrf.mxu0  ;;  %5096 = vmatmul.mubr.msk.bf16.vlgmr.msra.gmra.mxu0 %vm248_vm2, %v6862_v11 }
 0x183   : > { %v1096_v43 = vsel %vm1016_vm5, %v1093_v16, %v1095_v34  ;;  %v1092_v28 = vrot.slane %v956_v57, 1  ;;  %5099 = vmatprep.mubr.msk.bf16.mxu0 %vm248_vm2, %v6863_v31  ;;  %v1517_v0 = vsel %vm1439_vm4, %v1515_v29, %v1516_v13  ;;  %v6865_v34 = vld [vmem:[#allocation37_spill] sm:$0xff]  ;;  %v2258_v29 = vrot.slane %v4897_v25, 1 }
 0x184   : > { %v4847_v50 = vpop.f32.mrf.mxu1  ;;  %5046 = vmatmul.mubr.msk.bf16.vlgmr.msra.gmra.mxu1 %vm248_vm2, %v6862_v11  ;;  %v6124_v61 = vadd.f32 %v1514_v18, %v1158_v52  ;;  %v1160_v44 = vadd.f32 %v6864_v32, %v1096_v43  ;;  %v2016_v17 = vpop.f32.mrf.mxu0 }
 0x185   : > { %5049 = vmatprep.mubr.msk.bf16.mxu1 %vm248_vm2, %v6863_v31  ;;  %v1094_v15 = vsel %vm1016_vm5, %v1092_v28, %v1093_v16  ;;  %v2255_v11 = vrot.slane %v2016_v17, 1 }
 0x186   : > { %v1770_v47 = vpop.f32.mrf.mxu1  ;;  %v6131_v46 = vadd.f32 %v1519_v7, %v1160_v44  ;;  %v1159_v40 = vadd.f32 %v1094_v15, %v6865_v34  ;;  %v4898_v27 = vpop.f32.mrf.mxu0  ;;  %v6866_v7 = vld [vmem:[#allocation6_spill] sm:$0xff] }
 0x187   : > { %v1945_v57 = vadd.f32 %v1770_v47, %v5892_v58  ;;  %v2260_v15 = vrot.slane %v4898_v27, 1 }
 0x188   : > { %v4848_v18 = vpop.f32.mrf.mxu1  ;;  %v6135_v52 = vadd.f32 %v1517_v0, %v1159_v40  ;;  %v2019_v13 = vpop.f32.mrf.mxu0 }
 0x189   : > { %v1947_v43 = vadd.f32 %v4848_v18, %v5907_v23  ;;  %v2256_v50 = vrot.slane %v2019_v13, 1  ;;  %v6867_v23 = vld [vmem:[#allocation7_spill] sm:$0xff] }
 0x18a   : > { %v1773_v31 = vpop.f32.mrf.mxu1  ;;  %v4901_v28 = vpop.f32.mrf.mxu0  ;;  %5100 = vmatmul.mubr.msk.bf16.gmra.mxu0 %vm248_vm2, %v6866_v7 }
 0x18b   : > { %v1946_v16 = vadd.f32 %v1773_v31, %v5895_v48  ;;  %v2257_v32 = vsel %vm1016_vm5, %v2255_v11, %v2256_v50  ;;  %v2259_v58 = vsel %vm1016_vm5, %v2256_v50, %v2258_v29  ;;  %5103 = vmatprep.mubr.msk.bf16.mxu0 %vm248_vm2, %v6867_v23  ;;  %v2265_v47 = vrot.slane %v4901_v28, 1 }
 0x18c   : > { %v4851_v44 = vpop.f32.mrf.mxu1  ;;  %5050 = vmatmul.mubr.msk.bf16.gmra.mxu1 %vm248_vm2, %v6866_v7  ;;  %v6147_v25 = vadd.f32 %v2257_v32, %v1945_v57  ;;  %v2032_v17 = vpop.f32.mrf.mxu0 }
 0x18d   : > { %v6149_v0 = vadd.f32 %v2259_v58, %v1946_v16  ;;  %v1949_v48 = vadd.f32 %v4851_v44, %v5914_v4  ;;  %5053 = vmatprep.mubr.msk.bf16.mxu1 %vm248_vm2, %v6867_v23  ;;  %v2261_v34 = vrot.slane %v2032_v17, 1 }
 0x18e   : > { %v1785_v40 = vpop.f32.mrf.mxu1  ;;  %v4902_v13 = vpop.f32.mrf.mxu0 }
 0x18f   : > { %v1948_v18 = vadd.f32 %v1785_v40, %v5917_v9  ;;  %v2262_v29 = vsel %vm1016_vm5, %v2260_v15, %v2261_v34  ;;  %v2266_v11 = vrot.slane %v4902_v13, 1 }
 0x190   : > { %v4852_v57 = vpop.f32.mrf.mxu1  ;;  %v6156_v50 = vadd.f32 %v2262_v29, %v1947_v43  ;;  %v2035_v4 = vpop.f32.mrf.mxu0 }
 0x191   : > { %v1950_v31 = vadd.f32 %v4852_v57, %v5930_v62  ;;  %v2267_v16 = vsel %vm1016_vm5, %v2265_v47, %v2266_v11  ;;  %v2263_v7 = vrot.slane %v2035_v4, 1 }
 0x192   : > { %v1788_v32 = vpop.f32.mrf.mxu1  ;;  %v6160_v27 = vadd.f32 %v2267_v16, %v1949_v48  ;;  %v4905_v28 = vpop.f32.mrf.mxu0  ;;  %5104 = vmatmul.mubr.msk.bf16.gmra.mxu0 %vm248_vm2, %v5438_v37 }
 0x193   : > { %v2264_v9 = vsel %vm1016_vm5, %v2261_v34, %v2263_v7  ;;  %5107 = vmatprep.mubr.msk.bf16.mxu0 %vm248_vm2, %v5450_v53  ;;  %v2271_v23 = vrot.slane %v4905_v28, 1 }
 0x194   : > { %v4855_v58 = vpop.f32.mrf.mxu1  ;;  %5054 = vmatmul.mubr.msk.bf16.gmra.mxu1 %vm248_vm2, %v5438_v37  ;;  %v6169_v62 = vadd.f32 %v2264_v9, %v1948_v18  ;;  %v2048_v44 = vpop.f32.mrf.mxu0 }
 0x195   : > { %v1952_v43 = vadd.f32 %v4855_v58, %v5937_v22  ;;  %5057 = vmatprep.mubr.msk.bf16.mxu1 %vm248_vm2, %v5450_v53  ;;  %v2268_v48 = vrot.slane %v2048_v44, 1 }
 0x196   : > { %v1800_v17 = vpop.f32.mrf.mxu1  ;;  %v4906_v15 = vpop.f32.mrf.mxu0 }
 0x197   : > { %v2269_v47 = vsel %vm1016_vm5, %v2266_v11, %v2268_v48  ;;  %v2273_v34 = vrot.slane %v4906_v15, 1 }
 0x198   : > { %v4856_v40 = vpop.f32.mrf.mxu1  ;;  %v6175_v37 = vadd.f32 %v2269_v47, %v1950_v31  ;;  %v2051_v13 = vpop.f32.mrf.mxu0 }
 0x199   : > { %v2274_v18 = vsel %vm1016_vm5, %v2271_v23, %v2273_v34  ;;  %v2270_v29 = vrot.slane %v2051_v13, 1 }
 0x19a   : > { %v1802_v57 = vpop.f32.mrf.mxu1  ;;  %v6178_v22 = vadd.f32 %v2274_v18, %v1952_v43  ;;  %v4909_v53 = vpop.f32.mrf.mxu0  ;;  %5108 = vmatmul.mubr.msk.bf16.gmra.mxu0 %vm248_vm2, %v5454_v56 }
 0x19b   : > { %v1951_v4 = vadd.f32 %v1802_v57, %v5940_v20  ;;  %v2272_v16 = vsel %vm1016_vm5, %v2270_v29, %v2271_v23  ;;  %5111 = vmatprep.mubr.msk.bf16.mxu0 %vm248_vm2, %v5466_v2  ;;  %v2278_v44 = vrot.slane %v4909_v53, 1 }
 0x19c   : > { %v4859_v11 = vpop.f32.mrf.mxu1  ;;  %5058 = vmatmul.mubr.msk.bf16.gmra.mxu1 %vm248_vm2, %v5454_v56  ;;  %v2064_v7 = vpop.f32.mrf.mxu0 }
 0x19d   : > { %v6188_v31 = vadd.f32 %v2272_v16, %v1951_v4  ;;  %5061 = vmatprep.mubr.msk.bf16.mxu1 %vm248_vm2, %v5466_v2  ;;  %v2275_v23 = vrot.slane %v2064_v7, 1 }
 0x19e   : > { %v1814_v20 = vpop.f32.mrf.mxu1  ;;  %v4910_v28 = vpop.f32.mrf.mxu0 }
 0x19f   : > { %v1953_v32 = vadd.f32 %v1814_v20, %v5956_v12  ;;  %v2280_v13 = vrot.slane %v4910_v28, 1 }
 0x1a0   : > { %v4860_v9 = vpop.f32.mrf.mxu1  ;;  %v2067_v43 = vpop.f32.mrf.mxu0 }
 0x1a1   : > { %v1955_v58 = vadd.f32 %v4860_v9, %v5971_v21  ;;  %v2276_v56 = vrot.slane %v2067_v43, 1 }
 0x1a2   : > { %v1817_v48 = vpop.f32.mrf.mxu1  ;;  %v4913_v15 = vpop.f32.mrf.mxu0  ;;  %5112 = vmatmul.mubr.msk.bf16.gmra.mxu0 %vm248_vm2, %v5349_v41 }
 0x1a3   : > { %v1954_v17 = vadd.f32 %v1817_v48, %v5959_v59  ;;  %v2277_v2 = vsel %vm1016_vm5, %v2275_v23, %v2276_v56  ;;  %v2279_v47 = vsel %vm1016_vm5, %v2276_v56, %v2278_v44  ;;  %5115 = vmatprep.mubr.msk.bf16.mxu0 %vm248_vm2, %v5351_v45  ;;  %v2285_v18 = vrot.slane %v4913_v15, 1 }
 0x1a4   : > { %v4863_v12 = vpop.f32.mrf.mxu1  ;;  %5062 = vmatmul.mubr.msk.bf16.gmra.mxu1 %vm248_vm2, %v5349_v41  ;;  %v6203_v21 = vadd.f32 %v2277_v2, %v1953_v32  ;;  %v2080_v40 = vpop.f32.mrf.mxu0 }
 0x1a5   : > { %v6205_v34 = vadd.f32 %v2279_v47, %v1954_v17  ;;  %v1957_v59 = vadd.f32 %v4863_v12, %v5978_v8  ;;  %5065 = vmatprep.mubr.msk.bf16.mxu1 %vm248_vm2, %v5351_v45  ;;  %v2281_v29 = vrot.slane %v2080_v40, 1 }
 0x1a6   : > { %v1829_v57 = vpop.f32.mrf.mxu1  ;;  %v4914_v41 = vpop.f32.mrf.mxu0 }
 0x1a7   : > { %v1956_v4 = vadd.f32 %v1829_v57, %v5981_v54  ;;  %v2282_v53 = vsel %vm1016_vm5, %v2280_v13, %v2281_v29  ;;  %v2286_v16 = vrot.slane %v4914_v41, 1 }
 0x1a8   : > { %v4864_v11 = vpop.f32.mrf.mxu1  ;;  %v6212_v7 = vadd.f32 %v2282_v53, %v1955_v58  ;;  %v2083_v8 = vpop.f32.mrf.mxu0 }
 0x1a9   : > { %v1958_v20 = vadd.f32 %v4864_v11, %v5994_v35  ;;  %v2287_v32 = vsel %vm1016_vm5, %v2285_v18, %v2286_v16  ;;  %v2283_v9 = vrot.slane %v2083_v8, 1 }
 0x1aa   : > { %v1832_v45 = vpop.f32.mrf.mxu1  ;;  %v6216_v28 = vadd.f32 %v2287_v32, %v1957_v59  ;;  %v4917_v43 = vpop.f32.mrf.mxu0  ;;  %5116 = vmatmul.mubr.msk.bf16.gmra.mxu0 %vm248_vm2, %v5370_v55 }
 0x1ab   : > { %v2284_v54 = vsel %vm1016_vm5, %v2281_v29, %v2283_v9  ;;  %5119 = vmatprep.mubr.msk.bf16.mxu0 %vm248_vm2, %v5381_v63  ;;  %v2291_v56 = vrot.slane %v4917_v43, 1 }
 0x1ac   : > { %v4867_v44 = vpop.f32.mrf.mxu1  ;;  %5066 = vmatmul.mubr.msk.bf16.gmra.mxu1 %vm248_vm2, %v5370_v55  ;;  %v6225_v35 = vadd.f32 %v2284_v54, %v1956_v4  ;;  %v2096_v23 = vpop.f32.mrf.mxu0 }
 0x1ad   : > { %v1960_v58 = vadd.f32 %v4867_v44, %v6001_v38  ;;  %5069 = vmatprep.mubr.msk.bf16.mxu1 %vm248_vm2, %v5381_v63  ;;  %v2288_v48 = vrot.slane %v2096_v23, 1 }
 0x1ae   : > { %v1844_v17 = vpop.f32.mrf.mxu1  ;;  %v4918_v15 = vpop.f32.mrf.mxu0 }
 0x1af   : > { %v2289_v2 = vsel %vm1016_vm5, %v2286_v16, %v2288_v48  ;;  %v2293_v47 = vrot.slane %v4918_v15, 1 }
 0x1b0   : > { %v4868_v12 = vpop.f32.mrf.mxu1  ;;  %v6231_v55 = vadd.f32 %v2289_v2, %v1958_v20  ;;  %v2099_v59 = vpop.f32.mrf.mxu0 }
 0x1b1   : > { %v2294_v40 = vsel %vm1016_vm5, %v2291_v56, %v2293_v47  ;;  %v2290_v13 = vrot.slane %v2099_v59, 1 }
 0x1b2   : > { %v1846_v18 = vpop.f32.mrf.mxu1  ;;  %v6234_v38 = vadd.f32 %v2294_v40, %v1960_v58  ;;  %v4921_v63 = vpop.f32.mrf.mxu0  ;;  %5120 = vmatmul.mubr.msk.bf16.gmra.mxu0 %vm248_vm2, %v5385_v1 }
 0x1b3   : > { %v1959_v29 = vadd.f32 %v1846_v18, %v6004_v42  ;;  %v2292_v57 = vsel %vm1016_vm5, %v2290_v13, %v2291_v56  ;;  %5123 = vmatprep.mubr.msk.bf16.mxu0 %vm248_vm2, %v5420_v24  ;;  %v2298_v9 = vrot.slane %v4921_v63, 1 }
 0x1b4   : > { %v4871_v4 = vpop.f32.mrf.mxu1  ;;  %5070 = vmatmul.mubr.msk.bf16.gmra.mxu1 %vm248_vm2, %v5385_v1  ;;  %v2112_v53 = vpop.f32.mrf.mxu0 }
 0x1b5   : > { %v6244_v41 = vadd.f32 %v2292_v57, %v1959_v29  ;;  %5073 = vmatprep.mubr.msk.bf16.mxu1 %vm248_vm2, %v5420_v24  ;;  %v2295_v45 = vrot.slane %v2112_v53, 1 }
 0x1b6   : > { %v1858_v42 = vpop.f32.mrf.mxu1  ;;  %v4922_v11 = vpop.f32.mrf.mxu0 }
 0x1b7   : > { %v1961_v16 = vadd.f32 %v1858_v42, %v6020_v14  ;;  %v2300_v48 = vrot.slane %v4922_v11, 1  ;;  %v6868_v42 = vld [vmem:[#allocation9_spill] sm:$0xff] }
 0x1b8   : > { %v4872_v20 = vpop.f32.mrf.mxu1  ;;  %v2115_v32 = vpop.f32.mrf.mxu0 }
 0x1b9   : > { %v1963_v8 = vadd.f32 %v4872_v20, %v6035_v33  ;;  %v2296_v1 = vrot.slane %v2115_v32, 1 }
 0x1ba   : > { %v1861_v43 = vpop.f32.mrf.mxu1  ;;  %v4925_v44 = vpop.f32.mrf.mxu0  ;;  %5124 = vmatmul.mubr.msk.bf16.gmra.mxu0 %vm248_vm2, %v5424_v26 }
 0x1bb   : > { %v1962_v54 = vadd.f32 %v1861_v43, %v6023_v10  ;;  %v2297_v24 = vsel %vm1016_vm5, %v2295_v45, %v2296_v1  ;;  %v2299_v58 = vsel %vm1016_vm5, %v2296_v1, %v2298_v9  ;;  %5127 = vmatprep.mubr.msk.bf16.mxu0 %vm248_vm2, %v5436_v36  ;;  %v2305_v17 = vrot.slane %v4925_v44, 1 }
 0x1bc   : > { %v4875_v14 = vpop.f32.mrf.mxu1  ;;  %5074 = vmatmul.mubr.msk.bf16.gmra.mxu1 %vm248_vm2, %v5424_v26  ;;  %v6259_v33 = vadd.f32 %v2297_v24, %v1961_v16  ;;  %v2128_v56 = vpop.f32.mrf.mxu0  ;;  %v6869_v16 = vld [vmem:[#allocation14_spill] sm:$0xff] }
 0x1bd   : > { %v6261_v23 = vadd.f32 %v2299_v58, %v1962_v54  ;;  %v1965_v10 = vadd.f32 %v4875_v14, %v6042_v5  ;;  %5077 = vmatprep.mubr.msk.bf16.mxu1 %vm248_vm2, %v5436_v36  ;;  %v2301_v15 = vrot.slane %v2128_v56, 1  ;;  %v6870_v56 = vld [vmem:[#allocation12_spill] sm:$0xff] }
 0x1be   : > { %v1873_v2 = vpop.f32.mrf.mxu1  ;;  %v4926_v26 = vpop.f32.mrf.mxu0 }
 0x1bf   : > { %v1964_v47 = vadd.f32 %v1873_v2, %v6045_v30  ;;  %v2302_v12 = vsel %vm1016_vm5, %v2300_v48, %v2301_v15  ;;  %v2306_v59 = vrot.slane %v4926_v26, 1  ;;  %v6872_v26 = vld [vmem:[#allocation11_spill] sm:$0xff] }
 0x1c0   : > { %v4876_v40 = vpop.f32.mrf.mxu1  ;;  %v6268_v13 = vadd.f32 %v2302_v12, %v1963_v8  ;;  %v2131_v5 = vpop.f32.mrf.mxu0 }
 0x1c1   : > { %v1966_v18 = vadd.f32 %v4876_v40, %v6058_v60  ;;  %v2307_v29 = vsel %vm1016_vm5, %v2305_v17, %v2306_v59  ;;  %v2303_v63 = vrot.slane %v2131_v5, 1 }
 0x1c2   : > { %v1876_v36 = vpop.f32.mrf.mxu1  ;;  %v6272_v57 = vadd.f32 %v2307_v29, %v1965_v10  ;;  %v4929_v4 = vpop.f32.mrf.mxu0  ;;  %5128 = vmatmul.mubr.msk.bf16.gmra.mxu0 %vm248_vm2, %v6834_v6 }
 0x1c3   : > { %v2304_v30 = vsel %vm1016_vm5, %v2301_v15, %v2303_v63  ;;  %5131 = vmatprep.mubr.msk.bf16.mxu0 %vm248_vm2, %v6868_v42  ;;  %v2311_v8 = vrot.slane %v4929_v4, 1  ;;  %v6871_v15 = vld [vmem:[#allocation10_spill] sm:$0xff] }
 0x1c4   : > { %v4879_v53 = vpop.f32.mrf.mxu1  ;;  %5078 = vmatmul.mubr.msk.bf16.gmra.mxu1 %vm248_vm2, %v6834_v6  ;;  %v6281_v60 = vadd.f32 %v2304_v30, %v1964_v47  ;;  %v2144_v20 = vpop.f32.mrf.mxu0 }
 0x1c5   : > { %v1968_v11 = vadd.f32 %v4879_v53, %v6869_v16  ;;  %5081 = vmatprep.mubr.msk.bf16.mxu1 %vm248_vm2, %v6868_v42  ;;  %v2308_v32 = vrot.slane %v2144_v20, 1  ;;  %v6873_v20 = vld [vmem:[#allocation24_spill] sm:$0xff] }
 0x1c6   : > { %v1888_v9 = vpop.f32.mrf.mxu1  ;;  %v4930_v45 = vpop.f32.mrf.mxu0 }
 0x1c7   : > { %v2309_v1 = vsel %vm1016_vm5, %v2306_v59, %v2308_v32  ;;  %v2313_v43 = vrot.slane %v4930_v45, 1 }
 0x1c8   : > { %v4880_v54 = vpop.f32.mrf.mxu1  ;;  %v6287_v6 = vadd.f32 %v2309_v1, %v1966_v18  ;;  %v2147_v44 = vpop.f32.mrf.mxu0 }
 0x1c9   : > { %v2314_v24 = vsel %vm1016_vm5, %v2311_v8, %v2313_v43  ;;  %v2310_v58 = vrot.slane %v2147_v44, 1 }
 0x1ca   : > { %v1890_v14 = vpop.f32.mrf.mxu1  ;;  %v6290_v10 = vadd.f32 %v2314_v24, %v1968_v11  ;;  %v4933_v17 = vpop.f32.mrf.mxu0  ;;  %5132 = vmatmul.mubr.msk.bf16.gmra.mxu0 %vm248_vm2, %v6871_v15 }
 0x1cb   : > { %v1967_v48 = vadd.f32 %v1890_v14, %v6870_v56  ;;  %v2312_v2 = vsel %vm1016_vm5, %v2310_v58, %v2311_v8  ;;  %5135 = vmatprep.mubr.msk.bf16.mxu0 %vm248_vm2, %v6872_v26  ;;  %v2318_v4 = vrot.slane %v4933_v17, 1 }
 0x1cc   : > { %v4883_v47 = vpop.f32.mrf.mxu1  ;;  %5082 = vmatmul.mubr.msk.bf16.gmra.mxu1 %vm248_vm2, %v6871_v15  ;;  %v2160_v59 = vpop.f32.mrf.mxu0 }
 0x1cd   : > { %v6300_v12 = vadd.f32 %v2312_v2, %v1967_v48  ;;  %5085 = vmatprep.mubr.msk.bf16.mxu1 %vm248_vm2, %v6872_v26  ;;  %v2315_v30 = vrot.slane %v2160_v59, 1 }
 0x1ce   : > { %v1902_v40 = vpop.f32.mrf.mxu1  ;;  %v4934_v5 = vpop.f32.mrf.mxu0 }
 0x1cf   : > { %v1969_v18 = vadd.f32 %v1902_v40, %v6086_v51  ;;  %v2320_v43 = vrot.slane %v4934_v5, 1  ;;  %v6875_v5 = vld [vmem:[#allocation15_spill] sm:$0xff] }
 0x1d0   : > { %v4884_v29 = vpop.f32.mrf.mxu1  ;;  %v2163_v36 = vpop.f32.mrf.mxu0 }
 0x1d1   : > { %v1971_v63 = vadd.f32 %v4884_v29, %v6101_v19  ;;  %v2316_v53 = vrot.slane %v2163_v36, 1  ;;  %v6874_v19 = vld [vmem:[#allocation29_spill] sm:$0xff] }
 0x1d2   : > { %v1905_v42 = vpop.f32.mrf.mxu1  ;;  %v4937_v11 = vpop.f32.mrf.mxu0  ;;  %5136 = vmatmul.mubr.msk.bf16.gmra.mxu0 %vm248_vm2, %v6873_v20 }
 0x1d3   : > { %v1970_v16 = vadd.f32 %v1905_v42, %v6089_v49  ;;  %v2317_v8 = vsel %vm1016_vm5, %v2315_v30, %v2316_v53  ;;  %v2319_v32 = vsel %vm1016_vm5, %v2316_v53, %v2318_v4  ;;  %5139 = vmatprep.mubr.msk.bf16.mxu0 %vm248_vm2, %v6874_v19  ;;  %v2325_v54 = vrot.slane %v4937_v11, 1 }
 0x1d4   : > { %v4887_v51 = vpop.f32.mrf.mxu1  ;;  %5086 = vmatmul.mubr.msk.bf16.gmra.mxu1 %vm248_vm2, %v6873_v20  ;;  %v6315_v9 = vadd.f32 %v2317_v8, %v1969_v18  ;;  %v2176_v1 = vpop.f32.mrf.mxu0 }
 0x1d5   : > { %v6317_v45 = vadd.f32 %v2319_v32, %v1970_v16  ;;  %v1973_v49 = vadd.f32 %v4887_v51, %v6108_v39  ;;  %5089 = vmatprep.mubr.msk.bf16.mxu1 %vm248_vm2, %v6874_v19  ;;  %v2321_v44 = vrot.slane %v2176_v1, 1 }
 0x1d6   : > { %v1917_v24 = vpop.f32.mrf.mxu1  ;;  %v4938_v14 = vpop.f32.mrf.mxu0 }
 0x1d7   : > { %v1972_v58 = vadd.f32 %v1917_v24, %v6111_v3  ;;  %v2322_v56 = vsel %vm1016_vm5, %v2320_v43, %v2321_v44  ;;  %v2326_v48 = vrot.slane %v4938_v14, 1 }
 0x1d8   : > { %v4888_v17 = vpop.f32.mrf.mxu1  ;;  %v6324_v15 = vadd.f32 %v2322_v56, %v1971_v63  ;;  %v2179_v39 = vpop.f32.mrf.mxu0 }
 0x1d9   : > { %v1974_v2 = vadd.f32 %v4888_v17, %v6124_v61  ;;  %v2327_v47 = vsel %vm1016_vm5, %v2325_v54, %v2326_v48  ;;  %v2323_v26 = vrot.slane %v2179_v39, 1 }
 0x1da   : > { %v1920_v59 = vpop.f32.mrf.mxu1  ;;  %v6328_v40 = vadd.f32 %v2327_v47, %v1973_v49  ;;  %v4941_v18 = vpop.f32.mrf.mxu0  ;;  %5140 = vmatmul.mubr.msk.bf16.gmra.mxu0 %vm248_vm2, %v6875_v5 }
 0x1db   : > { %v2324_v3 = vsel %vm1016_vm5, %v2321_v44, %v2323_v26  ;;  %v2331_v4 = vrot.slane %v4941_v18, 1 }
 0x1dc   : > { %v4891_v29 = vpop.f32.mrf.mxu1  ;;  %5090 = vmatmul.mubr.msk.bf16.gmra.mxu1 %vm248_vm2, %v6875_v5  ;;  %v6335_v63 = vadd.f32 %v2324_v3, %v1972_v58  ;;  %v2192_v36 = vpop.f32.mrf.mxu0 }
 0x1dd   : > { %v1976_v61 = vadd.f32 %v4891_v29, %v6131_v46  ;;  %v2328_v30 = vrot.slane %v2192_v36, 1 }
 0x1de   : > { %v1932_v53 = vpop.f32.mrf.mxu1  ;;  %v4942_v42 = vpop.f32.mrf.mxu0 }
 0x1df   : > { %v2329_v16 = vsel %vm1016_vm5, %v2326_v48, %v2328_v30  ;;  %v2333_v11 = vrot.slane %v4942_v42, 1 }
 0x1e0   : > { %v4892_v20 = vpop.f32.mrf.mxu1  ;;  %v6339_v8 = vadd.f32 %v2329_v16, %v1974_v2  ;;  %v2195_v32 = vpop.f32.mrf.mxu0 }
 0x1e1   : > { %v2334_v51 = vsel %vm1016_vm5, %v2331_v4, %v2333_v11  ;;  %v2330_v19 = vrot.slane %v2195_v32, 1 }
 0x1e2   : > { %v1934_v49 = vpop.f32.mrf.mxu1  ;;  %v6342_v1 = vadd.f32 %v2334_v51, %v1976_v61  ;;  %v4997_v43 = vpop.f32.mrf.mxu0 }
 0x1e3   : > { %v1975_v46 = vadd.f32 %v1934_v49, %v6135_v52  ;;  %v2332_v54 = vsel %vm1016_vm5, %v2330_v19, %v2331_v4 }
 0x1e4   : > { %v4947_v44 = vpop.f32.mrf.mxu1  ;;  %v2869_v58 = vpop.f32.mrf.mxu0 }
 0x1e5   : > { %v6346_v24 = vadd.f32 %v2332_v54, %v1975_v46  ;;  %v2680_v39 = vrot.slane %v4947_v44, 2 }
 0x1e6   : > { %v2438_v14 = vpop.f32.mrf.mxu1  ;;  %v4998_v56 = vpop.f32.mrf.mxu0 }
 0x1e7   : > { %v2677_v47 = vrot.slane %v2438_v14, 2 }
 0x1e8   : > { %v4948_v48 = vpop.f32.mrf.mxu1  ;;  %v2872_v17 = vpop.f32.mrf.mxu0 }
 0x1e9   : > { %v2682_v4 = vrot.slane %v4948_v48, 2 }
 0x1ea   : > { %v2441_v2 = vpop.f32.mrf.mxu1  ;;  %v5001_v59 = vpop.f32.mrf.mxu0 }
 0x1eb   : > { %v2678_v26 = vrot.slane %v2441_v2, 2 }
 0x1ec   : > { %v4951_v18 = vpop.f32.mrf.mxu1  ;;  %v2884_v3 = vpop.f32.mrf.mxu0 }
 0x1ed   : > { %v2679_v5 = vsel %vm1439_vm4, %v2677_v47, %v2678_v26  ;;  %v2681_v52 = vsel %vm1439_vm4, %v2678_v26, %v2680_v39  ;;  %v2687_v20 = vrot.slane %v4951_v18, 2 }
 0x1ee   : > { %v2789_v29 = vadd.f32 %v2679_v5, %v6147_v25  ;;  %v2790_v61 = vadd.f32 %v2681_v52, %v6149_v0  ;;  %v2454_v36 = vpop.f32.mrf.mxu1  ;;  %v5002_v53 = vpop.f32.mrf.mxu0 }
 0x1ef   : > { %v2683_v30 = vrot.slane %v2454_v36, 2 }
 0x1f0   : > { %v4952_v42 = vpop.f32.mrf.mxu1  ;;  %v6352_v16 = vadd.f32 %v2869_v58, %v2789_v29  ;;  %v6354_v11 = vadd.f32 %v2872_v17, %v2790_v61  ;;  %v2887_v19 = vpop.f32.mrf.mxu0 }
 0x1f1   : > { %v2684_v32 = vsel %vm1439_vm4, %v2682_v4, %v2683_v30  ;;  %v2688_v51 = vrot.slane %v4952_v42, 2 }
 0x1f2   : > { %v2791_v49 = vadd.f32 %v2684_v32, %v6156_v50  ;;  %v2457_v46 = vpop.f32.mrf.mxu1  ;;  %v5005_v43 = vpop.f32.mrf.mxu0 }
 0x1f3   : > { %v2689_v25 = vsel %vm1439_vm4, %v2687_v20, %v2688_v51  ;;  %v2685_v0 = vrot.slane %v2457_v46, 2 }
 0x1f4   : > { %v2793_v54 = vadd.f32 %v2689_v25, %v6160_v27  ;;  %v4955_v44 = vpop.f32.mrf.mxu1  ;;  %v6360_v14 = vadd.f32 %v4998_v56, %v2791_v49  ;;  %v2899_v48 = vpop.f32.mrf.mxu0 }
 0x1f5   : > { %v2686_v58 = vsel %vm1439_vm4, %v2683_v30, %v2685_v0  ;;  %v2693_v5 = vrot.slane %v4955_v44, 2 }
 0x1f6   : > { %v2792_v17 = vadd.f32 %v2686_v58, %v6169_v62  ;;  %v2470_v2 = vpop.f32.mrf.mxu1  ;;  %v6364_v39 = vadd.f32 %v5001_v59, %v2793_v54  ;;  %v5006_v50 = vpop.f32.mrf.mxu0 }
 0x1f7   : > { %v2690_v47 = vrot.slane %v2470_v2, 2 }
 0x1f8   : > { %v4956_v26 = vpop.f32.mrf.mxu1  ;;  %v6366_v18 = vadd.f32 %v2884_v3, %v2792_v17  ;;  %v2901_v29 = vpop.f32.mrf.mxu0 }
 0x1f9   : > { %v2691_v52 = vsel %vm1439_vm4, %v2688_v51, %v2690_v47  ;;  %v2695_v27 = vrot.slane %v4956_v26, 2 }
 0x1fa   : > { %v2794_v56 = vadd.f32 %v2691_v52, %v6175_v37  ;;  %v2473_v61 = vpop.f32.mrf.mxu1  ;;  %v5009_v62 = vpop.f32.mrf.mxu0 }
 0x1fb   : > { %v2696_v36 = vsel %vm1439_vm4, %v2693_v5, %v2695_v27  ;;  %v2692_v4 = vrot.slane %v2473_v61, 2 }
 0x1fc   : > { %v2796_v59 = vadd.f32 %v2696_v36, %v6178_v22  ;;  %v4959_v30 = vpop.f32.mrf.mxu1  ;;  %v6372_v42 = vadd.f32 %v5002_v53, %v2794_v56  ;;  %v2913_v20 = vpop.f32.mrf.mxu0 }
 0x1fd   : > { %v2694_v3 = vsel %vm1439_vm4, %v2692_v4, %v2693_v5  ;;  %v2700_v54 = vrot.slane %v4959_v30, 2 }
 0x1fe   : > { %v2795_v32 = vadd.f32 %v2694_v3, %v6188_v31  ;;  %v2486_v51 = vpop.f32.mrf.mxu1  ;;  %v6376_v19 = vadd.f32 %v5005_v43, %v2796_v59  ;;  %v5010_v49 = vpop.f32.mrf.mxu0 }
 0x1ff   : > { %v2697_v44 = vrot.slane %v2486_v51, 2 }
 0x200   : > { %v4960_v37 = vpop.f32.mrf.mxu1  ;;  %v6378_v46 = vadd.f32 %v2901_v29, %v2795_v32  ;;  %v2916_v25 = vpop.f32.mrf.mxu0 }
 0x201   : > { %v2702_v50 = vrot.slane %v4960_v37, 2 }
 0x202   : > { %v2489_v0 = vpop.f32.mrf.mxu1  ;;  %v5013_v58 = vpop.f32.mrf.mxu0 }
 0x203   : > { %v2698_v22 = vrot.slane %v2489_v0, 2 }
 0x204   : > { %v4963_v53 = vpop.f32.mrf.mxu1  ;;  %v2928_v2 = vpop.f32.mrf.mxu0 }
 0x205   : > { %v2699_v48 = vsel %vm1439_vm4, %v2697_v44, %v2698_v22  ;;  %v2701_v17 = vsel %vm1439_vm4, %v2698_v22, %v2700_v54  ;;  %v2707_v56 = vrot.slane %v4963_v53, 2 }
 0x206   : > { %v2797_v31 = vadd.f32 %v2699_v48, %v6203_v21  ;;  %v2798_v43 = vadd.f32 %v2701_v17, %v6205_v34  ;;  %v2502_v47 = vpop.f32.mrf.mxu1  ;;  %v5014_v5 = vpop.f32.mrf.mxu0 }
 0x207   : > { %v2703_v26 = vrot.slane %v2502_v47, 2 }
 0x208   : > { %v4964_v52 = vpop.f32.mrf.mxu1  ;;  %v6384_v27 = vadd.f32 %v2913_v20, %v2797_v31  ;;  %v6386_v29 = vadd.f32 %v2916_v25, %v2798_v43  ;;  %v2931_v4 = vpop.f32.mrf.mxu0 }
 0x209   : > { %v2704_v61 = vsel %vm1439_vm4, %v2702_v50, %v2703_v26  ;;  %v2708_v36 = vrot.slane %v4964_v52, 2 }
 0x20a   : > { %v2799_v62 = vadd.f32 %v2704_v61, %v6212_v7  ;;  %v2505_v59 = vpop.f32.mrf.mxu1  ;;  %v5017_v30 = vpop.f32.mrf.mxu0 }
 0x20b   : > { %v2709_v21 = vsel %vm1439_vm4, %v2707_v56, %v2708_v36  ;;  %v2705_v34 = vrot.slane %v2505_v59, 2 }
 0x20c   : > { %v2801_v3 = vadd.f32 %v2709_v21, %v6216_v28  ;;  %v4967_v32 = vpop.f32.mrf.mxu1  ;;  %v6392_v51 = vadd.f32 %v5010_v49, %v2799_v62  ;;  %v2943_v37 = vpop.f32.mrf.mxu0 }
 0x20d   : > { %v2706_v20 = vsel %vm1439_vm4, %v2703_v26, %v2705_v34  ;;  %v2713_v48 = vrot.slane %v4967_v32, 2 }
 0x20e   : > { %v2800_v25 = vadd.f32 %v2706_v20, %v6225_v35  ;;  %v2518_v0 = vpop.f32.mrf.mxu1  ;;  %v6396_v54 = vadd.f32 %v5013_v58, %v2801_v3  ;;  %v5018_v7 = vpop.f32.mrf.mxu0 }
 0x20f   : > { %v2710_v44 = vrot.slane %v2518_v0, 2 }
 0x210   : > { %v4968_v22 = vpop.f32.mrf.mxu1  ;;  %v6398_v53 = vadd.f32 %v2928_v2, %v2800_v25  ;;  %v2945_v31 = vpop.f32.mrf.mxu0 }
 0x211   : > { %v2711_v17 = vsel %vm1439_vm4, %v2708_v36, %v2710_v44  ;;  %v2715_v28 = vrot.slane %v4968_v22, 2 }
 0x212   : > { %v2802_v49 = vadd.f32 %v2711_v17, %v6231_v55  ;;  %v2521_v43 = vpop.f32.mrf.mxu1  ;;  %v5021_v35 = vpop.f32.mrf.mxu0 }
 0x213   : > { %v2716_v47 = vsel %vm1439_vm4, %v2713_v48, %v2715_v28  ;;  %v2712_v50 = vrot.slane %v2521_v43, 2 }
 0x214   : > { %v2804_v58 = vadd.f32 %v2716_v47, %v6234_v38  ;;  %v4971_v26 = vpop.f32.mrf.mxu1  ;;  %v6404_v52 = vadd.f32 %v5014_v5, %v2802_v49  ;;  %v2957_v56 = vpop.f32.mrf.mxu0 }
 0x215   : > { %v2714_v2 = vsel %vm1439_vm4, %v2712_v50, %v2713_v48  ;;  %v2720_v3 = vrot.slane %v4971_v26, 2 }
 0x216   : > { %v2803_v61 = vadd.f32 %v2714_v2, %v6244_v41  ;;  %v2534_v36 = vpop.f32.mrf.mxu1  ;;  %v6408_v4 = vadd.f32 %v5017_v30, %v2804_v58  ;;  %v5022_v62 = vpop.f32.mrf.mxu0 }
 0x217   : > { %v2717_v32 = vrot.slane %v2534_v36, 2 }
 0x218   : > { %v4972_v55 = vpop.f32.mrf.mxu1  ;;  %v6410_v59 = vadd.f32 %v2945_v31, %v2803_v61  ;;  %v2960_v21 = vpop.f32.mrf.mxu0 }
 0x219   : > { %v2722_v7 = vrot.slane %v4972_v55, 2 }
 0x21a   : > { %v2537_v34 = vpop.f32.mrf.mxu1  ;;  %v5025_v20 = vpop.f32.mrf.mxu0 }
 0x21b   : > { %v2718_v38 = vrot.slane %v2537_v34, 2 }
 0x21c   : > { %v4975_v5 = vpop.f32.mrf.mxu1  ;;  %v2972_v0 = vpop.f32.mrf.mxu0 }
 0x21d   : > { %v2719_v37 = vsel %vm1439_vm4, %v2717_v32, %v2718_v38  ;;  %v2721_v25 = vsel %vm1439_vm4, %v2718_v38, %v2720_v3  ;;  %v2727_v49 = vrot.slane %v4975_v5, 2 }
 0x21e   : > { %v2805_v41 = vadd.f32 %v2719_v37, %v6259_v33  ;;  %v2806_v30 = vadd.f32 %v2721_v25, %v6261_v23  ;;  %v2550_v44 = vpop.f32.mrf.mxu1  ;;  %v5026_v48 = vpop.f32.mrf.mxu0 }
 0x21f   : > { %v2723_v22 = vrot.slane %v2550_v44, 2 }
 0x220   : > { %v4976_v17 = vpop.f32.mrf.mxu1  ;;  %v6416_v28 = vadd.f32 %v2957_v56, %v2805_v41  ;;  %v6418_v31 = vadd.f32 %v2960_v21, %v2806_v30  ;;  %v2975_v50 = vpop.f32.mrf.mxu0 }
 0x221   : > { %v2724_v43 = vsel %vm1439_vm4, %v2722_v7, %v2723_v22  ;;  %v2728_v47 = vrot.slane %v4976_v17, 2 }
 0x222   : > { %v2807_v35 = vadd.f32 %v2724_v43, %v6268_v13  ;;  %v2553_v58 = vpop.f32.mrf.mxu1  ;;  %v5029_v26 = vpop.f32.mrf.mxu0 }
 0x223   : > { %v2729_v33 = vsel %vm1439_vm4, %v2727_v49, %v2728_v47  ;;  %v2725_v23 = vrot.slane %v2553_v58, 2 }
 0x224   : > { %v2809_v2 = vadd.f32 %v2729_v33, %v6272_v57  ;;  %v4979_v61 = vpop.f32.mrf.mxu1  ;;  %v6424_v36 = vadd.f32 %v5022_v62, %v2807_v35  ;;  %v2987_v55 = vpop.f32.mrf.mxu0 }
 0x225   : > { %v2726_v56 = vsel %vm1439_vm4, %v2723_v22, %v2725_v23  ;;  %v2733_v37 = vrot.slane %v4979_v61, 2 }
 0x226   : > { %v2808_v21 = vadd.f32 %v2726_v56, %v6281_v60  ;;  %v2566_v34 = vpop.f32.mrf.mxu1  ;;  %v6428_v3 = vadd.f32 %v5025_v20, %v2809_v2  ;;  %v5030_v13 = vpop.f32.mrf.mxu0 }
 0x227   : > { %v2730_v32 = vrot.slane %v2566_v34, 2 }
 0x228   : > { %v4980_v38 = vpop.f32.mrf.mxu1  ;;  %v6430_v5 = vadd.f32 %v2972_v0, %v2808_v21  ;;  %v2989_v41 = vpop.f32.mrf.mxu0 }
 0x229   : > { %v2731_v25 = vsel %vm1439_vm4, %v2728_v47, %v2730_v32  ;;  %v2735_v57 = vrot.slane %v4980_v38, 2 }
 0x22a   : > { %v2810_v62 = vadd.f32 %v2731_v25, %v6287_v6  ;;  %v2569_v30 = vpop.f32.mrf.mxu1  ;;  %v5033_v60 = vpop.f32.mrf.mxu0 }
 0x22b   : > { %v2736_v44 = vsel %vm1439_vm4, %v2733_v37, %v2735_v57  ;;  %v2732_v7 = vrot.slane %v2569_v30, 2 }
 0x22c   : > { %v2812_v20 = vadd.f32 %v2736_v44, %v6290_v10  ;;  %v4983_v22 = vpop.f32.mrf.mxu1  ;;  %v6436_v17 = vadd.f32 %v5026_v48, %v2810_v62  ;;  %v3001_v49 = vpop.f32.mrf.mxu0 }
 0x22d   : > { %v2734_v0 = vsel %vm1439_vm4, %v2732_v7, %v2733_v37  ;;  %v2740_v2 = vrot.slane %v4983_v22, 2 }
 0x22e   : > { %v2811_v43 = vadd.f32 %v2734_v0, %v6300_v12  ;;  %v2582_v47 = vpop.f32.mrf.mxu1  ;;  %v6440_v50 = vadd.f32 %v5029_v26, %v2812_v20  ;;  %v5034_v35 = vpop.f32.mrf.mxu0 }
 0x22f   : > { %v2737_v61 = vrot.slane %v2582_v47, 2 }
 0x230   : > { %v4984_v6 = vpop.f32.mrf.mxu1  ;;  %v6442_v58 = vadd.f32 %v2989_v41, %v2811_v43  ;;  %v3004_v33 = vpop.f32.mrf.mxu0 }
 0x231   : > { %v2742_v13 = vrot.slane %v4984_v6, 2 }
 0x232   : > { %v2585_v23 = vpop.f32.mrf.mxu1  ;;  %v5037_v56 = vpop.f32.mrf.mxu0 }
 0x233   : > { %v2738_v10 = vrot.slane %v2585_v23, 2 }
 0x234   : > { %v4987_v48 = vpop.f32.mrf.mxu1  ;;  %v3016_v34 = vpop.f32.mrf.mxu0 }
 0x235   : > { %v2739_v55 = vsel %vm1439_vm4, %v2737_v61, %v2738_v10  ;;  %v2741_v21 = vsel %vm1439_vm4, %v2738_v10, %v2740_v2  ;;  %v2747_v62 = vrot.slane %v4987_v48, 2 }
 0x236   : > { %v2813_v12 = vadd.f32 %v2739_v55, %v6315_v9  ;;  %v2814_v26 = vadd.f32 %v2741_v21, %v6317_v45  ;;  %v2598_v32 = vpop.f32.mrf.mxu1  ;;  %v5038_v37 = vpop.f32.mrf.mxu0 }
 0x237   : > { %v2743_v38 = vrot.slane %v2598_v32, 2 }
 0x238   : > { %v4988_v25 = vpop.f32.mrf.mxu1  ;;  %v6448_v57 = vadd.f32 %v3001_v49, %v2813_v12  ;;  %v6450_v41 = vadd.f32 %v3004_v33, %v2814_v26  ;;  %v3019_v7 = vpop.f32.mrf.mxu0 }
 0x239   : > { %v2744_v30 = vsel %vm1439_vm4, %v2742_v13, %v2743_v38  ;;  %v2748_v44 = vrot.slane %v4988_v25, 2 }
 0x23a   : > { %v2815_v60 = vadd.f32 %v2744_v30, %v6324_v15  ;;  %v2601_v20 = vpop.f32.mrf.mxu1  ;;  %v5041_v22 = vpop.f32.mrf.mxu0 }
 0x23b   : > { %v2749_v9 = vsel %vm1439_vm4, %v2747_v62, %v2748_v44  ;;  %v2745_v45 = vrot.slane %v2601_v20, 2 }
 0x23c   : > { %v2817_v0 = vadd.f32 %v2749_v9, %v6328_v40  ;;  %v4991_v43 = vpop.f32.mrf.mxu1  ;;  %v6456_v47 = vadd.f32 %v5034_v35, %v2815_v60  ;;  %v3031_v6 = vpop.f32.mrf.mxu0 }
 0x23d   : > { %v2746_v49 = vsel %vm1439_vm4, %v2743_v38, %v2745_v45  ;;  %v2753_v55 = vrot.slane %v4991_v43, 2 }
 0x23e   : > { %v2816_v33 = vadd.f32 %v2746_v49, %v6335_v63  ;;  %v2614_v23 = vpop.f32.mrf.mxu1  ;;  %v6460_v2 = vadd.f32 %v5037_v56, %v2817_v0  ;;  %v5042_v15 = vpop.f32.mrf.mxu0 }
 0x23f   : > { %v2750_v61 = vrot.slane %v2614_v23, 2 }
 0x240   : > { %v4992_v10 = vpop.f32.mrf.mxu1  ;;  %v6462_v48 = vadd.f32 %v3016_v34, %v2816_v33  ;;  %v3033_v12 = vpop.f32.mrf.mxu0 }
 0x241   : > { %v2751_v21 = vsel %vm1439_vm4, %v2748_v44, %v2750_v61  ;;  %v2755_v40 = vrot.slane %v4992_v10, 2 }
 0x242   : > { %v2818_v35 = vadd.f32 %v2751_v21, %v6339_v8  ;;  %v2617_v26 = vpop.f32.mrf.mxu1  ;;  %v5097_v63 = vpop.f32.mrf.mxu0 }
 0x243   : > { %v2756_v32 = vsel %vm1439_vm4, %v2753_v55, %v2755_v40  ;;  %v2752_v13 = vrot.slane %v2617_v26, 2  ;;  %v3779_v33 = vrot.slane %v5097_v63, 2 }
 0x244   : > { %v2820_v56 = vadd.f32 %v2756_v32, %v6342_v1  ;;  %v5047_v38 = vpop.f32.mrf.mxu1  ;;  %v6468_v25 = vadd.f32 %v5038_v37, %v2818_v35  ;;  %v3537_v62 = vpop.f32.mrf.mxu0 }
 0x245   : > { %v2754_v34 = vsel %vm1439_vm4, %v2752_v13, %v2753_v55  ;;  %v3357_v0 = vrot.slane %v5047_v38, 1  ;;  %v3776_v23 = vrot.slane %v3537_v62, 2 }
 0x246   : > { %v2819_v30 = vadd.f32 %v2754_v34, %v6346_v24  ;;  %v3115_v44 = vpop.f32.mrf.mxu1  ;;  %v6472_v7 = vadd.f32 %v5041_v22, %v2820_v56  ;;  %v5098_v60 = vpop.f32.mrf.mxu0 }
 0x247   : > { %v3354_v43 = vrot.slane %v3115_v44, 1 }
 0x248   : > { %v5048_v8 = vpop.f32.mrf.mxu1  ;;  %v6474_v20 = vadd.f32 %v3033_v12, %v2819_v30  ;;  %v3540_v9 = vpop.f32.mrf.mxu0 }
 0x249   : > { %v3777_v1 = vrot.slane %v3540_v9, 2  ;;  %v3359_v15 = vrot.slane %v5048_v8, 1 }
 0x24a   : > { %v3118_v45 = vpop.f32.mrf.mxu1  ;;  %v5101_v49 = vpop.f32.mrf.mxu0 }
 0x24b   : > { %v3355_v37 = vrot.slane %v3118_v45, 1  ;;  %v3778_v40 = vsel %vm1439_vm4, %v3776_v23, %v3777_v1  ;;  %v3780_v12 = vsel %vm1439_vm4, %v3777_v1, %v3779_v33  ;;  %v3786_v63 = vrot.slane %v5101_v49, 2 }
 0x24c   : > { %v5051_v6 = vpop.f32.mrf.mxu1  ;;  %v3553_v61 = vpop.f32.mrf.mxu0 }
 0x24d   : > { %v3356_v24 = vsel %vm1016_vm5, %v3354_v43, %v3355_v37  ;;  %v3358_v22 = vsel %vm1016_vm5, %v3355_v37, %v3357_v0  ;;  %v3782_v35 = vrot.slane %v3553_v61, 2  ;;  %v3364_v38 = vrot.slane %v5051_v6, 1 }
 0x24e   : > { %v3466_v10 = vadd.f32 %v3356_v24, %v6352_v16  ;;  %v3467_v55 = vadd.f32 %v3358_v22, %v6354_v11  ;;  %v3131_v21 = vpop.f32.mrf.mxu1  ;;  %v5102_v32 = vpop.f32.mrf.mxu0  ;;  %v3781_v16 = vrot.slane %v5098_v60, 2 }
 0x24f   : > { %v3360_v26 = vrot.slane %v3131_v21, 1  ;;  %v3787_v62 = vrot.slane %v5102_v32, 2 }
 0x250   : > { %v3888_v13 = vadd.f32 %v3778_v40, %v3466_v10  ;;  %v3889_v11 = vadd.f32 %v3780_v12, %v3467_v55  ;;  %v5052_v56 = vpop.f32.mrf.mxu1  ;;  %v3556_v44 = vpop.f32.mrf.mxu0  ;;  %v3783_v1 = vsel %vm1439_vm4, %v3781_v16, %v3782_v35 }
 0x251   : > { %v3361_v34 = vsel %vm1016_vm5, %v3359_v15, %v3360_v26  ;;  %v3365_v30 = vrot.slane %v5052_v56, 1  ;;  %v3784_v22 = vrot.slane %v3556_v44, 2  ;;  %v3788_v55 = vsel %vm1439_vm4, %v3786_v63, %v3787_v62 }
 0x252   : > { %3921 = vst.msk [vmem:[%s6487_s18] sm:$0xff] %vm3920_vm6, %v3888_v13  ;;  %3922 = vst.msk [vmem:[%s6487_s18 + $0x8] sm:$0xff] %vm3920_vm6, %v3889_v11  ;;  %v3953_v8 = vsel %vm3920_vm6, %v3888_v13, 0.0  ;;  %v3954_v9 = vsel %vm3920_vm6, %v3889_v11, 0.0  ;;  %v4024_v45 = vmul.f32 %v3888_v13, %v3888_v13  ;;  %v4025_v60 = vmul.f32 %v3889_v11, %v3889_v11  ;;  %v3134_v0 = vpop.f32.mrf.mxu1  ;;  %v6499_v6 = vpop.f32.mrf.mxu0 }
 0x253   : > { %v3955_v43 = vadd.f32 %v3954_v9, %v3953_v8  ;;  %v3468_v37 = vadd.f32 %v3361_v34, %v6360_v14  ;;  %v3366_v49 = vsel %vm1016_vm5, %v3364_v38, %v3365_v30  ;;  %v3362_v21 = vrot.slane %v3134_v0, 1 }
 0x254   : > { %v4056_v33 = vsel %vm3920_vm6, %v4024_v45, 0.0  ;;  %v4057_v23 = vsel %vm3920_vm6, %v4025_v60, 0.0  ;;  %v3470_v24 = vadd.f32 %v3366_v49, %v6364_v39  ;;  %v5055_v61 = vpop.f32.mrf.mxu1  ;;  %v3569_v14 = vpop.f32.mrf.mxu0  ;;  %v3792_v12 = vrot.slane %v6499_v6, 2 }
 0x255   : > { %v4058_v15 = vadd.f32 %v4057_v23, %v4056_v33  ;;  %v3890_v10 = vadd.f32 %v3783_v1, %v3468_v37  ;;  %v3789_v32 = vrot.slane %v3569_v14, 2  ;;  %v3363_v39 = vsel %vm1016_vm5, %v3360_v26, %v3362_v21 }
 0x256   : > { %v3892_v40 = vadd.f32 %v3788_v55, %v3470_v24  ;;  %v3147_v16 = vpop.f32.mrf.mxu1  ;;  %v5106_v38 = vpop.f32.mrf.mxu0  ;;  %v3785_v44 = vsel %vm1439_vm4, %v3782_v35, %v3784_v22  ;;  %v3469_v8 = vadd.f32 %v3363_v39, %v6366_v18  ;;  %v3370_v60 = vrot.slane %v5055_v61, 1 }
 0x257   : > { %3923 = vst.msk [vmem:[%s6487_s18 + $0x10] sm:$0xff] %vm3920_vm6, %v3890_v10  ;;  %v3956_v13 = vsel %vm3920_vm6, %v3890_v10, 0.0  ;;  %v4026_v11 = vmul.f32 %v3890_v10, %v3890_v10  ;;  %v3367_v56 = vrot.slane %v3147_v16, 1  ;;  %v3794_v1 = vrot.slane %v5106_v38, 2 }
 0x258   : > { %v3957_v34 = vadd.f32 %v3956_v13, %v3955_v43  ;;  %3925 = vst.msk [vmem:[%s6487_s18 + $0x20] sm:$0xff] %vm3920_vm6, %v3892_v40  ;;  %v4028_v63 = vmul.f32 %v3892_v40, %v3892_v40  ;;  %v5056_v9 = vpop.f32.mrf.mxu1  ;;  %v3572_v37 = vpop.f32.mrf.mxu0  ;;  %v3960_v49 = vsel %vm3920_vm6, %v3892_v40, 0.0  ;;  %v3891_v43 = vadd.f32 %v3785_v44, %v3469_v8 }
 0x259   : > { %v4059_v45 = vsel %vm3920_vm6, %v4026_v11, 0.0  ;;  %v3368_v0 = vsel %vm1016_vm5, %v3365_v30, %v3367_v56  ;;  %v3790_v18 = vsel %vm1439_vm4, %v3787_v62, %v3789_v32  ;;  %v3372_v23 = vrot.slane %v5056_v9, 1 }
 0x25a   : > { %v4060_v26 = vadd.f32 %v4059_v45, %v4058_v15  ;;  %v3471_v6 = vadd.f32 %v3368_v0, %v6372_v42  ;;  %v3150_v33 = vpop.f32.mrf.mxu1  ;;  %v4063_v35 = vsel %vm3920_vm6, %v4028_v63, 0.0  ;;  %v5109_v22 = vpop.f32.mrf.mxu0  ;;  %3924 = vst.msk [vmem:[%s6487_s18 + $0x18] sm:$0xff] %vm3920_vm6, %v3891_v43  ;;  %v3958_v30 = vsel %vm3920_vm6, %v3891_v43, 0.0 }
 0x25b   : > { %v3369_v24 = vrot.slane %v3150_v33, 1  ;;  %v4027_v61 = vmul.f32 %v3891_v43, %v3891_v43  ;;  %v3791_v10 = vrot.slane %v3572_v37, 2  ;;  %v3959_v21 = vadd.f32 %v3958_v30, %v3957_v34 }
 0x25c   : > { %v3893_v15 = vadd.f32 %v3790_v18, %v3471_v6  ;;  %v5059_v55 = vpop.f32.mrf.mxu1  ;;  %v3795_v42 = vsel %vm1439_vm4, %v3792_v12, %v3794_v1  ;;  %v3373_v14 = vsel %vm1016_vm5, %v3370_v60, %v3372_v23  ;;  %v3585_v62 = vpop.f32.mrf.mxu0  ;;  %v3799_v63 = vrot.slane %v5109_v22, 2 }
 0x25d   : > { %v3371_v40 = vsel %vm1016_vm5, %v3369_v24, %v3370_v60  ;;  %v4061_v32 = vsel %vm3920_vm6, %v4027_v61, 0.0  ;;  %v3473_v11 = vadd.f32 %v3373_v14, %v6376_v19  ;;  %v3961_v38 = vadd.f32 %v3960_v49, %v3959_v21 }
 0x25e   : > { %3926 = vst.msk [vmem:[%s6487_s18 + $0x28] sm:$0xff] %vm3920_vm6, %v3893_v15  ;;  %v3962_v16 = vsel %vm3920_vm6, %v3893_v15, 0.0  ;;  %v4029_v13 = vmul.f32 %v3893_v15, %v3893_v15  ;;  %v3163_v39 = vpop.f32.mrf.mxu1  ;;  %v4062_v56 = vadd.f32 %v4061_v32, %v4060_v26  ;;  %v3472_v34 = vadd.f32 %v3371_v40, %v6378_v46  ;;  %v5110_v44 = vpop.f32.mrf.mxu0 }
 0x25f   : > { %v3895_v9 = vadd.f32 %v3795_v42, %v3473_v11  ;;  %v3793_v45 = vsel %vm1439_vm4, %v3791_v10, %v3792_v12  ;;  %v3377_v60 = vrot.slane %v5059_v55, 1  ;;  %v3963_v1 = vadd.f32 %v3962_v16, %v3961_v38 }
 0x260   : > { %v4065_v8 = vsel %vm3920_vm6, %v4029_v13, 0.0  ;;  %v5060_v0 = vpop.f32.mrf.mxu1  ;;  %v4064_v37 = vadd.f32 %v4063_v35, %v4062_v56  ;;  %v3894_v43 = vadd.f32 %v3793_v45, %v3472_v34  ;;  %v3796_v19 = vrot.slane %v3585_v62, 2  ;;  %v3588_v6 = vpop.f32.mrf.mxu0 }
 0x261   : > { %3928 = vst.msk [vmem:[%s6487_s18 + $0x38] sm:$0xff] %vm3920_vm6, %v3895_v9  ;;  %v4031_v26 = vmul.f32 %v3895_v9, %v3895_v9  ;;  %v3374_v49 = vrot.slane %v3163_v39, 1  ;;  %v3801_v46 = vrot.slane %v5110_v44, 2  ;;  %v3797_v33 = vrot.slane %v3588_v6, 2 }
 0x262   : > { %v3166_v18 = vpop.f32.mrf.mxu1  ;;  %v4066_v23 = vadd.f32 %v4065_v8, %v4064_v37  ;;  %3927 = vst.msk [vmem:[%s6487_s18 + $0x30] sm:$0xff] %vm3920_vm6, %v3894_v43  ;;  %v3964_v24 = vsel %vm3920_vm6, %v3894_v43, 0.0  ;;  %v4030_v12 = vmul.f32 %v3894_v43, %v3894_v43  ;;  %v5113_v30 = vpop.f32.mrf.mxu0  ;;  %v3966_v35 = vsel %vm3920_vm6, %v3895_v9, 0.0 }
 0x263   : > { %v3375_v22 = vrot.slane %v3166_v18, 1  ;;  %v4069_v61 = vsel %vm3920_vm6, %v4031_v26, 0.0  ;;  %v3965_v15 = vadd.f32 %v3964_v24, %v3963_v1  ;;  %v3379_v10 = vrot.slane %v5060_v0, 1 }
 0x264   : > { %v5063_v55 = vpop.f32.mrf.mxu1  ;;  %v4067_v21 = vsel %vm3920_vm6, %v4030_v12, 0.0  ;;  %v3798_v42 = vsel %vm1439_vm4, %v3796_v19, %v3797_v33  ;;  %v3601_v62 = vpop.f32.mrf.mxu0  ;;  %v3800_v56 = vsel %vm1439_vm4, %v3797_v33, %v3799_v63  ;;  %v3806_v38 = vrot.slane %v5113_v30, 2 }
 0x265   : > { %v3376_v14 = vsel %vm1016_vm5, %v3374_v49, %v3375_v22  ;;  %v3378_v40 = vsel %vm1016_vm5, %v3375_v22, %v3377_v60  ;;  %v4068_v32 = vadd.f32 %v4067_v21, %v4066_v23  ;;  %v3967_v11 = vadd.f32 %v3966_v35, %v3965_v15 }
 0x266   : > { %v3474_v16 = vadd.f32 %v3376_v14, %v6384_v27  ;;  %v3475_v13 = vadd.f32 %v3378_v40, %v6386_v29  ;;  %v3179_v39 = vpop.f32.mrf.mxu1  ;;  %v3802_v34 = vrot.slane %v3601_v62, 2  ;;  %v5114_v8 = vpop.f32.mrf.mxu0  ;;  %v3384_v37 = vrot.slane %v5063_v55, 1 }
 0x267   : > { %v3380_v44 = vrot.slane %v3179_v39, 1  ;;  %v4070_v0 = vadd.f32 %v4069_v61, %v4068_v32  ;;  %v3807_v60 = vrot.slane %v5114_v8, 2 }
 0x268   : > { %v3896_v9 = vadd.f32 %v3798_v42, %v3474_v16  ;;  %v3897_v45 = vadd.f32 %v3800_v56, %v3475_v13  ;;  %v5064_v1 = vpop.f32.mrf.mxu1  ;;  %v3604_v29 = vpop.f32.mrf.mxu0  ;;  %v3803_v26 = vsel %vm1439_vm4, %v3801_v46, %v3802_v34 }
 0x269   : > { %v3381_v27 = vsel %vm1016_vm5, %v3379_v10, %v3380_v44  ;;  %v3385_v43 = vrot.slane %v5064_v1, 1  ;;  %v3808_v30 = vsel %vm1439_vm4, %v3806_v38, %v3807_v60  ;;  %v3804_v61 = vrot.slane %v3604_v29, 2 }
 0x26a   : > { %3929 = vst.msk [vmem:[%s6487_s18 + $0x40] sm:$0xff] %vm3920_vm6, %v3896_v9  ;;  %3930 = vst.msk [vmem:[%s6487_s18 + $0x48] sm:$0xff] %vm3920_vm6, %v3897_v45  ;;  %v3968_v63 = vsel %vm3920_vm6, %v3896_v9, 0.0  ;;  %v4032_v19 = vmul.f32 %v3896_v9, %v3896_v9  ;;  %v4033_v6 = vmul.f32 %v3897_v45, %v3897_v45  ;;  %v3182_v49 = vpop.f32.mrf.mxu1  ;;  %v3970_v18 = vsel %vm3920_vm6, %v3897_v45, 0.0  ;;  %v6558_v12 = vpop.f32.mrf.mxu0 }
 0x26b   : > { %v3969_v33 = vadd.f32 %v3968_v63, %v3967_v11  ;;  %v3476_v23 = vadd.f32 %v3381_v27, %v6392_v51  ;;  %v3386_v24 = vsel %vm1016_vm5, %v3384_v37, %v3385_v43  ;;  %v3382_v21 = vrot.slane %v3182_v49, 1 }
 0x26c   : > { %v4071_v22 = vsel %vm3920_vm6, %v4032_v19, 0.0  ;;  %v3478_v35 = vadd.f32 %v3386_v24, %v6396_v54  ;;  %v5067_v15 = vpop.f32.mrf.mxu1  ;;  %v3617_v42 = vpop.f32.mrf.mxu0  ;;  %v4073_v51 = vsel %vm3920_vm6, %v4033_v6, 0.0  ;;  %v3805_v39 = vsel %vm1439_vm4, %v3802_v34, %v3804_v61 }
 0x26d   : > { %v3971_v46 = vadd.f32 %v3970_v18, %v3969_v33  ;;  %v4072_v10 = vadd.f32 %v4071_v22, %v4070_v0  ;;  %v3898_v55 = vadd.f32 %v3803_v26, %v3476_v23  ;;  %v3383_v54 = vsel %vm1016_vm5, %v3380_v44, %v3382_v21 }
 0x26e   : > { %v3900_v14 = vadd.f32 %v3808_v30, %v3478_v35  ;;  %v3195_v40 = vpop.f32.mrf.mxu1  ;;  %v5118_v13 = vpop.f32.mrf.mxu0  ;;  %v3477_v56 = vadd.f32 %v3383_v54, %v6398_v53  ;;  %v3812_v38 = vrot.slane %v6558_v12, 2  ;;  %v3390_v45 = vrot.slane %v5067_v15, 1 }
 0x26f   : > { %v4074_v62 = vadd.f32 %v4073_v51, %v4072_v10  ;;  %3931 = vst.msk [vmem:[%s6487_s18 + $0x50] sm:$0xff] %vm3920_vm6, %v3898_v55  ;;  %v3972_v32 = vsel %vm3920_vm6, %v3898_v55, 0.0  ;;  %v4034_v16 = vmul.f32 %v3898_v55, %v3898_v55  ;;  %v3809_v0 = vrot.slane %v3617_v42, 2 }
 0x270   : > { %v3973_v11 = vadd.f32 %v3972_v32, %v3971_v46  ;;  %3933 = vst.msk [vmem:[%s6487_s18 + $0x60] sm:$0xff] %vm3920_vm6, %v3900_v14  ;;  %v5068_v8 = vpop.f32.mrf.mxu1  ;;  %v3387_v1 = vrot.slane %v3195_v40, 1  ;;  %v3620_v37 = vpop.f32.mrf.mxu0  ;;  %v3899_v44 = vadd.f32 %v3805_v39, %v3477_v56  ;;  %v3814_v29 = vrot.slane %v5118_v13, 2 }
 0x271   : > { %v4075_v9 = vsel %vm3920_vm6, %v4034_v16, 0.0  ;;  %v3392_v63 = vrot.slane %v5068_v8, 1  ;;  %v4036_v6 = vmul.f32 %v3900_v14, %v3900_v14  ;;  %v3810_v34 = vsel %vm1439_vm4, %v3807_v60, %v3809_v0 }
 0x272   : > { %v4076_v27 = vadd.f32 %v4075_v9, %v4074_v62  ;;  %v3198_v19 = vpop.f32.mrf.mxu1  ;;  %v3388_v53 = vsel %vm1016_vm5, %v3385_v43, %v3387_v1  ;;  %v6576_v26 = vpop.f32.mrf.mxu0  ;;  %3932 = vst.msk [vmem:[%s6487_s18 + $0x58] sm:$0xff] %vm3920_vm6, %v3899_v44  ;;  %v3974_v49 = vsel %vm3920_vm6, %v3899_v44, 0.0  ;;  %v4035_v33 = vmul.f32 %v3899_v44, %v3899_v44 }
 0x273   : > { %v3479_v18 = vadd.f32 %v3388_v53, %v6404_v52  ;;  %v3393_v23 = vsel %vm1016_vm5, %v3390_v45, %v3392_v63  ;;  %v3975_v12 = vadd.f32 %v3974_v49, %v3973_v11  ;;  %v3811_v30 = vrot.slane %v3620_v37, 2 }
 0x274   : > { %v5071_v24 = vpop.f32.mrf.mxu1  ;;  %v3481_v22 = vadd.f32 %v3393_v23, %v6408_v4  ;;  %v3389_v60 = vrot.slane %v3198_v19, 1  ;;  %v3633_v35 = vpop.f32.mrf.mxu0  ;;  %v3976_v43 = vsel %vm3920_vm6, %v3900_v14, 0.0  ;;  %v4077_v61 = vsel %vm3920_vm6, %v4035_v33, 0.0 }
 0x275   : > { %v3901_v15 = vadd.f32 %v3810_v34, %v3479_v18  ;;  %v3815_v46 = vsel %vm1439_vm4, %v3812_v38, %v3814_v29  ;;  %v4078_v52 = vadd.f32 %v4077_v61, %v4076_v27  ;;  %v3977_v55 = vadd.f32 %v3976_v43, %v3975_v12 }
 0x276   : > { %v3211_v10 = vpop.f32.mrf.mxu1  ;;  %v3903_v21 = vadd.f32 %v3815_v46, %v3481_v22  ;;  %v3391_v42 = vsel %vm1016_vm5, %v3389_v60, %v3390_v45  ;;  %v6588_v51 = vpop.f32.mrf.mxu0  ;;  %v4079_v4 = vsel %vm3920_vm6, %v4036_v6, 0.0  ;;  %v3813_v11 = vsel %vm1439_vm4, %v3811_v30, %v3812_v38 }
 0x277   : > { %3934 = vst.msk [vmem:[%s6487_s18 + $0x68] sm:$0xff] %vm3920_vm6, %v3901_v15  ;;  %v3978_v14 = vsel %vm3920_vm6, %v3901_v15, 0.0  ;;  %v4037_v40 = vmul.f32 %v3901_v15, %v3901_v15  ;;  %v3480_v62 = vadd.f32 %v3391_v42, %v6410_v59  ;;  %v4080_v54 = vadd.f32 %v4079_v4, %v4078_v52 }
 0x278   : > { %v5072_v32 = vpop.f32.mrf.mxu1  ;;  %v3979_v16 = vadd.f32 %v3978_v14, %v3977_v55  ;;  %3936 = vst.msk [vmem:[%s6487_s18 + $0x78] sm:$0xff] %vm3920_vm6, %v3903_v21  ;;  %v4039_v13 = vmul.f32 %v3903_v21, %v3903_v21  ;;  %v3636_v39 = vpop.f32.mrf.mxu0  ;;  %v3819_v9 = vrot.slane %v6576_v26, 2  ;;  %v3397_v1 = vrot.slane %v5071_v24, 1 }
 0x279   : > { %v4081_v56 = vsel %vm3920_vm6, %v4037_v40, 0.0  ;;  %v3902_v8 = vadd.f32 %v3813_v11, %v3480_v62  ;;  %v3816_v37 = vrot.slane %v3633_v35, 2  ;;  %v3394_v59 = vrot.slane %v3211_v10, 1 }
 0x27a   : > { %v3214_v45 = vpop.f32.mrf.mxu1  ;;  %v4082_v0 = vadd.f32 %v4081_v56, %v4080_v54  ;;  %v5125_v27 = vpop.f32.mrf.mxu0  ;;  %v3817_v63 = vrot.slane %v3636_v39, 2  ;;  %v3982_v6 = vsel %vm3920_vm6, %v3903_v21, 0.0  ;;  %v4085_v34 = vsel %vm3920_vm6, %v4039_v13, 0.0 }
 0x27b   : > { %3935 = vst.msk [vmem:[%s6487_s18 + $0x70] sm:$0xff] %vm3920_vm6, %v3902_v8  ;;  %v3980_v44 = vsel %vm3920_vm6, %v3902_v8, 0.0  ;;  %v4038_v29 = vmul.f32 %v3902_v8, %v3902_v8  ;;  %v3395_v19 = vrot.slane %v3214_v45, 1  ;;  %v3821_v26 = vrot.slane %v6588_v51, 2 }
 0x27c   : > { %v5075_v38 = vpop.f32.mrf.mxu1  ;;  %v3981_v53 = vadd.f32 %v3980_v44, %v3979_v16  ;;  %v3649_v49 = vpop.f32.mrf.mxu0  ;;  %v3399_v18 = vrot.slane %v5072_v32, 1  ;;  %v3818_v61 = vsel %vm1439_vm4, %v3816_v37, %v3817_v63  ;;  %v3820_v15 = vsel %vm1439_vm4, %v3817_v63, %v3819_v9 }
 0x27d   : > { %v4083_v33 = vsel %vm3920_vm6, %v4038_v29, 0.0  ;;  %v3396_v23 = vsel %vm1016_vm5, %v3394_v59, %v3395_v19  ;;  %v3398_v24 = vsel %vm1016_vm5, %v3395_v19, %v3397_v1  ;;  %v3822_v46 = vrot.slane %v3649_v49, 2 }
 0x27e   : > { %v3227_v12 = vpop.f32.mrf.mxu1  ;;  %v4084_v22 = vadd.f32 %v4083_v33, %v4082_v0  ;;  %v3482_v30 = vadd.f32 %v3396_v23, %v6416_v28  ;;  %v3483_v60 = vadd.f32 %v3398_v24, %v6418_v31  ;;  %v3983_v35 = vadd.f32 %v3982_v6, %v3981_v53  ;;  %v6611_v43 = vpop.f32.mrf.mxu0 }
 0x27f   : > { %v3400_v10 = vrot.slane %v3227_v12, 1  ;;  %v3826_v31 = vrot.slane %v5125_v27, 2  ;;  %v3404_v4 = vrot.slane %v5075_v38, 1  ;;  %v3827_v40 = vrot.slane %v6611_v43, 2 }
 0x280   : > { %v6615_v52 = vpop.f32.mrf.mxu1  ;;  %v3904_v55 = vadd.f32 %v3818_v61, %v3482_v30  ;;  %v3905_v21 = vadd.f32 %v3820_v15, %v3483_v60  ;;  %v4086_v42 = vadd.f32 %v4085_v34, %v4084_v22  ;;  %v3652_v51 = vpop.f32.mrf.mxu0  ;;  %v3823_v56 = vsel %vm1439_vm4, %v3821_v26, %v3822_v46 }
 0x281   : > { %v3405_v28 = vrot.slane %v6615_v52, 1  ;;  %v3401_v14 = vsel %vm1016_vm5, %v3399_v18, %v3400_v10  ;;  %v3824_v13 = vrot.slane %v3652_v51, 2  ;;  %v3828_v19 = vsel %vm1439_vm4, %v3826_v31, %v3827_v40 }
 0x282   : > { %v3230_v62 = vpop.f32.mrf.mxu1  ;;  %3937 = vst.msk [vmem:[%s6487_s18 + $0x80] sm:$0xff] %vm3920_vm6, %v3904_v55  ;;  %3938 = vst.msk [vmem:[%s6487_s18 + $0x88] sm:$0xff] %vm3920_vm6, %v3905_v21  ;;  %v3984_v32 = vsel %vm3920_vm6, %v3904_v55, 0.0  ;;  %v4040_v16 = vmul.f32 %v3904_v55, %v3904_v55  ;;  %v4041_v54 = vmul.f32 %v3905_v21, %v3905_v21  ;;  %v6625_v11 = vpop.f32.mrf.mxu0  ;;  %v3484_v8 = vadd.f32 %v3401_v14, %v6424_v36 }
 0x283   : > { %v3985_v39 = vadd.f32 %v3984_v32, %v3983_v35  ;;  %v3406_v9 = vsel %vm1016_vm5, %v3404_v4, %v3405_v28  ;;  %v3986_v0 = vsel %vm3920_vm6, %v3905_v21, 0.0  ;;  %v3402_v59 = vrot.slane %v3230_v62, 1 }
 0x284   : > { %v6630_v45 = vpop.f32.mrf.mxu1  ;;  %v4087_v1 = vsel %vm3920_vm6, %v4040_v16, 0.0  ;;  %v3486_v37 = vadd.f32 %v3406_v9, %v6428_v3  ;;  %v3665_v27 = vpop.f32.mrf.mxu0  ;;  %v3906_v63 = vadd.f32 %v3823_v56, %v3484_v8  ;;  %v4089_v38 = vsel %vm3920_vm6, %v4041_v54, 0.0 }
 0x285   : > { %v3987_v44 = vadd.f32 %v3986_v0, %v3985_v39  ;;  %v4088_v29 = vadd.f32 %v4087_v1, %v4086_v42  ;;  %v3825_v34 = vsel %vm1439_vm4, %v3822_v46, %v3824_v13  ;;  %v3403_v53 = vsel %vm1016_vm5, %v3400_v10, %v3402_v59 }
 0x286   : > { %v3243_v36 = vpop.f32.mrf.mxu1  ;;  %v3908_v6 = vadd.f32 %v3828_v19, %v3486_v37  ;;  %v5130_v26 = vpop.f32.mrf.mxu0  ;;  %3939 = vst.msk [vmem:[%s6487_s18 + $0x90] sm:$0xff] %vm3920_vm6, %v3906_v63  ;;  %v3988_v3 = vsel %vm3920_vm6, %v3906_v63, 0.0  ;;  %v4042_v33 = vmul.f32 %v3906_v63, %v3906_v63  ;;  %v3485_v18 = vadd.f32 %v3403_v53, %v6430_v5 }
 0x287   : > { %v4090_v49 = vadd.f32 %v4089_v38, %v4088_v29  ;;  %v3989_v24 = vadd.f32 %v3988_v3, %v3987_v44  ;;  %v3832_v12 = vrot.slane %v6625_v11, 2  ;;  %v3410_v22 = vrot.slane %v6630_v45, 1 }
 0x288   : > { %v5080_v23 = vpop.f32.mrf.mxu1  ;;  %3941 = vst.msk [vmem:[%s6487_s18 + $0xa0] sm:$0xff] %vm3920_vm6, %v3908_v6  ;;  %v3829_v30 = vrot.slane %v3665_v27, 2  ;;  %v3668_v60 = vpop.f32.mrf.mxu0  ;;  %v4091_v35 = vsel %vm3920_vm6, %v4042_v33, 0.0  ;;  %v4044_v43 = vmul.f32 %v3908_v6, %v3908_v6  ;;  %v3907_v61 = vadd.f32 %v3825_v34, %v3485_v18 }
 0x289   : > { %v3407_v15 = vrot.slane %v3243_v36, 1  ;;  %v4092_v10 = vadd.f32 %v4091_v35, %v4090_v49  ;;  %v3992_v5 = vsel %vm3920_vm6, %v3908_v6, 0.0  ;;  %v3834_v52 = vrot.slane %v5130_v26, 2 }
 0x28a   : > { %v3246_v46 = vpop.f32.mrf.mxu1  ;;  %v3412_v55 = vrot.slane %v5080_v23, 1  ;;  %v6649_v21 = vpop.f32.mrf.mxu0  ;;  %3940 = vst.msk [vmem:[%s6487_s18 + $0x98] sm:$0xff] %vm3920_vm6, %v3907_v61  ;;  %v3990_v42 = vsel %vm3920_vm6, %v3907_v61, 0.0  ;;  %v4043_v51 = vmul.f32 %v3907_v61, %v3907_v61  ;;  %v3831_v4 = vrot.slane %v3668_v60, 2 }
 0x28b   : > { %v3408_v31 = vsel %vm1016_vm5, %v3405_v28, %v3407_v15  ;;  %v3991_v62 = vadd.f32 %v3990_v42, %v3989_v24  ;;  %v3830_v32 = vsel %vm1439_vm4, %v3827_v40, %v3829_v30  ;;  %v4095_v11 = vsel %vm3920_vm6, %v4044_v43, 0.0 }
 0x28c   : > { %v5083_v14 = vpop.f32.mrf.mxu1  ;;  %v3487_v16 = vadd.f32 %v3408_v31, %v6436_v17  ;;  %v3413_v54 = vsel %vm1016_vm5, %v3410_v22, %v3412_v55  ;;  %v3681_v13 = vpop.f32.mrf.mxu0  ;;  %v4093_v39 = vsel %vm3920_vm6, %v4043_v51, 0.0  ;;  %v3409_v8 = vrot.slane %v3246_v46, 1 }
 0x28d   : > { %v3489_v56 = vadd.f32 %v3413_v54, %v6440_v50  ;;  %v4094_v28 = vadd.f32 %v4093_v39, %v4092_v10  ;;  %v3993_v0 = vadd.f32 %v3992_v5, %v3991_v62  ;;  %v3835_v40 = vsel %vm1439_vm4, %v3832_v12, %v3834_v52 }
 0x28e   : > { %v3259_v9 = vpop.f32.mrf.mxu1  ;;  %v3909_v45 = vadd.f32 %v3830_v32, %v3487_v16  ;;  %v6662_v1 = vpop.f32.mrf.mxu0  ;;  %v3833_v37 = vsel %vm1439_vm4, %v3831_v4, %v3832_v12  ;;  %v3411_v59 = vsel %vm1016_vm5, %v3409_v8, %v3410_v22  ;;  %v3839_v27 = vrot.slane %v6649_v21, 2 }
 0x28f   : > { %v3911_v17 = vadd.f32 %v3835_v40, %v3489_v56  ;;  %v4096_v63 = vadd.f32 %v4095_v11, %v4094_v28  ;;  %v3488_v19 = vadd.f32 %v3411_v59, %v6442_v58  ;;  %v3417_v34 = vrot.slane %v5083_v14, 1 }
 0x290   : > { %v5084_v44 = vpop.f32.mrf.mxu1  ;;  %3942 = vst.msk [vmem:[%s6487_s18 + $0xa8] sm:$0xff] %vm3920_vm6, %v3909_v45  ;;  %v3994_v50 = vsel %vm3920_vm6, %v3909_v45, 0.0  ;;  %v4045_v29 = vmul.f32 %v3909_v45, %v3909_v45  ;;  %v3684_v36 = vpop.f32.mrf.mxu0  ;;  %v3836_v53 = vrot.slane %v3681_v13, 2  ;;  %v3414_v33 = vrot.slane %v3259_v9, 1 }
 0x291   : > { %v3995_v38 = vadd.f32 %v3994_v50, %v3993_v0  ;;  %3944 = vst.msk [vmem:[%s6487_s18 + $0xb8] sm:$0xff] %vm3920_vm6, %v3911_v17  ;;  %v4047_v6 = vmul.f32 %v3911_v17, %v3911_v17  ;;  %v3910_v3 = vadd.f32 %v3833_v37, %v3488_v19  ;;  %v3837_v18 = vrot.slane %v3684_v36, 2 }
 0x292   : > { %v3262_v26 = vpop.f32.mrf.mxu1  ;;  %v4097_v49 = vsel %vm3920_vm6, %v4045_v29, 0.0  ;;  %v5137_v23 = vpop.f32.mrf.mxu0  ;;  %v3998_v12 = vsel %vm3920_vm6, %v3911_v17, 0.0  ;;  %v3841_v58 = vrot.slane %v6662_v1, 2  ;;  %v3419_v61 = vrot.slane %v5084_v44, 1 }
 0x293   : > { %v4098_v24 = vadd.f32 %v4097_v49, %v4096_v63  ;;  %v3415_v22 = vrot.slane %v3262_v26, 1  ;;  %v4101_v60 = vsel %vm3920_vm6, %v4047_v6, 0.0  ;;  %3943 = vst.msk [vmem:[%s6487_s18 + $0xb0] sm:$0xff] %vm3920_vm6, %v3910_v3  ;;  %v3996_v35 = vsel %vm3920_vm6, %v3910_v3, 0.0 }
 0x294   : > { %v5087_v30 = vpop.f32.mrf.mxu1  ;;  %v4046_v43 = vmul.f32 %v3910_v3, %v3910_v3  ;;  %v3697_v15 = vpop.f32.mrf.mxu0  ;;  %v3997_v46 = vadd.f32 %v3996_v35, %v3995_v38  ;;  %v3838_v10 = vsel %vm1439_vm4, %v3836_v53, %v3837_v18  ;;  %v3840_v62 = vsel %vm1439_vm4, %v3837_v18, %v3839_v27 }
 0x295   : > { %v3416_v5 = vsel %vm1016_vm5, %v3414_v33, %v3415_v22  ;;  %v3418_v52 = vsel %vm1016_vm5, %v3415_v22, %v3417_v34  ;;  %v3842_v31 = vrot.slane %v3697_v15, 2  ;;  %v3846_v39 = vrot.slane %v5137_v23, 2 }
 0x296   : > { %v3275_v55 = vpop.f32.mrf.mxu1  ;;  %v4099_v21 = vsel %vm3920_vm6, %v4046_v43, 0.0  ;;  %v3490_v42 = vadd.f32 %v3416_v5, %v6448_v57  ;;  %v3491_v51 = vadd.f32 %v3418_v52, %v6450_v41  ;;  %v6686_v4 = vpop.f32.mrf.mxu0  ;;  %v3999_v32 = vadd.f32 %v3998_v12, %v3997_v46 }
 0x297   : > { %v4100_v14 = vadd.f32 %v4099_v21, %v4098_v24  ;;  %v3420_v16 = vrot.slane %v3275_v55, 1  ;;  %v3424_v41 = vrot.slane %v5087_v30, 1  ;;  %v3847_v28 = vrot.slane %v6686_v4, 2 }
 0x298   : > { %v6689_v54 = vpop.f32.mrf.mxu1  ;;  %v3912_v13 = vadd.f32 %v3838_v10, %v3490_v42  ;;  %v3913_v11 = vadd.f32 %v3840_v62, %v3491_v51  ;;  %v3700_v57 = vpop.f32.mrf.mxu0  ;;  %v3843_v17 = vsel %vm1439_vm4, %v3841_v58, %v3842_v31 }
 0x299   : > { %v3425_v56 = vrot.slane %v6689_v54, 1  ;;  %v4102_v8 = vadd.f32 %v4101_v60, %v4100_v14  ;;  %v3421_v9 = vsel %vm1016_vm5, %v3419_v61, %v3420_v16  ;;  %v3844_v50 = vrot.slane %v3700_v57, 2 }
 0x29a   : > { %v3278_v45 = vpop.f32.mrf.mxu1  ;;  %3945 = vst.msk [vmem:[%s6487_s18 + $0xc0] sm:$0xff] %vm3920_vm6, %v3912_v13  ;;  %3946 = vst.msk [vmem:[%s6487_s18 + $0xc8] sm:$0xff] %vm3920_vm6, %v3913_v11  ;;  %v4000_v0 = vsel %vm3920_vm6, %v3912_v13, 0.0  ;;  %v4048_v40 = vmul.f32 %v3912_v13, %v3912_v13  ;;  %v4049_v1 = vmul.f32 %v3913_v11, %v3913_v11  ;;  %v6700_v37 = vpop.f32.mrf.mxu0  ;;  %v3492_v27 = vadd.f32 %v3421_v9, %v6456_v47 }
 0x29b   : > { %v4001_v59 = vadd.f32 %v4000_v0, %v3999_v32  ;;  %v3426_v44 = vsel %vm1016_vm5, %v3424_v41, %v3425_v56  ;;  %v4002_v63 = vsel %vm3920_vm6, %v3913_v11, 0.0  ;;  %v3422_v38 = vrot.slane %v3278_v45, 1 }
 0x29c   : > { %v5091_v29 = vpop.f32.mrf.mxu1  ;;  %v4103_v19 = vsel %vm3920_vm6, %v4048_v40, 0.0  ;;  %v3494_v36 = vadd.f32 %v3426_v44, %v6460_v2  ;;  %v3713_v6 = vpop.f32.mrf.mxu0  ;;  %v3914_v26 = vadd.f32 %v3843_v17, %v3492_v27  ;;  %v3848_v49 = vsel %vm1439_vm4, %v3846_v39, %v3847_v28 }
 0x29d   : > { %v4003_v34 = vadd.f32 %v4002_v63, %v4001_v59  ;;  %v4104_v53 = vadd.f32 %v4103_v19, %v4102_v8  ;;  %v4105_v3 = vsel %vm3920_vm6, %v4049_v1, 0.0  ;;  %v3423_v18 = vsel %vm1016_vm5, %v3420_v16, %v3422_v38 }
 0x29e   : > { %v3291_v47 = vpop.f32.mrf.mxu1  ;;  %v3916_v33 = vadd.f32 %v3848_v49, %v3494_v36  ;;  %v5142_v23 = vpop.f32.mrf.mxu0  ;;  %3947 = vst.msk [vmem:[%s6487_s18 + $0xd0] sm:$0xff] %vm3920_vm6, %v3914_v26  ;;  %v4004_v2 = vsel %vm3920_vm6, %v3914_v26, 0.0  ;;  %v4050_v12 = vmul.f32 %v3914_v26, %v3914_v26  ;;  %v3493_v58 = vadd.f32 %v3423_v18, %v6462_v48 }
 0x29f   : > { %v4106_v24 = vadd.f32 %v4105_v3, %v4104_v53  ;;  %v4005_v30 = vadd.f32 %v4004_v2, %v4003_v34  ;;  %v3845_v60 = vsel %vm1439_vm4, %v3842_v31, %v3844_v50  ;;  %v3852_v35 = vrot.slane %v6700_v37, 2 }
 0x2a0   : > { %v5092_v22 = vpop.f32.mrf.mxu1  ;;  %3949 = vst.msk [vmem:[%s6487_s18 + $0xe0] sm:$0xff] %vm3920_vm6, %v3916_v33  ;;  %v3849_v43 = vrot.slane %v3713_v6, 2  ;;  %v4107_v61 = vsel %vm3920_vm6, %v4050_v12, 0.0  ;;  %v3915_v15 = vadd.f32 %v3845_v60, %v3493_v58  ;;  %v3430_v46 = vrot.slane %v5091_v29, 1  ;;  %v3716_v21 = vpop.f32.mrf.mxu0 }
 0x2a1   : > { %v3427_v10 = vrot.slane %v3291_v47, 1  ;;  %v4108_v5 = vadd.f32 %v4107_v61, %v4106_v24  ;;  %v4008_v52 = vsel %vm3920_vm6, %v3916_v33, 0.0  ;;  %v3854_v55 = vrot.slane %v5142_v23, 2 }
 0x2a2   : > { %v3432_v48 = vrot.slane %v5092_v22, 1  ;;  %v3294_v42 = vpop.f32.mrf.mxu1  ;;  %v4052_v51 = vmul.f32 %v3916_v33, %v3916_v33  ;;  %3948 = vst.msk [vmem:[%s6487_s18 + $0xd8] sm:$0xff] %vm3920_vm6, %v3915_v15  ;;  %v4006_v31 = vsel %vm3920_vm6, %v3915_v15, 0.0  ;;  %v4051_v4 = vmul.f32 %v3915_v15, %v3915_v15 }
 0x2a3   : > { %v3428_v14 = vsel %vm1016_vm5, %v3425_v56, %v3427_v10  ;;  %v4007_v62 = vadd.f32 %v4006_v31, %v4005_v30  ;;  %v3850_v32 = vsel %vm1439_vm4, %v3847_v28, %v3849_v43  ;;  %v3851_v39 = vrot.slane %v3716_v21, 2 }
 0x2a4   : > { %v3495_v16 = vadd.f32 %v3428_v14, %v6468_v25  ;;  %v3433_v54 = vsel %vm1016_vm5, %v3430_v46, %v3432_v48  ;;  %v4109_v13 = vsel %vm3920_vm6, %v4051_v4, 0.0  ;;  %v3429_v57 = vrot.slane %v3294_v42, 1 }
 0x2a5   : > { %v3497_v11 = vadd.f32 %v3433_v54, %v6472_v7  ;;  %v4110_v8 = vadd.f32 %v4109_v13, %v4108_v5  ;;  %v4009_v9 = vadd.f32 %v4008_v52, %v4007_v62  ;;  %v3855_v56 = vsel %vm1439_vm4, %v3852_v35, %v3854_v55 }
 0x2a6   : > { %v3917_v41 = vadd.f32 %v3850_v32, %v3495_v16  ;;  %v4111_v45 = vsel %vm3920_vm6, %v4052_v51, 0.0  ;;  %v3431_v25 = vsel %vm1016_vm5, %v3429_v57, %v3430_v46  ;;  %v3853_v37 = vsel %vm1439_vm4, %v3851_v39, %v3852_v35 }
 0x2a7   : > { %v3919_v28 = vadd.f32 %v3855_v56, %v3497_v11  ;;  %v4112_v7 = vadd.f32 %v4111_v45, %v4110_v8  ;;  %v3496_v1 = vadd.f32 %v3431_v25, %v6474_v20 }
 0x2a8   : > { %3950 = vst.msk [vmem:[%s6487_s18 + $0xe8] sm:$0xff] %vm3920_vm6, %v3917_v41  ;;  %v4010_v0 = vsel %vm3920_vm6, %v3917_v41, 0.0  ;;  %v4053_v40 = vmul.f32 %v3917_v41, %v3917_v41 }
 0x2a9   : > { %v4011_v17 = vadd.f32 %v4010_v0, %v4009_v9  ;;  %3952 = vst.msk [vmem:[%s6487_s18 + $0xf8] sm:$0xff] %vm3920_vm6, %v3919_v28  ;;  %v3918_v27 = vadd.f32 %v3853_v37, %v3496_v1  ;;  %v4055_v50 = vmul.f32 %v3919_v28, %v3919_v28  ;;  %v4014_v36 = vsel %vm3920_vm6, %v3919_v28, 0.0 }
 0x2aa   : > { %v4113_v59 = vsel %vm3920_vm6, %v4053_v40, 0.0 }
 0x2ab   : > { %v4114_v44 = vadd.f32 %v4113_v59, %v4112_v7  ;;  %3951 = vst.msk [vmem:[%s6487_s18 + $0xf0] sm:$0xff] %vm3920_vm6, %v3918_v27  ;;  %v4012_v29 = vsel %vm3920_vm6, %v3918_v27, 0.0  ;;  %v4054_v63 = vmul.f32 %v3918_v27, %v3918_v27  ;;  %v4117_v34 = vsel %vm3920_vm6, %v4055_v50, 0.0 }
 0x2ac   : > { %v4013_v19 = vadd.f32 %v4012_v29, %v4011_v17 }
 0x2ad   : > { %v4115_v20 = vsel %vm3920_vm6, %v4054_v63, 0.0 }
 0x2ae   : > { %v4015_v38 = vadd.f32 %v4014_v36, %v4013_v19  ;;  %v4116_v6 = vadd.f32 %v4115_v20, %v4114_v44 }
 0x2b0   : > { %v4016_v53 = vrot.slane %v4015_v38, 4  ;;  %v4118_v26 = vadd.f32 %v4117_v34, %v4116_v6 }
 0x2b2   : > { %v4017_v49 = vadd.f32 %v4016_v53, %v4015_v38  ;;  %v4119_v47 = vrot.slane %v4118_v26, 4 }
 0x2b4   : > { %v4018_v3 = vrot.slane %v4017_v49, 2  ;;  %v4120_v33 = vadd.f32 %v4119_v47, %v4118_v26 }
 0x2b6   : > { %v4019_v18 = vadd.f32 %v4018_v3, %v4017_v49  ;;  %v4121_v23 = vrot.slane %v4120_v33, 2 }
 0x2b8   : > { %v4020_v24 = vrot.slane %v4019_v18, 1  ;;  %v4122_v2 = vadd.f32 %v4121_v23, %v4120_v33 }
 0x2ba   : > { %v4021_v12 = vadd.f32 %v4020_v24, %v4019_v18  ;;  %v4123_v58 = vrot.slane %v4122_v2, 1 }
 0x2bc   : > { %4023 = vst.msk [vmem:[%s211_s21] sm:$0x1] %vm4022_vm7, %v4021_v12  ;;  %v4124_v22 = vadd.f32 %v4123_v58, %v4122_v2 }
 0x2be   : > { %4125 = vst.msk [vmem:[%s214_s24] sm:$0x1] %vm4022_vm7, %v4124_v22 }
 0x2bf PF: > { %s15_s15 = sadd.s32 1, %s5161_s15  }
 0x2c0   : > { %p12_p4 = scmp.ge.s32.totalorder %s15_s15, 4  }
 0x2c2   :  { %14 = sbr.rel (!%p12_p4) target bundleno = 1 (0x1), region = 91 }

// kernel: tile.93
= control target key start
LH: loop header
LB: loop body
LE: loop exit
PB: predicated region body
PF: predicated region fallthrough
CT: control target
= control target key end

     0   :  { %s22_s0 = inlined_call_operand.vmem [shape: f32[32], index: 0, kind: input, shape index: {}]   ;;  %s23_s1 = inlined_call_operand.vmem [shape: f32[4,32], index: 1, kind: output, shape index: {}]  }
   0x1   :  { %v4_v0 = vld [vmem:[%s22_s0] ss:$0 sm:$0xff] }
   0x2   :  { %5 = vst [vmem:[%s23_s1] sm:$0xf] %v4_v0 }

// kernel: tile.94
= control target key start
LH: loop header
LB: loop body
LE: loop exit
PB: predicated region body
PF: predicated region fallthrough
CT: control target
= control target key end

     0   :  { %vm8_vm0 = vcmask 261120   ;;  %s40_s8 = smov 32   ;;  %s41_s9 = smov 64   ;;  %vm14_vm1 = vcmask 1048320   ;;  %vm20_vm2 = vcmask 785920   ;;  %vm26_vm3 = vcmask 523520   ;;  %s58_s0 = inlined_call_operand.vmem [shape: f32[4,32], index: 0, kind: input, shape index: {}]   ;;  %s59_s1 = inlined_call_operand.vmem [shape: f32[1,1,128], index: 1, kind: output, shape index: {}]  }
   0x1   :  { %v5_v0 = vld [vmem:[%s58_s0] sm:$0xf]  ;;  %s39_s0 = smov 96  }
   0x2   :  { %6 = vst [vmem:[#allocation1] sm:$0xf] %v5_v0 }
   0x9   :  { %v11_v1 = vld [vmem:[#allocation1 + $0x3] sm:$0x1]   ;;  %v23_v2 = vld [vmem:[#allocation1 + $0x1] sm:$0x1]   ;;  %v7_v3 = vld [vmem:[#allocation1] sm:$0x1]  }
   0xa   :  { %12 = vrot.lane.b32.xlu0 %v11_v1, %s39_s0  ;;  %24 = vrot.lane.b32.xlu1 %v23_v2, %s40_s8  ;;  %v17_v4 = vld [vmem:[#allocation1 + $0x2] sm:$0x1]   ;;  %9 = vst.msk [vmem:[#allocation0] sm:$0x1] %vm8_vm0, %v7_v3  }
   0xe   :  { %18 = vrot.lane.b32.xlu0 %v17_v4, %s41_s9 }
  0x7c   :  { %v13_v5 = vpop.permute.xlu0 %12   ;;  %v25_v6 = vpop.permute.xlu1 %24  }
  0x7d   :  { %15 = vst.msk [vmem:[#allocation0] sm:$0x1] %vm14_vm1, %v13_v5  }
  0x80   :  { %v19_v7 = vpop.permute.xlu0 %18  }
  0x81   :  { %21 = vst.msk [vmem:[#allocation0] sm:$0x1] %vm20_vm2, %v19_v7  }
  0x82   :  { %27 = vst.msk [vmem:[#allocation0] sm:$0x1] %vm26_vm3, %v25_v6  }
  0x89   :  { %v32_v8 = vld [vmem:[#allocation0] sm:$0x1] }
  0x8a   :  { %35 = vst [vmem:[%s59_s1] sm:$0x1] %v32_v8 }

// kernel: resnet_forward.29
= control target key start
LH: loop header
LB: loop body
LE: loop exit
PB: predicated region body
PF: predicated region fallthrough
CT: control target
= control target key end

     0   :  { %s142_s0 = inlined_call_operand.vmem [shape: f32[2,8,128], index: 0, kind: input, shape index: {}]   ;;  %s143_s1 = inlined_call_operand.vmem [shape: f32[1,1,128], index: 1, kind: input, shape index: {}]   ;;  %s144_s2 = inlined_call_operand.vmem [shape: f32[1,1,128], index: 2, kind: input, shape index: {}]   ;;  %s145_s3 = inlined_call_operand.vmem [shape: f32[2,8,128], index: 3, kind: input, shape index: {}]   ;;  %s146_s4 = inlined_call_operand.vmem [shape: f32[1,1,128], index: 4, kind: input, shape index: {}]   ;;  %s147_s5 = inlined_call_operand.vmem [shape: f32[1,1,128], index: 5, kind: input, shape index: {}]   ;;  %s148_s6 = inlined_call_operand.vmem [shape: f32[2,8,128], index: 6, kind: output, shape index: {}]  }
   0x1   :  { %v23_v0 = vld [vmem:[%s142_s0] sm:$0xff]  ;;  %v24_v7 = vld [vmem:[%s142_s0 + $0x8] sm:$0xff] }
   0x2   :  { %v73_v1 = vld [vmem:[%s143_s1] ss:$0 sm:$0xff]  ;;  %v44_v8 = vld [vmem:[%s145_s3 + $0x8] sm:$0xff] }
   0x3   :  { %v74_v2 = vld [vmem:[%s144_s2] ss:$0 sm:$0xff]  ;;  %v32_v3 = vmul.f32 %v73_v1, %v23_v0  ;;  %v33_v10 = vmul.f32 %v73_v1, %v24_v7 }
   0x4   :  { %v43_v4 = vld [vmem:[%s145_s3] sm:$0xff] }
   0x5   :  { %v75_v5 = vld [vmem:[%s146_s4] ss:$0 sm:$0xff]  ;;  %v41_v9 = vadd.f32 %v74_v2, %v32_v3  ;;  %v42_v14 = vadd.f32 %v74_v2, %v33_v10 }
   0x6   :  { %v52_v6 = vmul.f32 %v75_v5, %v43_v4  ;;  %v53_v11 = vmul.f32 %v75_v5, %v44_v8  ;;  %v76_v12 = vld [vmem:[%s147_s5] ss:$0 sm:$0xff] }
   0x8   :  { %v54_v13 = vadd.f32 %v52_v6, %v41_v9  ;;  %v55_v16 = vadd.f32 %v53_v11, %v42_v14 }
   0xa   :  { %v63_v15 = vadd.f32 %v76_v12, %v54_v13  ;;  %v64_v18 = vadd.f32 %v76_v12, %v55_v16 }
   0xc   :  { %v65_v17 = vmax.f32 %v63_v15, 0.0  ;;  %v66_v19 = vmax.f32 %v64_v18, 0.0 }
   0xe   :  { %67 = vst [vmem:[%s148_s6] sm:$0xff] %v65_v17  ;;  %68 = vst [vmem:[%s148_s6 + $0x8] sm:$0xff] %v66_v19 }

// kernel: resnet_forward.33
= control target key start
LH: loop header
LB: loop body
LE: loop exit
PB: predicated region body
PF: predicated region fallthrough
CT: control target
= control target key end

     0   :  { %s472_s15 = smov 0   ;;  %s503_s0 = inlined_call_operand.vmem [shape: f32[2,16,16], index: 0, kind: input, shape index: {}]   ;;  %s504_s1 = inlined_call_operand.vmem [shape: bf16[16,32], index: 1, kind: input, shape index: {}]   ;;  %s505_s2 = inlined_call_operand.vmem [shape: f32[2,16,32], index: 2, kind: output, shape index: {0}]   ;;  %s506_s3 = inlined_call_operand.vmem [shape: f32[2,1,32], index: 3, kind: output, shape index: {1}]   ;;  %s507_s4 = inlined_call_operand.vmem [shape: f32[2,1,32], index: 4, kind: output, shape index: {2}]  }
   0x1 LB: > { %s403_s16 = sadd.s32 4294967295, %s443_s15   ;;  %p407_p0 = scmp.ge.s32.totalorder %s443_s15, 1  ;;  %s443_s15 = sphi %s472_s15, %s15_s15  }
   0x2   : > { %p167_p1 = scmp.lt.s32.totalorder %s443_s15, 3 }
   0x4   : > { %p168_p2 = pnand %p407_p0, %p167_p1 }
   0x5   : > { %p199_p3 = scmp.lt.s32.totalorder (!%p168_p2), %s403_s16, 1 }
   0x6   : > { %171 = sbr.rel (%p168_p2) target bundleno = 232 (0xe8), region = 28 }
   0xb   : > { %v436_v0 = vld [vmem:[%s504_s1] sm:$0xff]   ;;  %v445_v1 = vmov 0.0   ;;  %vm446_vm0 = vmmov 0   ;;  %s509_s16 = smov (!%p199_p3, %s403_s16), 1  ;;  %vm227_vm1 = vcmask 130048   ;;  %vm272_vm2 = vcmask 261120  }
   0xc   : > { %420 = vmatprep.subr.bf16.mxu0 %v445_v1  ;;  %422 = vmatprep.mubr.msk.bf16.mxu0 %vm446_vm0, %v445_v1  ;;  %s416_s19 = sshll.u32 %s509_s16, 4  ;;  %s211_s28 = scalar_lea.vmem %s506_s3, %s509_s16  ;;  %vm284_vm3 = vcmask 253952  }
   0xd   : > { %421 = vmatpush3.bf16.msra.mxu0 %v436_v0  ;;  %s203_s22 = scalar_lea.vmem %s503_s0, %s416_s19  ;;  %s208_s25 = scalar_lea.vmem %s505_s2, %s416_s19 }
   0xe   : > { %v216_v2 = vld [vmem:[%s203_s22] sm:$0xff]  ;;  %v217_v3 = vld [vmem:[%s203_s22 + $0x8] sm:$0xff]  ;;  %s214_s5 = scalar_lea.vmem %s507_s4, %s509_s16 }
   0xf   : > { %v218_v4 = vpack.c.bf16 %v217_v3, %v216_v2 }
  0x11   : > { %423 = vmatmul.mubr.msk.bf16.vlgmr.msra.gmra.mxu0 %vm227_vm1, %v218_v4 }
  0xd1   : > { %v265_v5 = vpop.f32.mrf.mxu0 }
  0xd2   : > { %273 = vst.msk [vmem:[%s208_s25] sm:$0xff] %vm272_vm2, %v265_v5  ;;  %v286_v7 = vmul.f32 %v265_v5, %v265_v5  ;;  %v275_v9 = vsel %vm272_vm2, %v265_v5, 0.0 }
  0xd3   : > { %v424_v6 = vpop.f32.mrf.mxu0 }
  0xd4   : > { %v288_v14 = vsel %vm272_vm2, %v286_v7, 0.0 }
  0xd5   : > { %v268_v8 = vpop.f32.mrf.mxu0 }
  0xd6   : > { %274 = vst.msk [vmem:[%s208_s25 + $0x8] sm:$0xff] %vm272_vm2, %v268_v8  ;;  %v276_v10 = vsel %vm272_vm2, %v268_v8, 0.0  ;;  %v287_v11 = vmul.f32 %v268_v8, %v268_v8 }
  0xd7   : > { %v277_v12 = vadd.f32 %v276_v10, %v275_v9  ;;  %v425_v13 = vpop.f32.mrf.mxu0 }
  0xd8   : > { %v289_v15 = vsel %vm272_vm2, %v287_v11, 0.0 }
  0xd9   : > { %v278_v16 = vrot.slane %v277_v12, 4  ;;  %v290_v17 = vadd.f32 %v289_v15, %v288_v14 }
  0xdb   : > { %v279_v18 = vadd.f32 %v278_v16, %v277_v12  ;;  %v291_v19 = vrot.slane %v290_v17, 4 }
  0xdd   : > { %v280_v20 = vrot.slane %v279_v18, 2  ;;  %v292_v21 = vadd.f32 %v291_v19, %v290_v17 }
  0xdf   : > { %v281_v22 = vadd.f32 %v280_v20, %v279_v18  ;;  %v293_v23 = vrot.slane %v292_v21, 2 }
  0xe1   : > { %v282_v24 = vrot.slane %v281_v22, 1  ;;  %v294_v25 = vadd.f32 %v293_v23, %v292_v21 }
  0xe3   : > { %v283_v26 = vadd.f32 %v282_v24, %v281_v22  ;;  %v295_v27 = vrot.slane %v294_v25, 1 }
  0xe5   : > { %285 = vst.msk [vmem:[%s211_s28] sm:$0x1] %vm284_vm3, %v283_v26  ;;  %v296_v28 = vadd.f32 %v295_v27, %v294_v25 }
  0xe7   : > { %297 = vst.msk [vmem:[%s214_s5] sm:$0x1] %vm284_vm3, %v296_v28 }
  0xe8 PF: > { %s15_s15 = sadd.s32 1, %s443_s15  }
  0xe9   : > { %p12_p4 = scmp.ge.s32.totalorder %s15_s15, 4  }
  0xeb   :  { %14 = sbr.rel (!%p12_p4) target bundleno = 1 (0x1), region = 82 }

// kernel: resnet_forward.30
= control target key start
LH: loop header
LB: loop body
LE: loop exit
PB: predicated region body
PF: predicated region fallthrough
CT: control target
= control target key end

     0   :  { %s607_s15 = smov 0   ;;  %s673_s0 = inlined_call_operand.vmem [shape: f32[2,64,16], index: 0, kind: input, shape index: {}]   ;;  %s674_s1 = inlined_call_operand.vmem [shape: bf16[16,8], index: 1, kind: input, shape index: {}]   ;;  %s675_s2 = inlined_call_operand.vmem [shape: bf16[2,64,8], index: 2, kind: output, shape index: {0}]   ;;  %s676_s3 = inlined_call_operand.vmem [shape: f32[2,1,8], index: 3, kind: output, shape index: {1}]   ;;  %s677_s4 = inlined_call_operand.vmem [shape: f32[2,1,8], index: 4, kind: output, shape index: {2}]  }
   0x1 LB: > { %s514_s16 = sadd.s32 4294967295, %s580_s15   ;;  %p518_p0 = scmp.ge.s32.totalorder %s580_s15, 1  ;;  %s580_s15 = sphi %s607_s15, %s15_s15  }
   0x2   : > { %p167_p1 = scmp.lt.s32.totalorder %s580_s15, 3 }
   0x4   : > { %p168_p2 = pnand %p518_p0, %p167_p1 }
   0x5   : > { %p199_p3 = scmp.lt.s32.totalorder (!%p168_p2), %s514_s16, 1 }
   0x6   : > { %171 = sbr.rel (%p168_p2) target bundleno = 247 (0xf7), region = 28 }
   0xb   : > { %v573_v0 = vld [vmem:[%s674_s1] sm:$0xff]   ;;  %s679_s16 = smov (!%p199_p3, %s514_s16), 1  ;;  %vm236_vm0 = vcmask 130048   ;;  %vm346_vm1 = vcmask 60416   ;;  %vm355_vm2 = vcmask 64512   ;;  %vm377_vm3 = vcmask 57344  }
   0xc   : > { %553 = vmatprep.subr.bf16.mxu0 %v573_v0  ;;  %563 = vmatprep.subr.bf16.mxu1 %v573_v0  ;;  %s538_s19 = sshll.u32 %s679_s16, 6  ;;  %s539_s23 = sshll.u32 %s679_s16, 5 }
   0xd   : > { %554 = vmatpush3.bf16.msra.mxu0 %v573_v0  ;;  %564 = vmatpush3.bf16.msra.mxu1 %v573_v0  ;;  %s203_s22 = scalar_lea.vmem %s673_s0, %s538_s19  ;;  %s628_s26 = scalar_lea.vmem %s675_s2, %s539_s23 }
   0xe   : > { %v216_v1 = vld [vmem:[%s203_s22] sm:$0xff]  ;;  %v217_v2 = vld [vmem:[%s203_s22 + $0x8] sm:$0xff]  ;;  %v218_v3 = vld [vmem:[%s203_s22 + $0x10] sm:$0xff]  ;;  %s211_s29 = scalar_lea.vmem %s676_s3, %s679_s16  ;;  %s214_s6 = scalar_lea.vmem %s677_s4, %s679_s16 }
   0xf   : > { %v224_v4 = vpack.c.bf16 %v217_v2, %v216_v1  ;;  %v219_v5 = vld [vmem:[%s203_s22 + $0x18] sm:$0xff]  ;;  %v220_v6 = vld [vmem:[%s203_s22 + $0x20] sm:$0xff]  ;;  %v221_v7 = vld [vmem:[%s203_s22 + $0x28] sm:$0xff] }
  0x10   : > { %v225_v8 = vpack.c.bf16 %v219_v5, %v218_v3  ;;  %v226_v9 = vpack.c.bf16 %v221_v7, %v220_v6  ;;  %v222_v10 = vld [vmem:[%s203_s22 + $0x30] sm:$0xff]  ;;  %v223_v11 = vld [vmem:[%s203_s22 + $0x38] sm:$0xff] }
  0x11   : > { %555 = vmatprep.mubr.msk.bf16.mxu0 %vm236_vm0, %v224_v4  ;;  %v227_v12 = vpack.c.bf16 %v223_v11, %v222_v10 }
  0x12   : > { %556 = vmatmul.mubr.msk.bf16.vlgmr.msra.gmra.mxu0 %vm236_vm0, %v225_v8  ;;  %559 = vmatprep.mubr.msk.bf16.mxu1 %vm236_vm0, %v226_v9 }
  0x13   : > { %560 = vmatmul.mubr.msk.bf16.vlgmr.msra.gmra.mxu1 %vm236_vm0, %v227_v12 }
  0xd2   : > { %v557_v13 = vpop.f32.mrf.mxu0 }
  0xd3   : > { %v542_v14 = vpack.c.bf16 %v557_v13, %v557_v13  ;;  %v561_v15 = vpop.f32.mrf.mxu1  ;;  %v381_v25 = vmul.f32 %v557_v13, %v557_v13  ;;  %v359_v35 = vsel %vm355_vm2, %v557_v13, 0.0 }
  0xd4   : > { %v283_v16 = vpop.f32.mrf.mxu0  ;;  %v546_v17 = vpack.c.bf16 %v561_v15, %v561_v15  ;;  %v385_v51 = vmul.f32 %v561_v15, %v561_v15  ;;  %v367_v56 = vsel %vm355_vm2, %v561_v15, 0.0 }
  0xd5   : > { %349 = vst.msk [vmem:[%s628_s26 + $0x8] sm:$0xf] %vm346_vm1, %v542_v14  ;;  %v540_v18 = vpack.c.bf16 %v283_v16, %v283_v16  ;;  %v299_v19 = vpop.f32.mrf.mxu1  ;;  %v379_v22 = vmul.f32 %v283_v16, %v283_v16  ;;  %v356_v28 = vsel %vm355_vm2, %v283_v16, 0.0  ;;  %v390_v41 = vsel %vm355_vm2, %v381_v25, 0.0 }
  0xd6   : > { %353 = vst.msk [vmem:[%s628_s26 + $0x18] sm:$0xf] %vm346_vm1, %v546_v17  ;;  %v558_v20 = vpop.f32.mrf.mxu0  ;;  %v544_v21 = vpack.c.bf16 %v299_v19, %v299_v19  ;;  %v383_v43 = vmul.f32 %v299_v19, %v299_v19  ;;  %v363_v47 = vsel %vm355_vm2, %v299_v19, 0.0  ;;  %v398_v61 = vsel %vm355_vm2, %v385_v51, 0.0 }
  0xd7   : > { %347 = vst.msk [vmem:[%s628_s26] sm:$0xf] %vm346_vm1, %v540_v18  ;;  %v543_v23 = vpack.c.bf16 %v558_v20, %v558_v20  ;;  %v562_v24 = vpop.f32.mrf.mxu1  ;;  %v387_v36 = vsel %vm355_vm2, %v379_v22, 0.0  ;;  %v382_v37 = vmul.f32 %v558_v20, %v558_v20  ;;  %v361_v42 = vsel %vm355_vm2, %v558_v20, 0.0 }
  0xd8   : > { %351 = vst.msk [vmem:[%s628_s26 + $0x10] sm:$0xf] %vm346_vm1, %v544_v21  ;;  %v286_v26 = vpop.f32.mrf.mxu0  ;;  %v547_v27 = vpack.c.bf16 %v562_v24, %v562_v24  ;;  %v394_v52 = vsel %vm355_vm2, %v383_v43, 0.0  ;;  %v386_v57 = vmul.f32 %v562_v24, %v562_v24  ;;  %v369_v62 = vsel %vm355_vm2, %v562_v24, 0.0 }
  0xd9   : > { %350 = vst.msk [vmem:[%s628_s26 + $0xc] sm:$0xf] %vm346_vm1, %v543_v23  ;;  %v541_v29 = vpack.c.bf16 %v286_v26, %v286_v26  ;;  %v357_v30 = vsel %vm355_vm2, %v286_v26, 0.0  ;;  %v380_v31 = vmul.f32 %v286_v26, %v286_v26  ;;  %v302_v32 = vpop.f32.mrf.mxu1  ;;  %v392_v46 = vsel %vm355_vm2, %v382_v37, 0.0 }
  0xda   : > { %v358_v33 = vadd.f32 %v357_v30, %v356_v28  ;;  %354 = vst.msk [vmem:[%s628_s26 + $0x1c] sm:$0xf] %vm346_vm1, %v547_v27  ;;  %v545_v34 = vpack.c.bf16 %v302_v32, %v302_v32  ;;  %v384_v48 = vmul.f32 %v302_v32, %v302_v32  ;;  %v365_v53 = vsel %vm355_vm2, %v302_v32, 0.0 }
  0xdb   : > { %348 = vst.msk [vmem:[%s628_s26 + $0x4] sm:$0xf] %vm346_vm1, %v541_v29  ;;  %v388_v38 = vsel %vm355_vm2, %v380_v31, 0.0  ;;  %v400_v1 = vsel %vm355_vm2, %v386_v57, 0.0 }
  0xdc   : > { %v360_v39 = vadd.f32 %v359_v35, %v358_v33  ;;  %v389_v40 = vadd.f32 %v388_v38, %v387_v36  ;;  %352 = vst.msk [vmem:[%s628_s26 + $0x14] sm:$0xf] %vm346_vm1, %v545_v34  ;;  %v396_v58 = vsel %vm355_vm2, %v384_v48, 0.0 }
  0xde   : > { %v391_v44 = vadd.f32 %v390_v41, %v389_v40  ;;  %v362_v45 = vadd.f32 %v361_v42, %v360_v39 }
  0xe0   : > { %v364_v49 = vadd.f32 %v363_v47, %v362_v45  ;;  %v393_v50 = vadd.f32 %v392_v46, %v391_v44 }
  0xe2   : > { %v366_v54 = vadd.f32 %v365_v53, %v364_v49  ;;  %v395_v55 = vadd.f32 %v394_v52, %v393_v50 }
  0xe4   : > { %v368_v59 = vadd.f32 %v367_v56, %v366_v54  ;;  %v397_v60 = vadd.f32 %v396_v58, %v395_v55 }
  0xe6   : > { %v370_v63 = vadd.f32 %v369_v62, %v368_v59  ;;  %v399_v0 = vadd.f32 %v398_v61, %v397_v60 }
  0xe8   : > { %v371_v2 = vrot.slane %v370_v63, 4  ;;  %v401_v3 = vadd.f32 %v400_v1, %v399_v0 }
  0xea   : > { %v372_v4 = vadd.f32 %v371_v2, %v370_v63  ;;  %v402_v5 = vrot.slane %v401_v3, 4 }
  0xec   : > { %v373_v6 = vrot.slane %v372_v4, 2  ;;  %v403_v7 = vadd.f32 %v402_v5, %v401_v3 }
  0xee   : > { %v374_v8 = vadd.f32 %v373_v6, %v372_v4  ;;  %v404_v9 = vrot.slane %v403_v7, 2 }
  0xf0   : > { %v375_v10 = vrot.slane %v374_v8, 1  ;;  %v405_v11 = vadd.f32 %v404_v9, %v403_v7 }
  0xf2   : > { %v376_v12 = vadd.f32 %v375_v10, %v374_v8  ;;  %v406_v13 = vrot.slane %v405_v11, 1 }
  0xf4   : > { %378 = vst.msk [vmem:[%s211_s29] sm:$0x1] %vm377_vm3, %v376_v12  ;;  %v407_v14 = vadd.f32 %v406_v13, %v405_v11 }
  0xf6   : > { %408 = vst.msk [vmem:[%s214_s6] sm:$0x1] %vm377_vm3, %v407_v14 }
  0xf7 PF: > { %s15_s15 = sadd.s32 1, %s580_s15  }
  0xf8   : > { %p12_p4 = scmp.ge.s32.totalorder %s15_s15, 4  }
  0xfa   :  { %14 = sbr.rel (!%p12_p4) target bundleno = 1 (0x1), region = 82 }

// kernel: resnet_forward.34
= control target key start
LH: loop header
LB: loop body
LE: loop exit
PB: predicated region body
PF: predicated region fallthrough
CT: control target
= control target key end

     0   :  { %s142_s0 = inlined_call_operand.vmem [shape: f32[2,4,128], index: 0, kind: input, shape index: {}]   ;;  %s143_s1 = inlined_call_operand.vmem [shape: f32[1,1,128], index: 1, kind: input, shape index: {}]   ;;  %s144_s2 = inlined_call_operand.vmem [shape: f32[1,1,128], index: 2, kind: input, shape index: {}]   ;;  %s145_s3 = inlined_call_operand.vmem [shape: f32[2,4,128], index: 3, kind: input, shape index: {}]   ;;  %s146_s4 = inlined_call_operand.vmem [shape: f32[1,1,128], index: 4, kind: input, shape index: {}]   ;;  %s147_s5 = inlined_call_operand.vmem [shape: f32[1,1,128], index: 5, kind: input, shape index: {}]   ;;  %s148_s6 = inlined_call_operand.vmem [shape: f32[2,4,128], index: 6, kind: output, shape index: {}]  }
   0x1   :  { %v23_v0 = vld [vmem:[%s142_s0] sm:$0xf]  ;;  %v24_v7 = vld [vmem:[%s142_s0 + $0x4] sm:$0xf] }
   0x2   :  { %v73_v1 = vld [vmem:[%s143_s1] ss:$0 sm:$0xff]  ;;  %v44_v8 = vld [vmem:[%s145_s3 + $0x4] sm:$0xf] }
   0x3   :  { %v74_v2 = vld [vmem:[%s144_s2] ss:$0 sm:$0xff]  ;;  %v32_v3 = vmul.f32 %v73_v1, %v23_v0  ;;  %v33_v10 = vmul.f32 %v73_v1, %v24_v7 }
   0x4   :  { %v43_v4 = vld [vmem:[%s145_s3] sm:$0xf] }
   0x5   :  { %v75_v5 = vld [vmem:[%s146_s4] ss:$0 sm:$0xff]  ;;  %v41_v9 = vadd.f32 %v74_v2, %v32_v3  ;;  %v42_v14 = vadd.f32 %v74_v2, %v33_v10 }
   0x6   :  { %v52_v6 = vmul.f32 %v75_v5, %v43_v4  ;;  %v53_v11 = vmul.f32 %v75_v5, %v44_v8  ;;  %v76_v12 = vld [vmem:[%s147_s5] ss:$0 sm:$0xff] }
   0x8   :  { %v54_v13 = vadd.f32 %v52_v6, %v41_v9  ;;  %v55_v16 = vadd.f32 %v53_v11, %v42_v14 }
   0xa   :  { %v63_v15 = vadd.f32 %v76_v12, %v54_v13  ;;  %v64_v18 = vadd.f32 %v76_v12, %v55_v16 }
   0xc   :  { %v65_v17 = vmax.f32 %v63_v15, 0.0  ;;  %v66_v19 = vmax.f32 %v64_v18, 0.0 }
   0xe   :  { %67 = vst [vmem:[%s148_s6] sm:$0xf] %v65_v17  ;;  %68 = vst [vmem:[%s148_s6 + $0x4] sm:$0xf] %v66_v19 }

// kernel: resnet_forward.32
= control target key start
LH: loop header
LB: loop body
LE: loop exit
PB: predicated region body
PF: predicated region fallthrough
CT: control target
= control target key end

     0   :  { %s559_s21 = smov 0   ;;  %s597_s0 = inlined_call_operand.vmem [shape: bf16[2,16,8], index: 0, kind: input, shape index: {}]   ;;  %s598_s1 = inlined_call_operand.vmem [shape: f32[1,8], index: 1, kind: input, shape index: {}]   ;;  %s599_s2 = inlined_call_operand.vmem [shape: f32[1,8], index: 2, kind: input, shape index: {}]   ;;  %s600_s3 = inlined_call_operand.vmem [shape: bf16[8,32], index: 3, kind: input, shape index: {}]   ;;  %s601_s4 = inlined_call_operand.vmem [shape: f32[2,16,32], index: 4, kind: output, shape index: {0}]   ;;  %s602_s5 = inlined_call_operand.vmem [shape: f32[2,1,32], index: 5, kind: output, shape index: {1}]   ;;  %s603_s6 = inlined_call_operand.vmem [shape: f32[2,1,32], index: 6, kind: output, shape index: {2}]  }
   0x1 LB: > { %s476_s22 = sadd.s32 4294967295, %s520_s21   ;;  %p480_p0 = scmp.ge.s32.totalorder %s520_s21, 1  ;;  %s520_s21 = sphi %s559_s21, %s17_s21  }
   0x2   : > { %p217_p1 = scmp.lt.s32.totalorder %s520_s21, 3 }
   0x4   : > { %p218_p2 = pnand %p480_p0, %p217_p1 }
   0x5   : > { %p253_p3 = scmp.lt.s32.totalorder (!%p218_p2), %s476_s22, 1 }
   0x6   : > { %221 = sbr.rel (%p218_p2) target bundleno = 240 (0xf0), region = 36 }
   0xb   : > { %v295_v0 = vld [vmem:[%s600_s3] sm:$0xf]  ;;  %vm300_vm0 = vcmask 1043456   ;;  %v522_v1 = vmov 0.0   ;;  %vm523_vm1 = vmmov 0   ;;  %s605_s22 = smov (!%p253_p3, %s476_s22), 1 }
   0xc   : > { %498 = vmatprep.subr.bf16.mxu0 %v522_v1  ;;  %v302_v2 = vsel %vm300_vm0, %v295_v0, 0  ;;  %500 = vmatprep.mubr.msk.bf16.mxu0 %vm523_vm1, %v522_v1  ;;  %s490_s25 = sshll.u32 %s605_s22, 3  ;;  %v485_v4 = vld [vmem:[%s598_s1] ss:$0 sm:$0xff]  ;;  %vm296_vm2 = vcmask 64512   ;;  %s491_s9 = sshll.u32 %s605_s22, 4 }
   0xd   : > { %499 = vmatpush3.bf16.msra.mxu0 %v302_v2  ;;  %s257_s28 = scalar_lea.vmem %s597_s0, %s490_s25  ;;  %v486_v7 = vld [vmem:[%s599_s2] ss:$0 sm:$0xff]  ;;  %s262_s12 = scalar_lea.vmem %s601_s4, %s491_s9  ;;  %vm345_vm3 = vcmask 261120   ;;  %vm357_vm4 = vcmask 253952  }
   0xe   : > { %v493_v3 = vld [vmem:[%s257_s28] sm:$0xff]   ;;  %s265_s15 = scalar_lea.vmem %s602_s5, %s605_s22  ;;  %s268_s18 = scalar_lea.vmem %s603_s6, %s605_s22 }
   0xf   : > { %v494_v5 = vunpack.c.l.bf16 %v493_v3  ;;  %v495_v6 = vunpack.c.h.bf16 %v493_v3 }
  0x11   : > { %v281_v8 = vmul.f32 %v494_v5, %v485_v4  ;;  %v282_v9 = vmul.f32 %v495_v6, %v485_v4 }
  0x13   : > { %v290_v10 = vadd.f32 %v486_v7, %v281_v8  ;;  %v291_v11 = vadd.f32 %v486_v7, %v282_v9 }
  0x15   : > { %v292_v12 = vmax.f32 %v290_v10, 0.0  ;;  %v293_v13 = vmax.f32 %v291_v11, 0.0 }
  0x17   : > { %v294_v14 = vpack.c.bf16 %v293_v13, %v292_v12 }
  0x19   : > { %501 = vmatmul.mubr.msk.bf16.vlgmr.msra.gmra.mxu0 %vm296_vm2, %v294_v14 }
  0xd9   : > { %v338_v15 = vpop.f32.mrf.mxu0 }
  0xda   : > { %346 = vst.msk [vmem:[%s262_s12] sm:$0xff] %vm345_vm3, %v338_v15  ;;  %v359_v17 = vmul.f32 %v338_v15, %v338_v15  ;;  %v348_v19 = vsel %vm345_vm3, %v338_v15, 0.0 }
  0xdb   : > { %v502_v16 = vpop.f32.mrf.mxu0 }
  0xdc   : > { %v361_v24 = vsel %vm345_vm3, %v359_v17, 0.0 }
  0xdd   : > { %v341_v18 = vpop.f32.mrf.mxu0 }
  0xde   : > { %347 = vst.msk [vmem:[%s262_s12 + $0x8] sm:$0xff] %vm345_vm3, %v341_v18  ;;  %v349_v20 = vsel %vm345_vm3, %v341_v18, 0.0  ;;  %v360_v21 = vmul.f32 %v341_v18, %v341_v18 }
  0xdf   : > { %v350_v22 = vadd.f32 %v349_v20, %v348_v19  ;;  %v503_v23 = vpop.f32.mrf.mxu0 }
  0xe0   : > { %v362_v25 = vsel %vm345_vm3, %v360_v21, 0.0 }
  0xe1   : > { %v351_v26 = vrot.slane %v350_v22, 4  ;;  %v363_v27 = vadd.f32 %v362_v25, %v361_v24 }
  0xe3   : > { %v352_v28 = vadd.f32 %v351_v26, %v350_v22  ;;  %v364_v29 = vrot.slane %v363_v27, 4 }
  0xe5   : > { %v353_v30 = vrot.slane %v352_v28, 2  ;;  %v365_v31 = vadd.f32 %v364_v29, %v363_v27 }
  0xe7   : > { %v354_v32 = vadd.f32 %v353_v30, %v352_v28  ;;  %v366_v33 = vrot.slane %v365_v31, 2 }
  0xe9   : > { %v355_v34 = vrot.slane %v354_v32, 1  ;;  %v367_v35 = vadd.f32 %v366_v33, %v365_v31 }
  0xeb   : > { %v356_v36 = vadd.f32 %v355_v34, %v354_v32  ;;  %v368_v37 = vrot.slane %v367_v35, 1 }
  0xed   : > { %358 = vst.msk [vmem:[%s265_s15] sm:$0x1] %vm357_vm4, %v356_v36  ;;  %v369_v38 = vadd.f32 %v368_v37, %v367_v35 }
  0xef   : > { %370 = vst.msk [vmem:[%s268_s18] sm:$0x1] %vm357_vm4, %v369_v38 }
  0xf0 PF: > { %s17_s21 = sadd.s32 1, %s520_s21  }
  0xf1   : > { %p14_p4 = scmp.ge.s32.totalorder %s17_s21, 4  }
  0xf3   :  { %16 = sbr.rel (!%p14_p4) target bundleno = 1 (0x1), region = 90 }

// kernel: tile.113
= control target key start
LH: loop header
LB: loop body
LE: loop exit
PB: predicated region body
PF: predicated region fallthrough
CT: control target
= control target key end

     0   :  { %s22_s0 = inlined_call_operand.vmem [shape: f32[64], index: 0, kind: input, shape index: {}]   ;;  %s23_s1 = inlined_call_operand.vmem [shape: f32[2,64], index: 1, kind: output, shape index: {}]  }
   0x1   :  { %v4_v0 = vld [vmem:[%s22_s0] ss:$0 sm:$0xff] }
   0x2   :  { %5 = vst [vmem:[%s23_s1] sm:$0x3] %v4_v0 }

// kernel: tile.114
= control target key start
LH: loop header
LB: loop body
LE: loop exit
PB: predicated region body
PF: predicated region fallthrough
CT: control target
= control target key end

     0   :  { %vm8_vm0 = vcmask 523264   ;;  %vm14_vm1 = vcmask 1048064   ;;  %s42_s0 = inlined_call_operand.vmem [shape: f32[2,64], index: 0, kind: input, shape index: {}]   ;;  %s43_s1 = inlined_call_operand.vmem [shape: f32[1,1,128], index: 1, kind: output, shape index: {}]  }
   0x1   :  { %v5_v0 = vld [vmem:[%s42_s0] sm:$0x3]  ;;  %s25_s0 = smov 64  }
   0x2   :  { %6 = vst [vmem:[#allocation1] sm:$0x3] %v5_v0 }
   0x9   :  { %v11_v1 = vld [vmem:[#allocation1 + $0x1] sm:$0x1]   ;;  %v7_v2 = vld [vmem:[#allocation1] sm:$0x1]  }
   0xa   :  { %12 = vrot.lane.b32.xlu0 %v11_v1, %s25_s0  ;;  %9 = vst.msk [vmem:[#allocation0] sm:$0x1] %vm8_vm0, %v7_v2  }
  0x7c   :  { %v13_v3 = vpop.permute.xlu0 %12  }
  0x7d   :  { %15 = vst.msk [vmem:[#allocation0] sm:$0x1] %vm14_vm1, %v13_v3  }
  0x84   :  { %v20_v4 = vld [vmem:[#allocation0] sm:$0x1] }
  0x85   :  { %23 = vst [vmem:[%s43_s1] sm:$0x1] %v20_v4 }

// kernel: resnet_forward.31
= control target key start
LH: loop header
LB: loop body
LE: loop exit
PB: predicated region body
PF: predicated region fallthrough
CT: control target
= control target key end

     0   :  { %s945_s15 = smov 0   ;;  %s1039_s0 = inlined_call_operand.vmem [shape: bf16[2,5,16,32], index: 0, kind: input, shape index: {}]   ;;  %s1040_s1 = inlined_call_operand.vmem [shape: bf16[4,32,8], index: 1, kind: input, shape index: {}]   ;;  %s1041_s2 = inlined_call_operand.vmem [shape: bf16[2,4,4,8], index: 2, kind: output, shape index: {0}]   ;;  %s1042_s3 = inlined_call_operand.vmem [shape: f32[2,1,8], index: 3, kind: output, shape index: {1}]   ;;  %s1043_s4 = inlined_call_operand.vmem [shape: f32[2,1,8], index: 4, kind: output, shape index: {2}]  }
   0x1 LB: > { %s766_s16 = sadd.s32 4294967295, %s918_s15   ;;  %p770_p0 = scmp.ge.s32.totalorder %s918_s15, 1  ;;  %s918_s15 = sphi %s945_s15, %s15_s15  }
   0x2   : > { %p167_p1 = scmp.lt.s32.totalorder %s918_s15, 3 }
   0x4   : > { %p168_p2 = pnand %p770_p0, %p167_p1 }
   0x5   : > { %p199_p3 = scmp.lt.s32.totalorder (!%p168_p2), %s766_s16, 1 }
   0x6   : > { %171 = sbr.rel (%p168_p2) target bundleno = 263 (0x107), region = 28 }
   0xb   : > { %v899_v0 = vld [vmem:[%s1040_s1 + $0x8] sm:$0xff]   ;;  %v900_v1 = vld [vmem:[%s1040_s1 + $0x18] sm:$0xff]   ;;  %v901_v2 = vld [vmem:[%s1040_s1] sm:$0xff]   ;;  %s1045_s16 = smov (!%p199_p3, %s766_s16), 1  ;;  %vm262_vm0 = vcmask 261120   ;;  %vm622_vm1 = vcmask 58368  }
   0xc   : > { %842 = vmatprep.subr.bf16.mxu0 %v899_v0  ;;  %854 = vmatprep.subr.bf16.mxu1 %v900_v1  ;;  %v902_v3 = vld [vmem:[%s1040_s1 + $0x10] sm:$0xff]   ;;  %s890_s25 = smul.u32 40, %s1045_s16  ;;  %v905_v4 = vld [vmem:[%s1040_s1 + $0x28] sm:$0xff]   ;;  %v906_v5 = vld [vmem:[%s1040_s1 + $0x38] sm:$0xff]   ;;  %s817_s11 = sshll.u32 %s1045_s16, 3  ;;  %vm627_vm2 = vcmask 60416  }
   0xd   : > { %843 = vmatpush3.bf16.msra.mxu0 %v899_v0  ;;  %855 = vmatpush3.bf16.msra.mxu1 %v900_v1  ;;  %v909_v7 = vld [vmem:[%s1040_s1 + $0x20] sm:$0xff]   ;;  %v910_v10 = vld [vmem:[%s1040_s1 + $0x30] sm:$0xff]   ;;  %s1010_s14 = scalar_lea.vmem %s1041_s2, %s817_s11  ;;  %s211_s19 = scalar_lea.vmem %s1042_s3, %s1045_s16  ;;  %vm641_vm3 = vcmask 57344  }
   0xe   : > { %844 = vmatprep.subr.bf16.mxu0 %v901_v2  ;;  %856 = vmatprep.subr.bf16.mxu1 %v902_v3  ;;  %s974_s30 = scalar_lea.vmem %s1039_s0, %s890_s25  ;;  %s214_s22 = scalar_lea.vmem %s1043_s4, %s1045_s16 }
   0xf   : > { %v903_v6 = vld [vmem:[%s974_s30] sm:$0xff]   ;;  %v904_v8 = vld [vmem:[%s974_s30 + $0x8] sm:$0xff]   ;;  %v907_v9 = vld [vmem:[%s974_s30 + $0x10] sm:$0xff]  }
  0x10   : > { %846 = vmatprep.mubr.msk.bf16.mxu0 %vm262_vm0, %v903_v6  ;;  %858 = vmatprep.mubr.msk.bf16.mxu1 %vm262_vm0, %v903_v6  ;;  %v908_v11 = vld [vmem:[%s974_s30 + $0x18] sm:$0xff]   ;;  %v911_v12 = vld [vmem:[%s974_s30 + $0x20] sm:$0xff]  }
  0x11   : > { %845 = vmatpush3.bf16.msra.mxu0 %v901_v2  ;;  %857 = vmatpush3.bf16.msra.mxu1 %v902_v3 }
  0x12   : > { %866 = vmatprep.subr.bf16.mxu0 %v905_v4  ;;  %878 = vmatprep.subr.bf16.mxu1 %v906_v5 }
  0x14   : > { %847 = vmatmul.mubr.msk.bf16.vlgmr.msra.gmra.mxu0 %vm262_vm0, %v904_v8  ;;  %859 = vmatmul.mubr.msk.bf16.vlgmr.msra.gmra.mxu1 %vm262_vm0, %v904_v8 }
  0x15   : > { %867 = vmatpush3.bf16.msra.mxu0 %v905_v4  ;;  %879 = vmatpush3.bf16.msra.mxu1 %v906_v5 }
  0x16   : > { %850 = vmatprep.mubr.msk.bf16.mxu0 %vm262_vm0, %v907_v9  ;;  %862 = vmatprep.mubr.msk.bf16.mxu1 %vm262_vm0, %v907_v9 }
  0x17   : > { %868 = vmatprep.subr.bf16.mxu0 %v909_v7  ;;  %880 = vmatprep.subr.bf16.mxu1 %v910_v10 }
  0x19   : > { %869 = vmatpush3.bf16.msra.mxu0 %v909_v7  ;;  %881 = vmatpush3.bf16.msra.mxu1 %v910_v10 }
  0x1c   : > { %851 = vmatmul.mubr.msk.bf16.gmra.mxu0 %vm262_vm0, %v908_v11  ;;  %863 = vmatmul.mubr.msk.bf16.gmra.mxu1 %vm262_vm0, %v908_v11 }
  0x1d   : > { %870 = vmatprep.mubr.msk.bf16.mxu0 %vm262_vm0, %v904_v8  ;;  %882 = vmatprep.mubr.msk.bf16.mxu1 %vm262_vm0, %v904_v8 }
  0x24   : > { %871 = vmatmul.mubr.msk.bf16.vlgmr.msra.gmra.mxu0 %vm262_vm0, %v907_v9  ;;  %883 = vmatmul.mubr.msk.bf16.vlgmr.msra.gmra.mxu1 %vm262_vm0, %v907_v9 }
  0x25   : > { %874 = vmatprep.mubr.msk.bf16.mxu0 %vm262_vm0, %v908_v11  ;;  %886 = vmatprep.mubr.msk.bf16.mxu1 %vm262_vm0, %v908_v11 }
  0x2c   : > { %875 = vmatmul.mubr.msk.bf16.gmra.mxu0 %vm262_vm0, %v911_v12  ;;  %887 = vmatmul.mubr.msk.bf16.gmra.mxu1 %vm262_vm0, %v911_v12 }
  0xd4   : > { %v848_v13 = vpop.f32.mrf.mxu0  ;;  %v860_v14 = vpop.f32.mrf.mxu1 }
  0xd5   : > { %v423_v24 = vrot.slane %v860_v14, 1 }
  0xd6   : > { %v309_v15 = vpop.f32.mrf.mxu0  ;;  %v391_v16 = vpop.f32.mrf.mxu1 }
  0xd7   : > { %v422_v27 = vrot.slane %v391_v16, 1  ;;  %v431_v31 = vadd.f32 %v848_v13, %v423_v24 }
  0xd8   : > { %v849_v17 = vpop.f32.mrf.mxu0  ;;  %v861_v18 = vpop.f32.mrf.mxu1 }
  0xd9   : > { %v430_v35 = vadd.f32 %v422_v27, %v309_v15 }
  0xda   : > { %v312_v19 = vpop.f32.mrf.mxu0  ;;  %v394_v20 = vpop.f32.mrf.mxu1 }
  0xdc   : > { %v852_v21 = vpop.f32.mrf.mxu0  ;;  %v864_v22 = vpop.f32.mrf.mxu1 }
  0xdd   : > { %v425_v38 = vrot.slane %v864_v22, 1 }
  0xde   : > { %v323_v23 = vpop.f32.mrf.mxu0  ;;  %v405_v25 = vpop.f32.mrf.mxu1 }
  0xdf   : > { %v424_v44 = vrot.slane %v405_v25, 1  ;;  %v433_v50 = vadd.f32 %v852_v21, %v425_v38 }
  0xe0   : > { %v853_v26 = vpop.f32.mrf.mxu0  ;;  %v865_v28 = vpop.f32.mrf.mxu1 }
  0xe1   : > { %v432_v55 = vadd.f32 %v424_v44, %v323_v23 }
  0xe2   : > { %v326_v29 = vpop.f32.mrf.mxu0  ;;  %v408_v30 = vpop.f32.mrf.mxu1 }
  0xe4   : > { %v872_v32 = vpop.f32.mrf.mxu0  ;;  %v884_v34 = vpop.f32.mrf.mxu1 }
  0xe5   : > { %v521_v33 = vadd.f32 %v872_v32, %v431_v31  ;;  %v607_v36 = vrot.slane %v884_v34, 1 }
  0xe6   : > { %v493_v37 = vpop.f32.mrf.mxu0  ;;  %v575_v40 = vpop.f32.mrf.mxu1 }
  0xe7   : > { %v520_v39 = vadd.f32 %v493_v37, %v430_v35  ;;  %v615_v41 = vadd.f32 %v607_v36, %v521_v33  ;;  %v606_v42 = vrot.slane %v575_v40, 1 }
  0xe8   : > { %v873_v43 = vpop.f32.mrf.mxu0  ;;  %v885_v45 = vpop.f32.mrf.mxu1 }
  0xe9   : > { %v619_v46 = vpack.c.bf16 %v615_v41, %v615_v41  ;;  %v614_v47 = vadd.f32 %v606_v42, %v520_v39  ;;  %v644_v59 = vmul.f32 %v615_v41, %v615_v41  ;;  %v629_v3 = vsel %vm627_vm2, %v615_v41, 0.0 }
  0xea   : > { %v496_v48 = vpop.f32.mrf.mxu0  ;;  %v578_v49 = vpop.f32.mrf.mxu1 }
  0xeb   : > { %624 = vst.msk [vmem:[%s1010_s14 + $0x2] sm:$0x3] %vm622_vm1, %v619_v46  ;;  %v618_v51 = vpack.c.bf16 %v614_v47, %v614_v47  ;;  %v643_v56 = vmul.f32 %v614_v47, %v614_v47  ;;  %v628_v62 = vsel %vm627_vm2, %v614_v47, 0.0  ;;  %v648_v8 = vsel %vm627_vm2, %v644_v59, 0.0 }
  0xec   : > { %v876_v52 = vpop.f32.mrf.mxu0  ;;  %v888_v54 = vpop.f32.mrf.mxu1  ;;  %v630_v9 = vadd.f32 %v629_v3, %v628_v62 }
  0xed   : > { %v523_v53 = vadd.f32 %v876_v52, %v433_v50  ;;  %623 = vst.msk [vmem:[%s1010_s14] sm:$0x3] %vm622_vm1, %v618_v51  ;;  %v609_v57 = vrot.slane %v888_v54, 1  ;;  %v647_v4 = vsel %vm627_vm2, %v643_v56, 0.0 }
  0xee   : > { %v507_v58 = vpop.f32.mrf.mxu0  ;;  %v589_v61 = vpop.f32.mrf.mxu1  ;;  %v649_v15 = vadd.f32 %v648_v8, %v647_v4 }
  0xef   : > { %v522_v60 = vadd.f32 %v507_v58, %v432_v55  ;;  %v617_v63 = vadd.f32 %v609_v57, %v523_v53  ;;  %v608_v0 = vrot.slane %v589_v61, 1 }
  0xf0   : > { %v877_v1 = vpop.f32.mrf.mxu0  ;;  %v889_v2 = vpop.f32.mrf.mxu1 }
  0xf1   : > { %v621_v5 = vpack.c.bf16 %v617_v63, %v617_v63  ;;  %v616_v6 = vadd.f32 %v608_v0, %v522_v60  ;;  %v646_v11 = vmul.f32 %v617_v63, %v617_v63  ;;  %v633_v17 = vsel %vm627_vm2, %v617_v63, 0.0 }
  0xf2   : > { %v510_v7 = vpop.f32.mrf.mxu0  ;;  %v592_v10 = vpop.f32.mrf.mxu1 }
  0xf3   : > { %626 = vst.msk [vmem:[%s1010_s14 + $0x6] sm:$0x3] %vm622_vm1, %v621_v5  ;;  %v620_v12 = vpack.c.bf16 %v616_v6, %v616_v6  ;;  %v631_v13 = vsel %vm627_vm2, %v616_v6, 0.0  ;;  %v645_v14 = vmul.f32 %v616_v6, %v616_v6  ;;  %v652_v21 = vsel %vm627_vm2, %v646_v11, 0.0 }
  0xf4   : > { %v632_v16 = vadd.f32 %v631_v13, %v630_v9 }
  0xf5   : > { %625 = vst.msk [vmem:[%s1010_s14 + $0x4] sm:$0x3] %vm622_vm1, %v620_v12  ;;  %v650_v18 = vsel %vm627_vm2, %v645_v14, 0.0 }
  0xf6   : > { %v634_v19 = vadd.f32 %v633_v17, %v632_v16  ;;  %v651_v20 = vadd.f32 %v650_v18, %v649_v15 }
  0xf8   : > { %v635_v22 = vrot.slane %v634_v19, 4  ;;  %v653_v23 = vadd.f32 %v652_v21, %v651_v20 }
  0xfa   : > { %v636_v24 = vadd.f32 %v635_v22, %v634_v19  ;;  %v654_v25 = vrot.slane %v653_v23, 4 }
  0xfc   : > { %v637_v26 = vrot.slane %v636_v24, 2  ;;  %v655_v27 = vadd.f32 %v654_v25, %v653_v23 }
  0xfe   : > { %v638_v28 = vadd.f32 %v637_v26, %v636_v24  ;;  %v656_v29 = vrot.slane %v655_v27, 2 }
 0x100   : > { %v639_v30 = vrot.slane %v638_v28, 1  ;;  %v657_v31 = vadd.f32 %v656_v29, %v655_v27 }
 0x102   : > { %v640_v32 = vadd.f32 %v639_v30, %v638_v28  ;;  %v658_v33 = vrot.slane %v657_v31, 1 }
 0x104   : > { %642 = vst.msk [vmem:[%s211_s19] sm:$0x1] %vm641_vm3, %v640_v32  ;;  %v659_v34 = vadd.f32 %v658_v33, %v657_v31 }
 0x106   : > { %660 = vst.msk [vmem:[%s214_s22] sm:$0x1] %vm641_vm3, %v659_v34 }
 0x107 PF: > { %s15_s15 = sadd.s32 1, %s918_s15  }
 0x108   : > { %p12_p4 = scmp.ge.s32.totalorder %s15_s15, 4  }
 0x10a   :  { %14 = sbr.rel (!%p12_p4) target bundleno = 1 (0x1), region = 85 }

// kernel: resnet_forward.38
= control target key start
LH: loop header
LB: loop body
LE: loop exit
PB: predicated region body
PF: predicated region fallthrough
CT: control target
= control target key end

     0   :  { %s466_s15 = smov 0   ;;  %s500_s0 = inlined_call_operand.vmem [shape: f32[2,4,32], index: 0, kind: input, shape index: {}]   ;;  %s501_s1 = inlined_call_operand.vmem [shape: bf16[32,64], index: 1, kind: input, shape index: {}]   ;;  %s502_s2 = inlined_call_operand.vmem [shape: f32[2,4,64], index: 2, kind: output, shape index: {0}]   ;;  %s503_s3 = inlined_call_operand.vmem [shape: f32[2,1,64], index: 3, kind: output, shape index: {1}]   ;;  %s504_s4 = inlined_call_operand.vmem [shape: f32[2,1,64], index: 4, kind: output, shape index: {2}]  }
   0x1 LB: > { %s396_s16 = sadd.s32 4294967295, %s437_s15   ;;  %p400_p0 = scmp.ge.s32.totalorder %s437_s15, 1  ;;  %s437_s15 = sphi %s466_s15, %s15_s15  }
   0x2   : > { %p166_p1 = scmp.lt.s32.totalorder %s437_s15, 3 }
   0x4   : > { %p167_p2 = pnand %p400_p0, %p166_p1 }
   0x5   : > { %p196_p3 = scmp.lt.s32.totalorder (!%p167_p2), %s396_s16, 1 }
   0x6   : > { %170 = sbr.rel (%p167_p2) target bundleno = 229 (0xe5), region = 28 }
   0xb   : > { %v429_v0 = vld [vmem:[%s501_s1 + $0x8] sm:$0xff]   ;;  %v439_v1 = vmov 0.0   ;;  %v430_v2 = vld [vmem:[%s501_s1] sm:$0xff]   ;;  %vm440_vm0 = vmmov 0   ;;  %s506_s16 = smov (!%p196_p3, %s396_s16), 1  ;;  %vm229_vm1 = vcmask 261120  }
   0xc   : > { %411 = vmatprep.subr.bf16.mxu0 %v439_v1  ;;  %415 = vmatprep.mubr.msk.bf16.mxu0 %vm440_vm0, %v439_v1  ;;  %s401_s21 = sshll.u32 %s506_s16, 2  ;;  %vm273_vm2 = vcmask 519168   ;;  %s206_s30 = scalar_lea.vmem %s503_s3, %s506_s16  ;;  %vm282_vm3 = vcmask 516096  }
   0xd   : > { %412 = vmatpush3.bf16.msra.mxu0 %v429_v0  ;;  %s199_s24 = scalar_lea.vmem %s500_s0, %s401_s21  ;;  %s203_s27 = scalar_lea.vmem %s502_s2, %s401_s21 }
   0xe   : > { %413 = vmatprep.subr.bf16.mxu0 %v439_v1  ;;  %v211_v3 = vld [vmem:[%s199_s24] sm:$0xf]  ;;  %s209_s7 = scalar_lea.vmem %s504_s4, %s506_s16 }
   0xf   : > { %v212_v4 = vpack.c.bf16 %v211_v3, %v211_v3 }
  0x11   : > { %414 = vmatpush3.bf16.msra.mxu0 %v430_v2 }
  0x14   : > { %416 = vmatmul.mubr.msk.bf16.vlgmr.msra.gmra.mxu0 %vm229_vm1, %v212_v4 }
  0xd4   : > { %v267_v5 = vpop.f32.mrf.mxu0 }
  0xd5   : > { %274 = vst.msk [vmem:[%s203_s27] sm:$0xf] %vm273_vm2, %v267_v5  ;;  %v275_v6 = vsel %vm273_vm2, %v267_v5, 0.0  ;;  %v284_v7 = vmul.f32 %v267_v5, %v267_v5 }
  0xd6   : > { %v276_v8 = vrot.slane %v275_v6, 4  ;;  %v417_v9 = vpop.f32.mrf.mxu0 }
  0xd7   : > { %v285_v10 = vsel %vm273_vm2, %v284_v7, 0.0 }
  0xd8   : > { %v277_v11 = vadd.f32 %v276_v8, %v275_v6  ;;  %v286_v12 = vrot.slane %v285_v10, 4  ;;  %v270_v13 = vpop.f32.mrf.mxu0 }
  0xda   : > { %v278_v14 = vrot.slane %v277_v11, 2  ;;  %v287_v15 = vadd.f32 %v286_v12, %v285_v10  ;;  %v418_v16 = vpop.f32.mrf.mxu0 }
  0xdc   : > { %v279_v17 = vadd.f32 %v278_v14, %v277_v11  ;;  %v288_v18 = vrot.slane %v287_v15, 2 }
  0xde   : > { %v280_v19 = vrot.slane %v279_v17, 1  ;;  %v289_v20 = vadd.f32 %v288_v18, %v287_v15 }
  0xe0   : > { %v281_v21 = vadd.f32 %v280_v19, %v279_v17  ;;  %v290_v22 = vrot.slane %v289_v20, 1 }
  0xe2   : > { %283 = vst.msk [vmem:[%s206_s30] sm:$0x1] %vm282_vm3, %v281_v21  ;;  %v291_v23 = vadd.f32 %v290_v22, %v289_v20 }
  0xe4   : > { %292 = vst.msk [vmem:[%s209_s7] sm:$0x1] %vm282_vm3, %v291_v23 }
  0xe5 PF: > { %s15_s15 = sadd.s32 1, %s437_s15  }
  0xe6   : > { %p12_p4 = scmp.ge.s32.totalorder %s15_s15, 4  }
  0xe8   :  { %14 = sbr.rel (!%p12_p4) target bundleno = 1 (0x1), region = 82 }

// kernel: resnet_forward.35
= control target key start
LH: loop header
LB: loop body
LE: loop exit
PB: predicated region body
PF: predicated region fallthrough
CT: control target
= control target key end

     0   :  { %s498_s15 = smov 0   ;;  %s533_s0 = inlined_call_operand.vmem [shape: f32[2,16,32], index: 0, kind: input, shape index: {}]   ;;  %s534_s1 = inlined_call_operand.vmem [shape: bf16[32,16], index: 1, kind: input, shape index: {}]   ;;  %s535_s2 = inlined_call_operand.vmem [shape: bf16[2,16,16], index: 2, kind: output, shape index: {0}]   ;;  %s536_s3 = inlined_call_operand.vmem [shape: f32[2,1,16], index: 3, kind: output, shape index: {1}]   ;;  %s537_s4 = inlined_call_operand.vmem [shape: f32[2,1,16], index: 4, kind: output, shape index: {2}]  }
   0x1 LB: > { %s420_s16 = sadd.s32 4294967295, %s469_s15   ;;  %p424_p0 = scmp.ge.s32.totalorder %s469_s15, 1  ;;  %s469_s15 = sphi %s498_s15, %s15_s15  }
   0x2   : > { %p167_p1 = scmp.lt.s32.totalorder %s469_s15, 3 }
   0x4   : > { %p168_p2 = pnand %p424_p0, %p167_p1 }
   0x5   : > { %p199_p3 = scmp.lt.s32.totalorder (!%p168_p2), %s420_s16, 1 }
   0x6   : > { %171 = sbr.rel (%p168_p2) target bundleno = 235 (0xeb), region = 28 }
   0xb   : > { %v461_v0 = vld [vmem:[%s534_s1 + $0x8] sm:$0xff]   ;;  %v471_v1 = vmov 0.0   ;;  %v462_v2 = vld [vmem:[%s534_s1] sm:$0xff]   ;;  %vm472_vm0 = vmmov 0   ;;  %s539_s16 = smov (!%p199_p3, %s420_s16), 1  ;;  %vm235_vm1 = vcmask 261120  }
   0xc   : > { %443 = vmatprep.subr.bf16.mxu0 %v471_v1  ;;  %447 = vmatprep.mubr.msk.bf16.mxu0 %vm472_vm0, %v471_v1  ;;  %s436_s21 = sshll.u32 %s539_s16, 4  ;;  %s437_s25 = sshll.u32 %s539_s16, 3  ;;  %vm288_vm2 = vcmask 125952   ;;  %vm291_vm3 = vcmask 130048   ;;  %vm301_vm4 = vcmask 122880  }
   0xd   : > { %444 = vmatpush3.bf16.msra.mxu0 %v461_v0  ;;  %s203_s24 = scalar_lea.vmem %s533_s0, %s436_s21  ;;  %s208_s28 = scalar_lea.vmem %s535_s2, %s437_s25 }
   0xe   : > { %445 = vmatprep.subr.bf16.mxu0 %v471_v1  ;;  %v216_v3 = vld [vmem:[%s203_s24] sm:$0xff]  ;;  %v217_v4 = vld [vmem:[%s203_s24 + $0x8] sm:$0xff]  ;;  %s211_s5 = scalar_lea.vmem %s536_s3, %s539_s16  ;;  %s214_s8 = scalar_lea.vmem %s537_s4, %s539_s16 }
   0xf   : > { %v218_v5 = vpack.c.bf16 %v217_v4, %v216_v3 }
  0x11   : > { %446 = vmatpush3.bf16.msra.mxu0 %v462_v2 }
  0x14   : > { %448 = vmatmul.mubr.msk.bf16.vlgmr.msra.gmra.mxu0 %vm235_vm1, %v218_v5 }
  0xd4   : > { %v273_v6 = vpop.f32.mrf.mxu0 }
  0xd5   : > { %v438_v7 = vpack.c.bf16 %v273_v6, %v273_v6  ;;  %v303_v9 = vmul.f32 %v273_v6, %v273_v6  ;;  %v292_v11 = vsel %vm291_vm3, %v273_v6, 0.0 }
  0xd6   : > { %v449_v8 = vpop.f32.mrf.mxu0 }
  0xd7   : > { %289 = vst.msk [vmem:[%s208_s28] sm:$0xf] %vm288_vm2, %v438_v7  ;;  %v305_v17 = vsel %vm291_vm3, %v303_v9, 0.0 }
  0xd8   : > { %v276_v10 = vpop.f32.mrf.mxu0 }
  0xd9   : > { %v439_v12 = vpack.c.bf16 %v276_v10, %v276_v10  ;;  %v293_v13 = vsel %vm291_vm3, %v276_v10, 0.0  ;;  %v304_v14 = vmul.f32 %v276_v10, %v276_v10 }
  0xda   : > { %v294_v15 = vadd.f32 %v293_v13, %v292_v11  ;;  %v450_v16 = vpop.f32.mrf.mxu0 }
  0xdb   : > { %290 = vst.msk [vmem:[%s208_s28 + $0x4] sm:$0xf] %vm288_vm2, %v439_v12  ;;  %v306_v18 = vsel %vm291_vm3, %v304_v14, 0.0 }
  0xdc   : > { %v295_v19 = vrot.slane %v294_v15, 4  ;;  %v307_v20 = vadd.f32 %v306_v18, %v305_v17 }
  0xde   : > { %v296_v21 = vadd.f32 %v295_v19, %v294_v15  ;;  %v308_v22 = vrot.slane %v307_v20, 4 }
  0xe0   : > { %v297_v23 = vrot.slane %v296_v21, 2  ;;  %v309_v24 = vadd.f32 %v308_v22, %v307_v20 }
  0xe2   : > { %v298_v25 = vadd.f32 %v297_v23, %v296_v21  ;;  %v310_v26 = vrot.slane %v309_v24, 2 }
  0xe4   : > { %v299_v27 = vrot.slane %v298_v25, 1  ;;  %v311_v28 = vadd.f32 %v310_v26, %v309_v24 }
  0xe6   : > { %v300_v29 = vadd.f32 %v299_v27, %v298_v25  ;;  %v312_v30 = vrot.slane %v311_v28, 1 }
  0xe8   : > { %302 = vst.msk [vmem:[%s211_s5] sm:$0x1] %vm301_vm4, %v300_v29  ;;  %v313_v31 = vadd.f32 %v312_v30, %v311_v28 }
  0xea   : > { %314 = vst.msk [vmem:[%s214_s8] sm:$0x1] %vm301_vm4, %v313_v31 }
  0xeb PF: > { %s15_s15 = sadd.s32 1, %s469_s15  }
  0xec   : > { %p12_p4 = scmp.ge.s32.totalorder %s15_s15, 4  }
  0xee   :  { %14 = sbr.rel (!%p12_p4) target bundleno = 1 (0x1), region = 82 }

// kernel: resnet_forward.39
= control target key start
LH: loop header
LB: loop body
LE: loop exit
PB: predicated region body
PF: predicated region fallthrough
CT: control target
= control target key end

     0   :  { %s142_s0 = inlined_call_operand.vmem [shape: f32[2,2,128], index: 0, kind: input, shape index: {}]   ;;  %s143_s1 = inlined_call_operand.vmem [shape: f32[1,1,128], index: 1, kind: input, shape index: {}]   ;;  %s144_s2 = inlined_call_operand.vmem [shape: f32[1,1,128], index: 2, kind: input, shape index: {}]   ;;  %s145_s3 = inlined_call_operand.vmem [shape: f32[2,2,128], index: 3, kind: input, shape index: {}]   ;;  %s146_s4 = inlined_call_operand.vmem [shape: f32[1,1,128], index: 4, kind: input, shape index: {}]   ;;  %s147_s5 = inlined_call_operand.vmem [shape: f32[1,1,128], index: 5, kind: input, shape index: {}]   ;;  %s148_s6 = inlined_call_operand.vmem [shape: f32[2,2,128], index: 6, kind: output, shape index: {}]  }
   0x1   :  { %v23_v0 = vld [vmem:[%s142_s0] sm:$0x3]  ;;  %v24_v7 = vld [vmem:[%s142_s0 + $0x2] sm:$0x3] }
   0x2   :  { %v73_v1 = vld [vmem:[%s143_s1] ss:$0 sm:$0xff]  ;;  %v44_v8 = vld [vmem:[%s145_s3 + $0x2] sm:$0x3] }
   0x3   :  { %v74_v2 = vld [vmem:[%s144_s2] ss:$0 sm:$0xff]  ;;  %v32_v3 = vmul.f32 %v73_v1, %v23_v0  ;;  %v33_v10 = vmul.f32 %v73_v1, %v24_v7 }
   0x4   :  { %v43_v4 = vld [vmem:[%s145_s3] sm:$0x3] }
   0x5   :  { %v75_v5 = vld [vmem:[%s146_s4] ss:$0 sm:$0xff]  ;;  %v41_v9 = vadd.f32 %v74_v2, %v32_v3  ;;  %v42_v14 = vadd.f32 %v74_v2, %v33_v10 }
   0x6   :  { %v52_v6 = vmul.f32 %v75_v5, %v43_v4  ;;  %v53_v11 = vmul.f32 %v75_v5, %v44_v8  ;;  %v76_v12 = vld [vmem:[%s147_s5] ss:$0 sm:$0xff] }
   0x8   :  { %v54_v13 = vadd.f32 %v52_v6, %v41_v9  ;;  %v55_v16 = vadd.f32 %v53_v11, %v42_v14 }
   0xa   :  { %v63_v15 = vadd.f32 %v76_v12, %v54_v13  ;;  %v64_v18 = vadd.f32 %v76_v12, %v55_v16 }
   0xc   :  { %v65_v17 = vmax.f32 %v63_v15, 0.0  ;;  %v66_v19 = vmax.f32 %v64_v18, 0.0 }
   0xe   :  { %67 = vst [vmem:[%s148_s6] sm:$0x3] %v65_v17  ;;  %68 = vst [vmem:[%s148_s6 + $0x2] sm:$0x3] %v66_v19 }

// kernel: resnet_forward.37
= control target key start
LH: loop header
LB: loop body
LE: loop exit
PB: predicated region body
PF: predicated region fallthrough
CT: control target
= control target key end

     0   :  { %s537_s21 = smov 0   ;;  %s575_s0 = inlined_call_operand.vmem [shape: bf16[2,4,16], index: 0, kind: input, shape index: {}]   ;;  %s576_s1 = inlined_call_operand.vmem [shape: f32[1,16], index: 1, kind: input, shape index: {}]   ;;  %s577_s2 = inlined_call_operand.vmem [shape: f32[1,16], index: 2, kind: input, shape index: {}]   ;;  %s578_s3 = inlined_call_operand.vmem [shape: bf16[16,64], index: 3, kind: input, shape index: {}]   ;;  %s579_s4 = inlined_call_operand.vmem [shape: f32[2,4,64], index: 4, kind: output, shape index: {0}]   ;;  %s580_s5 = inlined_call_operand.vmem [shape: f32[2,1,64], index: 5, kind: output, shape index: {1}]   ;;  %s581_s6 = inlined_call_operand.vmem [shape: f32[2,1,64], index: 6, kind: output, shape index: {2}]  }
   0x1 LB: > { %s460_s22 = sadd.s32 4294967295, %s498_s21   ;;  %p464_p0 = scmp.ge.s32.totalorder %s498_s21, 1  ;;  %s498_s21 = sphi %s537_s21, %s17_s21  }
   0x2   : > { %p216_p1 = scmp.lt.s32.totalorder %s498_s21, 3 }
   0x4   : > { %p217_p2 = pnand %p464_p0, %p216_p1 }
   0x5   : > { %p250_p3 = scmp.lt.s32.totalorder (!%p217_p2), %s460_s22, 1 }
   0x6   : > { %220 = sbr.rel (%p217_p2) target bundleno = 234 (0xea), region = 36 }
   0xb   : > { %v491_v0 = vld [vmem:[%s578_s3] sm:$0xff]   ;;  %v500_v1 = vmov 0.0   ;;  %vm501_vm0 = vmmov 0   ;;  %s583_s22 = smov (!%p250_p3, %s460_s22), 1  ;;  %vm293_vm1 = vcmask 130048   ;;  %vm337_vm2 = vcmask 519168  }
   0xc   : > { %475 = vmatprep.subr.bf16.mxu0 %v500_v1  ;;  %477 = vmatprep.mubr.msk.bf16.mxu0 %vm501_vm0, %v500_v1  ;;  %s465_s25 = sshll.u32 %s583_s22, 1  ;;  %v467_v3 = vld [vmem:[%s576_s1] ss:$0 sm:$0xff]  ;;  %s466_s9 = sshll.u32 %s583_s22, 2  ;;  %vm346_vm3 = vcmask 516096  }
   0xd   : > { %476 = vmatpush3.bf16.msra.mxu0 %v491_v0  ;;  %s253_s28 = scalar_lea.vmem %s575_s0, %s465_s25  ;;  %v468_v5 = vld [vmem:[%s577_s2] ss:$0 sm:$0xff]  ;;  %s257_s12 = scalar_lea.vmem %s579_s4, %s466_s9 }
   0xe   : > { %v265_v2 = vld [vmem:[%s253_s28] sm:$0x3]  ;;  %s260_s15 = scalar_lea.vmem %s580_s5, %s583_s22  ;;  %s263_s18 = scalar_lea.vmem %s581_s6, %s583_s22 }
   0xf   : > { %v267_v4 = vunpack.c.l.bf16 %v265_v2 }
  0x11   : > { %v274_v6 = vmul.f32 %v467_v3, %v267_v4 }
  0x13   : > { %v282_v7 = vadd.f32 %v468_v5, %v274_v6 }
  0x15   : > { %v283_v8 = vmax.f32 %v282_v7, 0.0 }
  0x17   : > { %v284_v9 = vpack.c.bf16 %v283_v8, %v283_v8 }
  0x19   : > { %478 = vmatmul.mubr.msk.bf16.vlgmr.msra.gmra.mxu0 %vm293_vm1, %v284_v9 }
  0xd9   : > { %v331_v10 = vpop.f32.mrf.mxu0 }
  0xda   : > { %338 = vst.msk [vmem:[%s257_s12] sm:$0xf] %vm337_vm2, %v331_v10  ;;  %v339_v11 = vsel %vm337_vm2, %v331_v10, 0.0  ;;  %v348_v12 = vmul.f32 %v331_v10, %v331_v10 }
  0xdb   : > { %v340_v13 = vrot.slane %v339_v11, 4  ;;  %v479_v14 = vpop.f32.mrf.mxu0 }
  0xdc   : > { %v349_v15 = vsel %vm337_vm2, %v348_v12, 0.0 }
  0xdd   : > { %v341_v16 = vadd.f32 %v340_v13, %v339_v11  ;;  %v350_v17 = vrot.slane %v349_v15, 4  ;;  %v334_v18 = vpop.f32.mrf.mxu0 }
  0xdf   : > { %v342_v19 = vrot.slane %v341_v16, 2  ;;  %v351_v20 = vadd.f32 %v350_v17, %v349_v15  ;;  %v480_v21 = vpop.f32.mrf.mxu0 }
  0xe1   : > { %v343_v22 = vadd.f32 %v342_v19, %v341_v16  ;;  %v352_v23 = vrot.slane %v351_v20, 2 }
  0xe3   : > { %v344_v24 = vrot.slane %v343_v22, 1  ;;  %v353_v25 = vadd.f32 %v352_v23, %v351_v20 }
  0xe5   : > { %v345_v26 = vadd.f32 %v344_v24, %v343_v22  ;;  %v354_v27 = vrot.slane %v353_v25, 1 }
  0xe7   : > { %347 = vst.msk [vmem:[%s260_s15] sm:$0x1] %vm346_vm3, %v345_v26  ;;  %v355_v28 = vadd.f32 %v354_v27, %v353_v25 }
  0xe9   : > { %356 = vst.msk [vmem:[%s263_s18] sm:$0x1] %vm346_vm3, %v355_v28 }
  0xea PF: > { %s17_s21 = sadd.s32 1, %s498_s21  }
  0xeb   : > { %p14_p4 = scmp.ge.s32.totalorder %s17_s21, 4  }
  0xed   :  { %16 = sbr.rel (!%p14_p4) target bundleno = 1 (0x1), region = 90 }

// kernel: resnet_forward.36
= control target key start
LH: loop header
LB: loop body
LE: loop exit
PB: predicated region body
PF: predicated region fallthrough
CT: control target
= control target key end

     0   :  { %s908_s15 = smov 0   ;;  %s1002_s0 = inlined_call_operand.vmem [shape: bf16[2,3,16,64], index: 0, kind: input, shape index: {}]   ;;  %s1003_s1 = inlined_call_operand.vmem [shape: bf16[4,64,16], index: 1, kind: input, shape index: {}]   ;;  %s1004_s2 = inlined_call_operand.vmem [shape: bf16[2,2,2,16], index: 2, kind: output, shape index: {0}]   ;;  %s1005_s3 = inlined_call_operand.vmem [shape: f32[2,1,16], index: 3, kind: output, shape index: {1}]   ;;  %s1006_s4 = inlined_call_operand.vmem [shape: f32[2,1,16], index: 4, kind: output, shape index: {2}]  }
   0x1 LB: > { %s715_s16 = sadd.s32 4294967295, %s881_s15   ;;  %p719_p0 = scmp.ge.s32.totalorder %s881_s15, 1  ;;  %s881_s15 = sphi %s908_s15, %s15_s15  }
   0x2   : > { %p167_p1 = scmp.lt.s32.totalorder %s881_s15, 3 }
   0x4   : > { %p168_p2 = pnand %p719_p0, %p167_p1 }
   0x5   : > { %p198_p3 = scmp.lt.s32.totalorder (!%p168_p2), %s715_s16, 1 }
   0x6   : > { %171 = sbr.rel (%p168_p2) target bundleno = 262 (0x106), region = 28 }
   0xb   : > { %v856_v0 = vld [vmem:[%s1003_s1 + $0x18] sm:$0xff]   ;;  %v858_v2 = vld [vmem:[%s1003_s1 + $0x10] sm:$0xff]   ;;  %s1008_s16 = smov (!%p198_p3, %s715_s16), 1  ;;  %v860_v4 = vld [vmem:[%s1003_s1 + $0x8] sm:$0xff]   ;;  %vm262_vm0 = vcmask 523264   ;;  %vm586_vm1 = vcmask 122880  }
   0xc   : > { %v857_v1 = vld [vmem:[%s1003_s1 + $0x38] sm:$0xff]   ;;  %799 = vmatprep.subr.bf16.mxu0 %v856_v0  ;;  %v859_v3 = vld [vmem:[%s1003_s1 + $0x30] sm:$0xff]   ;;  %s847_s27 = smul.u32 24, %s1008_s16  ;;  %v861_v5 = vld [vmem:[%s1003_s1 + $0x28] sm:$0xff]   ;;  %s721_s29 = sshll.u32 %s1008_s16, 1  ;;  %vm589_vm2 = vcmask 123904  }
   0xd   : > { %811 = vmatprep.subr.bf16.mxu1 %v857_v1  ;;  %800 = vmatpush3.bf16.msra.mxu0 %v856_v0  ;;  %v862_v6 = vld [vmem:[%s1003_s1] sm:$0xff]   ;;  %v866_v9 = vld [vmem:[%s1003_s1 + $0x58] sm:$0xff]   ;;  %v868_v12 = vld [vmem:[%s1003_s1 + $0x50] sm:$0xff]   ;;  %s209_s9 = scalar_lea.vmem %s1005_s3, %s1008_s16  ;;  %s212_s12 = scalar_lea.vmem %s1006_s4, %s1008_s16 }
   0xe   : > { %812 = vmatpush3.bf16.msra.mxu1 %v857_v1  ;;  %801 = vmatprep.subr.bf16.mxu0 %v858_v2  ;;  %s940_s6 = scalar_lea.vmem %s1002_s0, %s847_s27  ;;  %v863_v8 = vld [vmem:[%s1003_s1 + $0x20] sm:$0xff]   ;;  %v867_v10 = vld [vmem:[%s1003_s1 + $0x78] sm:$0xff]   ;;  %v869_v13 = vld [vmem:[%s1003_s1 + $0x70] sm:$0xff]  }
   0xf   : > { %813 = vmatprep.subr.bf16.mxu1 %v859_v3  ;;  %v864_v7 = vld [vmem:[%s940_s6] sm:$0xff]   ;;  %v865_v11 = vld [vmem:[%s940_s6 + $0x8] sm:$0xff]   ;;  %v874_v18 = vld [vmem:[%s940_s6 + $0x10] sm:$0xff]   ;;  %s206_s6 = scalar_lea.vmem %s1004_s2, %s721_s29 }
  0x10   : > { %807 = vmatprep.mubr.msk.bf16.mxu0 %vm262_vm0, %v864_v7  ;;  %819 = vmatprep.mubr.msk.bf16.mxu1 %vm262_vm0, %v864_v7  ;;  %v870_v14 = vld [vmem:[%s1003_s1 + $0x48] sm:$0xff]   ;;  %v872_v16 = vld [vmem:[%s1003_s1 + $0x40] sm:$0xff]  }
  0x11   : > { %802 = vmatpush3.bf16.msra.mxu0 %v858_v2  ;;  %v871_v15 = vld [vmem:[%s1003_s1 + $0x68] sm:$0xff]   ;;  %v873_v17 = vld [vmem:[%s1003_s1 + $0x60] sm:$0xff]  }
  0x12   : > { %814 = vmatpush3.bf16.msra.mxu1 %v859_v3  ;;  %803 = vmatprep.subr.bf16.mxu0 %v860_v4 }
  0x13   : > { %815 = vmatprep.subr.bf16.mxu1 %v861_v5 }
  0x15   : > { %804 = vmatpush3.bf16.msra.mxu0 %v860_v4 }
  0x16   : > { %816 = vmatpush3.bf16.msra.mxu1 %v861_v5  ;;  %805 = vmatprep.subr.bf16.mxu0 %v862_v6 }
  0x17   : > { %817 = vmatprep.subr.bf16.mxu1 %v863_v8 }
  0x19   : > { %806 = vmatpush3.bf16.msra.mxu0 %v862_v6 }
  0x1a   : > { %818 = vmatpush3.bf16.msra.mxu1 %v863_v8  ;;  %823 = vmatprep.subr.bf16.mxu0 %v866_v9 }
  0x1b   : > { %835 = vmatprep.subr.bf16.mxu1 %v867_v10 }
  0x1c   : > { %808 = vmatmul.mubr.msk.bf16.vlgmr.msra.gmra.mxu0 %vm262_vm0, %v865_v11 }
  0x1d   : > { %820 = vmatmul.mubr.msk.bf16.vlgmr.msra.gmra.mxu1 %vm262_vm0, %v865_v11  ;;  %824 = vmatpush3.bf16.msra.mxu0 %v866_v9 }
  0x1e   : > { %836 = vmatpush3.bf16.msra.mxu1 %v867_v10  ;;  %825 = vmatprep.subr.bf16.mxu0 %v868_v12 }
  0x1f   : > { %837 = vmatprep.subr.bf16.mxu1 %v869_v13  ;;  %831 = vmatprep.mubr.msk.bf16.mxu0 %vm262_vm0, %v865_v11 }
  0x20   : > { %843 = vmatprep.mubr.msk.bf16.mxu1 %vm262_vm0, %v865_v11 }
  0x21   : > { %826 = vmatpush3.bf16.msra.mxu0 %v868_v12 }
  0x22   : > { %838 = vmatpush3.bf16.msra.mxu1 %v869_v13  ;;  %827 = vmatprep.subr.bf16.mxu0 %v870_v14 }
  0x23   : > { %839 = vmatprep.subr.bf16.mxu1 %v871_v15 }
  0x25   : > { %828 = vmatpush3.bf16.msra.mxu0 %v870_v14 }
  0x26   : > { %840 = vmatpush3.bf16.msra.mxu1 %v871_v15  ;;  %829 = vmatprep.subr.bf16.mxu0 %v872_v16 }
  0x27   : > { %841 = vmatprep.subr.bf16.mxu1 %v873_v17 }
  0x29   : > { %830 = vmatpush3.bf16.msra.mxu0 %v872_v16 }
  0x2a   : > { %842 = vmatpush3.bf16.msra.mxu1 %v873_v17 }
  0x2c   : > { %832 = vmatmul.mubr.msk.bf16.vlgmr.msra.gmra.mxu0 %vm262_vm0, %v874_v18 }
  0x2d   : > { %844 = vmatmul.mubr.msk.bf16.vlgmr.msra.gmra.mxu1 %vm262_vm0, %v874_v18 }
  0xdc   : > { %v809_v19 = vpop.f32.mrf.mxu0 }
  0xdd   : > { %v821_v20 = vpop.f32.mrf.mxu1 }
  0xde   : > { %v303_v21 = vpop.f32.mrf.mxu0  ;;  %v401_v27 = vrot.slane %v821_v20, 1 }
  0xdf   : > { %v385_v22 = vpop.f32.mrf.mxu1 }
  0xe0   : > { %v810_v23 = vpop.f32.mrf.mxu0  ;;  %v400_v28 = vrot.slane %v385_v22, 1  ;;  %v405_v29 = vadd.f32 %v809_v19, %v401_v27 }
  0xe1   : > { %v822_v24 = vpop.f32.mrf.mxu1 }
  0xe2   : > { %v306_v25 = vpop.f32.mrf.mxu0  ;;  %v404_v33 = vadd.f32 %v400_v28, %v303_v21 }
  0xe3   : > { %v388_v26 = vpop.f32.mrf.mxu1 }
  0xec   : > { %v833_v30 = vpop.f32.mrf.mxu0 }
  0xed   : > { %v495_v31 = vadd.f32 %v833_v30, %v405_v29  ;;  %v845_v32 = vpop.f32.mrf.mxu1 }
  0xee   : > { %v579_v34 = vrot.slane %v845_v32, 1  ;;  %v481_v35 = vpop.f32.mrf.mxu0 }
  0xef   : > { %v494_v36 = vadd.f32 %v481_v35, %v404_v33  ;;  %v563_v37 = vpop.f32.mrf.mxu1 }
  0xf0   : > { %v583_v38 = vadd.f32 %v579_v34, %v495_v31  ;;  %v578_v39 = vrot.slane %v563_v37, 1  ;;  %v834_v40 = vpop.f32.mrf.mxu0 }
  0xf1   : > { %v846_v41 = vpop.f32.mrf.mxu1 }
  0xf2   : > { %v585_v42 = vpack.c.bf16 %v583_v38, %v583_v38  ;;  %v601_v43 = vmul.f32 %v583_v38, %v583_v38  ;;  %v582_v44 = vadd.f32 %v578_v39, %v494_v36  ;;  %v484_v45 = vpop.f32.mrf.mxu0  ;;  %v591_v47 = vsel %vm589_vm2, %v583_v38, 0.0 }
  0xf3   : > { %v566_v46 = vpop.f32.mrf.mxu1 }
  0xf4   : > { %588 = vst.msk [vmem:[%s206_s6 + $0x1] sm:$0x1] %vm586_vm1, %v585_v42  ;;  %v584_v48 = vpack.c.bf16 %v582_v44, %v582_v44  ;;  %v590_v49 = vsel %vm589_vm2, %v582_v44, 0.0  ;;  %v600_v50 = vmul.f32 %v582_v44, %v582_v44  ;;  %v603_v52 = vsel %vm589_vm2, %v601_v43, 0.0 }
  0xf5   : > { %v592_v51 = vadd.f32 %v591_v47, %v590_v49 }
  0xf6   : > { %587 = vst.msk [vmem:[%s206_s6] sm:$0x1] %vm586_vm1, %v584_v48  ;;  %v602_v53 = vsel %vm589_vm2, %v600_v50, 0.0 }
  0xf7   : > { %v593_v54 = vrot.slane %v592_v51, 4  ;;  %v604_v55 = vadd.f32 %v603_v52, %v602_v53 }
  0xf9   : > { %v594_v56 = vadd.f32 %v593_v54, %v592_v51  ;;  %v605_v57 = vrot.slane %v604_v55, 4 }
  0xfb   : > { %v595_v58 = vrot.slane %v594_v56, 2  ;;  %v606_v59 = vadd.f32 %v605_v57, %v604_v55 }
  0xfd   : > { %v596_v60 = vadd.f32 %v595_v58, %v594_v56  ;;  %v607_v61 = vrot.slane %v606_v59, 2 }
  0xff   : > { %v597_v62 = vrot.slane %v596_v60, 1  ;;  %v608_v63 = vadd.f32 %v607_v61, %v606_v59 }
 0x101   : > { %v598_v0 = vadd.f32 %v597_v62, %v596_v60  ;;  %v609_v1 = vrot.slane %v608_v63, 1 }
 0x103   : > { %599 = vst.msk [vmem:[%s209_s9] sm:$0x1] %vm586_vm1, %v598_v0  ;;  %v610_v2 = vadd.f32 %v609_v1, %v608_v63 }
 0x105   : > { %611 = vst.msk [vmem:[%s212_s12] sm:$0x1] %vm586_vm1, %v610_v2 }
 0x106 PF: > { %s15_s15 = sadd.s32 1, %s881_s15  }
 0x107   : > { %p12_p4 = scmp.ge.s32.totalorder %s15_s15, 4  }
 0x109   :  { %14 = sbr.rel (!%p12_p4) target bundleno = 1 (0x1), region = 85 }

// kernel: resnet_forward.43
= control target key start
LH: loop header
LB: loop body
LE: loop exit
PB: predicated region body
PF: predicated region fallthrough
CT: control target
= control target key end

     0   :  { %s462_s15 = smov 0   ;;  %s497_s0 = inlined_call_operand.vmem [shape: f32[2,1,64], index: 0, kind: input, shape index: {}]   ;;  %s498_s1 = inlined_call_operand.vmem [shape: bf16[64,128], index: 1, kind: input, shape index: {}]   ;;  %s499_s2 = inlined_call_operand.vmem [shape: f32[2,1,128], index: 2, kind: output, shape index: {0}]   ;;  %s500_s3 = inlined_call_operand.vmem [shape: f32[2,1,128], index: 3, kind: output, shape index: {1}]   ;;  %s501_s4 = inlined_call_operand.vmem [shape: f32[2,1,128], index: 4, kind: output, shape index: {2}]  }
   0x1 LB: > { %s384_s16 = sadd.s32 4294967295, %s433_s15   ;;  %p388_p0 = scmp.ge.s32.totalorder %s433_s15, 1  ;;  %s433_s15 = sphi %s462_s15, %s15_s15  }
   0x2   : > { %p165_p1 = scmp.lt.s32.totalorder %s433_s15, 3 }
   0x4   : > { %p166_p2 = pnand %p388_p0, %p165_p1 }
   0x5   : > { %p193_p3 = scmp.lt.s32.totalorder (!%p166_p2), %s384_s16, 1 }
   0x6   : > { %169 = sbr.rel (%p166_p2) target bundleno = 227 (0xe3), region = 28 }
   0xb   : > { %v423_v0 = vld [vmem:[%s498_s1 + $0x18] sm:$0xff]   ;;  %v435_v1 = vmov 0.0   ;;  %v424_v2 = vld [vmem:[%s498_s1 + $0x10] sm:$0xff]   ;;  %vm436_vm0 = vmmov 0   ;;  %s503_s16 = smov (!%p193_p3, %s384_s16), 1  ;;  %v425_v3 = vld [vmem:[%s498_s1 + $0x8] sm:$0xff]  }
   0xc   : > { %401 = vmatprep.subr.bf16.mxu0 %v435_v1  ;;  %409 = vmatprep.mubr.msk.bf16.mxu0 %vm436_vm0, %v435_v1  ;;  %s195_s25 = scalar_lea.vmem %s497_s0, %s503_s16  ;;  %v426_v4 = vld [vmem:[%s498_s1] sm:$0xff]   ;;  %vm240_vm1 = vcmask 523264   ;;  %s198_s30 = scalar_lea.vmem %s499_s2, %s503_s16 }
   0xd   : > { %402 = vmatpush3.bf16.msra.mxu0 %v423_v0  ;;  %v206_v5 = vld [vmem:[%s195_s25] sm:$0x1]  ;;  %s201_s7 = scalar_lea.vmem %s500_s3, %s503_s16  ;;  %s204_s10 = scalar_lea.vmem %s501_s4, %s503_s16 }
   0xe   : > { %403 = vmatprep.subr.bf16.mxu0 %v435_v1  ;;  %v207_v6 = vpack.c.bf16 %v206_v5, %v206_v5 }
  0x11   : > { %404 = vmatpush3.bf16.msra.mxu0 %v424_v2 }
  0x12   : > { %405 = vmatprep.subr.bf16.mxu0 %v435_v1 }
  0x15   : > { %406 = vmatpush3.bf16.msra.mxu0 %v425_v3 }
  0x16   : > { %407 = vmatprep.subr.bf16.mxu0 %v435_v1 }
  0x19   : > { %408 = vmatpush3.bf16.msra.mxu0 %v426_v4 }
  0x1c   : > { %410 = vmatmul.mubr.msk.bf16.vlgmr.msra.gmra.mxu0 %vm240_vm1, %v207_v6 }
  0xdc   : > { %v278_v7 = vpop.f32.mrf.mxu0 }
  0xdd   : > { %284 = vst [vmem:[%s198_s30] sm:$0x1] %v278_v7  ;;  %286 = vst [vmem:[%s201_s7] sm:$0x1] %v278_v7  ;;  %v287_v8 = vmul.f32 %v278_v7, %v278_v7 }
  0xde   : > { %v411_v9 = vpop.f32.mrf.mxu0 }
  0xdf   : > { %289 = vst [vmem:[%s204_s10] sm:$0x1] %v287_v8 }
  0xe0   : > { %v281_v10 = vpop.f32.mrf.mxu0 }
  0xe2   : > { %v412_v11 = vpop.f32.mrf.mxu0 }
  0xe3 PF: > { %s15_s15 = sadd.s32 1, %s433_s15  }
  0xe4   : > { %p12_p4 = scmp.ge.s32.totalorder %s15_s15, 4  }
  0xe6   :  { %14 = sbr.rel (!%p12_p4) target bundleno = 1 (0x1), region = 82 }

// kernel: resnet_forward.40
= control target key start
LH: loop header
LB: loop body
LE: loop exit
PB: predicated region body
PF: predicated region fallthrough
CT: control target
= control target key end

     0   :  { %s494_s15 = smov 0   ;;  %s535_s0 = inlined_call_operand.vmem [shape: f32[2,4,64], index: 0, kind: input, shape index: {}]   ;;  %s536_s1 = inlined_call_operand.vmem [shape: bf16[64,32], index: 1, kind: input, shape index: {}]   ;;  %s537_s2 = inlined_call_operand.vmem [shape: bf16[2,4,32], index: 2, kind: output, shape index: {0}]   ;;  %s538_s3 = inlined_call_operand.vmem [shape: f32[2,1,32], index: 3, kind: output, shape index: {1}]   ;;  %s539_s4 = inlined_call_operand.vmem [shape: f32[2,1,32], index: 4, kind: output, shape index: {2}]  }
   0x1 LB: > { %s414_s16 = sadd.s32 4294967295, %s465_s15   ;;  %p418_p0 = scmp.ge.s32.totalorder %s465_s15, 1  ;;  %s465_s15 = sphi %s494_s15, %s15_s15  }
   0x2   : > { %p166_p1 = scmp.lt.s32.totalorder %s465_s15, 3 }
   0x4   : > { %p167_p2 = pnand %p418_p0, %p166_p1 }
   0x5   : > { %p196_p3 = scmp.lt.s32.totalorder (!%p167_p2), %s414_s16, 1 }
   0x6   : > { %170 = sbr.rel (%p167_p2) target bundleno = 237 (0xed), region = 28 }
   0xb   : > { %v455_v0 = vld [vmem:[%s536_s1 + $0x18] sm:$0xff]   ;;  %v467_v1 = vmov 0.0   ;;  %v456_v2 = vld [vmem:[%s536_s1 + $0x10] sm:$0xff]   ;;  %vm468_vm0 = vmmov 0   ;;  %s541_s16 = smov (!%p196_p3, %s414_s16), 1  ;;  %v457_v3 = vld [vmem:[%s536_s1 + $0x8] sm:$0xff]  }
   0xc   : > { %433 = vmatprep.subr.bf16.mxu0 %v467_v1  ;;  %441 = vmatprep.mubr.msk.bf16.mxu0 %vm468_vm0, %v467_v1  ;;  %s419_s23 = sshll.u32 %s541_s16, 2  ;;  %v458_v4 = vld [vmem:[%s536_s1] sm:$0xff]   ;;  %vm245_vm1 = vcmask 523264   ;;  %s420_s29 = sshll.u32 %s541_s16, 1  ;;  %vm292_vm2 = vcmask 257024   ;;  %vm290_vm3 = vcmask 254976  }
   0xd   : > { %434 = vmatpush3.bf16.msra.mxu0 %v455_v0  ;;  %s199_s26 = scalar_lea.vmem %s535_s0, %s419_s23  ;;  %s203_s6 = scalar_lea.vmem %s537_s2, %s420_s29  ;;  %vm300_vm4 = vcmask 253952  }
   0xe   : > { %435 = vmatprep.subr.bf16.mxu0 %v467_v1  ;;  %v211_v5 = vld [vmem:[%s199_s26] sm:$0xf]  ;;  %s206_s9 = scalar_lea.vmem %s538_s3, %s541_s16  ;;  %s209_s12 = scalar_lea.vmem %s539_s4, %s541_s16 }
   0xf   : > { %v212_v6 = vpack.c.bf16 %v211_v5, %v211_v5 }
  0x11   : > { %436 = vmatpush3.bf16.msra.mxu0 %v456_v2 }
  0x12   : > { %437 = vmatprep.subr.bf16.mxu0 %v467_v1 }
  0x15   : > { %438 = vmatpush3.bf16.msra.mxu0 %v457_v3 }
  0x16   : > { %439 = vmatprep.subr.bf16.mxu0 %v467_v1 }
  0x19   : > { %440 = vmatpush3.bf16.msra.mxu0 %v458_v4 }
  0x1c   : > { %442 = vmatmul.mubr.msk.bf16.vlgmr.msra.gmra.mxu0 %vm245_vm1, %v212_v6 }
  0xdc   : > { %v283_v7 = vpop.f32.mrf.mxu0 }
  0xdd   : > { %v289_v8 = vpack.c.bf16 %v283_v7, %v283_v7  ;;  %v293_v9 = vsel %vm292_vm2, %v283_v7, 0.0  ;;  %v302_v10 = vmul.f32 %v283_v7, %v283_v7 }
  0xde   : > { %v294_v11 = vrot.slane %v293_v9, 4  ;;  %v443_v12 = vpop.f32.mrf.mxu0 }
  0xdf   : > { %291 = vst.msk [vmem:[%s203_s6] sm:$0x3] %vm290_vm3, %v289_v8  ;;  %v303_v13 = vsel %vm292_vm2, %v302_v10, 0.0 }
  0xe0   : > { %v295_v14 = vadd.f32 %v294_v11, %v293_v9  ;;  %v304_v15 = vrot.slane %v303_v13, 4  ;;  %v286_v16 = vpop.f32.mrf.mxu0 }
  0xe2   : > { %v296_v17 = vrot.slane %v295_v14, 2  ;;  %v305_v18 = vadd.f32 %v304_v15, %v303_v13  ;;  %v444_v19 = vpop.f32.mrf.mxu0 }
  0xe4   : > { %v297_v20 = vadd.f32 %v296_v17, %v295_v14  ;;  %v306_v21 = vrot.slane %v305_v18, 2 }
  0xe6   : > { %v298_v22 = vrot.slane %v297_v20, 1  ;;  %v307_v23 = vadd.f32 %v306_v21, %v305_v18 }
  0xe8   : > { %v299_v24 = vadd.f32 %v298_v22, %v297_v20  ;;  %v308_v25 = vrot.slane %v307_v23, 1 }
  0xea   : > { %301 = vst.msk [vmem:[%s206_s9] sm:$0x1] %vm300_vm4, %v299_v24  ;;  %v309_v26 = vadd.f32 %v308_v25, %v307_v23 }
  0xec   : > { %310 = vst.msk [vmem:[%s209_s12] sm:$0x1] %vm300_vm4, %v309_v26 }
  0xed PF: > { %s15_s15 = sadd.s32 1, %s465_s15  }
  0xee   : > { %p12_p4 = scmp.ge.s32.totalorder %s15_s15, 4  }
  0xf0   :  { %14 = sbr.rel (!%p12_p4) target bundleno = 1 (0x1), region = 82 }

// kernel: resnet_forward.42
= control target key start
LH: loop header
LB: loop body
LE: loop exit
PB: predicated region body
PF: predicated region fallthrough
CT: control target
= control target key end

     0   :  { %s506_s21 = smov 0   ;;  %s541_s0 = inlined_call_operand.vmem [shape: bf16[2,1,32], index: 0, kind: input, shape index: {}]   ;;  %s542_s1 = inlined_call_operand.vmem [shape: f32[1,32], index: 1, kind: input, shape index: {}]   ;;  %s543_s2 = inlined_call_operand.vmem [shape: f32[1,32], index: 2, kind: input, shape index: {}]   ;;  %s544_s3 = inlined_call_operand.vmem [shape: bf16[32,128], index: 3, kind: input, shape index: {}]   ;;  %s545_s4 = inlined_call_operand.vmem [shape: f32[2,1,128], index: 4, kind: output, shape index: {0}]   ;;  %s546_s5 = inlined_call_operand.vmem [shape: f32[2,1,128], index: 5, kind: output, shape index: {1}]   ;;  %s547_s6 = inlined_call_operand.vmem [shape: f32[2,1,128], index: 6, kind: output, shape index: {2}]  }
   0x1 LB: > { %s428_s22 = sadd.s32 4294967295, %s467_s21   ;;  %p432_p0 = scmp.ge.s32.totalorder %s467_s21, 1  ;;  %s467_s21 = sphi %s506_s21, %s17_s21  }
   0x2   : > { %p215_p1 = scmp.lt.s32.totalorder %s467_s21, 3 }
   0x4   : > { %p216_p2 = pnand %p432_p0, %p215_p1 }
   0x5   : > { %p247_p3 = scmp.lt.s32.totalorder (!%p216_p2), %s428_s22, 1 }
   0x6   : > { %219 = sbr.rel (%p216_p2) target bundleno = 223 (0xdf), region = 36 }
   0xb   : > { %v459_v0 = vld [vmem:[%s544_s3 + $0x8] sm:$0xff]   ;;  %v469_v1 = vmov 0.0   ;;  %v460_v2 = vld [vmem:[%s544_s3] sm:$0xff]   ;;  %vm470_vm0 = vmmov 0   ;;  %s549_s22 = smov (!%p247_p3, %s428_s22), 1  ;;  %vm284_vm1 = vcmask 261120  }
   0xc   : > { %441 = vmatprep.subr.bf16.mxu0 %v469_v1  ;;  %445 = vmatprep.mubr.msk.bf16.mxu0 %vm470_vm0, %v469_v1  ;;  %s249_s29 = scalar_lea.vmem %s541_s0, %s549_s22  ;;  %v261_v4 = vld [vmem:[%s542_s1] sm:$0x1]  ;;  %s252_s12 = scalar_lea.vmem %s545_s4, %s549_s22 }
   0xd   : > { %442 = vmatpush3.bf16.msra.mxu0 %v459_v0  ;;  %v260_v3 = vld [vmem:[%s249_s29] sm:$0x1]  ;;  %s255_s15 = scalar_lea.vmem %s546_s5, %s549_s22  ;;  %s258_s18 = scalar_lea.vmem %s547_s6, %s549_s22 }
   0xe   : > { %443 = vmatprep.subr.bf16.mxu0 %v469_v1  ;;  %v262_v5 = vunpack.c.l.bf16 %v260_v3  ;;  %v264_v6 = vld [vmem:[%s543_s2] sm:$0x1] }
  0x10   : > { %v263_v7 = vmul.f32 %v262_v5, %v261_v4 }
  0x11   : > { %444 = vmatpush3.bf16.msra.mxu0 %v460_v2 }
  0x12   : > { %v265_v8 = vadd.f32 %v264_v6, %v263_v7 }
  0x14   : > { %v266_v9 = vmax.f32 %v265_v8, 0.0 }
  0x16   : > { %v267_v10 = vpack.c.bf16 %v266_v9, %v266_v9 }
  0x18   : > { %446 = vmatmul.mubr.msk.bf16.vlgmr.msra.gmra.mxu0 %vm284_vm1, %v267_v10 }
  0xd8   : > { %v322_v11 = vpop.f32.mrf.mxu0 }
  0xd9   : > { %328 = vst [vmem:[%s252_s12] sm:$0x1] %v322_v11  ;;  %330 = vst [vmem:[%s255_s15] sm:$0x1] %v322_v11  ;;  %v331_v12 = vmul.f32 %v322_v11, %v322_v11 }
  0xda   : > { %v447_v13 = vpop.f32.mrf.mxu0 }
  0xdb   : > { %333 = vst [vmem:[%s258_s18] sm:$0x1] %v331_v12 }
  0xdc   : > { %v325_v14 = vpop.f32.mrf.mxu0 }
  0xde   : > { %v448_v15 = vpop.f32.mrf.mxu0 }
  0xdf PF: > { %s17_s21 = sadd.s32 1, %s467_s21  }
  0xe0   : > { %p14_p4 = scmp.ge.s32.totalorder %s17_s21, 4  }
  0xe2   :  { %16 = sbr.rel (!%p14_p4) target bundleno = 1 (0x1), region = 90 }

// kernel: resnet_forward.44
= control target key start
LH: loop header
LB: loop body
LE: loop exit
PB: predicated region body
PF: predicated region fallthrough
CT: control target
= control target key end

     0   :  { %s114_s0 = inlined_call_operand.vmem [shape: f32[2,1,128], index: 0, kind: input, shape index: {}]   ;;  %s115_s1 = inlined_call_operand.vmem [shape: f32[1,1,128], index: 1, kind: input, shape index: {}]   ;;  %s116_s2 = inlined_call_operand.vmem [shape: f32[1,1,128], index: 2, kind: input, shape index: {}]   ;;  %s117_s3 = inlined_call_operand.vmem [shape: f32[2,1,128], index: 3, kind: input, shape index: {}]   ;;  %s118_s4 = inlined_call_operand.vmem [shape: f32[1,1,128], index: 4, kind: input, shape index: {}]   ;;  %s119_s5 = inlined_call_operand.vmem [shape: f32[1,1,128], index: 5, kind: input, shape index: {}]   ;;  %s120_s6 = inlined_call_operand.vmem [shape: f32[2,1,128], index: 6, kind: output, shape index: {}]  }
   0x1   :  { %v23_v0 = vld [vmem:[%s114_s0] sm:$0x1]  ;;  %v24_v7 = vld [vmem:[%s114_s0 + $0x1] sm:$0x1] }
   0x2   :  { %v25_v1 = vld [vmem:[%s115_s1] sm:$0x1]  ;;  %v32_v8 = vld [vmem:[%s117_s3 + $0x1] sm:$0x1] }
   0x3   :  { %v28_v2 = vld [vmem:[%s116_s2] sm:$0x1]  ;;  %v26_v3 = vmul.f32 %v25_v1, %v23_v0  ;;  %v27_v10 = vmul.f32 %v25_v1, %v24_v7 }
   0x4   :  { %v31_v4 = vld [vmem:[%s117_s3] sm:$0x1] }
   0x5   :  { %v33_v5 = vld [vmem:[%s118_s4] sm:$0x1]  ;;  %v29_v9 = vadd.f32 %v28_v2, %v26_v3  ;;  %v30_v14 = vadd.f32 %v28_v2, %v27_v10 }
   0x6   :  { %v34_v6 = vmul.f32 %v33_v5, %v31_v4  ;;  %v35_v11 = vmul.f32 %v33_v5, %v32_v8  ;;  %v38_v12 = vld [vmem:[%s119_s5] sm:$0x1] }
   0x8   :  { %v36_v13 = vadd.f32 %v34_v6, %v29_v9  ;;  %v37_v16 = vadd.f32 %v35_v11, %v30_v14 }
   0xa   :  { %v39_v15 = vadd.f32 %v38_v12, %v36_v13  ;;  %v40_v18 = vadd.f32 %v38_v12, %v37_v16 }
   0xc   :  { %v41_v17 = vmax.f32 %v39_v15, 0.0  ;;  %v42_v19 = vmax.f32 %v40_v18, 0.0 }
   0xe   :  { %43 = vst [vmem:[%s120_s6] sm:$0x1] %v41_v17  ;;  %44 = vst [vmem:[%s120_s6 + $0x1] sm:$0x1] %v42_v19 }

// kernel: resnet_forward.41
= control target key start
LH: loop header
LB: loop body
LE: loop exit
PB: predicated region body
PF: predicated region fallthrough
CT: control target
= control target key end

     0   :  { %s1054_s15 = smov 0   ;;  %s1226_s0 = inlined_call_operand.vmem [shape: bf16[2,2,16,128], index: 0, kind: input, shape index: {}]   ;;  %s1227_s1 = inlined_call_operand.vmem [shape: bf16[4,128,32], index: 1, kind: input, shape index: {}]   ;;  %s1228_s2 = inlined_call_operand.vmem [shape: bf16[2,1,1,32], index: 2, kind: output, shape index: {0}]   ;;  %s1229_s3 = inlined_call_operand.vmem [shape: f32[2,1,32], index: 3, kind: output, shape index: {1}]   ;;  %s1230_s4 = inlined_call_operand.vmem [shape: f32[2,1,32], index: 4, kind: output, shape index: {2}]  }
   0x1 LB: > { %s767_s16 = sadd.s32 4294967295, %s1025_s15   ;;  %p771_p0 = scmp.ge.s32.totalorder %s1025_s15, 1  ;;  %s1025_s15 = sphi %s1054_s15, %s15_s15  }
   0x2   : > { %p167_p1 = scmp.lt.s32.totalorder %s1025_s15, 3 }
   0x4   : > { %p168_p2 = pnand %p771_p0, %p167_p1 }
   0x5   : > { %p197_p3 = scmp.lt.s32.totalorder (!%p168_p2), %s767_s16, 1 }
   0x6   : > { %171 = sbr.rel (%p168_p2) target bundleno = 278 (0x116), region = 28 }
   0xb   : > { %v985_v0 = vld [vmem:[%s1227_s1 + $0x38] sm:$0xff]   ;;  %v1027_v1 = vmov 0.0   ;;  %v987_v3 = vld [vmem:[%s1227_s1 + $0x30] sm:$0xff]   ;;  %vm1028_vm0 = vmmov 0   ;;  %v989_v5 = vld [vmem:[%s1227_s1 + $0x28] sm:$0xff]   ;;  %s1232_s16 = smov (!%p197_p3, %s767_s16), 1 }
   0xc   : > { %895 = vmatprep.subr.bf16.mxu0 %v1027_v1  ;;  %915 = vmatprep.subr.bf16.mxu1 %v1027_v1  ;;  %v986_v2 = vld [vmem:[%s1227_s1 + $0x78] sm:$0xff]   ;;  %v988_v4 = vld [vmem:[%s1227_s1 + $0x70] sm:$0xff]   ;;  %v990_v6 = vld [vmem:[%s1227_s1 + $0x68] sm:$0xff]   ;;  %s858_s7 = sshll.u32 %s1232_s16, 4  ;;  %s204_s13 = scalar_lea.vmem %s1228_s2, %s1232_s16  ;;  %vm658_vm1 = vcmask 253952  }
   0xd   : > { %896 = vmatpush3.bf16.msra.mxu0 %v985_v0  ;;  %911 = vmatprep.mubr.msk.bf16.mxu0 %vm1028_vm0, %v1027_v1  ;;  %v991_v7 = vld [vmem:[%s1227_s1 + $0x20] sm:$0xff]   ;;  %v993_v9 = vld [vmem:[%s1227_s1 + $0x18] sm:$0xff]   ;;  %s1111_s14 = scalar_lea.vmem %s1226_s0, %s858_s7  ;;  %v995_v11 = vld [vmem:[%s1227_s1 + $0x10] sm:$0xff]   ;;  %vm659_vm2 = vsmask.f32 256  ;;  %s207_s19 = scalar_lea.vmem %s1229_s3, %s1232_s16 }
   0xe   : > { %916 = vmatpush3.bf16.msra.mxu1 %v986_v2  ;;  %897 = vmatprep.subr.bf16.mxu0 %v1027_v1  ;;  %v992_v8 = vld [vmem:[%s1227_s1 + $0x60] sm:$0xff]   ;;  %v994_v10 = vld [vmem:[%s1227_s1 + $0x58] sm:$0xff]   ;;  %v996_v12 = vld [vmem:[%s1227_s1 + $0x50] sm:$0xff]   ;;  %s210_s22 = scalar_lea.vmem %s1230_s4, %s1232_s16 }
   0xf   : > { %917 = vmatprep.subr.bf16.mxu1 %v1027_v1  ;;  %931 = vmatprep.mubr.msk.bf16.mxu1 %vm1028_vm0, %v1027_v1  ;;  %v997_v13 = vld [vmem:[%s1227_s1 + $0x8] sm:$0xff]   ;;  %v999_v15 = vld [vmem:[%s1227_s1] sm:$0xff]   ;;  %v1002_v18 = vld [vmem:[%s1227_s1 + $0xb8] sm:$0xff]  }
  0x10   : > { %v998_v14 = vld [vmem:[%s1227_s1 + $0x48] sm:$0xff]   ;;  %v1000_v16 = vld [vmem:[%s1227_s1 + $0x40] sm:$0xff]   ;;  %v1003_v19 = vld [vmem:[%s1227_s1 + $0xf8] sm:$0xff]  }
  0x11   : > { %898 = vmatpush3.bf16.msra.mxu0 %v987_v3  ;;  %v1001_v17 = vld [vmem:[%s1111_s14] sm:$0xff]   ;;  %v1004_v20 = vld [vmem:[%s1227_s1 + $0xb0] sm:$0xff]   ;;  %v1006_v22 = vld [vmem:[%s1227_s1 + $0xa8] sm:$0xff]  }
  0x12   : > { %918 = vmatpush3.bf16.msra.mxu1 %v988_v4  ;;  %899 = vmatprep.subr.bf16.mxu0 %v1027_v1  ;;  %v1005_v21 = vld [vmem:[%s1227_s1 + $0xf0] sm:$0xff]   ;;  %v1007_v23 = vld [vmem:[%s1227_s1 + $0xe8] sm:$0xff]   ;;  %v1008_v24 = vld [vmem:[%s1227_s1 + $0xa0] sm:$0xff]  }
  0x13   : > { %919 = vmatprep.subr.bf16.mxu1 %v1027_v1  ;;  %v1009_v25 = vld [vmem:[%s1227_s1 + $0xe0] sm:$0xff]   ;;  %v1010_v26 = vld [vmem:[%s1227_s1 + $0x98] sm:$0xff]   ;;  %v1012_v28 = vld [vmem:[%s1227_s1 + $0x90] sm:$0xff]  }
  0x14   : > { %v1011_v27 = vld [vmem:[%s1227_s1 + $0xd8] sm:$0xff]   ;;  %v1013_v29 = vld [vmem:[%s1227_s1 + $0xd0] sm:$0xff]   ;;  %v1014_v30 = vld [vmem:[%s1227_s1 + $0x88] sm:$0xff]  }
  0x15   : > { %900 = vmatpush3.bf16.msra.mxu0 %v989_v5  ;;  %v1015_v31 = vld [vmem:[%s1227_s1 + $0xc8] sm:$0xff]   ;;  %v1016_v32 = vld [vmem:[%s1227_s1 + $0x80] sm:$0xff]   ;;  %vm660_vm3 = vmand %vm658_vm1, %vm659_vm2 }
  0x16   : > { %920 = vmatpush3.bf16.msra.mxu1 %v990_v6  ;;  %901 = vmatprep.subr.bf16.mxu0 %v1027_v1  ;;  %v1017_v33 = vld [vmem:[%s1227_s1 + $0xc0] sm:$0xff]   ;;  %v1018_v34 = vld [vmem:[%s1111_s14 + $0x8] sm:$0xff]  }
  0x17   : > { %921 = vmatprep.subr.bf16.mxu1 %v1027_v1  ;;  %v661_v53 = vld [vmem:[%s204_s13] sm:$0x1] }
  0x19   : > { %902 = vmatpush3.bf16.msra.mxu0 %v991_v7 }
  0x1a   : > { %922 = vmatpush3.bf16.msra.mxu1 %v992_v8  ;;  %903 = vmatprep.subr.bf16.mxu0 %v1027_v1 }
  0x1b   : > { %923 = vmatprep.subr.bf16.mxu1 %v1027_v1 }
  0x1d   : > { %904 = vmatpush3.bf16.msra.mxu0 %v993_v9 }
  0x1e   : > { %924 = vmatpush3.bf16.msra.mxu1 %v994_v10  ;;  %905 = vmatprep.subr.bf16.mxu0 %v1027_v1 }
  0x1f   : > { %925 = vmatprep.subr.bf16.mxu1 %v1027_v1 }
  0x21   : > { %906 = vmatpush3.bf16.msra.mxu0 %v995_v11 }
  0x22   : > { %926 = vmatpush3.bf16.msra.mxu1 %v996_v12  ;;  %907 = vmatprep.subr.bf16.mxu0 %v1027_v1 }
  0x23   : > { %927 = vmatprep.subr.bf16.mxu1 %v1027_v1 }
  0x25   : > { %908 = vmatpush3.bf16.msra.mxu0 %v997_v13 }
  0x26   : > { %928 = vmatpush3.bf16.msra.mxu1 %v998_v14  ;;  %909 = vmatprep.subr.bf16.mxu0 %v1027_v1 }
  0x27   : > { %929 = vmatprep.subr.bf16.mxu1 %v1027_v1 }
  0x29   : > { %910 = vmatpush3.bf16.msra.mxu0 %v999_v15 }
  0x2a   : > { %930 = vmatpush3.bf16.msra.mxu1 %v1000_v16  ;;  %935 = vmatprep.subr.bf16.mxu0 %v1027_v1 }
  0x2b   : > { %955 = vmatprep.subr.bf16.mxu1 %v1027_v1 }
  0x2c   : > { %912 = vmatmul.mubr.bf16.vlgmr.msra.gmra.mxu0 %v1001_v17 }
  0x2d   : > { %932 = vmatmul.mubr.bf16.vlgmr.msra.gmra.mxu1 %v1001_v17  ;;  %936 = vmatpush3.bf16.msra.mxu0 %v1002_v18 }
  0x2e   : > { %956 = vmatpush3.bf16.msra.mxu1 %v1003_v19  ;;  %937 = vmatprep.subr.bf16.mxu0 %v1027_v1 }
  0x2f   : > { %957 = vmatprep.subr.bf16.mxu1 %v1027_v1  ;;  %951 = vmatprep.mubr.msk.bf16.mxu0 %vm1028_vm0, %v1027_v1 }
  0x30   : > { %971 = vmatprep.mubr.msk.bf16.mxu1 %vm1028_vm0, %v1027_v1 }
  0x31   : > { %938 = vmatpush3.bf16.msra.mxu0 %v1004_v20 }
  0x32   : > { %958 = vmatpush3.bf16.msra.mxu1 %v1005_v21  ;;  %939 = vmatprep.subr.bf16.mxu0 %v1027_v1 }
  0x33   : > { %959 = vmatprep.subr.bf16.mxu1 %v1027_v1 }
  0x35   : > { %940 = vmatpush3.bf16.msra.mxu0 %v1006_v22 }
  0x36   : > { %960 = vmatpush3.bf16.msra.mxu1 %v1007_v23  ;;  %941 = vmatprep.subr.bf16.mxu0 %v1027_v1 }
  0x37   : > { %961 = vmatprep.subr.bf16.mxu1 %v1027_v1 }
  0x39   : > { %942 = vmatpush3.bf16.msra.mxu0 %v1008_v24 }
  0x3a   : > { %962 = vmatpush3.bf16.msra.mxu1 %v1009_v25  ;;  %943 = vmatprep.subr.bf16.mxu0 %v1027_v1 }
  0x3b   : > { %963 = vmatprep.subr.bf16.mxu1 %v1027_v1 }
  0x3d   : > { %944 = vmatpush3.bf16.msra.mxu0 %v1010_v26 }
  0x3e   : > { %964 = vmatpush3.bf16.msra.mxu1 %v1011_v27  ;;  %945 = vmatprep.subr.bf16.mxu0 %v1027_v1 }
  0x3f   : > { %965 = vmatprep.subr.bf16.mxu1 %v1027_v1 }
  0x41   : > { %946 = vmatpush3.bf16.msra.mxu0 %v1012_v28 }
  0x42   : > { %966 = vmatpush3.bf16.msra.mxu1 %v1013_v29  ;;  %947 = vmatprep.subr.bf16.mxu0 %v1027_v1 }
  0x43   : > { %967 = vmatprep.subr.bf16.mxu1 %v1027_v1 }
  0x45   : > { %948 = vmatpush3.bf16.msra.mxu0 %v1014_v30 }
  0x46   : > { %968 = vmatpush3.bf16.msra.mxu1 %v1015_v31  ;;  %949 = vmatprep.subr.bf16.mxu0 %v1027_v1 }
  0x47   : > { %969 = vmatprep.subr.bf16.mxu1 %v1027_v1 }
  0x49   : > { %950 = vmatpush3.bf16.msra.mxu0 %v1016_v32 }
  0x4a   : > { %970 = vmatpush3.bf16.msra.mxu1 %v1017_v33 }
  0x4c   : > { %952 = vmatmul.mubr.bf16.vlgmr.msra.gmra.mxu0 %v1018_v34 }
  0x4d   : > { %972 = vmatmul.mubr.bf16.vlgmr.msra.gmra.mxu1 %v1018_v34 }
  0xec   : > { %v320_v35 = vpop.f32.mrf.mxu0 }
  0xed   : > { %v426_v36 = vpop.f32.mrf.mxu1 }
  0xee   : > { %v913_v37 = vpop.f32.mrf.mxu0  ;;  %v433_v43 = vrot.slane %v426_v36, 1 }
  0xef   : > { %v933_v38 = vpop.f32.mrf.mxu1 }
  0xf0   : > { %v323_v39 = vpop.f32.mrf.mxu0  ;;  %v435_v44 = vadd.f32 %v433_v43, %v320_v35 }
  0xf1   : > { %v429_v40 = vpop.f32.mrf.mxu1 }
  0xf2   : > { %v914_v41 = vpop.f32.mrf.mxu0 }
  0xf3   : > { %v934_v42 = vpop.f32.mrf.mxu1 }
 0x10c   : > { %v541_v45 = vpop.f32.mrf.mxu0 }
 0x10d   : > { %v547_v46 = vadd.f32 %v541_v45, %v435_v44  ;;  %v647_v47 = vpop.f32.mrf.mxu1 }
 0x10e   : > { %v654_v48 = vrot.slane %v647_v47, 1  ;;  %v953_v49 = vpop.f32.mrf.mxu0 }
 0x10f   : > { %v973_v50 = vpop.f32.mrf.mxu1 }
 0x110   : > { %v656_v51 = vadd.f32 %v654_v48, %v547_v46  ;;  %v544_v52 = vpop.f32.mrf.mxu0 }
 0x111   : > { %v650_v54 = vpop.f32.mrf.mxu1 }
 0x112   : > { %v657_v55 = vpack.c.bf16 %v656_v51, %v656_v51  ;;  %666 = vst.msk [vmem:[%s207_s19] sm:$0x1] %vm658_vm1, %v656_v51  ;;  %v667_v56 = vmul.f32 %v656_v51, %v656_v51  ;;  %v954_v57 = vpop.f32.mrf.mxu0 }
 0x113   : > { %v974_v58 = vpop.f32.mrf.mxu1 }
 0x114   : > { %v662_v59 = vsel %vm660_vm3, %v657_v55, %v661_v53  ;;  %669 = vst.msk [vmem:[%s210_s22] sm:$0x1] %vm658_vm1, %v667_v56 }
 0x115   : > { %663 = vst [vmem:[%s204_s13] sm:$0x1] %v662_v59 }
 0x116 PF: > { %s15_s15 = sadd.s32 1, %s1025_s15  }
 0x117   : > { %p12_p4 = scmp.ge.s32.totalorder %s15_s15, 4  }
 0x119   :  { %14 = sbr.rel (!%p12_p4) target bundleno = 1 (0x1), region = 85 }

// kernel: resnet_forward.45
= control target key start
LH: loop header
LB: loop body
LE: loop exit
PB: predicated region body
PF: predicated region fallthrough
CT: control target
= control target key end

     0   :  { %v229_v1 = vmov 0.0   ;;  %vm230_vm0 = vmmov 0   ;;  %s288_s0 = inlined_call_operand.vmem [shape: f32[2,1,128], index: 0, kind: input, shape index: {}]   ;;  %s289_s1 = inlined_call_operand.vmem [shape: bf16[128,10], index: 1, kind: input, shape index: {}]   ;;  %s290_s2 = inlined_call_operand.vmem [shape: f32[1,10], index: 2, kind: input, shape index: {}]   ;;  %s291_s3 = inlined_call_operand.hbm [shape: f32[2,10], index: 3, kind: output, shape index: {}]  }
   0x1   :  { %v199_v0 = vld [vmem:[%s289_s1 + $0x38] sm:$0xff]   ;;  %176 = vmatprep.subr.bf16.mxu0 %v229_v1  ;;  %v200_v2 = vld [vmem:[%s289_s1 + $0x30] sm:$0xff]   ;;  %192 = vmatprep.mubr.msk.bf16.mxu0 %vm230_vm0, %v229_v1  ;;  %v201_v3 = vld [vmem:[%s289_s1 + $0x28] sm:$0xff]  }
   0x2   :  { %177 = vmatpush3.bf16.msra.mxu0 %v199_v0 }
   0x3   :  { %178 = vmatprep.subr.bf16.mxu0 %v229_v1 }
   0x6   :  { %179 = vmatpush3.bf16.msra.mxu0 %v200_v2 }
   0x7   :  { %180 = vmatprep.subr.bf16.mxu0 %v229_v1 }
   0x8   :  { %8 = vsyncpa [#allocation3], 0  ;;  %v202_v4 = vld [vmem:[%s289_s1 + $0x20] sm:$0xff]   ;;  %v203_v6 = vld [vmem:[%s289_s1 + $0x18] sm:$0xff]   ;;  %vm50_vm1 = vcmask 1041409   ;;  %s231_s6 = smov [#allocation2]  }
   0x9   :  { %v17_v5 = vld [vmem:[%s288_s0 + $0x1] sm:$0x1]  ;;  %v16_v8 = vld [vmem:[%s288_s0] sm:$0x1]  ;;  %v204_v9 = vld [vmem:[%s289_s1 + $0x10] sm:$0xff]   ;;  %s150_s7 = sshll.u32 %s231_s6, 4  ;;  %s151_s7 = int_to_ptr.vmem [resolvable:$true] %s150_s7 }
   0xa   :  { %181 = vmatpush3.bf16.msra.mxu0 %v201_v3  ;;  %v21_v7 = vpack.c.bf16 %v17_v5, %v17_v5  ;;  %v20_v10 = vpack.c.bf16 %v16_v8, %v16_v8  ;;  %v205_v12 = vld [vmem:[%s289_s1 + $0x8] sm:$0xff]   ;;  %v206_v15 = vld [vmem:[%s289_s1] sm:$0xff]   ;;  %vm142_vm2 = vcmask 74752   ;;  %s207_s8 = scalar_lea.vmem %s151_s7, 32  ;;  %p212_p1 = scmp.lt.s32.totalorder %s151_s7, %s151_s7 }
   0xb   :  { %182 = vmatprep.subr.bf16.mxu0 %v229_v1  ;;  %v158_v18 = vld [vmem:[%s290_s2] ss:$0 sm:$0xff]  ;;  %p208_p0 = scmp.ne.s32.totalorder %s151_s7, %s207_s8  ;;  %p213_p2 = scmp.lt.s32.totalorder %s207_s8, %s207_s8 }
   0xc   :  { %v48_v11 = vunpack.c.l.b16 %v21_v7  ;;  %v47_v13 = vunpack.c.l.b16 %v20_v10 }
   0xd   :  { %p214_p3 = por %p213_p2, %p212_p1 }
   0xe   :  { %183 = vmatpush3.bf16.msra.mxu0 %v202_v4  ;;  %v49_v14 = vrot.slane %v48_v11, 7 }
   0xf   :  { %184 = vmatprep.subr.bf16.mxu0 %v229_v1  ;;  %p215_p4 = pnand %p214_p3, %p208_p0 }
  0x10   :  { %v51_v16 = vsel %vm50_vm1, %v49_v14, %v47_v13 }
  0x11   :  { %v52_v17 = vpack.c.b16 %v51_v16, %v51_v16 }
  0x12   :  { %185 = vmatpush3.bf16.msra.mxu0 %v203_v6 }
  0x13   :  { %186 = vmatprep.subr.bf16.mxu0 %v229_v1 }
  0x16   :  { %187 = vmatpush3.bf16.msra.mxu0 %v204_v9 }
  0x17   :  { %188 = vmatprep.subr.bf16.mxu0 %v229_v1 }
  0x1a   :  { %189 = vmatpush3.bf16.msra.mxu0 %v205_v12 }
  0x1b   :  { %190 = vmatprep.subr.bf16.mxu0 %v229_v1 }
  0x1e   :  { %191 = vmatpush3.bf16.msra.mxu0 %v206_v15 }
  0x21   :  { %193 = vmatmul.mubr.bf16.vlgmr.msra.gmra.mxu0 %v52_v17 }
  0xe1   :  { %v136_v19 = vpop.f32.mrf.mxu0 }
  0xe2   :  { %v137_v20 = vadd.f32 %v158_v18, %v136_v19 }
  0xe3   :  { %v194_v21 = vpop.f32.mrf.mxu0 }
  0xe4   :  { %143 = vst.msk [vmem:[#allocation2] sm:$0x3] %vm142_vm2, %v137_v20 }
  0xe5   :  { %v139_v22 = vpop.f32.mrf.mxu0 }
  0xe6   :  { %218 = shalt.err (!%p215_p4)
}
  0xe7   :  { %153 = dma.vmem_to_hbm [thread:$0]  %s151_s7, 32, %s291_s3, [#allocation3]   ;;  %v195_v23 = vpop.f32.mrf.mxu0 }
  0xe8   :  { %227 = dma.done.wait [#allocation3], 32  }
  0xe9   :  { %228 = vsyncadd [#allocation3], 4294967264 }
  0xea   :  { %157 = vsyncpa [#allocation3], 1 }

</bundles_post_ra>
